<compile_context>
chip_gen: v6e
topology: v6e:2x2x1
jax: 0.10.0
libtpu: 0.0.40
codegen_flags: <defaults>
</compile_context>

<pallas_src>
import functools

import jax
import jax.numpy as jnp
from jax.experimental import pallas as pl
from jax.experimental.pallas import tpu as pltpu

_LRELU_SLOPE = 0.01   # nn.LeakyReLU default
_IN_EPS = 1e-5        # nn.InstanceNorm2d default


def _round_up(x, m):
    return ((x + m - 1) // m) * m


def _vmem_limit_bytes():
    """Generation-aware VMEM budget: ~48 MiB on v7x (64 MiB phys), ~96 MiB on
    v5e/v6e (128 MiB phys)."""
    phys = 64 * 1024 * 1024
    try:
        info = pltpu.get_tpu_info()
        phys = int(getattr(info, "vmem_capacity_bytes", phys))
    except Exception:
        pass
    return min((phys * 3) // 4, 100 * 1024 * 1024)


_VMEM_LIMIT = _vmem_limit_bytes()


# --------------------------------------------------------------------------
# Layout helpers (XLA-side plumbing)
# --------------------------------------------------------------------------
def _space_to_depth(h_nhwc):
    """Zero-pad by 1 then 2x2 space-to-depth.
    (B, H, W, C) -> (B, Ho+1, Wo+1, 2, 2, C), plus (Ho, Wo)."""
    B, H, W, C = h_nhwc.shape
    Ho, Wo = H // 2, W // 2
    xp = jnp.pad(h_nhwc, ((0, 0), (1, 1), (1, 1), (0, 0)))
    xs = xp.reshape(B, Ho + 1, 2, Wo + 1, 2, C).transpose(0, 1, 3, 2, 4, 5)
    return xs, Ho, Wo


def _pack_weight(w_oihw):
    """(Cout, Cin, 4, 4) -> (4, 4*Cin, Cout) bf16.
    Leading index is 2*dh+dw; K ordering is (ph_h, ph_w, cin), matching the
    space-to-depth channel packing."""
    Cout, Cin = w_oihw.shape[0], w_oihw.shape[1]
    w = jnp.transpose(w_oihw, (2, 3, 1, 0))                # (kh, kw, cin, cout)
    w = w.reshape(2, 2, 2, 2, Cin, Cout)                   # (dh, ph_h, dw, ph_w, ., .)
    w = w.transpose(0, 2, 1, 3, 4, 5).reshape(4, 4 * Cin, Cout)
    return w.astype(jnp.bfloat16)


# --------------------------------------------------------------------------
# Kernel 1: fused conv (4 shifted matmuls) + InstanceNorm + LeakyReLU epilogue
# --------------------------------------------------------------------------
def _fused_conv_kernel(*refs, Wp, L, neg_slope, fuse_norm, inv_n, eps):
    """One batch instance.  Output lives in the padded (Ho, Wo+1) geometry;
    the junk column (wo == Wo) is excluded from the IN stats by a masked
    row-vector matmul and sliced off outside the kernel."""
    if fuse_norm:
        x_ref, w_ref, m_ref, o_ref = refs
    else:
        x_ref, w_ref, o_ref = refs

    x = x_ref[0, :, :]                         # ((Ho+1)*Wp + 8, 4*Cin)  bf16
    acc = None
    for dh in range(2):
        for dw in range(2):
            start = dh * Wp + dw
            xs = x[start:start + L, :]         # contiguous shifted window
            term = jnp.dot(xs, w_ref[2 * dh + dw, :, :],
                           preferred_element_type=jnp.float32)
            acc = term if acc is None else acc + term

    if fuse_norm:
        m = m_ref[...]                                              # (1, L) f32
        s1 = jnp.dot(m, acc, preferred_element_type=jnp.float32)    # (1, Cout)
        s2 = jnp.dot(m, acc * acc, preferred_element_type=jnp.float32)
        mean = s1 * inv_n
        var = jnp.maximum(s2 * inv_n - mean * mean, 0.0)            # biased var
        acc = (acc - mean) * jax.lax.rsqrt(var + eps)

    if neg_slope is not None:
        acc = jnp.maximum(acc, neg_slope * acc)

    o_ref[0, :, :] = acc.astype(o_ref.dtype)


def _conv_block_fused(h_nhwc, w_oihw, *, norm, act):
    B, H, W, Cin = h_nhwc.shape
    Cout = w_oihw.shape[0]
    xs6, Ho, Wo = _space_to_depth(h_nhwc)
    Wp, K4 = Wo + 1, 4 * Cin
    S = (Ho + 1) * Wp                   # s2d rows per instance
    L = Ho * Wp                         # output rows per instance (padded geometry)

    # Flatten spatial, add 8 zero tail rows (covers the dh=dw=1 window of the
    # discarded junk column), cast to bf16 for the MXU.
    xs = xs6.reshape(B, S, K4)
    xs = jnp.pad(xs, ((0, 0), (0, 8), (0, 0))).astype(jnp.bfloat16)
    w2 = _pack_weight(w_oihw)

    kernel = functools.partial(
        _fused_conv_kernel, Wp=Wp, L=L, fuse_norm=norm,
        neg_slope=(_LRELU_SLOPE if act else None),
        inv_n=1.0 / (Ho * Wo), eps=_IN_EPS)

    in_specs = [
        pl.BlockSpec((1, S + 8, K4), lambda b: (b, 0, 0)),
        pl.BlockSpec((4, K4, Cout), lambda b: (0, 0, 0)),   # weight resident
    ]
    args = [xs, w2]
    if norm:
        mask = (jnp.arange(L) % Wp < Wo).astype(jnp.float32).reshape(1, L)
        in_specs.append(pl.BlockSpec((1, L), lambda b: (0, 0)))
        args.append(mask)

    cost = pl.CostEstimate(
        flops=2 * B * L * 4 * K4 * Cout,
        transcendentals=B * Cout if norm else 0,
        bytes_accessed=2 * (B * (S + 8) * K4 + 4 * K4 * Cout + B * L * Cout),
    )

    out = pl.pallas_call(
        kernel,
        out_shape=jax.ShapeDtypeStruct((B, L, Cout), jnp.bfloat16),
        grid_spec=pltpu.PrefetchScalarGridSpec(
            num_scalar_prefetch=0,
            grid=(B,),
            in_specs=in_specs,
            out_specs=pl.BlockSpec((1, L, Cout), lambda b: (b, 0, 0)),
        ),
        compiler_params=pltpu.CompilerParams(
            dimension_semantics=("parallel",),
            vmem_limit_bytes=_VMEM_LIMIT,
        ),
        cost_estimate=cost,
    )(*args)

    # Drop the junk column, back to spatial NHWC.
    return out.reshape(B, Ho, Wp, Cout)[:, :, :Wo, :]


# --------------------------------------------------------------------------
# Kernel 2: tiled matmul, weight resident, optional bias / LeakyReLU
# --------------------------------------------------------------------------
def _mm_kernel(*refs, neg_slope, has_bias):
    if has_bias:
        a_ref, w_ref, b_ref, o_ref = refs
    else:
        a_ref, w_ref, o_ref = refs
    acc = jnp.dot(a_ref[...], w_ref[...], preferred_element_type=jnp.float32)
    if has_bias:
        acc = acc + b_ref[...]
    if neg_slope is not None:
        acc = jnp.maximum(acc, neg_slope * acc)
    o_ref[...] = acc.astype(o_ref.dtype)


def _matmul(a, w, bias=None, *, neg_slope=None, out_dtype=None, block_m=512):
    """a: (M, K) bf16, w: (K, N) bf16, bias: (N,) or None -> (M, N)."""
    M, K = a.shape
    K2, N = w.shape
    assert K == K2
    out_dtype = out_dtype if out_dtype is not None else a.dtype

    N_pad = _round_up(N, 128)                      # lane-dense output slab
    if N_pad != N:
        w = jnp.pad(w, ((0, 0), (0, N_pad - N)))
    bm = min(block_m, _round_up(M, 16))            # bf16 sublane-aligned row tile
    M_pad = _round_up(M, bm)                       # guaranteed divisible by bm
    if M_pad != M:
        a = jnp.pad(a, ((0, M_pad - M), (0, 0)))

    has_bias = bias is not None
    in_specs = [
        pl.BlockSpec((bm, K), lambda i: (i, 0)),
        pl.BlockSpec((K, N_pad), lambda i: (0, 0)),   # full weight resident
    ]
    args = [a, w]
    if has_bias:
        b2 = bias.reshape(1, N).astype(jnp.float32)
        if N_pad != N:
            b2 = jnp.pad(b2, ((0, 0), (0, N_pad - N)))
        in_specs.append(pl.BlockSpec((1, N_pad), lambda i: (0, 0)))
        args.append(b2)

    cost = pl.CostEstimate(
        flops=2 * M_pad * N_pad * K,
        transcendentals=0,
        bytes_accessed=2 * (M_pad * K + K * N_pad) + 4 * M_pad * N_pad,
    )

    out = pl.pallas_call(
        functools.partial(_mm_kernel, neg_slope=neg_slope, has_bias=has_bias),
        out_shape=jax.ShapeDtypeStruct((M_pad, N_pad), out_dtype),
        grid_spec=pltpu.PrefetchScalarGridSpec(
            num_scalar_prefetch=0,
            grid=(M_pad // bm,),
            in_specs=in_specs,
            out_specs=pl.BlockSpec((bm, N_pad), lambda i: (i, 0)),
        ),
        compiler_params=pltpu.CompilerParams(
            dimension_semantics=("parallel",),
            vmem_limit_bytes=_VMEM_LIMIT,
        ),
        cost_estimate=cost,
    )(*args)

    if M_pad != M or N_pad != N:
        out = out[:M, :N]
    return out


# --------------------------------------------------------------------------
# Kernel 3: standalone InstanceNorm2d + LeakyReLU (fallback path only)
# --------------------------------------------------------------------------
def _inorm_lrelu_kernel(x_ref, o_ref, *, eps, neg_slope, inv_hw):
    x = x_ref[...].astype(jnp.float32)                    # (1, HW, bc)
    s1 = jnp.sum(x, axis=1, keepdims=True)
    s2 = jnp.sum(x * x, axis=1, keepdims=True)
    mean = s1 * inv_hw
    var = jnp.maximum(s2 * inv_hw - mean * mean, 0.0)
    y = (x - mean) * jax.lax.rsqrt(var + eps)
    if neg_slope is not None:
        y = jnp.maximum(y, neg_slope * y)
    o_ref[...] = y.astype(o_ref.dtype)


def _instance_norm_lrelu(x, *, eps=_IN_EPS, neg_slope=_LRELU_SLOPE, block_c=128):
    """x: (B, HW, C) -> per-(b, c) normalization over HW, then LeakyReLU."""
    # TODO(synk): tile the HW axis (two-pass running sums) for very large HW on v7x.
    B, HW, C = x.shape
    bc = min(block_c, C)
    assert C % bc == 0
    cost = pl.CostEstimate(
        flops=8 * B * HW * C, transcendentals=B * C, bytes_accessed=4 * B * HW * C)
    return pl.pallas_call(
        functools.partial(
            _inorm_lrelu_kernel, eps=eps, neg_slope=neg_slope, inv_hw=1.0 / HW),
        out_shape=jax.ShapeDtypeStruct((B, HW, C), x.dtype),
        grid_spec=pltpu.PrefetchScalarGridSpec(
            num_scalar_prefetch=0,
            grid=(B, C // bc),
            in_specs=[pl.BlockSpec((1, HW, bc), lambda b, j: (b, 0, j))],
            out_specs=pl.BlockSpec((1, HW, bc), lambda b, j: (b, 0, j)),
        ),
        compiler_params=pltpu.CompilerParams(
            dimension_semantics=("parallel", "parallel"),
            vmem_limit_bytes=_VMEM_LIMIT,
        ),
        cost_estimate=cost,
    )(x)


# --------------------------------------------------------------------------
# Conv block dispatch (fused kernel vs large-shape fallback)
# --------------------------------------------------------------------------
def _conv_block_fallback(h_nhwc, w_oihw, *, norm, act):
    """4x (not 16x) im2col on the s2d image + tiled matmul (+ separate IN)."""
    B, H, W, Cin = h_nhwc.shape
    Cout = w_oihw.shape[0]
    xs6, Ho, Wo = _space_to_depth(h_nhwc)
    cols = [xs6[:, dh:dh + Ho, dw:dw + Wo] for dh in (0, 1) for dw in (0, 1)]
    patches = jnp.stack(cols, axis=3).reshape(B * Ho * Wo, 16 * Cin)
    patches = patches.astype(jnp.bfloat16)
    w_big = _pack_weight(w_oihw).reshape(16 * Cin, Cout)   # same K ordering

    fuse_act = act and not norm
    y = _matmul(patches, w_big, None,
                neg_slope=(_LRELU_SLOPE if fuse_act else None),
                out_dtype=jnp.bfloat16)
    y = y.reshape(B, Ho * Wo, Cout)
    if norm:
        y = _instance_norm_lrelu(y, neg_slope=(_LRELU_SLOPE if act else None))
    return y.reshape(B, Ho, Wo, Cout)


def _fused_footprint_bytes(S, K4, L, Cout):
    in_b = 2 * (S + 8) * K4 * 2                     # double-buffered bf16 input
    w_b = 2 * 4 * K4 * Cout * 2                     # packed weight (bf16)
    out_b = 2 * L * Cout * 2                        # bf16 output block
    mask_b = 2 * 8 * _round_up(L, 128) * 4
    tmp_b = 4 * L * K4 * 2 + 3 * L * Cout * 4       # shifted windows + f32 acc temps
    return in_b + w_b + out_b + mask_b + tmp_b


def _conv_block(h_nhwc, w_oihw, *, norm, act, force_fallback=False):
    B, H, W, Cin = h_nhwc.shape
    Cout = w_oihw.shape[0]
    Ho, Wo = H // 2, W // 2
    K4, Wp = 4 * Cin, Wo + 1
    S, L = (Ho + 1) * Wp, Ho * Wp
    fits = _fused_footprint_bytes(S, K4, L, Cout) <= (_VMEM_LIMIT * 3) // 5
    if force_fallback or not fits:
        # TODO(synk): row-tile the fused kernel (halo DMA) instead of falling
        # back to the 4x im2col path at very large spatial extents.
        return _conv_block_fallback(h_nhwc, w_oihw, norm=norm, act=act)
    return _conv_block_fused(h_nhwc, w_oihw, norm=norm, act=act)


# --------------------------------------------------------------------------
# Full forward pass
# --------------------------------------------------------------------------
def patchgan_discriminator_forward(x, params, *, force_fallback=False):
    """x: (B, in_dim, H, W) NCHW -> (B, out_dim, H/16, W/16) NCHW."""
    _, _, H, W = x.shape
    assert H % 16 == 0 and W % 16 == 0, "spatial dims must be multiples of 16"
    h = jnp.transpose(x, (0, 2, 3, 1))                    # NCHW -> NHWC
    h = _conv_block(h, params["w1"], norm=False, act=True, force_fallback=force_fallback)
    h = _conv_block(h, params["w2"], norm=True, act=True, force_fallback=force_fallback)
    h = _conv_block(h, params["w3"], norm=True, act=True, force_fallback=force_fallback)
    h = _conv_block(h, params["w4"], norm=True, act=True, force_fallback=force_fallback)

    # dis_layer_5: 1x1 conv with bias, no norm / activation.
    B, Ho, Wo, C = h.shape
    out_dim = params["w5"].shape[0]
    a = h.reshape(B * Ho * Wo, C)
    w5 = params["w5"].reshape(out_dim, C).T.astype(jnp.bfloat16)
    y = _matmul(a, w5, params["b5"], neg_slope=None, out_dtype=jnp.float32)
    y = y.reshape(B, Ho, Wo, out_dim)
    return jnp.transpose(y, (0, 3, 1, 2))                 # NHWC -> NCHW


# --------------------------------------------------------------------------
# Pure-JAX f32 reference (lax.conv) for validation
# --------------------------------------------------------------------------
def _reference_forward(x, params, eps=_IN_EPS, slope=_LRELU_SLOPE):
    def conv(h, w, b=None, stride=2, pad=1):
        out = jax.lax.conv_general_dilated(
            h, w, window_strides=(stride, stride),
            padding=[(pad, pad), (pad, pad)],
            dimension_numbers=("NCHW", "OIHW", "NCHW"),
            precision=jax.lax.Precision.HIGHEST)
        if b is not None:
            out = out + b[None, :, None, None]
        return out

    def inorm(h):
        m = h.mean(axis=(2, 3), keepdims=True)
        v = ((h - m) ** 2).mean(axis=(2, 3), keepdims=True)
        return (h - m) / jnp.sqrt(v + eps)

    def lrelu(h):
        return jnp.where(h >= 0, h, slope * h)

    h = lrelu(conv(x, params["w1"]))
    h = lrelu(inorm(conv(h, params["w2"])))
    h = lrelu(inorm(conv(h, params["w3"])))
    h = lrelu(inorm(conv(h, params["w4"])))
    return conv(h, params["w5"], params["b5"], stride=1, pad=0)


if __name__ == "__main__":
    # Small shapes consistent with the module: 4 stride-2 convs need spatial >= 32.
    B, in_dim, out_dim, H, W = 2, 3, 1, 32, 32

    key = jax.random.PRNGKey(0)
    keys = jax.random.split(key, 7)
    x = jax.random.normal(keys[0], (B, in_dim, H, W), dtype=jnp.float32)

    def winit(k, cout, cin, kh, kw):
        fan_in = cin * kh * kw
        return jax.random.normal(k, (cout, cin, kh, kw), jnp.float32) / jnp.sqrt(fan_in)

    # Deterministic synthetic init (not a checkpoint load).
    params = {
        "w1": winit(keys[1], 64, in_dim, 4, 4),
        "w2": winit(keys[2], 128, 64, 4, 4),
        "w3": winit(keys[3], 256, 128, 4, 4),
        "w4": winit(keys[4], 512, 256, 4, 4),
        "w5": winit(keys[5], out_dim, 512, 1, 1),
        "b5": 0.1 * jax.random.normal(keys[6], (out_dim,), jnp.float32),
    }

    ref = _reference_forward(x, params)
    scale = max(1.0, float(jnp.max(jnp.abs(ref))))
    tol = 0.05 * scale   # bf16 operands with f32 accumulation across 5 layers

    # Main path: fully fused conv + InstanceNorm + LeakyReLU kernels.
    fwd = jax.jit(functools.partial(patchgan_discriminator_forward,
                                    force_fallback=False))
    out = jax.block_until_ready(fwd(x, params))
    assert out.shape == (B, out_dim, H // 16, W // 16), out.shape
    err = float(jnp.max(jnp.abs(out - ref)))
    assert err < tol, f"fused path max abs err {err} (tol {tol})"

    # Large-shape fallback path (4x im2col + tiled matmul + separate IN kernel).
    fwd_fb = jax.jit(functools.partial(patchgan_discriminator_forward,
                                       force_fallback=True))
    out_fb = jax.block_until_ready(fwd_fb(x, params))
    err_fb = float(jnp.max(jnp.abs(out_fb - ref)))
    assert err_fb < tol, f"fallback path max abs err {err_fb} (tol {tol})"

    print("KERNEL_OK")
</pallas_src>

<mosaic_0001>
module attributes {stable_mosaic.version = 11 : i64} {
  func.func @_fused_conv_kernel(%arg0: i32, %arg1: memref<1x297x12xbf16, #tpu.memory_space<vmem>>, %arg2: memref<4x12x64xbf16, #tpu.memory_space<vmem>>, %arg3: memref<1x272x64xbf16, #tpu.memory_space<vmem>>) attributes {dimension_semantics = [#tpu.dimension_semantics<parallel>], iteration_bounds = array<i64: 2>, scalar_prefetch = 0 : i64, scratch_operands = 0 : i64, tpu.core_type = #tpu.core_type<tc>, window_params = [{transform_indices = @transform_0, window_bounds = array<i64: 1, 297, 12>}, {pipeline_mode = #tpu.pipeline_mode<synchronous>, transform_indices = @transform_1, window_bounds = array<i64: 4, 12, 64>}, {transform_indices = @transform_2, window_bounds = array<i64: 1, 272, 64>}]} {
    %c0 = arith.constant 0 : index
    %c0_0 = arith.constant 0 : index
    %c0_1 = arith.constant 0 : index
    %0 = vector.load %arg1[%c0, %c0_0, %c0_1] : memref<1x297x12xbf16, #tpu.memory_space<vmem>>, vector<1x297x12xbf16>
    %1 = vector.shape_cast %0 : vector<1x297x12xbf16> to vector<297x12xbf16>
    %2 = vector.extract_strided_slice %1 {offsets = [0, 0], sizes = [272, 12], strides = [1, 1]} : vector<297x12xbf16> to vector<272x12xbf16>
    %c0_2 = arith.constant 0 : index
    %c0_3 = arith.constant 0 : index
    %c0_4 = arith.constant 0 : index
    %3 = vector.load %arg2[%c0_2, %c0_3, %c0_4] : memref<4x12x64xbf16, #tpu.memory_space<vmem>>, vector<1x12x64xbf16>
    %4 = vector.shape_cast %3 : vector<1x12x64xbf16> to vector<12x64xbf16>
    %cst = arith.constant dense<0.000000e+00> : vector<272x64xf32>
    %5 = tpu.matmul %2, %4, %cst {dimension_numbers = #tpu.dot_dimension_numbers<[1], [0], [0], [1], [0, 0, 1, 1], [], []>} : vector<272x12xbf16>, vector<12x64xbf16>, vector<272x64xf32> -> vector<272x64xf32>
    %6 = vector.extract_strided_slice %1 {offsets = [1, 0], sizes = [272, 12], strides = [1, 1]} : vector<297x12xbf16> to vector<272x12xbf16>
    %c1 = arith.constant 1 : index
    %c0_5 = arith.constant 0 : index
    %c0_6 = arith.constant 0 : index
    %7 = vector.load %arg2[%c1, %c0_5, %c0_6] : memref<4x12x64xbf16, #tpu.memory_space<vmem>>, vector<1x12x64xbf16>
    %8 = vector.shape_cast %7 : vector<1x12x64xbf16> to vector<12x64xbf16>
    %cst_7 = arith.constant dense<0.000000e+00> : vector<272x64xf32>
    %9 = tpu.matmul %6, %8, %cst_7 {dimension_numbers = #tpu.dot_dimension_numbers<[1], [0], [0], [1], [0, 0, 1, 1], [], []>} : vector<272x12xbf16>, vector<12x64xbf16>, vector<272x64xf32> -> vector<272x64xf32>
    %10 = arith.addf %5, %9 : vector<272x64xf32>
    %11 = vector.extract_strided_slice %1 {offsets = [17, 0], sizes = [272, 12], strides = [1, 1]} : vector<297x12xbf16> to vector<272x12xbf16>
    %c2 = arith.constant 2 : index
    %c0_8 = arith.constant 0 : index
    %c0_9 = arith.constant 0 : index
    %12 = vector.load %arg2[%c2, %c0_8, %c0_9] : memref<4x12x64xbf16, #tpu.memory_space<vmem>>, vector<1x12x64xbf16>
    %13 = vector.shape_cast %12 : vector<1x12x64xbf16> to vector<12x64xbf16>
    %cst_10 = arith.constant dense<0.000000e+00> : vector<272x64xf32>
    %14 = tpu.matmul %11, %13, %cst_10 {dimension_numbers = #tpu.dot_dimension_numbers<[1], [0], [0], [1], [0, 0, 1, 1], [], []>} : vector<272x12xbf16>, vector<12x64xbf16>, vector<272x64xf32> -> vector<272x64xf32>
    %15 = arith.addf %10, %14 : vector<272x64xf32>
    %16 = vector.extract_strided_slice %1 {offsets = [18, 0], sizes = [272, 12], strides = [1, 1]} : vector<297x12xbf16> to vector<272x12xbf16>
    %c3 = arith.constant 3 : index
    %c0_11 = arith.constant 0 : index
    %c0_12 = arith.constant 0 : index
    %17 = vector.load %arg2[%c3, %c0_11, %c0_12] : memref<4x12x64xbf16, #tpu.memory_space<vmem>>, vector<1x12x64xbf16>
    %18 = vector.shape_cast %17 : vector<1x12x64xbf16> to vector<12x64xbf16>
    %cst_13 = arith.constant dense<0.000000e+00> : vector<272x64xf32>
    %19 = tpu.matmul %16, %18, %cst_13 {dimension_numbers = #tpu.dot_dimension_numbers<[1], [0], [0], [1], [0, 0, 1, 1], [], []>} : vector<272x12xbf16>, vector<12x64xbf16>, vector<272x64xf32> -> vector<272x64xf32>
    %20 = arith.addf %15, %19 : vector<272x64xf32>
    %cst_14 = arith.constant 0.00999999977 : f32
    %21 = vector.broadcast %cst_14 : f32 to vector<272x64xf32>
    %22 = arith.mulf %21, %20 : vector<272x64xf32>
    %23 = arith.maximumf %20, %22 : vector<272x64xf32>
    %24 = arith.truncf %23 : vector<272x64xf32> to vector<272x64xbf16>
    %c0_15 = arith.constant 0 : index
    %c0_16 = arith.constant 0 : index
    %c0_17 = arith.constant 0 : index
    %25 = vector.load %arg3[%c0_15, %c0_16, %c0_17] : memref<1x272x64xbf16, #tpu.memory_space<vmem>>, vector<1x272x64xbf16>
    %26 = vector.shape_cast %25 : vector<1x272x64xbf16> to vector<272x64xbf16>
    %27 = vector.shape_cast %24 : vector<272x64xbf16> to vector<1x272x64xbf16>
    tpu.vector_store %arg3[%c0_15, %c0_16, %c0_17], %27 {strides = array<i32>} : memref<1x272x64xbf16, #tpu.memory_space<vmem>>, vector<1x272x64xbf16>,
    return
  }
  func.func @transform_0(%arg0: i32) -> (i32, i32, i32) {
    %c0_i32 = arith.constant 0 : i32
    %c0_i32_0 = arith.constant 0 : i32
    %c0_i32_1 = arith.constant 0 : i32
    return %arg0, %c0_i32, %c0_i32_0 : i32, i32, i32
  }
  func.func @transform_1(%arg0: i32) -> (i32, i32, i32) {
    %c0_i32 = arith.constant 0 : i32
    %c0_i32_0 = arith.constant 0 : i32
    %c0_i32_1 = arith.constant 0 : i32
    %c0_i32_2 = arith.constant 0 : i32
    return %c0_i32, %c0_i32_0, %c0_i32_1 : i32, i32, i32
  }
  func.func @transform_2(%arg0: i32) -> (i32, i32, i32) {
    %c0_i32 = arith.constant 0 : i32
    %c0_i32_0 = arith.constant 0 : i32
    %c0_i32_1 = arith.constant 0 : i32
    return %arg0, %c0_i32, %c0_i32_0 : i32, i32, i32
  }
}

module attributes {stable_mosaic.version = 11 : i64} {
  func.func @_fused_conv_kernel(%arg0: i32, %arg1: memref<1x89x256xbf16, #tpu.memory_space<vmem>>, %arg2: memref<4x256x128xbf16, #tpu.memory_space<vmem>>, %arg3: memref<1x72xf32, #tpu.memory_space<vmem>>, %arg4: memref<1x72x128xbf16, #tpu.memory_space<vmem>>) attributes {dimension_semantics = [#tpu.dimension_semantics<parallel>], iteration_bounds = array<i64: 2>, scalar_prefetch = 0 : i64, scratch_operands = 0 : i64, tpu.core_type = #tpu.core_type<tc>, window_params = [{transform_indices = @transform_0, window_bounds = array<i64: 1, 89, 256>}, {pipeline_mode = #tpu.pipeline_mode<synchronous>, transform_indices = @transform_1, window_bounds = array<i64: 4, 256, 128>}, {pipeline_mode = #tpu.pipeline_mode<synchronous>, transform_indices = @transform_2, window_bounds = array<i64: 1, 72>}, {transform_indices = @transform_3, window_bounds = array<i64: 1, 72, 128>}]} {
    %c0 = arith.constant 0 : index
    %c0_0 = arith.constant 0 : index
    %c0_1 = arith.constant 0 : index
    %0 = vector.load %arg1[%c0, %c0_0, %c0_1] : memref<1x89x256xbf16, #tpu.memory_space<vmem>>, vector<1x89x256xbf16>
    %1 = vector.shape_cast %0 : vector<1x89x256xbf16> to vector<89x256xbf16>
    %2 = vector.extract_strided_slice %1 {offsets = [0, 0], sizes = [72, 256], strides = [1, 1]} : vector<89x256xbf16> to vector<72x256xbf16>
    %c0_2 = arith.constant 0 : index
    %c0_3 = arith.constant 0 : index
    %c0_4 = arith.constant 0 : index
    %3 = vector.load %arg2[%c0_2, %c0_3, %c0_4] : memref<4x256x128xbf16, #tpu.memory_space<vmem>>, vector<1x256x128xbf16>
    %4 = vector.shape_cast %3 : vector<1x256x128xbf16> to vector<256x128xbf16>
    %cst = arith.constant dense<0.000000e+00> : vector<72x128xf32>
    %5 = tpu.matmul %2, %4, %cst {dimension_numbers = #tpu.dot_dimension_numbers<[1], [0], [0], [1], [0, 0, 1, 1], [], []>} : vector<72x256xbf16>, vector<256x128xbf16>, vector<72x128xf32> -> vector<72x128xf32>
    %6 = vector.extract_strided_slice %1 {offsets = [1, 0], sizes = [72, 256], strides = [1, 1]} : vector<89x256xbf16> to vector<72x256xbf16>
    %c1 = arith.constant 1 : index
    %c0_5 = arith.constant 0 : index
    %c0_6 = arith.constant 0 : index
    %7 = vector.load %arg2[%c1, %c0_5, %c0_6] : memref<4x256x128xbf16, #tpu.memory_space<vmem>>, vector<1x256x128xbf16>
    %8 = vector.shape_cast %7 : vector<1x256x128xbf16> to vector<256x128xbf16>
    %cst_7 = arith.constant dense<0.000000e+00> : vector<72x128xf32>
    %9 = tpu.matmul %6, %8, %cst_7 {dimension_numbers = #tpu.dot_dimension_numbers<[1], [0], [0], [1], [0, 0, 1, 1], [], []>} : vector<72x256xbf16>, vector<256x128xbf16>, vector<72x128xf32> -> vector<72x128xf32>
    %10 = arith.addf %5, %9 : vector<72x128xf32>
    %11 = vector.extract_strided_slice %1 {offsets = [9, 0], sizes = [72, 256], strides = [1, 1]} : vector<89x256xbf16> to vector<72x256xbf16>
    %c2 = arith.constant 2 : index
    %c0_8 = arith.constant 0 : index
    %c0_9 = arith.constant 0 : index
    %12 = vector.load %arg2[%c2, %c0_8, %c0_9] : memref<4x256x128xbf16, #tpu.memory_space<vmem>>, vector<1x256x128xbf16>
    %13 = vector.shape_cast %12 : vector<1x256x128xbf16> to vector<256x128xbf16>
    %cst_10 = arith.constant dense<0.000000e+00> : vector<72x128xf32>
    %14 = tpu.matmul %11, %13, %cst_10 {dimension_numbers = #tpu.dot_dimension_numbers<[1], [0], [0], [1], [0, 0, 1, 1], [], []>} : vector<72x256xbf16>, vector<256x128xbf16>, vector<72x128xf32> -> vector<72x128xf32>
    %15 = arith.addf %10, %14 : vector<72x128xf32>
    %16 = vector.extract_strided_slice %1 {offsets = [10, 0], sizes = [72, 256], strides = [1, 1]} : vector<89x256xbf16> to vector<72x256xbf16>
    %c3 = arith.constant 3 : index
    %c0_11 = arith.constant 0 : index
    %c0_12 = arith.constant 0 : index
    %17 = vector.load %arg2[%c3, %c0_11, %c0_12] : memref<4x256x128xbf16, #tpu.memory_space<vmem>>, vector<1x256x128xbf16>
    %18 = vector.shape_cast %17 : vector<1x256x128xbf16> to vector<256x128xbf16>
    %cst_13 = arith.constant dense<0.000000e+00> : vector<72x128xf32>
    %19 = tpu.matmul %16, %18, %cst_13 {dimension_numbers = #tpu.dot_dimension_numbers<[1], [0], [0], [1], [0, 0, 1, 1], [], []>} : vector<72x256xbf16>, vector<256x128xbf16>, vector<72x128xf32> -> vector<72x128xf32>
    %20 = arith.addf %15, %19 : vector<72x128xf32>
    %c0_14 = arith.constant 0 : index
    %c0_15 = arith.constant 0 : index
    %21 = vector.load %arg3[%c0_14, %c0_15] : memref<1x72xf32, #tpu.memory_space<vmem>>, vector<1x72xf32>
    %cst_16 = arith.constant dense<0.000000e+00> : vector<1x128xf32>
    %22 = tpu.matmul %21, %20, %cst_16 {dimension_numbers = #tpu.dot_dimension_numbers<[1], [0], [0], [1], [0, 0, 1, 1], [], []>} : vector<1x72xf32>, vector<72x128xf32>, vector<1x128xf32> -> vector<1x128xf32>
    %23 = arith.mulf %20, %20 : vector<72x128xf32>
    %cst_17 = arith.constant dense<0.000000e+00> : vector<1x128xf32>
    %24 = tpu.matmul %21, %23, %cst_17 {dimension_numbers = #tpu.dot_dimension_numbers<[1], [0], [0], [1], [0, 0, 1, 1], [], []>} : vector<1x72xf32>, vector<72x128xf32>, vector<1x128xf32> -> vector<1x128xf32>
    %cst_18 = arith.constant 1.562500e-02 : f32
    %25 = vector.broadcast %cst_18 : f32 to vector<1x128xf32>
    %26 = arith.mulf %22, %25 : vector<1x128xf32>
    %cst_19 = arith.constant 1.562500e-02 : f32
    %27 = vector.broadcast %cst_19 : f32 to vector<1x128xf32>
    %28 = arith.mulf %24, %27 : vector<1x128xf32>
    %29 = arith.mulf %26, %26 : vector<1x128xf32>
    %30 = arith.subf %28, %29 : vector<1x128xf32>
    %cst_20 = arith.constant 0.000000e+00 : f32
    %31 = vector.broadcast %cst_20 : f32 to vector<1x128xf32>
    %32 = arith.maximumf %30, %31 : vector<1x128xf32>
    %33 = vector.broadcast %26 : vector<1x128xf32> to vector<72x128xf32>
    %34 = arith.subf %20, %33 : vector<72x128xf32>
    %cst_21 = arith.constant 9.99999974E-6 : f32
    %35 = vector.broadcast %cst_21 : f32 to vector<1x128xf32>
    %36 = arith.addf %32, %35 : vector<1x128xf32>
    %37 = math.rsqrt %36 : vector<1x128xf32>
    %38 = vector.broadcast %37 : vector<1x128xf32> to vector<72x128xf32>
    %39 = arith.mulf %34, %38 : vector<72x128xf32>
    %cst_22 = arith.constant 0.00999999977 : f32
    %40 = vector.broadcast %cst_22 : f32 to vector<72x128xf32>
    %41 = arith.mulf %40, %39 : vector<72x128xf32>
    %42 = arith.maximumf %39, %41 : vector<72x128xf32>
    %43 = arith.truncf %42 : vector<72x128xf32> to vector<72x128xbf16>
    %c0_23 = arith.constant 0 : index
    %c0_24 = arith.constant 0 : index
    %c0_25 = arith.constant 0 : index
    %44 = vector.load %arg4[%c0_23, %c0_24, %c0_25] : memref<1x72x128xbf16, #tpu.memory_space<vmem>>, vector<1x72x128xbf16>
    %45 = vector.shape_cast %44 : vector<1x72x128xbf16> to vector<72x128xbf16>
    %46 = vector.shape_cast %43 : vector<72x128xbf16> to vector<1x72x128xbf16>
    tpu.vector_store %arg4[%c0_23, %c0_24, %c0_25], %46 {strides = array<i32>} : memref<1x72x128xbf16, #tpu.memory_space<vmem>>, vector<1x72x128xbf16>,
    return
  }
  func.func @transform_0(%arg0: i32) -> (i32, i32, i32) {
    %c0_i32 = arith.constant 0 : i32
    %c0_i32_0 = arith.constant 0 : i32
    %c0_i32_1 = arith.constant 0 : i32
    return %arg0, %c0_i32, %c0_i32_0 : i32, i32, i32
  }
  func.func @transform_1(%arg0: i32) -> (i32, i32, i32) {
    %c0_i32 = arith.constant 0 : i32
    %c0_i32_0 = arith.constant 0 : i32
    %c0_i32_1 = arith.constant 0 : i32
    %c0_i32_2 = arith.constant 0 : i32
    return %c0_i32, %c0_i32_0, %c0_i32_1 : i32, i32, i32
  }
  func.func @transform_2(%arg0: i32) -> (i32, i32) {
    %c0_i32 = arith.constant 0 : i32
    %c0_i32_0 = arith.constant 0 : i32
    %c0_i32_1 = arith.constant 0 : i32
    return %c0_i32, %c0_i32_0 : i32, i32
  }
  func.func @transform_3(%arg0: i32) -> (i32, i32, i32) {
    %c0_i32 = arith.constant 0 : i32
    %c0_i32_0 = arith.constant 0 : i32
    %c0_i32_1 = arith.constant 0 : i32
    return %arg0, %c0_i32, %c0_i32_0 : i32, i32, i32
  }
}

module attributes {stable_mosaic.version = 11 : i64} {
  func.func @_fused_conv_kernel(%arg0: i32, %arg1: memref<1x33x512xbf16, #tpu.memory_space<vmem>>, %arg2: memref<4x512x256xbf16, #tpu.memory_space<vmem>>, %arg3: memref<1x20xf32, #tpu.memory_space<vmem>>, %arg4: memref<1x20x256xbf16, #tpu.memory_space<vmem>>) attributes {dimension_semantics = [#tpu.dimension_semantics<parallel>], iteration_bounds = array<i64: 2>, scalar_prefetch = 0 : i64, scratch_operands = 0 : i64, tpu.core_type = #tpu.core_type<tc>, window_params = [{transform_indices = @transform_0, window_bounds = array<i64: 1, 33, 512>}, {pipeline_mode = #tpu.pipeline_mode<synchronous>, transform_indices = @transform_1, window_bounds = array<i64: 4, 512, 256>}, {pipeline_mode = #tpu.pipeline_mode<synchronous>, transform_indices = @transform_2, window_bounds = array<i64: 1, 20>}, {transform_indices = @transform_3, window_bounds = array<i64: 1, 20, 256>}]} {
    %c0 = arith.constant 0 : index
    %c0_0 = arith.constant 0 : index
    %c0_1 = arith.constant 0 : index
    %0 = vector.load %arg1[%c0, %c0_0, %c0_1] : memref<1x33x512xbf16, #tpu.memory_space<vmem>>, vector<1x33x512xbf16>
    %1 = vector.shape_cast %0 : vector<1x33x512xbf16> to vector<33x512xbf16>
    %2 = vector.extract_strided_slice %1 {offsets = [0, 0], sizes = [20, 512], strides = [1, 1]} : vector<33x512xbf16> to vector<20x512xbf16>
    %c0_2 = arith.constant 0 : index
    %c0_3 = arith.constant 0 : index
    %c0_4 = arith.constant 0 : index
    %3 = vector.load %arg2[%c0_2, %c0_3, %c0_4] : memref<4x512x256xbf16, #tpu.memory_space<vmem>>, vector<1x512x256xbf16>
    %4 = vector.shape_cast %3 : vector<1x512x256xbf16> to vector<512x256xbf16>
    %cst = arith.constant dense<0.000000e+00> : vector<20x256xf32>
    %5 = tpu.matmul %2, %4, %cst {dimension_numbers = #tpu.dot_dimension_numbers<[1], [0], [0], [1], [0, 0, 1, 1], [], []>} : vector<20x512xbf16>, vector<512x256xbf16>, vector<20x256xf32> -> vector<20x256xf32>
    %6 = vector.extract_strided_slice %1 {offsets = [1, 0], sizes = [20, 512], strides = [1, 1]} : vector<33x512xbf16> to vector<20x512xbf16>
    %c1 = arith.constant 1 : index
    %c0_5 = arith.constant 0 : index
    %c0_6 = arith.constant 0 : index
    %7 = vector.load %arg2[%c1, %c0_5, %c0_6] : memref<4x512x256xbf16, #tpu.memory_space<vmem>>, vector<1x512x256xbf16>
    %8 = vector.shape_cast %7 : vector<1x512x256xbf16> to vector<512x256xbf16>
    %cst_7 = arith.constant dense<0.000000e+00> : vector<20x256xf32>
    %9 = tpu.matmul %6, %8, %cst_7 {dimension_numbers = #tpu.dot_dimension_numbers<[1], [0], [0], [1], [0, 0, 1, 1], [], []>} : vector<20x512xbf16>, vector<512x256xbf16>, vector<20x256xf32> -> vector<20x256xf32>
    %10 = arith.addf %5, %9 : vector<20x256xf32>
    %11 = vector.extract_strided_slice %1 {offsets = [5, 0], sizes = [20, 512], strides = [1, 1]} : vector<33x512xbf16> to vector<20x512xbf16>
    %c2 = arith.constant 2 : index
    %c0_8 = arith.constant 0 : index
    %c0_9 = arith.constant 0 : index
    %12 = vector.load %arg2[%c2, %c0_8, %c0_9] : memref<4x512x256xbf16, #tpu.memory_space<vmem>>, vector<1x512x256xbf16>
    %13 = vector.shape_cast %12 : vector<1x512x256xbf16> to vector<512x256xbf16>
    %cst_10 = arith.constant dense<0.000000e+00> : vector<20x256xf32>
    %14 = tpu.matmul %11, %13, %cst_10 {dimension_numbers = #tpu.dot_dimension_numbers<[1], [0], [0], [1], [0, 0, 1, 1], [], []>} : vector<20x512xbf16>, vector<512x256xbf16>, vector<20x256xf32> -> vector<20x256xf32>
    %15 = arith.addf %10, %14 : vector<20x256xf32>
    %16 = vector.extract_strided_slice %1 {offsets = [6, 0], sizes = [20, 512], strides = [1, 1]} : vector<33x512xbf16> to vector<20x512xbf16>
    %c3 = arith.constant 3 : index
    %c0_11 = arith.constant 0 : index
    %c0_12 = arith.constant 0 : index
    %17 = vector.load %arg2[%c3, %c0_11, %c0_12] : memref<4x512x256xbf16, #tpu.memory_space<vmem>>, vector<1x512x256xbf16>
    %18 = vector.shape_cast %17 : vector<1x512x256xbf16> to vector<512x256xbf16>
    %cst_13 = arith.constant dense<0.000000e+00> : vector<20x256xf32>
    %19 = tpu.matmul %16, %18, %cst_13 {dimension_numbers = #tpu.dot_dimension_numbers<[1], [0], [0], [1], [0, 0, 1, 1], [], []>} : vector<20x512xbf16>, vector<512x256xbf16>, vector<20x256xf32> -> vector<20x256xf32>
    %20 = arith.addf %15, %19 : vector<20x256xf32>
    %c0_14 = arith.constant 0 : index
    %c0_15 = arith.constant 0 : index
    %21 = vector.load %arg3[%c0_14, %c0_15] : memref<1x20xf32, #tpu.memory_space<vmem>>, vector<1x20xf32>
    %cst_16 = arith.constant dense<0.000000e+00> : vector<1x256xf32>
    %22 = tpu.matmul %21, %20, %cst_16 {dimension_numbers = #tpu.dot_dimension_numbers<[1], [0], [0], [1], [0, 0, 1, 1], [], []>} : vector<1x20xf32>, vector<20x256xf32>, vector<1x256xf32> -> vector<1x256xf32>
    %23 = arith.mulf %20, %20 : vector<20x256xf32>
    %cst_17 = arith.constant dense<0.000000e+00> : vector<1x256xf32>
    %24 = tpu.matmul %21, %23, %cst_17 {dimension_numbers = #tpu.dot_dimension_numbers<[1], [0], [0], [1], [0, 0, 1, 1], [], []>} : vector<1x20xf32>, vector<20x256xf32>, vector<1x256xf32> -> vector<1x256xf32>
    %cst_18 = arith.constant 6.250000e-02 : f32
    %25 = vector.broadcast %cst_18 : f32 to vector<1x256xf32>
    %26 = arith.mulf %22, %25 : vector<1x256xf32>
    %cst_19 = arith.constant 6.250000e-02 : f32
    %27 = vector.broadcast %cst_19 : f32 to vector<1x256xf32>
    %28 = arith.mulf %24, %27 : vector<1x256xf32>
    %29 = arith.mulf %26, %26 : vector<1x256xf32>
    %30 = arith.subf %28, %29 : vector<1x256xf32>
    %cst_20 = arith.constant 0.000000e+00 : f32
    %31 = vector.broadcast %cst_20 : f32 to vector<1x256xf32>
    %32 = arith.maximumf %30, %31 : vector<1x256xf32>
    %33 = vector.broadcast %26 : vector<1x256xf32> to vector<20x256xf32>
    %34 = arith.subf %20, %33 : vector<20x256xf32>
    %cst_21 = arith.constant 9.99999974E-6 : f32
    %35 = vector.broadcast %cst_21 : f32 to vector<1x256xf32>
    %36 = arith.addf %32, %35 : vector<1x256xf32>
    %37 = math.rsqrt %36 : vector<1x256xf32>
    %38 = vector.broadcast %37 : vector<1x256xf32> to vector<20x256xf32>
    %39 = arith.mulf %34, %38 : vector<20x256xf32>
    %cst_22 = arith.constant 0.00999999977 : f32
    %40 = vector.broadcast %cst_22 : f32 to vector<20x256xf32>
    %41 = arith.mulf %40, %39 : vector<20x256xf32>
    %42 = arith.maximumf %39, %41 : vector<20x256xf32>
    %43 = arith.truncf %42 : vector<20x256xf32> to vector<20x256xbf16>
    %c0_23 = arith.constant 0 : index
    %c0_24 = arith.constant 0 : index
    %c0_25 = arith.constant 0 : index
    %44 = vector.load %arg4[%c0_23, %c0_24, %c0_25] : memref<1x20x256xbf16, #tpu.memory_space<vmem>>, vector<1x20x256xbf16>
    %45 = vector.shape_cast %44 : vector<1x20x256xbf16> to vector<20x256xbf16>
    %46 = vector.shape_cast %43 : vector<20x256xbf16> to vector<1x20x256xbf16>
    tpu.vector_store %arg4[%c0_23, %c0_24, %c0_25], %46 {strides = array<i32>} : memref<1x20x256xbf16, #tpu.memory_space<vmem>>, vector<1x20x256xbf16>,
    return
  }
  func.func @transform_0(%arg0: i32) -> (i32, i32, i32) {
    %c0_i32 = arith.constant 0 : i32
    %c0_i32_0 = arith.constant 0 : i32
    %c0_i32_1 = arith.constant 0 : i32
    return %arg0, %c0_i32, %c0_i32_0 : i32, i32, i32
  }
  func.func @transform_1(%arg0: i32) -> (i32, i32, i32) {
    %c0_i32 = arith.constant 0 : i32
    %c0_i32_0 = arith.constant 0 : i32
    %c0_i32_1 = arith.constant 0 : i32
    %c0_i32_2 = arith.constant 0 : i32
    return %c0_i32, %c0_i32_0, %c0_i32_1 : i32, i32, i32
  }
  func.func @transform_2(%arg0: i32) -> (i32, i32) {
    %c0_i32 = arith.constant 0 : i32
    %c0_i32_0 = arith.constant 0 : i32
    %c0_i32_1 = arith.constant 0 : i32
    return %c0_i32, %c0_i32_0 : i32, i32
  }
  func.func @transform_3(%arg0: i32) -> (i32, i32, i32) {
    %c0_i32 = arith.constant 0 : i32
    %c0_i32_0 = arith.constant 0 : i32
    %c0_i32_1 = arith.constant 0 : i32
    return %arg0, %c0_i32, %c0_i32_0 : i32, i32, i32
  }
}

module attributes {stable_mosaic.version = 11 : i64} {
  func.func @_fused_conv_kernel(%arg0: i32, %arg1: memref<1x17x1024xbf16, #tpu.memory_space<vmem>>, %arg2: memref<4x1024x512xbf16, #tpu.memory_space<vmem>>, %arg3: memref<1x6xf32, #tpu.memory_space<vmem>>, %arg4: memref<1x6x512xbf16, #tpu.memory_space<vmem>>) attributes {dimension_semantics = [#tpu.dimension_semantics<parallel>], iteration_bounds = array<i64: 2>, scalar_prefetch = 0 : i64, scratch_operands = 0 : i64, tpu.core_type = #tpu.core_type<tc>, window_params = [{transform_indices = @transform_0, window_bounds = array<i64: 1, 17, 1024>}, {pipeline_mode = #tpu.pipeline_mode<synchronous>, transform_indices = @transform_1, window_bounds = array<i64: 4, 1024, 512>}, {pipeline_mode = #tpu.pipeline_mode<synchronous>, transform_indices = @transform_2, window_bounds = array<i64: 1, 6>}, {transform_indices = @transform_3, window_bounds = array<i64: 1, 6, 512>}]} {
    %c0 = arith.constant 0 : index
    %c0_0 = arith.constant 0 : index
    %c0_1 = arith.constant 0 : index
    %0 = vector.load %arg1[%c0, %c0_0, %c0_1] : memref<1x17x1024xbf16, #tpu.memory_space<vmem>>, vector<1x17x1024xbf16>
    %1 = vector.shape_cast %0 : vector<1x17x1024xbf16> to vector<17x1024xbf16>
    %2 = vector.extract_strided_slice %1 {offsets = [0, 0], sizes = [6, 1024], strides = [1, 1]} : vector<17x1024xbf16> to vector<6x1024xbf16>
    %c0_2 = arith.constant 0 : index
    %c0_3 = arith.constant 0 : index
    %c0_4 = arith.constant 0 : index
    %3 = vector.load %arg2[%c0_2, %c0_3, %c0_4] : memref<4x1024x512xbf16, #tpu.memory_space<vmem>>, vector<1x1024x512xbf16>
    %4 = vector.shape_cast %3 : vector<1x1024x512xbf16> to vector<1024x512xbf16>
    %cst = arith.constant dense<0.000000e+00> : vector<6x512xf32>
    %5 = tpu.matmul %2, %4, %cst {dimension_numbers = #tpu.dot_dimension_numbers<[1], [0], [0], [1], [0, 0, 1, 1], [], []>} : vector<6x1024xbf16>, vector<1024x512xbf16>, vector<6x512xf32> -> vector<6x512xf32>
    %6 = vector.extract_strided_slice %1 {offsets = [1, 0], sizes = [6, 1024], strides = [1, 1]} : vector<17x1024xbf16> to vector<6x1024xbf16>
    %c1 = arith.constant 1 : index
    %c0_5 = arith.constant 0 : index
    %c0_6 = arith.constant 0 : index
    %7 = vector.load %arg2[%c1, %c0_5, %c0_6] : memref<4x1024x512xbf16, #tpu.memory_space<vmem>>, vector<1x1024x512xbf16>
    %8 = vector.shape_cast %7 : vector<1x1024x512xbf16> to vector<1024x512xbf16>
    %cst_7 = arith.constant dense<0.000000e+00> : vector<6x512xf32>
    %9 = tpu.matmul %6, %8, %cst_7 {dimension_numbers = #tpu.dot_dimension_numbers<[1], [0], [0], [1], [0, 0, 1, 1], [], []>} : vector<6x1024xbf16>, vector<1024x512xbf16>, vector<6x512xf32> -> vector<6x512xf32>
    %10 = arith.addf %5, %9 : vector<6x512xf32>
    %11 = vector.extract_strided_slice %1 {offsets = [3, 0], sizes = [6, 1024], strides = [1, 1]} : vector<17x1024xbf16> to vector<6x1024xbf16>
    %c2 = arith.constant 2 : index
    %c0_8 = arith.constant 0 : index
    %c0_9 = arith.constant 0 : index
    %12 = vector.load %arg2[%c2, %c0_8, %c0_9] : memref<4x1024x512xbf16, #tpu.memory_space<vmem>>, vector<1x1024x512xbf16>
    %13 = vector.shape_cast %12 : vector<1x1024x512xbf16> to vector<1024x512xbf16>
    %cst_10 = arith.constant dense<0.000000e+00> : vector<6x512xf32>
    %14 = tpu.matmul %11, %13, %cst_10 {dimension_numbers = #tpu.dot_dimension_numbers<[1], [0], [0], [1], [0, 0, 1, 1], [], []>} : vector<6x1024xbf16>, vector<1024x512xbf16>, vector<6x512xf32> -> vector<6x512xf32>
    %15 = arith.addf %10, %14 : vector<6x512xf32>
    %16 = vector.extract_strided_slice %1 {offsets = [4, 0], sizes = [6, 1024], strides = [1, 1]} : vector<17x1024xbf16> to vector<6x1024xbf16>
    %c3 = arith.constant 3 : index
    %c0_11 = arith.constant 0 : index
    %c0_12 = arith.constant 0 : index
    %17 = vector.load %arg2[%c3, %c0_11, %c0_12] : memref<4x1024x512xbf16, #tpu.memory_space<vmem>>, vector<1x1024x512xbf16>
    %18 = vector.shape_cast %17 : vector<1x1024x512xbf16> to vector<1024x512xbf16>
    %cst_13 = arith.constant dense<0.000000e+00> : vector<6x512xf32>
    %19 = tpu.matmul %16, %18, %cst_13 {dimension_numbers = #tpu.dot_dimension_numbers<[1], [0], [0], [1], [0, 0, 1, 1], [], []>} : vector<6x1024xbf16>, vector<1024x512xbf16>, vector<6x512xf32> -> vector<6x512xf32>
    %20 = arith.addf %15, %19 : vector<6x512xf32>
    %c0_14 = arith.constant 0 : index
    %c0_15 = arith.constant 0 : index
    %21 = vector.load %arg3[%c0_14, %c0_15] : memref<1x6xf32, #tpu.memory_space<vmem>>, vector<1x6xf32>
    %cst_16 = arith.constant dense<0.000000e+00> : vector<1x512xf32>
    %22 = tpu.matmul %21, %20, %cst_16 {dimension_numbers = #tpu.dot_dimension_numbers<[1], [0], [0], [1], [0, 0, 1, 1], [], []>} : vector<1x6xf32>, vector<6x512xf32>, vector<1x512xf32> -> vector<1x512xf32>
    %23 = arith.mulf %20, %20 : vector<6x512xf32>
    %cst_17 = arith.constant dense<0.000000e+00> : vector<1x512xf32>
    %24 = tpu.matmul %21, %23, %cst_17 {dimension_numbers = #tpu.dot_dimension_numbers<[1], [0], [0], [1], [0, 0, 1, 1], [], []>} : vector<1x6xf32>, vector<6x512xf32>, vector<1x512xf32> -> vector<1x512xf32>
    %cst_18 = arith.constant 2.500000e-01 : f32
    %25 = vector.broadcast %cst_18 : f32 to vector<1x512xf32>
    %26 = arith.mulf %22, %25 : vector<1x512xf32>
    %cst_19 = arith.constant 2.500000e-01 : f32
    %27 = vector.broadcast %cst_19 : f32 to vector<1x512xf32>
    %28 = arith.mulf %24, %27 : vector<1x512xf32>
    %29 = arith.mulf %26, %26 : vector<1x512xf32>
    %30 = arith.subf %28, %29 : vector<1x512xf32>
    %cst_20 = arith.constant 0.000000e+00 : f32
    %31 = vector.broadcast %cst_20 : f32 to vector<1x512xf32>
    %32 = arith.maximumf %30, %31 : vector<1x512xf32>
    %33 = vector.broadcast %26 : vector<1x512xf32> to vector<6x512xf32>
    %34 = arith.subf %20, %33 : vector<6x512xf32>
    %cst_21 = arith.constant 9.99999974E-6 : f32
    %35 = vector.broadcast %cst_21 : f32 to vector<1x512xf32>
    %36 = arith.addf %32, %35 : vector<1x512xf32>
    %37 = math.rsqrt %36 : vector<1x512xf32>
    %38 = vector.broadcast %37 : vector<1x512xf32> to vector<6x512xf32>
    %39 = arith.mulf %34, %38 : vector<6x512xf32>
    %cst_22 = arith.constant 0.00999999977 : f32
    %40 = vector.broadcast %cst_22 : f32 to vector<6x512xf32>
    %41 = arith.mulf %40, %39 : vector<6x512xf32>
    %42 = arith.maximumf %39, %41 : vector<6x512xf32>
    %43 = arith.truncf %42 : vector<6x512xf32> to vector<6x512xbf16>
    %c0_23 = arith.constant 0 : index
    %c0_24 = arith.constant 0 : index
    %c0_25 = arith.constant 0 : index
    %44 = vector.load %arg4[%c0_23, %c0_24, %c0_25] : memref<1x6x512xbf16, #tpu.memory_space<vmem>>, vector<1x6x512xbf16>
    %45 = vector.shape_cast %44 : vector<1x6x512xbf16> to vector<6x512xbf16>
    %46 = vector.shape_cast %43 : vector<6x512xbf16> to vector<1x6x512xbf16>
    tpu.vector_store %arg4[%c0_23, %c0_24, %c0_25], %46 {strides = array<i32>} : memref<1x6x512xbf16, #tpu.memory_space<vmem>>, vector<1x6x512xbf16>,
    return
  }
  func.func @transform_0(%arg0: i32) -> (i32, i32, i32) {
    %c0_i32 = arith.constant 0 : i32
    %c0_i32_0 = arith.constant 0 : i32
    %c0_i32_1 = arith.constant 0 : i32
    return %arg0, %c0_i32, %c0_i32_0 : i32, i32, i32
  }
  func.func @transform_1(%arg0: i32) -> (i32, i32, i32) {
    %c0_i32 = arith.constant 0 : i32
    %c0_i32_0 = arith.constant 0 : i32
    %c0_i32_1 = arith.constant 0 : i32
    %c0_i32_2 = arith.constant 0 : i32
    return %c0_i32, %c0_i32_0, %c0_i32_1 : i32, i32, i32
  }
  func.func @transform_2(%arg0: i32) -> (i32, i32) {
    %c0_i32 = arith.constant 0 : i32
    %c0_i32_0 = arith.constant 0 : i32
    %c0_i32_1 = arith.constant 0 : i32
    return %c0_i32, %c0_i32_0 : i32, i32
  }
  func.func @transform_3(%arg0: i32) -> (i32, i32, i32) {
    %c0_i32 = arith.constant 0 : i32
    %c0_i32_0 = arith.constant 0 : i32
    %c0_i32_1 = arith.constant 0 : i32
    return %arg0, %c0_i32, %c0_i32_0 : i32, i32, i32
  }
}

module attributes {stable_mosaic.version = 11 : i64} {
  func.func @_mm_kernel(%arg0: i32, %arg1: memref<16x512xbf16, #tpu.memory_space<vmem>>, %arg2: memref<512x128xbf16, #tpu.memory_space<vmem>>, %arg3: memref<1x128xf32, #tpu.memory_space<vmem>>, %arg4: memref<16x128xf32, #tpu.memory_space<vmem>>) attributes {dimension_semantics = [#tpu.dimension_semantics<parallel>], iteration_bounds = array<i64: 1>, scalar_prefetch = 0 : i64, scratch_operands = 0 : i64, tpu.core_type = #tpu.core_type<tc>, window_params = [{transform_indices = @transform_0, window_bounds = array<i64: 16, 512>}, {pipeline_mode = #tpu.pipeline_mode<synchronous>, transform_indices = @transform_1, window_bounds = array<i64: 512, 128>}, {pipeline_mode = #tpu.pipeline_mode<synchronous>, transform_indices = @transform_2, window_bounds = array<i64: 1, 128>}, {transform_indices = @transform_3, window_bounds = array<i64: 16, 128>}]} {
    %c0 = arith.constant 0 : index
    %c0_0 = arith.constant 0 : index
    %0 = vector.load %arg1[%c0, %c0_0] : memref<16x512xbf16, #tpu.memory_space<vmem>>, vector<16x512xbf16>
    %c0_1 = arith.constant 0 : index
    %c0_2 = arith.constant 0 : index
    %1 = vector.load %arg2[%c0_1, %c0_2] : memref<512x128xbf16, #tpu.memory_space<vmem>>, vector<512x128xbf16>
    %cst = arith.constant dense<0.000000e+00> : vector<16x128xf32>
    %2 = tpu.matmul %0, %1, %cst {dimension_numbers = #tpu.dot_dimension_numbers<[1], [0], [0], [1], [0, 0, 1, 1], [], []>} : vector<16x512xbf16>, vector<512x128xbf16>, vector<16x128xf32> -> vector<16x128xf32>
    %c0_3 = arith.constant 0 : index
    %c0_4 = arith.constant 0 : index
    %3 = vector.load %arg3[%c0_3, %c0_4] : memref<1x128xf32, #tpu.memory_space<vmem>>, vector<1x128xf32>
    %4 = vector.broadcast %3 : vector<1x128xf32> to vector<16x128xf32>
    %5 = arith.addf %2, %4 : vector<16x128xf32>
    %c0_5 = arith.constant 0 : index
    %c0_6 = arith.constant 0 : index
    %6 = vector.load %arg4[%c0_5, %c0_6] : memref<16x128xf32, #tpu.memory_space<vmem>>, vector<16x128xf32>
    tpu.vector_store %arg4[%c0_5, %c0_6], %5 {strides = array<i32>} : memref<16x128xf32, #tpu.memory_space<vmem>>, vector<16x128xf32>,
    return
  }
  func.func @transform_0(%arg0: i32) -> (i32, i32) {
    %c0_i32 = arith.constant 0 : i32
    %c0_i32_0 = arith.constant 0 : i32
    return %arg0, %c0_i32 : i32, i32
  }
  func.func @transform_1(%arg0: i32) -> (i32, i32) {
    %c0_i32 = arith.constant 0 : i32
    %c0_i32_0 = arith.constant 0 : i32
    %c0_i32_1 = arith.constant 0 : i32
    return %c0_i32, %c0_i32_0 : i32, i32
  }
  func.func @transform_2(%arg0: i32) -> (i32, i32) {
    %c0_i32 = arith.constant 0 : i32
    %c0_i32_0 = arith.constant 0 : i32
    %c0_i32_1 = arith.constant 0 : i32
    return %c0_i32, %c0_i32_0 : i32, i32
  }
  func.func @transform_3(%arg0: i32) -> (i32, i32) {
    %c0_i32 = arith.constant 0 : i32
    %c0_i32_0 = arith.constant 0 : i32
    return %arg0, %c0_i32 : i32, i32
  }
}

</mosaic_0001>

<bundles_post_ra>
// kernel: patchgan_discriminator_forward.5
= control target key start
LH: loop header
LB: loop body
LE: loop exit
PB: predicated region body
PF: predicated region fallthrough
CT: control target
= control target key end

     0   :  { %s2279_s9 = smov 0   ;;  %s2899_s0 = inlined_call_operand.vmem [shape: bf16[2,297,12], index: 0, kind: input, shape index: {}]   ;;  %s2900_s1 = inlined_call_operand.vmem [shape: bf16[4,12,64], index: 1, kind: input, shape index: {}]   ;;  %s2901_s2 = inlined_call_operand.vmem [shape: bf16[2,272,64], index: 2, kind: output, shape index: {}]  }
   0x1 LB: > { %s1691_s10 = sadd.s32 4294967295, %s2260_s9   ;;  %p1695_p0 = scmp.ge.s32.totalorder %s2260_s9, 1  ;;  %s2260_s9 = sphi %s2279_s9, %s12_s9  }
   0x2   : > { %p112_p1 = scmp.lt.s32.totalorder %s2260_s9, 3 }
   0x4   : > { %p113_p2 = pnand %p1695_p0, %p112_p1 }
   0x5   : > { %p134_p3 = scmp.lt.s32.totalorder (!%p113_p2), %s1691_s10, 1 }
   0x6   : > { %116 = sbr.rel (%p113_p2) target bundleno = 495 (0x1ef), region = 28 }
   0xb   : > { %vm473_vm0 = vcmask 1045504   ;;  %v2262_v0 = vmov 0.0   ;;  %v2230_v1 = vld [vmem:[%s2900_s1] sm:$0x3f]   ;;  %vm2263_vm1 = vmmov 0   ;;  %s2903_s10 = smov (!%p134_p3, %s1691_s10), 1 }
   0xc   : > { %2008 = vmatprep.subr.bf16.mxu1 %v2262_v0  ;;  %1938 = vmatprep.subr.bf16.mxu0 %v2262_v0  ;;  %v2231_v2 = vld [vmem:[%s2900_s1 + $0x8] sm:$0x3f]   ;;  %v686_v3 = vsel %vm473_vm0, %v2230_v1, 0  ;;  %s2218_s15 = smul.u32 152, %s2903_s10  ;;  %v2235_v5 = vld [vmem:[%s2900_s1 + $0x18] sm:$0x3f]  }
   0xd   : > { %2010 = vmatprep.mubr.msk.bf16.mxu1 %vm2263_vm1, %v2262_v0  ;;  %1940 = vmatprep.mubr.msk.bf16.mxu0 %vm2263_vm1, %v2262_v0  ;;  %v475_v4 = vsel %vm473_vm0, %v2231_v2, 0  ;;  %vm421_vm2 = vcmask 97280   ;;  %v1192_v7 = vsel %vm473_vm0, %v2235_v5, 0  ;;  %v2234_v12 = vld [vmem:[%s2900_s1 + $0x10] sm:$0x3f]   ;;  %vm1099_vm4 = vcmask 1046528  }
   0xe   : > { %2009 = vmatpush3.bf16.msra.mxu1 %v686_v3  ;;  %1939 = vmatpush3.bf16.msra.mxu0 %v475_v4  ;;  %s2312_s20 = scalar_lea.vmem %s2899_s0, %s2218_s15  ;;  %vm275_vm3 = vsmask.f32 7424  ;;  %v891_v19 = vsel %vm473_vm0, %v2234_v12, 0  ;;  %s2219_s23 = smul.u32 136, %s2903_s10  ;;  %vm1601_vm5 = vcmask 519168  }
   0xf   : > { %2148 = vmatprep.subr.bf16.mxu1 %v2262_v0  ;;  %2078 = vmatprep.subr.bf16.mxu0 %v2262_v0  ;;  %v2232_v6 = vld [vmem:[%s2312_s20] sm:$0xff]   ;;  %v2233_v8 = vld [vmem:[%s2312_s20 + $0x8] sm:$0xff]   ;;  %v2236_v13 = vld [vmem:[%s2312_s20 + $0x10] sm:$0xff]  }
  0x10   : > { %v277_v9 = vshrl.u32 %v2232_v6, 16  ;;  %v279_v10 = vshll.u32 %v2232_v6, 16  ;;  %v284_v11 = vshll.u32 %v2233_v8, 16  ;;  %v288_v17 = vshrl.u32 %v2233_v8, 16  ;;  %v2237_v23 = vld [vmem:[%s2312_s20 + $0x18] sm:$0xff]   ;;  %v2238_v29 = vld [vmem:[%s2312_s20 + $0x20] sm:$0xff]   ;;  %s2794_s26 = scalar_lea.vmem %s2901_s2, %s2219_s23 }
  0x11   : > { %2011 = vmatmul.mubr.msk.bf16.vlgmr.msra.gmra.mxu1 %vm421_vm2, %v2232_v6  ;;  %v292_v18 = vshll.u32 %v2236_v13, 16  ;;  %v296_v25 = vshrl.u32 %v2236_v13, 16  ;;  %v300_v26 = vshll.u32 %v2237_v23, 16  ;;  %v304_v31 = vshrl.u32 %v2237_v23, 16  ;;  %v2239_v36 = vld [vmem:[%s2312_s20 + $0x28] sm:$0xff]   ;;  %v2240_v49 = vld [vmem:[%s2312_s20 + $0x30] sm:$0xff]  }
  0x12   : > { %2149 = vmatpush3.bf16.msra.mxu1 %v1192_v7  ;;  %2014 = vmatprep.mubr.msk.bf16.mxu1 %vm2263_vm1, %v2262_v0  ;;  %v281_v14 = vrot.slane %v279_v10, 1  ;;  %v286_v15 = vrot.slane %v284_v11, 1  ;;  %v308_v32 = vshll.u32 %v2238_v29, 16  ;;  %v1100_v33 = vrot.slane %v2233_v8, 1  ;;  %v2241_v57 = vld [vmem:[%s2312_s20 + $0x38] sm:$0xff]   ;;  %v2242_v2 = vld [vmem:[%s2312_s20 + $0x40] sm:$0xff]  }
  0x13   : > { %v294_v22 = vrot.slane %v292_v18, 1  ;;  %v302_v28 = vrot.slane %v300_v26, 1  ;;  %v1101_v37 = vrot.slane %v2236_v13, 1  ;;  %v1103_v38 = vrot.slane %v2237_v23, 1  ;;  %v2415_v10 = vld [vmem:[%s2312_s20 + $0x48] sm:$0xff]   ;;  %v2454_v26 = vld [vmem:[%s2312_s20 + $0x58] sm:$0xff]  }
  0x14   : > { %v282_v16 = vor.u32 %v281_v14, %v277_v9  ;;  %v290_v21 = vor.u32 %v288_v17, %v286_v15  ;;  %v310_v35 = vrot.slane %v308_v32, 1  ;;  %v1105_v39 = vrot.slane %v2238_v29, 1  ;;  %v2432_v17 = vld [vmem:[%s2312_s20 + $0x50] sm:$0xff]  }
  0x15   : > { %v298_v27 = vor.u32 %v296_v25, %v294_v22  ;;  %v306_v34 = vor.u32 %v304_v31, %v302_v28  ;;  %v2356_v40 = vsel %vm1099_vm4, %v1100_v33, %v1101_v37  ;;  %v2359_v41 = vsel %vm1099_vm4, %v1101_v37, %v1103_v38  ;;  %v2470_v33 = vld [vmem:[%s2312_s20 + $0x60] sm:$0xff]  }
  0x16   : > { %v287_v20 = vsel %vm275_vm3, %v282_v16, %v286_v15  ;;  %v2334_v24 = vsel %vm275_vm3, %v290_v21, %v294_v22  ;;  %v2362_v42 = vsel %vm1099_vm4, %v1103_v38, %v1105_v39  ;;  %v312_v44 = vshrl.u32 %v2238_v29, 16 }
  0x17   : > { %1941 = vmatmul.mubr.msk.bf16.vlgmr.msra.gmra.mxu0 %vm421_vm2, %v287_v20  ;;  %v2345_v30 = vsel %vm275_vm3, %v298_v27, %v302_v28  ;;  %v2365_v43 = vsel %vm275_vm3, %v306_v34, %v310_v35  ;;  %v316_v45 = vshll.u32 %v2239_v36, 16  ;;  %v1107_v46 = vrot.slane %v2239_v36, 1 }
  0x18   : > { %2079 = vmatpush3.bf16.msra.mxu0 %v891_v19  ;;  %1944 = vmatprep.mubr.msk.bf16.mxu0 %vm2263_vm1, %v2262_v0  ;;  %v314_v47 = vor.u32 %v312_v44, %v310_v35  ;;  %v320_v52 = vshrl.u32 %v2239_v36, 16  ;;  %v324_v53 = vshll.u32 %v2240_v49, 16  ;;  %v1109_v54 = vrot.slane %v2240_v49, 1 }
  0x19   : > { %2015 = vmatmul.mubr.msk.bf16.gmra.mxu1 %vm421_vm2, %v2233_v8  ;;  %v318_v48 = vrot.slane %v316_v45, 1  ;;  %v2376_v50 = vsel %vm1099_vm4, %v1105_v39, %v1107_v46  ;;  %v328_v60 = vshrl.u32 %v2240_v49, 16  ;;  %v332_v61 = vshll.u32 %v2241_v57, 16  ;;  %v2486_v39 = vld [vmem:[%s2312_s20 + $0x68] sm:$0xff]  }
  0x1a   : > { %2018 = vmatprep.mubr.msk.bf16.mxu1 %vm2263_vm1, %v2262_v0  ;;  %v326_v56 = vrot.slane %v324_v53, 1  ;;  %v2390_v58 = vsel %vm1099_vm4, %v1107_v46, %v1109_v54  ;;  %v1111_v62 = vrot.slane %v2241_v57, 1  ;;  %v336_v5 = vshrl.u32 %v2241_v57, 16 }
  0x1b   : > { %v2379_v51 = vsel %vm275_vm3, %v314_v47, %v318_v48  ;;  %v322_v55 = vor.u32 %v320_v52, %v318_v48  ;;  %v334_v1 = vrot.slane %v332_v61, 1  ;;  %v340_v6 = vshll.u32 %v2242_v2, 16 }
  0x1c   : > { %v330_v63 = vor.u32 %v328_v60, %v326_v56  ;;  %v2404_v3 = vsel %vm1099_vm4, %v1109_v54, %v1111_v62  ;;  %v1113_v7 = vrot.slane %v2242_v2, 1  ;;  %v348_v14 = vshll.u32 %v2415_v10, 16 }
  0x1d   : > { %v2393_v59 = vsel %vm275_vm3, %v322_v55, %v326_v56  ;;  %v338_v8 = vor.u32 %v336_v5, %v334_v1  ;;  %v342_v9 = vrot.slane %v340_v6, 1  ;;  %v1115_v18 = vrot.slane %v2415_v10, 1 }
  0x1e   : > { %v2407_v4 = vsel %vm275_vm3, %v330_v63, %v334_v1  ;;  %v2420_v11 = vsel %vm1099_vm4, %v1111_v62, %v1113_v7  ;;  %v350_v16 = vrot.slane %v348_v14, 1  ;;  %v352_v21 = vshrl.u32 %v2415_v10, 16 }
  0x1f   : > { %1945 = vmatmul.mubr.msk.bf16.gmra.mxu0 %vm421_vm2, %v2334_v24  ;;  %v2423_v12 = vsel %vm275_vm3, %v338_v8, %v342_v9  ;;  %v2440_v19 = vsel %vm1099_vm4, %v1113_v7, %v1115_v18  ;;  %v356_v22 = vshll.u32 %v2432_v17, 16  ;;  %v360_v28 = vshrl.u32 %v2432_v17, 16  ;;  %v2544_v8 = vld [vmem:[%s2312_s20 + $0x88] sm:$0xf] }
  0x20   : > { %1948 = vmatprep.mubr.msk.bf16.mxu0 %vm2263_vm1, %v2262_v0  ;;  %v368_v35 = vshrl.u32 %v2454_v26, 16  ;;  %v376_v45 = vshrl.u32 %v2470_v33, 16  ;;  %v380_v46 = vshll.u32 %v2486_v39, 16  ;;  %v384_v53 = vshrl.u32 %v2486_v39, 16 }
  0x21   : > { %2019 = vmatmul.mubr.msk.bf16.gmra.mxu1 %vm421_vm2, %v2236_v13  ;;  %v344_v13 = vshrl.u32 %v2242_v2, 16  ;;  %v358_v25 = vrot.slane %v356_v22, 1  ;;  %v1717_v14 = vcombine.low %v2544_v8, %v2544_v8 }
  0x22   : > { %2022 = vmatprep.mubr.msk.bf16.mxu1 %vm2263_vm1, %v2262_v0  ;;  %v382_v48 = vrot.slane %v380_v46, 1 }
  0x23   : > { %v346_v15 = vor.u32 %v344_v13, %v342_v9  ;;  %v362_v31 = vor.u32 %v360_v28, %v358_v25 }
  0x24   : > { %v386_v55 = vor.u32 %v384_v53, %v382_v48  ;;  %v1123_v53 = vrot.slane %v2486_v39, 1 }
  0x25   : > { %v2443_v20 = vsel %vm275_vm3, %v346_v15, %v350_v16 }
  0x27   : > { %1949 = vmatmul.mubr.msk.bf16.gmra.mxu0 %vm421_vm2, %v2345_v30 }
  0x28   : > { %1952 = vmatprep.mubr.msk.bf16.mxu0 %vm2263_vm1, %v2262_v0 }
  0x29   : > { %2023 = vmatmul.mubr.msk.bf16.gmra.mxu1 %vm421_vm2, %v2237_v23  ;;  %v354_v23 = vor.u32 %v352_v21, %v350_v16  ;;  %v412_v21 = vshll.u32 %v1717_v14, 16 }
  0x2a   : > { %2026 = vmatprep.mubr.msk.bf16.mxu1 %vm2263_vm1, %v2262_v0 }
  0x2b   : > { %v2459_v27 = vsel %vm275_vm3, %v354_v23, %v358_v25  ;;  %v414_v23 = vrot.slane %v412_v21, 1 }
  0x2f   : > { %1953 = vmatmul.mubr.msk.bf16.gmra.mxu0 %vm421_vm2, %v2365_v43 }
  0x30   : > { %1956 = vmatprep.mubr.msk.bf16.mxu0 %vm2263_vm1, %v2262_v0 }
  0x31   : > { %2027 = vmatmul.mubr.msk.bf16.gmra.mxu1 %vm421_vm2, %v2238_v29  ;;  %v364_v29 = vshll.u32 %v2454_v26, 16 }
  0x32   : > { %2030 = vmatprep.mubr.msk.bf16.mxu1 %vm2263_vm1, %v2262_v0 }
  0x33   : > { %v366_v32 = vrot.slane %v364_v29, 1 }
  0x35   : > { %v2475_v34 = vsel %vm275_vm3, %v362_v31, %v366_v32  ;;  %v370_v37 = vor.u32 %v368_v35, %v366_v32  ;;  %v1121_v31 = vrot.slane %v2470_v33, 1 }
  0x37   : > { %1957 = vmatmul.mubr.msk.bf16.gmra.mxu0 %vm421_vm2, %v2379_v51 }
  0x38   : > { %1960 = vmatprep.mubr.msk.bf16.mxu0 %vm2263_vm1, %v2262_v0 }
  0x39   : > { %2031 = vmatmul.mubr.msk.bf16.gmra.mxu1 %vm421_vm2, %v2239_v36  ;;  %v372_v36 = vshll.u32 %v2470_v33, 16 }
  0x3a   : > { %2034 = vmatprep.mubr.msk.bf16.mxu1 %vm2263_vm1, %v2262_v0 }
  0x3b   : > { %v374_v38 = vrot.slane %v372_v36, 1 }
  0x3d   : > { %v2491_v44 = vsel %vm275_vm3, %v370_v37, %v374_v38  ;;  %v378_v47 = vor.u32 %v376_v45, %v374_v38 }
  0x3f   : > { %1961 = vmatmul.mubr.msk.bf16.gmra.mxu0 %vm421_vm2, %v2393_v59  ;;  %v2507_v52 = vsel %vm275_vm3, %v378_v47, %v382_v48 }
  0x40   : > { %1964 = vmatprep.mubr.msk.bf16.mxu0 %vm2263_vm1, %v2262_v0 }
  0x41   : > { %2035 = vmatmul.mubr.msk.bf16.gmra.mxu1 %vm421_vm2, %v2240_v49  ;;  %v2502_v49 = vld [vmem:[%s2312_s20 + $0x70] sm:$0xff]  }
  0x42   : > { %2038 = vmatprep.mubr.msk.bf16.mxu1 %vm2263_vm1, %v2262_v0  ;;  %v388_v54 = vshll.u32 %v2502_v49, 16  ;;  %v392_v61 = vshrl.u32 %v2502_v49, 16 }
  0x44   : > { %v390_v56 = vrot.slane %v388_v54, 1 }
  0x46   : > { %v2523_v60 = vsel %vm275_vm3, %v386_v55, %v390_v56  ;;  %v394_v63 = vor.u32 %v392_v61, %v390_v56 }
  0x47   : > { %1965 = vmatmul.mubr.msk.bf16.gmra.mxu0 %vm421_vm2, %v2407_v4 }
  0x48   : > { %1968 = vmatprep.mubr.msk.bf16.mxu0 %vm2263_vm1, %v2262_v0 }
  0x49   : > { %2039 = vmatmul.mubr.msk.bf16.gmra.mxu1 %vm421_vm2, %v2241_v57  ;;  %v2518_v57 = vld [vmem:[%s2312_s20 + $0x78] sm:$0xff]  }
  0x4a   : > { %2042 = vmatprep.mubr.msk.bf16.mxu1 %vm2263_vm1, %v2262_v0  ;;  %v396_v62 = vshll.u32 %v2518_v57, 16  ;;  %v400_v6 = vshrl.u32 %v2518_v57, 16 }
  0x4c   : > { %v398_v1 = vrot.slane %v396_v62, 1  ;;  %v1124_v62 = vsel %vm1099_vm4, %v1121_v31, %v1123_v53 }
  0x4e   : > { %v2539_v5 = vsel %vm275_vm3, %v394_v63, %v398_v1  ;;  %v402_v9 = vor.u32 %v400_v6, %v398_v1 }
  0x4f   : > { %1969 = vmatmul.mubr.msk.bf16.gmra.mxu0 %vm421_vm2, %v2423_v12 }
  0x50   : > { %1972 = vmatprep.mubr.msk.bf16.mxu0 %vm2263_vm1, %v2262_v0 }
  0x51   : > { %2043 = vmatmul.mubr.msk.bf16.gmra.mxu1 %vm421_vm2, %v2242_v2  ;;  %v2534_v2 = vld [vmem:[%s2312_s20 + $0x80] sm:$0xff]  }
  0x52   : > { %2046 = vmatprep.mubr.msk.bf16.mxu1 %vm2263_vm1, %v2262_v0  ;;  %v404_v7 = vshll.u32 %v2534_v2, 16  ;;  %v408_v16 = vshrl.u32 %v2534_v2, 16 }
  0x54   : > { %v406_v13 = vrot.slane %v404_v7, 1 }
  0x56   : > { %v2557_v15 = vsel %vm275_vm3, %v402_v9, %v406_v13  ;;  %v2566_v22 = vor.u32 %v408_v16, %v406_v13  ;;  %v1125_v9 = vrot.slane %v2502_v49, 1 }
  0x57   : > { %1973 = vmatmul.mubr.msk.bf16.gmra.mxu0 %vm421_vm2, %v2443_v20 }
  0x58   : > { %1976 = vmatprep.mubr.msk.bf16.mxu0 %vm2263_vm1, %v2262_v0  ;;  %v415_v25 = vsel %vm275_vm3, %v2566_v22, %v414_v23  ;;  %v1126_v23 = vsel %vm1099_vm4, %v1123_v53, %v1125_v9 }
  0x59   : > { %2047 = vmatmul.mubr.msk.bf16.gmra.mxu1 %vm421_vm2, %v2415_v10 }
  0x5a   : > { %2050 = vmatprep.mubr.msk.bf16.mxu1 %vm2263_vm1, %v2262_v0 }
  0x5f   : > { %1977 = vmatmul.mubr.msk.bf16.gmra.mxu0 %vm421_vm2, %v2459_v27 }
  0x60   : > { %1980 = vmatprep.mubr.msk.bf16.mxu0 %vm2263_vm1, %v2262_v0 }
  0x61   : > { %2051 = vmatmul.mubr.msk.bf16.gmra.mxu1 %vm421_vm2, %v2432_v17 }
  0x62   : > { %2054 = vmatprep.mubr.msk.bf16.mxu1 %vm2263_vm1, %v2262_v0 }
  0x67   : > { %1981 = vmatmul.mubr.msk.bf16.gmra.mxu0 %vm421_vm2, %v2475_v34 }
  0x68   : > { %1984 = vmatprep.mubr.msk.bf16.mxu0 %vm2263_vm1, %v2262_v0 }
  0x69   : > { %2055 = vmatmul.mubr.msk.bf16.gmra.mxu1 %vm421_vm2, %v2454_v26 }
  0x6a   : > { %2058 = vmatprep.mubr.msk.bf16.mxu1 %vm2263_vm1, %v2262_v0 }
  0x6f   : > { %1985 = vmatmul.mubr.msk.bf16.gmra.mxu0 %vm421_vm2, %v2491_v44 }
  0x70   : > { %1988 = vmatprep.mubr.msk.bf16.mxu0 %vm2263_vm1, %v2262_v0 }
  0x71   : > { %2059 = vmatmul.mubr.msk.bf16.gmra.mxu1 %vm421_vm2, %v2470_v33 }
  0x72   : > { %2062 = vmatprep.mubr.msk.bf16.mxu1 %vm2263_vm1, %v2262_v0 }
  0x77   : > { %1989 = vmatmul.mubr.msk.bf16.gmra.mxu0 %vm421_vm2, %v2507_v52 }
  0x78   : > { %1992 = vmatprep.mubr.msk.bf16.mxu0 %vm2263_vm1, %v2262_v0 }
  0x79   : > { %2063 = vmatmul.mubr.msk.bf16.gmra.mxu1 %vm421_vm2, %v2486_v39 }
  0x7a   : > { %2066 = vmatprep.mubr.msk.bf16.mxu1 %vm2263_vm1, %v2262_v0 }
  0x7f   : > { %1993 = vmatmul.mubr.msk.bf16.gmra.mxu0 %vm421_vm2, %v2523_v60 }
  0x80   : > { %1996 = vmatprep.mubr.msk.bf16.mxu0 %vm2263_vm1, %v2262_v0 }
  0x81   : > { %2067 = vmatmul.mubr.msk.bf16.gmra.mxu1 %vm421_vm2, %v2502_v49 }
  0x82   : > { %2070 = vmatprep.mubr.msk.bf16.mxu1 %vm2263_vm1, %v2262_v0 }
  0x87   : > { %1997 = vmatmul.mubr.msk.bf16.gmra.mxu0 %vm421_vm2, %v2539_v5 }
  0x88   : > { %2000 = vmatprep.mubr.msk.bf16.mxu0 %vm2263_vm1, %v2262_v0 }
  0x89   : > { %2071 = vmatmul.mubr.msk.bf16.gmra.mxu1 %vm421_vm2, %v2518_v57 }
  0x8a   : > { %2074 = vmatprep.mubr.msk.bf16.mxu1 %vm2263_vm1, %v2262_v0 }
  0x8f   : > { %2001 = vmatmul.mubr.msk.bf16.gmra.mxu0 %vm421_vm2, %v2557_v15 }
  0x90   : > { %2004 = vmatprep.mubr.msk.bf16.mxu0 %vm2263_vm1, %v2262_v0 }
  0x91   : > { %2075 = vmatmul.mubr.msk.bf16.gmra.mxu1 %vm421_vm2, %v2534_v2 }
  0x92   : > { %2150 = vmatprep.mubr.msk.bf16.mxu1 %vm2263_vm1, %v2262_v0 }
  0x97   : > { %2005 = vmatmul.mubr.msk.bf16.gmra.mxu0 %vm421_vm2, %v415_v25 }
  0x98   : > { %2080 = vmatprep.mubr.msk.bf16.mxu0 %vm2263_vm1, %v2262_v0 }
  0x99   : > { %2151 = vmatmul.mubr.msk.bf16.vlgmr.msra.gmra.mxu1 %vm421_vm2, %v2356_v40 }
  0x9a   : > { %2154 = vmatprep.mubr.msk.bf16.mxu1 %vm2263_vm1, %v2262_v0 }
  0x9f   : > { %2081 = vmatmul.mubr.msk.bf16.vlgmr.msra.gmra.mxu0 %vm421_vm2, %v2334_v24 }
  0xa0   : > { %2084 = vmatprep.mubr.msk.bf16.mxu0 %vm2263_vm1, %v2262_v0 }
  0xa1   : > { %2155 = vmatmul.mubr.msk.bf16.gmra.mxu1 %vm421_vm2, %v2359_v41 }
  0xa2   : > { %2158 = vmatprep.mubr.msk.bf16.mxu1 %vm2263_vm1, %v2262_v0 }
  0xa7   : > { %2085 = vmatmul.mubr.msk.bf16.gmra.mxu0 %vm421_vm2, %v2345_v30  ;;  %v1117_v30 = vrot.slane %v2432_v17, 1 }
  0xa8   : > { %2088 = vmatprep.mubr.msk.bf16.mxu0 %vm2263_vm1, %v2262_v0 }
  0xa9   : > { %2159 = vmatmul.mubr.msk.bf16.gmra.mxu1 %vm421_vm2, %v2362_v42  ;;  %v1118_v42 = vsel %vm1099_vm4, %v1115_v18, %v1117_v30 }
  0xaa   : > { %2162 = vmatprep.mubr.msk.bf16.mxu1 %vm2263_vm1, %v2262_v0 }
  0xaf   : > { %2089 = vmatmul.mubr.msk.bf16.gmra.mxu0 %vm421_vm2, %v2365_v43 }
  0xb0   : > { %2092 = vmatprep.mubr.msk.bf16.mxu0 %vm2263_vm1, %v2262_v0 }
  0xb1   : > { %2163 = vmatmul.mubr.msk.bf16.gmra.mxu1 %vm421_vm2, %v2376_v50 }
  0xb2   : > { %2166 = vmatprep.mubr.msk.bf16.mxu1 %vm2263_vm1, %v2262_v0 }
  0xb7   : > { %2093 = vmatmul.mubr.msk.bf16.gmra.mxu0 %vm421_vm2, %v2379_v51 }
  0xb8   : > { %2096 = vmatprep.mubr.msk.bf16.mxu0 %vm2263_vm1, %v2262_v0 }
  0xb9   : > { %2167 = vmatmul.mubr.msk.bf16.gmra.mxu1 %vm421_vm2, %v2390_v58 }
  0xba   : > { %2170 = vmatprep.mubr.msk.bf16.mxu1 %vm2263_vm1, %v2262_v0 }
  0xbf   : > { %2097 = vmatmul.mubr.msk.bf16.gmra.mxu0 %vm421_vm2, %v2393_v59 }
  0xc0   : > { %2100 = vmatprep.mubr.msk.bf16.mxu0 %vm2263_vm1, %v2262_v0 }
  0xc1   : > { %2171 = vmatmul.mubr.msk.bf16.gmra.mxu1 %vm421_vm2, %v2404_v3  ;;  %v1119_v3 = vrot.slane %v2454_v26, 1 }
  0xc2   : > { %2174 = vmatprep.mubr.msk.bf16.mxu1 %vm2263_vm1, %v2262_v0 }
  0xc3   : > { %v1120_v18 = vsel %vm1099_vm4, %v1117_v30, %v1119_v3  ;;  %v1122_v38 = vsel %vm1099_vm4, %v1119_v3, %v1121_v31 }
  0xc7   : > { %2101 = vmatmul.mubr.msk.bf16.gmra.mxu0 %vm421_vm2, %v2407_v4 }
  0xc8   : > { %2104 = vmatprep.mubr.msk.bf16.mxu0 %vm2263_vm1, %v2262_v0 }
  0xc9   : > { %2175 = vmatmul.mubr.msk.bf16.gmra.mxu1 %vm421_vm2, %v2420_v11 }
  0xca   : > { %2178 = vmatprep.mubr.msk.bf16.mxu1 %vm2263_vm1, %v2262_v0 }
  0xcf   : > { %2105 = vmatmul.mubr.msk.bf16.gmra.mxu0 %vm421_vm2, %v2423_v12 }
  0xd0   : > { %2108 = vmatprep.mubr.msk.bf16.mxu0 %vm2263_vm1, %v2262_v0 }
  0xd1   : > { %v722_v24 = vpop.f32.mrf.mxu1  ;;  %2179 = vmatmul.mubr.msk.bf16.gmra.mxu1 %vm421_vm2, %v2440_v19 }
  0xd2   : > { %2182 = vmatprep.mubr.msk.bf16.mxu1 %vm2263_vm1, %v2262_v0 }
  0xd3   : > { %v2012_v40 = vpop.f32.mrf.mxu1 }
  0xd5   : > { %v725_v41 = vpop.f32.mrf.mxu1 }
  0xd7   : > { %v2013_v43 = vpop.f32.mrf.mxu1  ;;  %v511_v50 = vpop.f32.mrf.mxu0  ;;  %2109 = vmatmul.mubr.msk.bf16.gmra.mxu0 %vm421_vm2, %v2443_v20 }
  0xd8   : > { %v2641_v51 = vadd.f32 %v722_v24, %v511_v50  ;;  %2112 = vmatprep.mubr.msk.bf16.mxu0 %vm2263_vm1, %v2262_v0 }
  0xd9   : > { %v730_v58 = vpop.f32.mrf.mxu1  ;;  %2183 = vmatmul.mubr.msk.bf16.gmra.mxu1 %vm421_vm2, %v1118_v42  ;;  %v1942_v59 = vpop.f32.mrf.mxu0 }
  0xda   : > { %2186 = vmatprep.mubr.msk.bf16.mxu1 %vm2263_vm1, %v2262_v0 }
  0xdb   : > { %v2016_v4 = vpop.f32.mrf.mxu1  ;;  %v514_v10 = vpop.f32.mrf.mxu0 }
  0xdc   : > { %v2649_v11 = vadd.f32 %v725_v41, %v514_v10  ;;  %v1127_v41 = vrot.slane %v2518_v57, 1 }
  0xdd   : > { %v733_v12 = vpop.f32.mrf.mxu1  ;;  %v1943_v17 = vpop.f32.mrf.mxu0 }
  0xde   : > { %v1128_v59 = vsel %vm1099_vm4, %v1125_v9, %v1127_v41  ;;  %v1129_v17 = vrot.slane %v2534_v2, 1 }
  0xdf   : > { %v2017_v19 = vpop.f32.mrf.mxu1  ;;  %v519_v20 = vpop.f32.mrf.mxu0  ;;  %2113 = vmatmul.mubr.msk.bf16.gmra.mxu0 %vm421_vm2, %v2459_v27 }
  0xe0   : > { %v2654_v28 = vadd.f32 %v730_v58, %v519_v20  ;;  %2116 = vmatprep.mubr.msk.bf16.mxu0 %vm2263_vm1, %v2262_v0 }
  0xe1   : > { %v738_v29 = vpop.f32.mrf.mxu1  ;;  %2187 = vmatmul.mubr.msk.bf16.gmra.mxu1 %vm421_vm2, %v1120_v18  ;;  %v1946_v26 = vpop.f32.mrf.mxu0  ;;  %v180_v18 = vld [vmem:[%s2312_s20 + $0x8c] sm:$0xf] }
  0xe2   : > { %2190 = vmatprep.mubr.msk.bf16.mxu1 %vm2263_vm1, %v2262_v0  ;;  %v1756_v26 = vcombine.low %v2544_v8, %v180_v18 }
  0xe3   : > { %v2020_v32 = vpop.f32.mrf.mxu1  ;;  %v522_v35 = vpop.f32.mrf.mxu0 }
  0xe4   : > { %v2662_v36 = vadd.f32 %v733_v12, %v522_v35  ;;  %v1130_v32 = vsel %vm1099_vm4, %v1127_v41, %v1129_v17  ;;  %v1131_v8 = vrot.slane %v1756_v26, 1  ;;  %v867_v53 = vshll.u32 %v1756_v26, 16 }
  0xe5   : > { %v741_v37 = vpop.f32.mrf.mxu1  ;;  %v1947_v27 = vpop.f32.mrf.mxu0 }
  0xe7   : > { %v2021_v45 = vpop.f32.mrf.mxu1  ;;  %v527_v46 = vpop.f32.mrf.mxu0  ;;  %2117 = vmatmul.mubr.msk.bf16.gmra.mxu0 %vm421_vm2, %v2475_v34 }
  0xe8   : > { %v2667_v47 = vadd.f32 %v738_v29, %v527_v46  ;;  %2120 = vmatprep.mubr.msk.bf16.mxu0 %vm2263_vm1, %v2262_v0 }
  0xe9   : > { %v746_v48 = vpop.f32.mrf.mxu1  ;;  %2191 = vmatmul.mubr.msk.bf16.gmra.mxu1 %vm421_vm2, %v1122_v38  ;;  %v1950_v33 = vpop.f32.mrf.mxu0 }
  0xea   : > { %2194 = vmatprep.mubr.msk.bf16.mxu1 %vm2263_vm1, %v2262_v0 }
  0xeb   : > { %v2024_v54 = vpop.f32.mrf.mxu1  ;;  %v530_v55 = vpop.f32.mrf.mxu0 }
  0xec   : > { %v2675_v56 = vadd.f32 %v741_v37, %v530_v55  ;;  %v1132_v54 = vsel %vm1099_vm4, %v1129_v17, %v1131_v8  ;;  %v2253_v55 = vld [vmem:[%s2312_s20 + $0x90] ss:$0 sps:$4 sm:$0xff]  }
  0xed   : > { %v749_v61 = vpop.f32.mrf.mxu1  ;;  %v1951_v34 = vpop.f32.mrf.mxu0 }
  0xef   : > { %v2025_v63 = vpop.f32.mrf.mxu1  ;;  %v535_v1 = vpop.f32.mrf.mxu0  ;;  %2121 = vmatmul.mubr.msk.bf16.gmra.mxu0 %vm421_vm2, %v2491_v44 }
  0xf0   : > { %v2680_v6 = vadd.f32 %v746_v48, %v535_v1  ;;  %2124 = vmatprep.mubr.msk.bf16.mxu0 %vm2263_vm1, %v2262_v0  ;;  %v869_v1 = vrot.slane %v867_v53, 1 }
  0xf1   : > { %v754_v7 = vpop.f32.mrf.mxu1  ;;  %2195 = vmatmul.mubr.msk.bf16.gmra.mxu1 %vm421_vm2, %v1124_v62  ;;  %v1954_v39 = vpop.f32.mrf.mxu0 }
  0xf2   : > { %2198 = vmatprep.mubr.msk.bf16.mxu1 %vm2263_vm1, %v2262_v0  ;;  %v1133_v39 = vrot.slane %v2253_v55, 1 }
  0xf3   : > { %v2028_v13 = vpop.f32.mrf.mxu1  ;;  %v538_v14 = vpop.f32.mrf.mxu0 }
  0xf4   : > { %v2688_v16 = vadd.f32 %v749_v61, %v538_v14 }
  0xf5   : > { %v757_v21 = vpop.f32.mrf.mxu1  ;;  %v1955_v44 = vpop.f32.mrf.mxu0 }
  0xf6   : > { %v871_v44 = vshrl.u32 %v1756_v26, 16 }
  0xf7   : > { %v2029_v25 = vpop.f32.mrf.mxu1  ;;  %v543_v24 = vpop.f32.mrf.mxu0  ;;  %2125 = vmatmul.mubr.msk.bf16.gmra.mxu0 %vm421_vm2, %v2507_v52 }
  0xf8   : > { %v2693_v30 = vadd.f32 %v754_v7, %v543_v24  ;;  %2128 = vmatprep.mubr.msk.bf16.mxu0 %vm2263_vm1, %v2262_v0  ;;  %v1134_v24 = vsel %vm1099_vm4, %v1131_v8, %v1133_v39 }
  0xf9   : > { %v762_v40 = vpop.f32.mrf.mxu1  ;;  %2199 = vmatmul.mubr.msk.bf16.gmra.mxu1 %vm421_vm2, %v1126_v23  ;;  %v1958_v49 = vpop.f32.mrf.mxu0  ;;  %v875_v23 = vshll.u32 %v2253_v55, 16 }
  0xfa   : > { %2202 = vmatprep.mubr.msk.bf16.mxu1 %vm2263_vm1, %v2262_v0 }
  0xfb   : > { %v2032_v42 = vpop.f32.mrf.mxu1  ;;  %v546_v43 = vpop.f32.mrf.mxu0 }
  0xfc   : > { %v2701_v50 = vadd.f32 %v757_v21, %v546_v43  ;;  %v873_v43 = vor.u32 %v871_v44, %v869_v1 }
  0xfd   : > { %v765_v52 = vpop.f32.mrf.mxu1  ;;  %v1959_v58 = vpop.f32.mrf.mxu0 }
  0xff   : > { %v2033_v3 = vpop.f32.mrf.mxu1  ;;  %v551_v4 = vpop.f32.mrf.mxu0  ;;  %2129 = vmatmul.mubr.msk.bf16.gmra.mxu0 %vm421_vm2, %v2523_v60 }
 0x100   : > { %v2706_v10 = vadd.f32 %v762_v40, %v551_v4  ;;  %2132 = vmatprep.mubr.msk.bf16.mxu0 %vm2263_vm1, %v2262_v0 }
 0x101   : > { %v770_v12 = vpop.f32.mrf.mxu1  ;;  %2203 = vmatmul.mubr.msk.bf16.gmra.mxu1 %vm421_vm2, %v1128_v59  ;;  %v1962_v57 = vpop.f32.mrf.mxu0 }
 0x102   : > { %2206 = vmatprep.mubr.msk.bf16.mxu1 %vm2263_vm1, %v2262_v0 }
 0x103   : > { %v2036_v19 = vpop.f32.mrf.mxu1  ;;  %v554_v20 = vpop.f32.mrf.mxu0 }
 0x104   : > { %v2715_v29 = vadd.f32 %v765_v52, %v554_v20  ;;  %v877_v52 = vrot.slane %v875_v23, 1 }
 0x105   : > { %v773_v60 = vpop.f32.mrf.mxu1  ;;  %v1963_v31 = vpop.f32.mrf.mxu0 }
 0x107   : > { %v2037_v35 = vpop.f32.mrf.mxu1  ;;  %v559_v37 = vpop.f32.mrf.mxu0  ;;  %2133 = vmatmul.mubr.msk.bf16.gmra.mxu0 %vm421_vm2, %v2539_v5 }
 0x108   : > { %v2721_v27 = vadd.f32 %v770_v12, %v559_v37  ;;  %2136 = vmatprep.mubr.msk.bf16.mxu0 %vm2263_vm1, %v2262_v0  ;;  %v878_v12 = vsel %vm275_vm3, %v873_v43, %v877_v52 }
 0x109   : > { %v778_v2 = vpop.f32.mrf.mxu1  ;;  %2207 = vmatmul.mubr.msk.bf16.gmra.mxu1 %vm421_vm2, %v1130_v32  ;;  %v1966_v38 = vpop.f32.mrf.mxu0 }
 0x10a   : > { %2210 = vmatprep.mubr.msk.bf16.mxu1 %vm2263_vm1, %v2262_v0 }
 0x10b   : > { %v2040_v45 = vpop.f32.mrf.mxu1  ;;  %v562_v46 = vpop.f32.mrf.mxu0 }
 0x10c   : > { %v2728_v48 = vadd.f32 %v773_v60, %v562_v46 }
 0x10d   : > { %v781_v33 = vpop.f32.mrf.mxu1  ;;  %v1967_v5 = vpop.f32.mrf.mxu0 }
 0x10f   : > { %v2041_v61 = vpop.f32.mrf.mxu1  ;;  %v567_v34 = vpop.f32.mrf.mxu0  ;;  %2137 = vmatmul.mubr.msk.bf16.gmra.mxu0 %vm421_vm2, %v2557_v15  ;;  %v870_v15 = vsel %vm275_vm3, %v2566_v22, %v869_v1 }
 0x110   : > { %v2734_v62 = vadd.f32 %v778_v2, %v567_v34  ;;  %2140 = vmatprep.mubr.msk.bf16.mxu0 %vm2263_vm1, %v2262_v0 }
 0x111   : > { %v786_v63 = vpop.f32.mrf.mxu1  ;;  %2211 = vmatmul.mubr.msk.bf16.gmra.mxu1 %vm421_vm2, %v1132_v54  ;;  %v1970_v7 = vpop.f32.mrf.mxu0 }
 0x112   : > { %2214 = vmatprep.mubr.msk.bf16.mxu1 %vm2263_vm1, %v2262_v0 }
 0x113   : > { %v2044_v9 = vpop.f32.mrf.mxu1  ;;  %v570_v13 = vpop.f32.mrf.mxu0 }
 0x114   : > { %v2741_v14 = vadd.f32 %v781_v33, %v570_v13 }
 0x115   : > { %v789_v21 = vpop.f32.mrf.mxu1  ;;  %v1971_v25 = vpop.f32.mrf.mxu0 }
 0x117   : > { %v2045_v40 = vpop.f32.mrf.mxu1  ;;  %v575_v49 = vpop.f32.mrf.mxu0  ;;  %2141 = vmatmul.mubr.msk.bf16.gmra.mxu0 %vm421_vm2, %v870_v15 }
 0x118   : > { %v2747_v41 = vadd.f32 %v786_v63, %v575_v49  ;;  %2144 = vmatprep.mubr.msk.bf16.mxu0 %vm2263_vm1, %v2262_v0 }
 0x119   : > { %v794_v42 = vpop.f32.mrf.mxu1  ;;  %2215 = vmatmul.mubr.msk.bf16.gmra.mxu1 %vm421_vm2, %v1134_v24  ;;  %v1974_v22 = vpop.f32.mrf.mxu0 }
 0x11b   : > { %v2048_v58 = vpop.f32.mrf.mxu1  ;;  %v578_v59 = vpop.f32.mrf.mxu0 }
 0x11c   : > { %v2752_v3 = vadd.f32 %v789_v21, %v578_v59 }
 0x11d   : > { %v797_v4 = vpop.f32.mrf.mxu1  ;;  %v1975_v57 = vpop.f32.mrf.mxu0 }
 0x11f   : > { %v2049_v17 = vpop.f32.mrf.mxu1  ;;  %v583_v18 = vpop.f32.mrf.mxu0  ;;  %2145 = vmatmul.mubr.msk.bf16.gmra.mxu0 %vm421_vm2, %v878_v12 }
 0x120   : > { %v2756_v19 = vadd.f32 %v794_v42, %v583_v18 }
 0x121   : > { %v802_v20 = vpop.f32.mrf.mxu1  ;;  %v1978_v60 = vpop.f32.mrf.mxu0 }
 0x123   : > { %v2052_v0 = vpop.f32.mrf.mxu1  ;;  %v586_v26 = vpop.f32.mrf.mxu0 }
 0x124   : > { %v2758_v31 = vadd.f32 %v797_v4, %v586_v26 }
 0x125   : > { %v805_v32 = vpop.f32.mrf.mxu1  ;;  %v1979_v35 = vpop.f32.mrf.mxu0 }
 0x127   : > { %v2053_v37 = vpop.f32.mrf.mxu1  ;;  %v591_v2 = vpop.f32.mrf.mxu0 }
 0x128   : > { %v2760_v38 = vadd.f32 %v802_v20, %v591_v2 }
 0x129   : > { %v810_v8 = vpop.f32.mrf.mxu1  ;;  %v1982_v45 = vpop.f32.mrf.mxu0 }
 0x12b   : > { %v2056_v46 = vpop.f32.mrf.mxu1  ;;  %v594_v33 = vpop.f32.mrf.mxu0 }
 0x12c   : > { %v2762_v53 = vadd.f32 %v805_v32, %v594_v33 }
 0x12d   : > { %v813_v5 = vpop.f32.mrf.mxu1  ;;  %v1983_v54 = vpop.f32.mrf.mxu0 }
 0x12f   : > { %v2057_v55 = vpop.f32.mrf.mxu1  ;;  %v599_v61 = vpop.f32.mrf.mxu0 }
 0x130   : > { %v2764_v34 = vadd.f32 %v810_v8, %v599_v61 }
 0x131   : > { %v818_v63 = vpop.f32.mrf.mxu1  ;;  %v1986_v1 = vpop.f32.mrf.mxu0 }
 0x133   : > { %v2060_v7 = vpop.f32.mrf.mxu1  ;;  %v602_v39 = vpop.f32.mrf.mxu0 }
 0x134   : > { %v2766_v9 = vadd.f32 %v813_v5, %v602_v39 }
 0x135   : > { %v821_v13 = vpop.f32.mrf.mxu1  ;;  %v1987_v21 = vpop.f32.mrf.mxu0 }
 0x137   : > { %v2061_v15 = vpop.f32.mrf.mxu1  ;;  %v607_v44 = vpop.f32.mrf.mxu0 }
 0x138   : > { %v2768_v23 = vadd.f32 %v818_v63, %v607_v44 }
 0x139   : > { %v826_v25 = vpop.f32.mrf.mxu1  ;;  %v1990_v24 = vpop.f32.mrf.mxu0 }
 0x13b   : > { %v2064_v40 = vpop.f32.mrf.mxu1  ;;  %v610_v49 = vpop.f32.mrf.mxu0 }
 0x13c   : > { %v2770_v42 = vadd.f32 %v821_v13, %v610_v49 }
 0x13d   : > { %v829_v43 = vpop.f32.mrf.mxu1  ;;  %v1991_v52 = vpop.f32.mrf.mxu0 }
 0x13f   : > { %v2065_v22 = vpop.f32.mrf.mxu1  ;;  %v615_v58 = vpop.f32.mrf.mxu0 }
 0x140   : > { %v2772_v59 = vadd.f32 %v826_v25, %v615_v58 }
 0x141   : > { %v834_v4 = vpop.f32.mrf.mxu1  ;;  %v1994_v12 = vpop.f32.mrf.mxu0 }
 0x143   : > { %v2068_v57 = vpop.f32.mrf.mxu1  ;;  %v618_v17 = vpop.f32.mrf.mxu0 }
 0x144   : > { %v2774_v18 = vadd.f32 %v829_v43, %v618_v17 }
 0x145   : > { %v837_v20 = vpop.f32.mrf.mxu1  ;;  %v1995_v60 = vpop.f32.mrf.mxu0 }
 0x147   : > { %v2069_v0 = vpop.f32.mrf.mxu1  ;;  %v623_v26 = vpop.f32.mrf.mxu0 }
 0x148   : > { %v2776_v32 = vadd.f32 %v834_v4, %v623_v26 }
 0x149   : > { %v842_v35 = vpop.f32.mrf.mxu1  ;;  %v1998_v37 = vpop.f32.mrf.mxu0 }
 0x14b   : > { %v2072_v2 = vpop.f32.mrf.mxu1  ;;  %v626_v8 = vpop.f32.mrf.mxu0 }
 0x14c   : > { %v2778_v45 = vadd.f32 %v837_v20, %v626_v8 }
 0x14d   : > { %v845_v46 = vpop.f32.mrf.mxu1  ;;  %v1999_v33 = vpop.f32.mrf.mxu0 }
 0x14f   : > { %v2073_v5 = vpop.f32.mrf.mxu1  ;;  %v631_v54 = vpop.f32.mrf.mxu0 }
 0x150   : > { %v2780_v55 = vadd.f32 %v842_v35, %v631_v54 }
 0x151   : > { %v850_v61 = vpop.f32.mrf.mxu1  ;;  %v2002_v63 = vpop.f32.mrf.mxu0 }
 0x153   : > { %v2076_v1 = vpop.f32.mrf.mxu1  ;;  %v634_v7 = vpop.f32.mrf.mxu0 }
 0x154   : > { %v2782_v39 = vadd.f32 %v845_v46, %v634_v7 }
 0x155   : > { %v853_v13 = vpop.f32.mrf.mxu1  ;;  %v2003_v21 = vpop.f32.mrf.mxu0 }
 0x157   : > { %v2077_v15 = vpop.f32.mrf.mxu1  ;;  %v639_v44 = vpop.f32.mrf.mxu0 }
 0x158   : > { %v2784_v25 = vadd.f32 %v850_v61, %v639_v44 }
 0x159   : > { %v1228_v24 = vpop.f32.mrf.mxu1  ;;  %v2006_v40 = vpop.f32.mrf.mxu0 }
 0x15b   : > { %v2152_v49 = vpop.f32.mrf.mxu1  ;;  %v642_v43 = vpop.f32.mrf.mxu0 }
 0x15c   : > { %v2786_v52 = vadd.f32 %v853_v13, %v642_v43 }
 0x15d   : > { %v1231_v22 = vpop.f32.mrf.mxu1  ;;  %v2007_v58 = vpop.f32.mrf.mxu0 }
 0x15f   : > { %v2153_v4 = vpop.f32.mrf.mxu1  ;;  %v927_v12 = vpop.f32.mrf.mxu0 }
 0x160   : > { %v1062_v57 = vadd.f32 %v927_v12, %v2641_v51 }
 0x161   : > { %v1236_v17 = vpop.f32.mrf.mxu1  ;;  %v2082_v20 = vpop.f32.mrf.mxu0 }
 0x162   : > { %v1363_v60 = vadd.f32 %v1228_v24, %v1062_v57 }
 0x163   : > { %v2156_v0 = vpop.f32.mrf.mxu1  ;;  %v930_v26 = vpop.f32.mrf.mxu0 }
 0x164   : > { %v1397_v35 = vmul.f32 0.01, %v1363_v60  ;;  %v1063_v37 = vadd.f32 %v930_v26, %v2649_v11 }
 0x165   : > { %v1239_v2 = vpop.f32.mrf.mxu1  ;;  %v2083_v8 = vpop.f32.mrf.mxu0 }
 0x166   : > { %v1431_v46 = vmax.f32 %v1363_v60, %v1397_v35  ;;  %v1364_v33 = vadd.f32 %v1231_v22, %v1063_v37 }
 0x167   : > { %v2157_v5 = vpop.f32.mrf.mxu1  ;;  %v935_v51 = vpop.f32.mrf.mxu0 }
 0x168   : > { %v1832_v54 = vpack.c.bf16 %v1431_v46, %v1431_v46  ;;  %v1398_v61 = vmul.f32 0.01, %v1364_v33  ;;  %v1064_v63 = vadd.f32 %v935_v51, %v2654_v28 }
 0x169   : > { %v1244_v1 = vpop.f32.mrf.mxu1  ;;  %v2086_v11 = vpop.f32.mrf.mxu0 }
 0x16a   : > { %1602 = vst.msk [vmem:[%s2794_s26] sm:$0xf] %vm1601_vm5, %v1832_v54  ;;  %v1432_v7 = vmax.f32 %v1364_v33, %v1398_v61  ;;  %v1365_v13 = vadd.f32 %v1236_v17, %v1064_v63 }
 0x16b   : > { %v2160_v21 = vpop.f32.mrf.mxu1  ;;  %v938_v15 = vpop.f32.mrf.mxu0 }
 0x16c   : > { %v1833_v44 = vpack.c.bf16 %v1432_v7, %v1432_v7  ;;  %v1399_v24 = vmul.f32 0.01, %v1365_v13  ;;  %v1065_v40 = vadd.f32 %v938_v15, %v2662_v36 }
 0x16d   : > { %v1247_v49 = vpop.f32.mrf.mxu1  ;;  %v2087_v43 = vpop.f32.mrf.mxu0 }
 0x16e   : > { %1603 = vst.msk [vmem:[%s2794_s26 + $0x4] sm:$0xf] %vm1601_vm5, %v1833_v44  ;;  %v1433_v22 = vmax.f32 %v1365_v13, %v1399_v24  ;;  %v1366_v58 = vadd.f32 %v1239_v2, %v1065_v40 }
 0x16f   : > { %v2161_v28 = vpop.f32.mrf.mxu1  ;;  %v943_v4 = vpop.f32.mrf.mxu0 }
 0x170   : > { %v1834_v12 = vpack.c.bf16 %v1433_v22, %v1433_v22  ;;  %v1400_v57 = vmul.f32 0.01, %v1366_v58  ;;  %v1066_v17 = vadd.f32 %v943_v4, %v2667_v47 }
 0x171   : > { %v1252_v20 = vpop.f32.mrf.mxu1  ;;  %v2090_v60 = vpop.f32.mrf.mxu0 }
 0x172   : > { %1604 = vst.msk [vmem:[%s2794_s26 + $0x8] sm:$0xf] %vm1601_vm5, %v1834_v12  ;;  %v1434_v0 = vmax.f32 %v1366_v58, %v1400_v57  ;;  %v1367_v26 = vadd.f32 %v1244_v1, %v1066_v17 }
 0x173   : > { %v2164_v36 = vpop.f32.mrf.mxu1  ;;  %v946_v35 = vpop.f32.mrf.mxu0 }
 0x174   : > { %v1835_v37 = vpack.c.bf16 %v1434_v0, %v1434_v0  ;;  %v1401_v8 = vmul.f32 0.01, %v1367_v26  ;;  %v1067_v2 = vadd.f32 %v946_v35, %v2675_v56 }
 0x175   : > { %v1255_v46 = vpop.f32.mrf.mxu1  ;;  %v2091_v33 = vpop.f32.mrf.mxu0 }
 0x176   : > { %1605 = vst.msk [vmem:[%s2794_s26 + $0xc] sm:$0xf] %vm1601_vm5, %v1835_v37  ;;  %v1435_v5 = vmax.f32 %v1367_v26, %v1401_v8  ;;  %v1368_v51 = vadd.f32 %v1247_v49, %v1067_v2 }
 0x177   : > { %v2165_v47 = vpop.f32.mrf.mxu1  ;;  %v951_v54 = vpop.f32.mrf.mxu0 }
 0x178   : > { %v1836_v61 = vpack.c.bf16 %v1435_v5, %v1435_v5  ;;  %v1402_v63 = vmul.f32 0.01, %v1368_v51  ;;  %v1068_v1 = vadd.f32 %v951_v54, %v2680_v6 }
 0x179   : > { %v1260_v11 = vpop.f32.mrf.mxu1  ;;  %v2094_v7 = vpop.f32.mrf.mxu0 }
 0x17a   : > { %1606 = vst.msk [vmem:[%s2794_s26 + $0x10] sm:$0xf] %vm1601_vm5, %v1836_v61  ;;  %v1436_v13 = vmax.f32 %v1368_v51, %v1402_v63  ;;  %v1369_v21 = vadd.f32 %v1252_v20, %v1068_v1 }
 0x17b   : > { %v2168_v56 = vpop.f32.mrf.mxu1  ;;  %v954_v15 = vpop.f32.mrf.mxu0 }
 0x17c   : > { %v1837_v44 = vpack.c.bf16 %v1436_v13, %v1436_v13  ;;  %v1403_v24 = vmul.f32 0.01, %v1369_v21  ;;  %v1069_v40 = vadd.f32 %v954_v15, %v2688_v16 }
 0x17d   : > { %v1263_v49 = vpop.f32.mrf.mxu1  ;;  %v2095_v43 = vpop.f32.mrf.mxu0 }
 0x17e   : > { %1607 = vst.msk [vmem:[%s2794_s26 + $0x14] sm:$0xf] %vm1601_vm5, %v1837_v44  ;;  %v1437_v22 = vmax.f32 %v1369_v21, %v1403_v24  ;;  %v1370_v58 = vadd.f32 %v1255_v46, %v1069_v40 }
 0x17f   : > { %v2169_v6 = vpop.f32.mrf.mxu1  ;;  %v959_v28 = vpop.f32.mrf.mxu0 }
 0x180   : > { %v1838_v4 = vpack.c.bf16 %v1437_v22, %v1437_v22  ;;  %v1404_v12 = vmul.f32 0.01, %v1370_v58  ;;  %v1070_v57 = vadd.f32 %v959_v28, %v2693_v30 }
 0x181   : > { %v1268_v17 = vpop.f32.mrf.mxu1  ;;  %v2098_v20 = vpop.f32.mrf.mxu0 }
 0x182   : > { %1608 = vst.msk [vmem:[%s2794_s26 + $0x18] sm:$0xf] %vm1601_vm5, %v1838_v4  ;;  %v1438_v60 = vmax.f32 %v1370_v58, %v1404_v12  ;;  %v1371_v0 = vadd.f32 %v1260_v11, %v1070_v57 }
 0x183   : > { %v2172_v16 = vpop.f32.mrf.mxu1  ;;  %v962_v26 = vpop.f32.mrf.mxu0 }
 0x184   : > { %v1839_v36 = vpack.c.bf16 %v1438_v60, %v1438_v60  ;;  %v1405_v35 = vmul.f32 0.01, %v1371_v0  ;;  %v1071_v37 = vadd.f32 %v962_v26, %v2701_v50 }
 0x185   : > { %v1271_v8 = vpop.f32.mrf.mxu1  ;;  %v2099_v2 = vpop.f32.mrf.mxu0 }
 0x186   : > { %1609 = vst.msk [vmem:[%s2794_s26 + $0x1c] sm:$0xf] %vm1601_vm5, %v1839_v36  ;;  %v1439_v46 = vmax.f32 %v1371_v0, %v1405_v35  ;;  %v1372_v33 = vadd.f32 %v1263_v49, %v1071_v37 }
 0x187   : > { %v2173_v30 = vpop.f32.mrf.mxu1  ;;  %v967_v5 = vpop.f32.mrf.mxu0 }
 0x188   : > { %v1840_v51 = vpack.c.bf16 %v1439_v46, %v1439_v46  ;;  %v1406_v47 = vmul.f32 0.01, %v1372_v33  ;;  %v1072_v54 = vadd.f32 %v967_v5, %v2706_v10 }
 0x189   : > { %v1276_v61 = vpop.f32.mrf.mxu1  ;;  %v2102_v63 = vpop.f32.mrf.mxu0 }
 0x18a   : > { %1610 = vst.msk [vmem:[%s2794_s26 + $0x20] sm:$0xf] %vm1601_vm5, %v1840_v51  ;;  %v1440_v1 = vmax.f32 %v1372_v33, %v1406_v47  ;;  %v1373_v11 = vadd.f32 %v1268_v17, %v1072_v54 }
 0x18b   : > { %v2176_v50 = vpop.f32.mrf.mxu1  ;;  %v970_v7 = vpop.f32.mrf.mxu0 }
 0x18c   : > { %v1841_v13 = vpack.c.bf16 %v1440_v1, %v1440_v1  ;;  %v1407_v21 = vmul.f32 0.01, %v1373_v11  ;;  %v1073_v56 = vadd.f32 %v970_v7, %v2715_v29 }
 0x18d   : > { %v1279_v15 = vpop.f32.mrf.mxu1  ;;  %v2103_v44 = vpop.f32.mrf.mxu0 }
 0x18e   : > { %1611 = vst.msk [vmem:[%s2794_s26 + $0x24] sm:$0xf] %vm1601_vm5, %v1841_v13  ;;  %v1441_v24 = vmax.f32 %v1373_v11, %v1407_v21  ;;  %v1374_v40 = vadd.f32 %v1271_v8, %v1073_v56 }
 0x18f   : > { %v2177_v10 = vpop.f32.mrf.mxu1  ;;  %v975_v49 = vpop.f32.mrf.mxu0 }
 0x190   : > { %v1842_v43 = vpack.c.bf16 %v1441_v24, %v1441_v24  ;;  %v1408_v22 = vmul.f32 0.01, %v1374_v40  ;;  %v1074_v58 = vadd.f32 %v975_v49, %v2721_v27 }
 0x191   : > { %v1284_v6 = vpop.f32.mrf.mxu1  ;;  %v2106_v28 = vpop.f32.mrf.mxu0 }
 0x192   : > { %1612 = vst.msk [vmem:[%s2794_s26 + $0x28] sm:$0xf] %vm1601_vm5, %v1842_v43  ;;  %v1442_v4 = vmax.f32 %v1374_v40, %v1408_v22  ;;  %v1375_v12 = vadd.f32 %v1276_v61, %v1074_v58 }
 0x193   : > { %v2180_v29 = vpop.f32.mrf.mxu1  ;;  %v978_v57 = vpop.f32.mrf.mxu0 }
 0x194   : > { %v1843_v17 = vpack.c.bf16 %v1442_v4, %v1442_v4  ;;  %v1409_v20 = vmul.f32 0.01, %v1375_v12  ;;  %v1075_v60 = vadd.f32 %v978_v57, %v2728_v48 }
 0x195   : > { %v1287_v0 = vpop.f32.mrf.mxu1  ;;  %v2107_v16 = vpop.f32.mrf.mxu0 }
 0x196   : > { %1613 = vst.msk [vmem:[%s2794_s26 + $0x2c] sm:$0xf] %vm1601_vm5, %v1843_v17  ;;  %v1443_v26 = vmax.f32 %v1375_v12, %v1409_v20  ;;  %v1376_v36 = vadd.f32 %v1279_v15, %v1075_v60 }
 0x197   : > { %v2181_v27 = vpop.f32.mrf.mxu1  ;;  %v983_v35 = vpop.f32.mrf.mxu0 }
 0x198   : > { %v1844_v37 = vpack.c.bf16 %v1443_v26, %v1443_v26  ;;  %v1410_v8 = vmul.f32 0.01, %v1376_v36  ;;  %v1076_v2 = vadd.f32 %v983_v35, %v2734_v62 }
 0x199   : > { %v1292_v46 = vpop.f32.mrf.mxu1  ;;  %v2110_v33 = vpop.f32.mrf.mxu0 }
 0x19a   : > { %1614 = vst.msk [vmem:[%s2794_s26 + $0x30] sm:$0xf] %vm1601_vm5, %v1844_v37  ;;  %v1444_v30 = vmax.f32 %v1376_v36, %v1410_v8  ;;  %v1377_v5 = vadd.f32 %v1284_v6, %v1076_v2 }
 0x19b   : > { %v2184_v48 = vpop.f32.mrf.mxu1  ;;  %v986_v51 = vpop.f32.mrf.mxu0 }
 0x19c   : > { %v1845_v47 = vpack.c.bf16 %v1444_v30, %v1444_v30  ;;  %v1411_v54 = vmul.f32 0.01, %v1377_v5  ;;  %v1077_v61 = vadd.f32 %v986_v51, %v2741_v14 }
 0x19d   : > { %v1295_v63 = vpop.f32.mrf.mxu1  ;;  %v2111_v1 = vpop.f32.mrf.mxu0 }
 0x19e   : > { %1615 = vst.msk [vmem:[%s2794_s26 + $0x34] sm:$0xf] %vm1601_vm5, %v1845_v47  ;;  %v1445_v11 = vmax.f32 %v1377_v5, %v1411_v54  ;;  %v1378_v50 = vadd.f32 %v1287_v0, %v1077_v61 }
 0x19f   : > { %v2185_v62 = vpop.f32.mrf.mxu1  ;;  %v991_v7 = vpop.f32.mrf.mxu0 }
 0x1a0   : > { %v1846_v13 = vpack.c.bf16 %v1445_v11, %v1445_v11  ;;  %v1412_v21 = vmul.f32 0.01, %v1378_v50  ;;  %v1078_v56 = vadd.f32 %v991_v7, %v2747_v41 }
 0x1a1   : > { %v1300_v15 = vpop.f32.mrf.mxu1  ;;  %v2114_v44 = vpop.f32.mrf.mxu0 }
 0x1a2   : > { %1616 = vst.msk [vmem:[%s2794_s26 + $0x38] sm:$0xf] %vm1601_vm5, %v1846_v13  ;;  %v1446_v24 = vmax.f32 %v1378_v50, %v1412_v21  ;;  %v1379_v40 = vadd.f32 %v1292_v46, %v1078_v56 }
 0x1a3   : > { %v2188_v14 = vpop.f32.mrf.mxu1  ;;  %v994_v10 = vpop.f32.mrf.mxu0 }
 0x1a4   : > { %v1847_v49 = vpack.c.bf16 %v1446_v24, %v1446_v24  ;;  %v1413_v43 = vmul.f32 0.01, %v1379_v40  ;;  %v1079_v22 = vadd.f32 %v994_v10, %v2752_v3 }
 0x1a5   : > { %v1303_v58 = vpop.f32.mrf.mxu1  ;;  %v2115_v6 = vpop.f32.mrf.mxu0 }
 0x1a6   : > { %1617 = vst.msk [vmem:[%s2794_s26 + $0x3c] sm:$0xf] %vm1601_vm5, %v1847_v49  ;;  %v1447_v28 = vmax.f32 %v1379_v40, %v1413_v43  ;;  %v1380_v4 = vadd.f32 %v1295_v63, %v1079_v22 }
 0x1a7   : > { %v2189_v41 = vpop.f32.mrf.mxu1  ;;  %v999_v12 = vpop.f32.mrf.mxu0 }
 0x1a8   : > { %v1848_v29 = vpack.c.bf16 %v1447_v28, %v1447_v28  ;;  %v1414_v57 = vmul.f32 0.01, %v1380_v4  ;;  %v1080_v17 = vadd.f32 %v999_v12, %v2756_v19 }
 0x1a9   : > { %v1308_v20 = vpop.f32.mrf.mxu1  ;;  %v2118_v60 = vpop.f32.mrf.mxu0 }
 0x1aa   : > { %1618 = vst.msk [vmem:[%s2794_s26 + $0x40] sm:$0xf] %vm1601_vm5, %v1848_v29  ;;  %v1448_v0 = vmax.f32 %v1380_v4, %v1414_v57  ;;  %v1381_v16 = vadd.f32 %v1300_v15, %v1080_v17 }
 0x1ab   : > { %v2192_v3 = vpop.f32.mrf.mxu1  ;;  %v1002_v26 = vpop.f32.mrf.mxu0 }
 0x1ac   : > { %v1849_v36 = vpack.c.bf16 %v1448_v0, %v1448_v0  ;;  %v1415_v27 = vmul.f32 0.01, %v1381_v16  ;;  %v1081_v35 = vadd.f32 %v1002_v26, %v2758_v31 }
 0x1ad   : > { %v1311_v37 = vpop.f32.mrf.mxu1  ;;  %v2119_v8 = vpop.f32.mrf.mxu0 }
 0x1ae   : > { %1619 = vst.msk [vmem:[%s2794_s26 + $0x44] sm:$0xf] %vm1601_vm5, %v1849_v36  ;;  %v1449_v2 = vmax.f32 %v1381_v16, %v1415_v27  ;;  %v1382_v46 = vadd.f32 %v1303_v58, %v1081_v35 }
 0x1af   : > { %v2193_v19 = vpop.f32.mrf.mxu1  ;;  %v1007_v33 = vpop.f32.mrf.mxu0 }
 0x1b0   : > { %v1850_v30 = vpack.c.bf16 %v1449_v2, %v1449_v2  ;;  %v1416_v5 = vmul.f32 0.01, %v1382_v46  ;;  %v1082_v48 = vadd.f32 %v1007_v33, %v2760_v38 }
 0x1b1   : > { %v1316_v51 = vpop.f32.mrf.mxu1  ;;  %v2122_v47 = vpop.f32.mrf.mxu0 }
 0x1b2   : > { %1620 = vst.msk [vmem:[%s2794_s26 + $0x48] sm:$0xf] %vm1601_vm5, %v1850_v30  ;;  %v1450_v54 = vmax.f32 %v1382_v46, %v1416_v5  ;;  %v1383_v61 = vadd.f32 %v1308_v20, %v1082_v48 }
 0x1b3   : > { %v2196_v31 = vpop.f32.mrf.mxu1  ;;  %v1010_v63 = vpop.f32.mrf.mxu0 }
 0x1b4   : > { %v1851_v1 = vpack.c.bf16 %v1450_v54, %v1450_v54  ;;  %v1417_v11 = vmul.f32 0.01, %v1383_v61  ;;  %v1083_v50 = vadd.f32 %v1010_v63, %v2762_v53 }
 0x1b5   : > { %v1319_v62 = vpop.f32.mrf.mxu1  ;;  %v2123_v7 = vpop.f32.mrf.mxu0 }
 0x1b6   : > { %1621 = vst.msk [vmem:[%s2794_s26 + $0x4c] sm:$0xf] %vm1601_vm5, %v1851_v1  ;;  %v1451_v13 = vmax.f32 %v1383_v61, %v1417_v11  ;;  %v1384_v21 = vadd.f32 %v1311_v37, %v1083_v50 }
 0x1b7   : > { %v2197_v38 = vpop.f32.mrf.mxu1  ;;  %v1015_v56 = vpop.f32.mrf.mxu0 }
 0x1b8   : > { %v1852_v15 = vpack.c.bf16 %v1451_v13, %v1451_v13  ;;  %v1418_v44 = vmul.f32 0.01, %v1384_v21  ;;  %v1084_v24 = vadd.f32 %v1015_v56, %v2764_v34 }
 0x1b9   : > { %v1324_v40 = vpop.f32.mrf.mxu1  ;;  %v2126_v14 = vpop.f32.mrf.mxu0 }
 0x1ba   : > { %1622 = vst.msk [vmem:[%s2794_s26 + $0x50] sm:$0xf] %vm1601_vm5, %v1852_v15  ;;  %v1452_v10 = vmax.f32 %v1384_v21, %v1418_v44  ;;  %v1385_v49 = vadd.f32 %v1316_v51, %v1084_v24 }
 0x1bb   : > { %v2200_v53 = vpop.f32.mrf.mxu1  ;;  %v1018_v43 = vpop.f32.mrf.mxu0 }
 0x1bc   : > { %v1853_v22 = vpack.c.bf16 %v1452_v10, %v1452_v10  ;;  %v1419_v58 = vmul.f32 0.01, %v1385_v49  ;;  %v1085_v6 = vadd.f32 %v1018_v43, %v2766_v9 }
 0x1bd   : > { %v1327_v28 = vpop.f32.mrf.mxu1  ;;  %v2127_v4 = vpop.f32.mrf.mxu0 }
 0x1be   : > { %1623 = vst.msk [vmem:[%s2794_s26 + $0x54] sm:$0xf] %vm1601_vm5, %v1853_v22  ;;  %v1453_v41 = vmax.f32 %v1385_v49, %v1419_v58  ;;  %v1386_v12 = vadd.f32 %v1319_v62, %v1085_v6 }
 0x1bf   : > { %v2201_v34 = vpop.f32.mrf.mxu1  ;;  %v1023_v29 = vpop.f32.mrf.mxu0 }
 0x1c0   : > { %v1854_v57 = vpack.c.bf16 %v1453_v41, %v1453_v41  ;;  %v1420_v17 = vmul.f32 0.01, %v1386_v12  ;;  %v1086_v20 = vadd.f32 %v1023_v29, %v2768_v23 }
 0x1c1   : > { %v1332_v60 = vpop.f32.mrf.mxu1  ;;  %v2130_v0 = vpop.f32.mrf.mxu0 }
 0x1c2   : > { %1624 = vst.msk [vmem:[%s2794_s26 + $0x58] sm:$0xf] %vm1601_vm5, %v1854_v57  ;;  %v1454_v16 = vmax.f32 %v1386_v12, %v1420_v17  ;;  %v1387_v3 = vadd.f32 %v1324_v40, %v1086_v20 }
 0x1c3   : > { %v2204_v9 = vpop.f32.mrf.mxu1  ;;  %v1026_v26 = vpop.f32.mrf.mxu0 }
 0x1c4   : > { %v1855_v36 = vpack.c.bf16 %v1454_v16, %v1454_v16  ;;  %v1421_v27 = vmul.f32 0.01, %v1387_v3  ;;  %v1087_v35 = vadd.f32 %v1026_v26, %v2770_v42 }
 0x1c5   : > { %v1335_v37 = vpop.f32.mrf.mxu1  ;;  %v2131_v8 = vpop.f32.mrf.mxu0 }
 0x1c6   : > { %1625 = vst.msk [vmem:[%s2794_s26 + $0x5c] sm:$0xf] %vm1601_vm5, %v1855_v36  ;;  %v1455_v2 = vmax.f32 %v1387_v3, %v1421_v27  ;;  %v1388_v46 = vadd.f32 %v1327_v28, %v1087_v35 }
 0x1c7   : > { %v2205_v23 = vpop.f32.mrf.mxu1  ;;  %v1031_v19 = vpop.f32.mrf.mxu0 }
 0x1c8   : > { %v1856_v33 = vpack.c.bf16 %v1455_v2, %v1455_v2  ;;  %v1422_v30 = vmul.f32 0.01, %v1388_v46  ;;  %v1088_v5 = vadd.f32 %v1031_v19, %v2772_v59 }
 0x1c9   : > { %v1340_v48 = vpop.f32.mrf.mxu1  ;;  %v2134_v51 = vpop.f32.mrf.mxu0 }
 0x1ca   : > { %1626 = vst.msk [vmem:[%s2794_s26 + $0x60] sm:$0xf] %vm1601_vm5, %v1856_v33  ;;  %v1456_v47 = vmax.f32 %v1388_v46, %v1422_v30  ;;  %v1389_v54 = vadd.f32 %v1332_v60, %v1088_v5 }
 0x1cb   : > { %v2208_v42 = vpop.f32.mrf.mxu1  ;;  %v1034_v61 = vpop.f32.mrf.mxu0 }
 0x1cc   : > { %v1857_v31 = vpack.c.bf16 %v1456_v47, %v1456_v47  ;;  %v1423_v63 = vmul.f32 0.01, %v1389_v54  ;;  %v1089_v1 = vadd.f32 %v1034_v61, %v2774_v18 }
 0x1cd   : > { %v1343_v11 = vpop.f32.mrf.mxu1  ;;  %v2135_v50 = vpop.f32.mrf.mxu0 }
 0x1ce   : > { %1627 = vst.msk [vmem:[%s2794_s26 + $0x64] sm:$0xf] %vm1601_vm5, %v1857_v31  ;;  %v1457_v62 = vmax.f32 %v1389_v54, %v1423_v63  ;;  %v1390_v7 = vadd.f32 %v1335_v37, %v1089_v1 }
 0x1cf   : > { %v2209_v59 = vpop.f32.mrf.mxu1  ;;  %v1039_v13 = vpop.f32.mrf.mxu0 }
 0x1d0   : > { %v1858_v21 = vpack.c.bf16 %v1457_v62, %v1457_v62  ;;  %v1424_v38 = vmul.f32 0.01, %v1390_v7  ;;  %v1090_v56 = vadd.f32 %v1039_v13, %v2776_v32 }
 0x1d1   : > { %v1348_v15 = vpop.f32.mrf.mxu1  ;;  %v2138_v44 = vpop.f32.mrf.mxu0 }
 0x1d2   : > { %1628 = vst.msk [vmem:[%s2794_s26 + $0x68] sm:$0xf] %vm1601_vm5, %v1858_v21  ;;  %v1458_v24 = vmax.f32 %v1390_v7, %v1424_v38  ;;  %v1391_v40 = vadd.f32 %v1340_v48, %v1090_v56 }
 0x1d3   : > { %v2212_v18 = vpop.f32.mrf.mxu1  ;;  %v1042_v14 = vpop.f32.mrf.mxu0 }
 0x1d4   : > { %v1859_v10 = vpack.c.bf16 %v1458_v24, %v1458_v24  ;;  %v1425_v49 = vmul.f32 0.01, %v1391_v40  ;;  %v1091_v53 = vadd.f32 %v1042_v14, %v2778_v45 }
 0x1d5   : > { %v1351_v43 = vpop.f32.mrf.mxu1  ;;  %v2139_v22 = vpop.f32.mrf.mxu0 }
 0x1d6   : > { %1629 = vst.msk [vmem:[%s2794_s26 + $0x6c] sm:$0xf] %vm1601_vm5, %v1859_v10  ;;  %v1459_v58 = vmax.f32 %v1391_v40, %v1425_v49  ;;  %v1392_v6 = vadd.f32 %v1343_v11, %v1091_v53 }
 0x1d7   : > { %v2213_v32 = vpop.f32.mrf.mxu1  ;;  %v1047_v28 = vpop.f32.mrf.mxu0 }
 0x1d8   : > { %v1860_v4 = vpack.c.bf16 %v1459_v58, %v1459_v58  ;;  %v1426_v41 = vmul.f32 0.01, %v1392_v6  ;;  %v1092_v12 = vadd.f32 %v1047_v28, %v2780_v55 }
 0x1d9   : > { %v1356_v34 = vpop.f32.mrf.mxu1  ;;  %v2142_v29 = vpop.f32.mrf.mxu0 }
 0x1da   : > { %1630 = vst.msk [vmem:[%s2794_s26 + $0x70] sm:$0xf] %vm1601_vm5, %v1860_v4  ;;  %v1460_v57 = vmax.f32 %v1392_v6, %v1426_v41  ;;  %v1393_v17 = vadd.f32 %v1348_v15, %v1092_v12 }
 0x1db   : > { %v2216_v45 = vpop.f32.mrf.mxu1  ;;  %v1050_v20 = vpop.f32.mrf.mxu0 }
 0x1dc   : > { %v1861_v60 = vpack.c.bf16 %v1460_v57, %v1460_v57  ;;  %v1427_v0 = vmul.f32 0.01, %v1393_v17  ;;  %v1093_v16 = vadd.f32 %v1050_v20, %v2782_v39 }
 0x1dd   : > { %v1359_v3 = vpop.f32.mrf.mxu1  ;;  %v2143_v9 = vpop.f32.mrf.mxu0 }
 0x1de   : > { %1631 = vst.msk [vmem:[%s2794_s26 + $0x74] sm:$0xf] %vm1601_vm5, %v1861_v60  ;;  %v1461_v26 = vmax.f32 %v1393_v17, %v1427_v0  ;;  %v1394_v55 = vadd.f32 %v1351_v43, %v1093_v16 }
 0x1df   : > { %v2217_v36 = vpop.f32.mrf.mxu1  ;;  %v1055_v27 = vpop.f32.mrf.mxu0 }
 0x1e0   : > { %v1862_v35 = vpack.c.bf16 %v1461_v26, %v1461_v26  ;;  %v1428_v37 = vmul.f32 0.01, %v1394_v55  ;;  %v1094_v8 = vadd.f32 %v1055_v27, %v2784_v25 }
 0x1e1   : > { %v2146_v2 = vpop.f32.mrf.mxu0 }
 0x1e2   : > { %1632 = vst.msk [vmem:[%s2794_s26 + $0x78] sm:$0xf] %vm1601_vm5, %v1862_v35  ;;  %v1462_v46 = vmax.f32 %v1394_v55, %v1428_v37  ;;  %v1395_v39 = vadd.f32 %v1356_v34, %v1094_v8 }
 0x1e3   : > { %v1058_v23 = vpop.f32.mrf.mxu0 }
 0x1e4   : > { %v1863_v19 = vpack.c.bf16 %v1462_v46, %v1462_v46  ;;  %v1429_v33 = vmul.f32 0.01, %v1395_v39  ;;  %v1095_v30 = vadd.f32 %v1058_v23, %v2786_v52 }
 0x1e5   : > { %v2147_v5 = vpop.f32.mrf.mxu0 }
 0x1e6   : > { %1633 = vst.msk [vmem:[%s2794_s26 + $0x7c] sm:$0xf] %vm1601_vm5, %v1863_v19  ;;  %v1463_v48 = vmax.f32 %v1395_v39, %v1429_v33  ;;  %v1396_v51 = vadd.f32 %v1359_v3, %v1095_v30 }
 0x1e8   : > { %v1864_v47 = vpack.c.bf16 %v1463_v48, %v1463_v48  ;;  %v1430_v54 = vmul.f32 0.01, %v1396_v51 }
 0x1ea   : > { %1634 = vst.msk [vmem:[%s2794_s26 + $0x80] sm:$0xf] %vm1601_vm5, %v1864_v47  ;;  %v1464_v25 = vmax.f32 %v1396_v51, %v1430_v54 }
 0x1ec   : > { %v1865_v42 = vpack.c.bf16 %v1464_v25, %v1464_v25 }
 0x1ee   : > { %1635 = vst.msk [vmem:[%s2794_s26 + $0x84] sm:$0xf] %vm1601_vm5, %v1865_v42 }
 0x1ef PF: > { %s12_s9 = sadd.s32 1, %s2260_s9  }
 0x1f0   : > { %p9_p4 = scmp.ge.s32.totalorder %s12_s9, 4  }
 0x1f2   :  { %11 = sbr.rel (!%p9_p4) target bundleno = 1 (0x1), region = 61 }

// kernel: patchgan_discriminator_forward.6
= control target key start
LH: loop header
LB: loop body
LE: loop exit
PB: predicated region body
PF: predicated region fallthrough
CT: control target
= control target key end

     0   :  { %s2191_s12 = smov 0   ;;  %s2640_s0 = inlined_call_operand.vmem [shape: bf16[2,89,256], index: 0, kind: input, shape index: {}]   ;;  %s2641_s1 = inlined_call_operand.vmem [shape: bf16[4,256,128], index: 1, kind: input, shape index: {}]   ;;  %s2642_s2 = inlined_call_operand.vmem [shape: f32[1,72], index: 2, kind: input, shape index: {}]   ;;  %s2643_s3 = inlined_call_operand.vmem [shape: bf16[2,72,128], index: 3, kind: output, shape index: {}]  }
   0x1 LB: > { %s1581_s13 = sadd.s32 4294967295, %s2167_s12   ;;  %p1585_p0 = scmp.ge.s32.totalorder %s2167_s12, 1  ;;  %s2167_s12 = sphi %s2191_s12, %s13_s12  }
   0x2   : > { %p137_p1 = scmp.lt.s32.totalorder %s2167_s12, 3 }
   0x4   : > { %p138_p2 = pnand %p1585_p0, %p137_p1 }
   0x6   : > { %141 = sbr.rel (%p138_p2) target bundleno = 569 (0x239), region = 32 }
   0xb   : > { %v2073_v0 = vld [vmem:[%s2641_s1 + $0xf8] sm:$0xff]   ;;  %v2077_v4 = vld [vmem:[%s2641_s1 + $0xf0] sm:$0xff]   ;;  %v2081_v8 = vld [vmem:[%s2641_s1 + $0xe8] sm:$0xff]   ;;  %p161_p3 = scmp.lt.s32.totalorder %s1581_s13, 1  ;;  %vm288_vm0 = vsmask.f32 7424 }
   0xc   : > { %v2074_v1 = vld [vmem:[%s2641_s1 + $0x78] sm:$0xff]   ;;  %1815 = vmatprep.subr.bf16.mxu0 %v2073_v0  ;;  %v2078_v5 = vld [vmem:[%s2641_s1 + $0x70] sm:$0xff]   ;;  %v2082_v9 = vld [vmem:[%s2641_s1 + $0x68] sm:$0xff]   ;;  %vm1069_vm1 = vcmask 1046528   ;;  %vm2170_vm2 = vmmov 0   ;;  %vm1276_vm3 = vcmask 588800  }
   0xd   : > { %v2075_v2 = vld [vmem:[%s2641_s1 + $0xb8] sm:$0xff]   ;;  %1861 = vmatprep.subr.bf16.mxu1 %v2074_v1  ;;  %v2079_v6 = vld [vmem:[%s2641_s1 + $0xb0] sm:$0xff]   ;;  %v2083_v10 = vld [vmem:[%s2641_s1 + $0xa8] sm:$0xff]   ;;  %s2664_s13 = smov (!%p161_p3, %s1581_s13), 1 }
   0xe   : > { %v2076_v3 = vld [vmem:[%s2641_s1 + $0x38] sm:$0xff]   ;;  %1816 = vmatpush3.bf16.msra.mxu0 %v2075_v2  ;;  %v2080_v7 = vld [vmem:[%s2641_s1 + $0x30] sm:$0xff]   ;;  %v2084_v11 = vld [vmem:[%s2641_s1 + $0x28] sm:$0xff]   ;;  %s2061_s16 = smul.u32 96, %s2664_s13 }
   0xf   : > { %1862 = vmatpush3.bf16.msra.mxu1 %v2076_v3  ;;  %1817 = vmatprep.subr.bf16.mxu0 %v2077_v4  ;;  %v2085_v12 = vld [vmem:[%s2641_s1 + $0xe0] sm:$0xff]   ;;  %v2089_v16 = vld [vmem:[%s2641_s1 + $0xd8] sm:$0xff]   ;;  %v2093_v20 = vld [vmem:[%s2641_s1 + $0xd0] sm:$0xff]   ;;  %s2062_s24 = smul.u32 36, %s2664_s13 }
  0x10   : > { %1863 = vmatprep.subr.bf16.mxu1 %v2078_v5  ;;  %v2086_v13 = vld [vmem:[%s2641_s1 + $0x60] sm:$0xff]   ;;  %v2090_v17 = vld [vmem:[%s2641_s1 + $0x58] sm:$0xff]   ;;  %v2094_v21 = vld [vmem:[%s2641_s1 + $0x50] sm:$0xff]   ;;  %s2299_s27 = scalar_lea.vmem %s2640_s0, %s2061_s16 }
  0x11   : > { %v2087_v14 = vld [vmem:[%s2641_s1 + $0xa0] sm:$0xff]   ;;  %v2091_v18 = vld [vmem:[%s2641_s1 + $0x98] sm:$0xff]   ;;  %v2095_v22 = vld [vmem:[%s2641_s1 + $0x90] sm:$0xff]   ;;  %s170_s26 = scalar_lea.vmem %s2643_s3, %s2062_s24 }
  0x12   : > { %1818 = vmatpush3.bf16.msra.mxu0 %v2079_v6  ;;  %v2088_v15 = vld [vmem:[%s2641_s1 + $0x20] sm:$0xff]   ;;  %v2092_v19 = vld [vmem:[%s2641_s1 + $0x18] sm:$0xff]   ;;  %v2096_v23 = vld [vmem:[%s2641_s1 + $0x10] sm:$0xff]  }
  0x13   : > { %1864 = vmatpush3.bf16.msra.mxu1 %v2080_v7  ;;  %1819 = vmatprep.subr.bf16.mxu0 %v2081_v8  ;;  %v2097_v24 = vld [vmem:[%s2641_s1 + $0xc8] sm:$0xff]   ;;  %v2101_v28 = vld [vmem:[%s2641_s1 + $0xc0] sm:$0xff]   ;;  %v2312_v34 = vld [vmem:[%s2299_s27 + $0x10] sm:$0xff] }
  0x14   : > { %1865 = vmatprep.subr.bf16.mxu1 %v2082_v9  ;;  %v2098_v25 = vld [vmem:[%s2641_s1 + $0x48] sm:$0xff]   ;;  %v2102_v29 = vld [vmem:[%s2641_s1 + $0x40] sm:$0xff]   ;;  %v2315_v35 = vld [vmem:[%s2299_s27 + $0x18] sm:$0xff] }
  0x15   : > { %v2099_v26 = vld [vmem:[%s2641_s1 + $0x88] sm:$0xff]   ;;  %v2103_v30 = vld [vmem:[%s2641_s1 + $0x80] sm:$0xff]   ;;  %v1623_v40 = vcombine.high %v2312_v34, %v2315_v35  ;;  %v1622_v41 = vcombine.low %v2312_v34, %v2315_v35  ;;  %v2111_v44 = vld [vmem:[%s2641_s1 + $0x178] sm:$0xff]  }
  0x16   : > { %1820 = vmatpush3.bf16.msra.mxu0 %v2083_v10  ;;  %v2100_v27 = vld [vmem:[%s2641_s1 + $0x8] sm:$0xff]   ;;  %v2104_v31 = vld [vmem:[%s2641_s1] sm:$0xff]   ;;  %v2112_v56 = vld [vmem:[%s2641_s1 + $0x1f8] sm:$0xff]  }
  0x17   : > { %1866 = vmatpush3.bf16.msra.mxu1 %v2084_v11  ;;  %1821 = vmatprep.subr.bf16.mxu0 %v2085_v12  ;;  %v172_v32 = vld [vmem:[%s2299_s27] sm:$0xff]  ;;  %v2309_v33 = vld [vmem:[%s2299_s27 + $0x8] sm:$0xff]  ;;  %v309_v49 = vshll.u32 %v1623_v40, 16  ;;  %v297_v50 = vshll.u32 %v1622_v41, 16  ;;  %v321_v51 = vshrl.u32 %v1623_v40, 16  ;;  %v313_v55 = vshrl.u32 %v1622_v41, 16 }
  0x18   : > { %1867 = vmatprep.subr.bf16.mxu1 %v2086_v13  ;;  %v1621_v36 = vcombine.high %v172_v32, %v2309_v33  ;;  %v1620_v37 = vcombine.low %v172_v32, %v2309_v33  ;;  %v2320_v38 = vld [vmem:[%s2299_s27 + $0x20] sm:$0xff]  ;;  %v2323_v39 = vld [vmem:[%s2299_s27 + $0x28] sm:$0xff]  ;;  %v2114_v60 = vld [vmem:[%s2641_s1 + $0x1b8] sm:$0xff]  }
  0x19   : > { %v1625_v42 = vcombine.high %v2320_v38, %v2323_v39  ;;  %v2333_v43 = vcombine.low %v2320_v38, %v2323_v39  ;;  %v311_v57 = vrot.slane %v309_v49, 1  ;;  %v299_v58 = vrot.slane %v297_v50, 1  ;;  %v2113_v0 = vld [vmem:[%s2641_s1 + $0x138] sm:$0xff]   ;;  %v2116_v4 = vld [vmem:[%s2641_s1 + $0x1f0] sm:$0xff]   ;;  %v2128_v32 = vld [vmem:[%s2641_s1 + $0x1a0] sm:$0xff]  }
  0x1a   : > { %1822 = vmatpush3.bf16.msra.mxu0 %v2087_v14  ;;  %v302_v45 = vshrl.u32 %v1621_v36, 16  ;;  %v304_v46 = vshll.u32 %v1621_v36, 16  ;;  %685 = vmatprep.mubr.bf16.mxu1 %v1621_v36  ;;  %v290_v47 = vshrl.u32 %v1620_v37, 16  ;;  %v292_v48 = vshll.u32 %v1620_v37, 16  ;;  %v2115_v6 = vld [vmem:[%s2641_s1 + $0x170] sm:$0xff]   ;;  %v2367_v13 = vld [vmem:[%s2299_s27 + $0x38] sm:$0xff] }
  0x1b   : > { %1868 = vmatpush3.bf16.msra.mxu1 %v2088_v15  ;;  %1823 = vmatprep.subr.bf16.mxu0 %v2089_v16  ;;  %v325_v52 = vshll.u32 %v1625_v42, 16  ;;  %v317_v63 = vshll.u32 %v2333_v43, 16  ;;  %v323_v1 = vor.u32 %v321_v51, %v311_v57  ;;  %v2117_v7 = vld [vmem:[%s2641_s1 + $0x130] sm:$0xff]   ;;  %v337_v9 = vshrl.u32 %v1625_v42, 16  ;;  %v2121_v16 = vld [vmem:[%s2641_s1 + $0x168] sm:$0xff]   ;;  %v2402_v36 = vld [vmem:[%s2299_s27 + $0x40] sm:$0xff] }
  0x1c   : > { %1869 = vmatprep.subr.bf16.mxu1 %v2090_v17  ;;  %v306_v53 = vrot.slane %v304_v46, 1  ;;  %v294_v54 = vrot.slane %v292_v48, 1  ;;  %v2118_v8 = vld [vmem:[%s2641_s1 + $0x1b0] sm:$0xff]   ;;  %v315_v10 = vor.u32 %v313_v55, %v299_v58  ;;  %v329_v17 = vshrl.u32 %v2333_v43, 16 }
  0x1d   : > { %v327_v59 = vrot.slane %v325_v52, 1  ;;  %v319_v11 = vrot.slane %v317_v63, 1  ;;  %v2364_v12 = vld [vmem:[%s2299_s27 + $0x30] sm:$0xff]  ;;  %v2133_v52 = vld [vmem:[%s2641_s1 + $0x118] sm:$0xff]   ;;  %v2446_v63 = vcombine.high %v2315_v35, %v2320_v38 }
  0x1e   : > { %1824 = vmatpush3.bf16.msra.mxu0 %v2091_v18  ;;  %v307_v61 = vor.u32 %v306_v53, %v302_v45  ;;  %v295_v62 = vor.u32 %v294_v54, %v290_v47  ;;  %v1627_v14 = vcombine.high %v2364_v12, %v2367_v13  ;;  %v1626_v15 = vcombine.low %v2364_v12, %v2367_v13  ;;  %v2122_v18 = vld [vmem:[%s2641_s1 + $0x1e8] sm:$0xff]   ;;  %v2132_v47 = vld [vmem:[%s2641_s1 + $0x1d8] sm:$0xff]  }
  0x1f   : > { %1870 = vmatpush3.bf16.msra.mxu1 %v2092_v19  ;;  %1825 = vmatprep.subr.bf16.mxu0 %v2093_v20  ;;  %v328_v5 = vsel %vm288_vm0, %v323_v1, %v327_v59  ;;  %v339_v19 = vor.u32 %v337_v9, %v327_v59  ;;  %v2134_v53 = vld [vmem:[%s2641_s1 + $0x198] sm:$0xff]   ;;  %v1646_v9 = vcombine.low %v2402_v36, %v2402_v36 }
  0x20   : > { %1871 = vmatprep.subr.bf16.mxu1 %v2094_v21  ;;  %v312_v2 = vsel %vm288_vm0, %v307_v61, %v311_v57  ;;  %v300_v3 = vsel %vm288_vm0, %v295_v62, %v299_v58  ;;  %v341_v20 = vshll.u32 %v1627_v14, 16  ;;  %v333_v21 = vshll.u32 %v1626_v15, 16  ;;  %v2136_v57 = vld [vmem:[%s2641_s1 + $0x1d0] sm:$0xff]  }
  0x21   : > { %505 = vmatprep.mubr.bf16.mxu0 %v312_v2  ;;  %v345_v46 = vshrl.u32 %v1626_v15, 16  ;;  %v1647_v58 = vcombine.high %v2402_v36, %v2402_v36  ;;  %v2137_v61 = vld [vmem:[%s2641_s1 + $0x110] sm:$0xff]   ;;  %v2141_v2 = vld [vmem:[%s2641_s1 + $0x148] sm:$0xff]  }
  0x22   : > { %1826 = vmatpush3.bf16.msra.mxu0 %v2095_v22  ;;  %v2123_v22 = vld [vmem:[%s2641_s1 + $0x128] sm:$0xff]  }
  0x23   : > { %1872 = vmatpush3.bf16.msra.mxu1 %v2096_v23  ;;  %1827 = vmatprep.subr.bf16.mxu0 %v2097_v24  ;;  %v2124_v23 = vld [vmem:[%s2641_s1 + $0x1a8] sm:$0xff]   ;;  %v320_v24 = vsel %vm288_vm0, %v315_v10, %v319_v11 }
  0x24   : > { %1873 = vmatprep.subr.bf16.mxu1 %v2098_v25  ;;  %v343_v25 = vrot.slane %v341_v20, 1  ;;  %v2143_v10 = vld [vmem:[%s2641_s1 + $0x108] sm:$0xff]   ;;  %v1701_v20 = vcombine.high %v2323_v39, %v2364_v12 }
  0x26   : > { %1828 = vmatpush3.bf16.msra.mxu0 %v2099_v26  ;;  %v2125_v26 = vld [vmem:[%s2641_s1 + $0x160] sm:$0xff]  }
  0x27   : > { %1874 = vmatpush3.bf16.msra.mxu1 %v2100_v27  ;;  %1829 = vmatprep.subr.bf16.mxu0 %v2101_v28  ;;  %v2126_v27 = vld [vmem:[%s2641_s1 + $0x1e0] sm:$0xff]   ;;  %v344_v28 = vsel %vm288_vm0, %v339_v19, %v343_v25 }
  0x28   : > { %1875 = vmatprep.subr.bf16.mxu1 %v2102_v29  ;;  %v2127_v29 = vld [vmem:[%s2641_s1 + $0x120] sm:$0xff]  }
  0x2a   : > { %1830 = vmatpush3.bf16.msra.mxu0 %v2103_v30  ;;  %v331_v30 = vor.u32 %v329_v17, %v319_v11  ;;  %v791_v11 = vshll.u32 %v2446_v63, 16 }
  0x2b   : > { %1876 = vmatpush3.bf16.msra.mxu1 %v2104_v31  ;;  %1907 = vmatprep.subr.bf16.mxu0 %v2111_v44  ;;  %v335_v31 = vrot.slane %v333_v21, 1  ;;  %v2131_v44 = vld [vmem:[%s2641_s1 + $0x158] sm:$0xff]   ;;  %v2147_v21 = vld [vmem:[%s2641_s1 + $0x100] sm:$0xff]  }
  0x2c   : > { %1953 = vmatprep.subr.bf16.mxu1 %v2112_v56  ;;  %v2135_v56 = vld [vmem:[%s2641_s1 + $0x150] sm:$0xff]  }
  0x2d   : > { %506 = vmatmul.mubr.bf16.vlgmr.msra.gmra.mxu0 %v300_v3  ;;  %v336_v48 = vsel %vm288_vm0, %v331_v30, %v335_v31 }
  0x2e   : > { %686 = vmatmul.mubr.bf16.vlgmr.msra.gmra.mxu1 %v1620_v37  ;;  %513 = vmatprep.mubr.bf16.mxu0 %v328_v5  ;;  %v353_v37 = vshrl.u32 %v1627_v14, 16  ;;  %v1074_v5 = vrot.slane %v2446_v63, 1 }
  0x2f   : > { %693 = vmatprep.mubr.bf16.mxu1 %v1623_v40  ;;  %1954 = vmatpush3.bf16.msra.mxu1 %v2114_v60  ;;  %v2406_v40 = vcombine.high %v2309_v33, %v2312_v34  ;;  %v347_v60 = vor.u32 %v345_v46, %v335_v31 }
  0x30   : > { %1955 = vmatprep.subr.bf16.mxu1 %v2116_v4  ;;  %1908 = vmatpush3.bf16.msra.mxu0 %v2113_v0  ;;  %v355_v49 = vor.u32 %v353_v37, %v343_v25  ;;  %v2138_v0 = vld [vmem:[%s2641_s1 + $0x190] sm:$0xff]   ;;  %v2142_v4 = vld [vmem:[%s2641_s1 + $0x1c8] sm:$0xff]   ;;  %v1078_v25 = vrot.slane %v1701_v20, 1  ;;  %v807_v37 = vshll.u32 %v1701_v20, 16 }
  0x31   : > { %1909 = vmatprep.subr.bf16.mxu0 %v2115_v6  ;;  %v784_v45 = vshrl.u32 %v2406_v40, 16  ;;  %v786_v1 = vshll.u32 %v2406_v40, 16  ;;  %v1073_v3 = vrot.slane %v2406_v40, 1  ;;  %v1696_v6 = vcombine.low %v2309_v33, %v2312_v34  ;;  %v2145_v33 = vld [vmem:[%s2641_s1 + $0x140] sm:$0xff]  }
  0x32   : > { %v1079_v40 = vsel %vm1069_vm1, %v1074_v5, %v1078_v25 }
  0x33   : > { %1956 = vmatpush3.bf16.msra.mxu1 %v2118_v8  ;;  %v1075_v17 = vsel %vm1069_vm1, %v1073_v3, %v1074_v5  ;;  %v774_v19 = vshll.u32 %v1696_v6, 16 }
  0x34   : > { %1957 = vmatprep.subr.bf16.mxu1 %v2122_v18  ;;  %1910 = vmatpush3.bf16.msra.mxu0 %v2117_v7  ;;  %v1698_v18 = vcombine.low %v2315_v35, %v2320_v38  ;;  %v793_v35 = vrot.slane %v791_v11, 1  ;;  %v1070_v38 = vrot.slane %v1696_v6, 1 }
  0x35   : > { %1911 = vmatprep.subr.bf16.mxu0 %v2121_v16  ;;  %514 = vmatmul.mubr.bf16.gmra.mxu0 %v320_v24  ;;  %v2146_v16 = vld [vmem:[%s2641_s1 + $0x1c0] sm:$0xff]  }
  0x36   : > { %694 = vmatmul.mubr.bf16.gmra.mxu1 %v1622_v41  ;;  %521 = vmatprep.mubr.bf16.mxu0 %v344_v28  ;;  %v2409_v41 = vld [vmem:[%s2299_s27 + $0x48] sm:$0xff]  ;;  %v1071_v24 = vrot.slane %v1698_v18, 1  ;;  %v776_v28 = vrot.slane %v774_v19, 1 }
  0x37   : > { %701 = vmatprep.mubr.bf16.mxu1 %v1625_v42  ;;  %1958 = vmatpush3.bf16.msra.mxu1 %v2124_v23  ;;  %v1629_v42 = vcombine.high %v2402_v36, %v2409_v41 }
  0x38   : > { %1959 = vmatprep.subr.bf16.mxu1 %v2126_v27  ;;  %1912 = vmatpush3.bf16.msra.mxu0 %v2123_v22  ;;  %v2148_v22 = vld [vmem:[%s2641_s1 + $0x180] sm:$0xff]   ;;  %v772_v27 = vshrl.u32 %v1696_v6, 16  ;;  %v1072_v31 = vsel %vm1069_vm1, %v1070_v38, %v1071_v24 }
  0x39   : > { %1913 = vmatprep.subr.bf16.mxu0 %v2125_v26  ;;  %v357_v50 = vshll.u32 %v1629_v42, 16  ;;  %v364_v62 = vshrl.u32 %v1629_v42, 16  ;;  %v1700_v42 = vcombine.low %v2323_v39, %v2364_v12  ;;  %v819_v12 = vshrl.u32 %v1701_v20, 16 }
  0x3b   : > { %1960 = vmatpush3.bf16.msra.mxu1 %v2128_v32  ;;  %v359_v54 = vrot.slane %v357_v50, 1  ;;  %v803_v32 = vshrl.u32 %v2446_v63, 16 }
  0x3c   : > { %1914 = vmatpush3.bf16.msra.mxu0 %v2127_v29  ;;  %1961 = vmatprep.subr.bf16.mxu1 %v2132_v47  ;;  %v779_v29 = vshll.u32 %v1698_v18, 16  ;;  %v809_v47 = vrot.slane %v807_v37, 1 }
  0x3d   : > { %1915 = vmatprep.subr.bf16.mxu0 %v2131_v44  ;;  %522 = vmatmul.mubr.bf16.gmra.mxu0 %v336_v48  ;;  %v360_v59 = vsel %vm288_vm0, %v355_v49, %v359_v54  ;;  %v366_v8 = vor.u32 %v364_v62, %v359_v54  ;;  %v805_v46 = vor.u32 %v803_v32, %v793_v35  ;;  %v1076_v48 = vrot.slane %v1700_v42, 1 }
  0x3e   : > { %702 = vmatmul.mubr.bf16.gmra.mxu1 %v2333_v43  ;;  %v2415_v43 = vcombine.low %v2402_v36, %v2409_v41  ;;  %529 = vmatprep.mubr.bf16.mxu0 %v360_v59  ;;  %v781_v44 = vrot.slane %v779_v29, 1 }
  0x3f   : > { %709 = vmatprep.mubr.bf16.mxu1 %v1627_v14  ;;  %1962 = vmatpush3.bf16.msra.mxu1 %v2134_v53  ;;  %v2144_v14 = vld [vmem:[%s2641_s1 + $0x188] sm:$0xff]   ;;  %v810_v53 = vsel %vm288_vm0, %v805_v46, %v809_v47  ;;  %v1077_v39 = vsel %vm1069_vm1, %v1071_v24, %v1076_v48 }
  0x40   : > { %v349_v51 = vshll.u32 %v2415_v43, 16  ;;  %1963 = vmatprep.subr.bf16.mxu1 %v2136_v57  ;;  %1916 = vmatpush3.bf16.msra.mxu0 %v2133_v52  ;;  %v361_v34 = vshrl.u32 %v2415_v43, 16  ;;  %v777_v43 = vor.u32 %v776_v28, %v772_v27  ;;  %v799_v52 = vshll.u32 %v1700_v42, 16 }
  0x41   : > { %1917 = vmatprep.subr.bf16.mxu0 %v2135_v56  ;;  %v1702_v57 = vcombine.low %v2367_v13, %v2402_v36 }
  0x42   : > { %v351_v55 = vrot.slane %v349_v51, 1  ;;  %v782_v50 = vsel %vm288_vm0, %v777_v43, %v781_v44  ;;  %v795_v51 = vshrl.u32 %v1698_v18, 16  ;;  %v801_v59 = vrot.slane %v799_v52, 1 }
  0x43   : > { %1964 = vmatpush3.bf16.msra.mxu1 %v2138_v0  ;;  %v1080_v63 = vrot.slane %v1702_v57, 1  ;;  %v815_v3 = vshll.u32 %v1702_v57, 16 }
  0x44   : > { %v352_v7 = vsel %vm288_vm0, %v347_v60, %v351_v55  ;;  %1918 = vmatpush3.bf16.msra.mxu0 %v2137_v61  ;;  %1965 = vmatprep.subr.bf16.mxu1 %v2142_v4  ;;  %v363_v26 = vor.u32 %v361_v34, %v351_v55  ;;  %v182_v55 = vld [vmem:[%s2299_s27 + $0x50] sm:$0xff]  ;;  %v821_v61 = vor.u32 %v819_v12, %v809_v47 }
  0x45   : > { %1919 = vmatprep.subr.bf16.mxu0 %v2141_v2  ;;  %530 = vmatmul.mubr.bf16.gmra.mxu0 %v352_v7  ;;  %v1705_v60 = vcombine.high %v2409_v41, %v182_v55  ;;  %v811_v2 = vshrl.u32 %v1700_v42, 16  ;;  %v1081_v5 = vsel %vm1069_vm1, %v1076_v48, %v1080_v63  ;;  %v1704_v7 = vcombine.low %v2409_v41, %v182_v55 }
  0x46   : > { %710 = vmatmul.mubr.bf16.gmra.mxu1 %v1626_v15  ;;  %v788_v15 = vrot.slane %v786_v1, 1  ;;  %537 = vmatprep.mubr.bf16.mxu0 %v366_v8 }
  0x47   : > { %717 = vmatprep.mubr.bf16.mxu1 %v1647_v58  ;;  %1966 = vmatpush3.bf16.msra.mxu1 %v2144_v14  ;;  %v797_v58 = vor.u32 %v795_v51, %v781_v44  ;;  %v1086_v0 = vrot.slane %v1705_v60, 1  ;;  %v813_v8 = vor.u32 %v811_v2, %v801_v59  ;;  %v1084_v14 = vrot.slane %v1704_v7, 1 }
  0x48   : > { %1920 = vmatpush3.bf16.msra.mxu0 %v2143_v10  ;;  %1967 = vmatprep.subr.bf16.mxu1 %v2146_v16  ;;  %v789_v23 = vor.u32 %v788_v15, %v784_v45  ;;  %v1703_v45 = vcombine.high %v2367_v13, %v2402_v36  ;;  %v839_v36 = vshll.u32 %v1705_v60, 16  ;;  %v831_v34 = vshll.u32 %v1704_v7, 16 }
  0x49   : > { %1921 = vmatprep.subr.bf16.mxu0 %v2145_v33  ;;  %v802_v1 = vsel %vm288_vm0, %v797_v58, %v801_v59  ;;  %v827_v33 = vshrl.u32 %v1702_v57, 16  ;;  %v846_v19 = vshrl.u32 %v1705_v60, 16 }
  0x4a   : > { %v794_v30 = vsel %vm288_vm0, %v789_v23, %v793_v35  ;;  %v1082_v49 = vrot.slane %v1703_v45, 1  ;;  %v823_v54 = vshll.u32 %v1703_v45, 16  ;;  %v835_v13 = vshrl.u32 %v1703_v45, 16 }
  0x4b   : > { %1968 = vmatpush3.bf16.msra.mxu1 %v2148_v22  ;;  %v841_v11 = vrot.slane %v839_v36, 1  ;;  %v833_v41 = vrot.slane %v831_v34, 1  ;;  %v843_v22 = vshrl.u32 %v1704_v7, 16  ;;  %v2644_v35 = vmov 0.0  }
  0x4c   : > { %1922 = vmatpush3.bf16.msra.mxu0 %v2147_v21  ;;  %v1083_v56 = vsel %vm1069_vm1, %v1078_v25, %v1082_v49  ;;  %v825_v62 = vrot.slane %v823_v54, 1  ;;  %v1087_v6 = vsel %vm1069_vm1, %v1082_v49, %v1086_v0  ;;  %2040 = vmatprep.subr.mxu1 %v2644_v35 }
  0x4d   : > { %538 = vmatmul.mubr.bf16.gmra.mxu0 %v363_v26  ;;  %v848_v21 = vor.u32 %v846_v19, %v841_v11  ;;  %v845_v23 = vor.u32 %v843_v22, %v833_v41  ;;  %2019 = vmatprep.subr.mxu0 %v2644_v35 }
  0x4e   : > { %718 = vmatmul.mubr.bf16.gmra.mxu1 %v1646_v9  ;;  %987 = vmatprep.mubr.bf16.mxu0 %v794_v30  ;;  %v826_v4 = vsel %vm288_vm0, %v821_v61, %v825_v62  ;;  %v817_v9 = vrot.slane %v815_v3, 1  ;;  %v837_v10 = vor.u32 %v835_v13, %v825_v62 }
  0x4f   : > { %1226 = vmatprep.mubr.bf16.mxu1 %v1075_v17  ;;  %v1085_v17 = vsel %vm1069_vm1, %v1080_v63, %v1084_v14 }
  0x50   : > { %v818_v15 = vsel %vm288_vm0, %v813_v8, %v817_v9  ;;  %v842_v16 = vsel %vm288_vm0, %v837_v10, %v841_v11  ;;  %v829_v18 = vor.u32 %v827_v33, %v817_v9 }
  0x52   : > { %v834_v20 = vsel %vm288_vm0, %v829_v18, %v833_v41 }
  0x55   : > { %988 = vmatmul.mubr.bf16.vlgmr.msra.gmra.mxu0 %v782_v50 }
  0x56   : > { %1227 = vmatmul.mubr.bf16.vlgmr.msra.gmra.mxu1 %v1072_v31  ;;  %995 = vmatprep.mubr.bf16.mxu0 %v810_v53 }
  0x57   : > { %1234 = vmatprep.mubr.bf16.mxu1 %v1079_v40 }
  0x5d   : > { %996 = vmatmul.mubr.bf16.gmra.mxu0 %v802_v1 }
  0x5e   : > { %1235 = vmatmul.mubr.bf16.gmra.mxu1 %v1077_v39  ;;  %1003 = vmatprep.mubr.bf16.mxu0 %v826_v4 }
  0x5f   : > { %1242 = vmatprep.mubr.bf16.mxu1 %v1083_v56 }
  0x65   : > { %1004 = vmatmul.mubr.bf16.gmra.mxu0 %v818_v15 }
  0x66   : > { %1243 = vmatmul.mubr.bf16.gmra.mxu1 %v1081_v5  ;;  %1011 = vmatprep.mubr.bf16.mxu0 %v842_v16 }
  0x67   : > { %1250 = vmatprep.mubr.bf16.mxu1 %v1087_v6 }
  0x6d   : > { %1012 = vmatmul.mubr.bf16.gmra.mxu0 %v834_v20 }
  0x6e   : > { %1251 = vmatmul.mubr.bf16.gmra.mxu1 %v1085_v17  ;;  %1019 = vmatprep.mubr.bf16.mxu0 %v848_v21 }
  0x6f   : > { %1258 = vmatprep.mubr.bf16.mxu1 %v1086_v0 }
  0x75   : > { %1020 = vmatmul.mubr.bf16.gmra.mxu0 %v845_v23 }
  0x76   : > { %1259 = vmatmul.mubr.bf16.gmra.mxu1 %v1084_v14  ;;  %2037 = vmatprep.mubr.msk.f32.mxu0 %vm2170_vm2, %v2644_v35 }
  0x77   : > { %2058 = vmatprep.mubr.msk.f32.mxu1 %vm2170_vm2, %v2644_v35 }
  0xed   : > { %v1831_v28 = vpop.f32.mrf.mxu0 }
  0xee   : > { %v1877_v38 = vpop.f32.mrf.mxu1 }
  0xef   : > { %v1832_v31 = vpop.f32.mrf.mxu0 }
  0xf0   : > { %v1878_v24 = vpop.f32.mrf.mxu1  ;;  %v1833_v32 = vadd.f32 %v1832_v31, %v1831_v28 }
  0xf1   : > { %v1879_v25 = vadd.f32 %v1878_v24, %v1877_v38  ;;  %v1834_v40 = vpop.f32.mrf.mxu0 }
  0xf2   : > { %v1880_v26 = vpop.f32.mrf.mxu1 }
  0xf3   : > { %v2521_v43 = vadd.f32 %v1879_v25, %v1833_v32  ;;  %v1835_v45 = vpop.f32.mrf.mxu0 }
  0xf4   : > { %v1881_v27 = vpop.f32.mrf.mxu1  ;;  %v1836_v46 = vadd.f32 %v1835_v45, %v1834_v40 }
  0xf5   : > { %v1882_v29 = vadd.f32 %v1881_v27, %v1880_v26  ;;  %2646 = vst [vmem:[#allocation2_spill] sm:$0xff] %v2521_v43  ;;  %v1837_v48 = vpop.f32.mrf.mxu0 }
  0xf6   : > { %v1883_v30 = vpop.f32.mrf.mxu1 }
  0xf7   : > { %v2523_v50 = vadd.f32 %v1882_v29, %v1836_v46  ;;  %v1838_v52 = vpop.f32.mrf.mxu0 }
  0xf8   : > { %v1884_v37 = vpop.f32.mrf.mxu1  ;;  %v1839_v53 = vadd.f32 %v1838_v52, %v1837_v48 }
  0xf9   : > { %v1885_v42 = vadd.f32 %v1884_v37, %v1883_v30  ;;  %2647 = vst [vmem:[#allocation3_spill] sm:$0xff] %v2523_v50  ;;  %v1840_v12 = vpop.f32.mrf.mxu0 }
  0xfa   : > { %v1886_v44 = vpop.f32.mrf.mxu1 }
  0xfb   : > { %v2525_v55 = vadd.f32 %v1885_v42, %v1839_v53  ;;  %v1841_v57 = vpop.f32.mrf.mxu0 }
  0xfc   : > { %v1887_v47 = vpop.f32.mrf.mxu1  ;;  %v1842_v58 = vadd.f32 %v1841_v57, %v1840_v12 }
  0xfd   : > { %v1888_v49 = vadd.f32 %v1887_v47, %v1886_v44  ;;  %v1843_v60 = vpop.f32.mrf.mxu0 }
  0xfe   : > { %v1889_v51 = vpop.f32.mrf.mxu1 }
  0xff   : > { %v2531_v61 = vadd.f32 %v1888_v49, %v1842_v58  ;;  %v1844_v63 = vpop.f32.mrf.mxu0 }
 0x100   : > { %v1890_v39 = vpop.f32.mrf.mxu1  ;;  %v1845_v0 = vadd.f32 %v1844_v63, %v1843_v60 }
 0x101   : > { %v1891_v54 = vadd.f32 %v1890_v39, %v1889_v51  ;;  %v1846_v2 = vpop.f32.mrf.mxu0 }
 0x102   : > { %v2527_v56 = vpop.f32.mrf.mxu1 }
 0x103   : > { %v2533_v3 = vadd.f32 %v1891_v54, %v1845_v0  ;;  %v1847_v5 = vpop.f32.mrf.mxu0 }
 0x104   : > { %v2529_v59 = vpop.f32.mrf.mxu1 }
 0x105   : > { %v1849_v36 = vpop.f32.mrf.mxu0 }
 0x106   : > { %v1895_v62 = vpop.f32.mrf.mxu1 }
 0x107   : > { %v1850_v7 = vpop.f32.mrf.mxu0 }
 0x108   : > { %v1896_v1 = vpop.f32.mrf.mxu1  ;;  %v1851_v63 = vadd.f32 %v1850_v7, %v1849_v36 }
 0x109   : > { %v1852_v9 = vpop.f32.mrf.mxu0  ;;  %v1897_v0 = vadd.f32 %v1896_v1, %v1895_v62 }
 0x10a   : > { %v1898_v4 = vpop.f32.mrf.mxu1 }
 0x10b   : > { %v1853_v11 = vpop.f32.mrf.mxu0  ;;  %v712_v50 = vadd.f32 %v1897_v0, %v1851_v63 }
 0x10c   : > { %v1899_v13 = vpop.f32.mrf.mxu1  ;;  %v1854_v57 = vadd.f32 %v1853_v11, %v1852_v9 }
 0x10d   : > { %v1855_v15 = vpop.f32.mrf.mxu0  ;;  %v1900_v58 = vadd.f32 %v1899_v13, %v1898_v4 }
 0x10e   : > { %v1901_v6 = vpop.f32.mrf.mxu1 }
 0x10f   : > { %v1856_v34 = vpop.f32.mrf.mxu0 }
 0x110   : > { %v1902_v8 = vpop.f32.mrf.mxu1 }
 0x111   : > { %v1858_v17 = vpop.f32.mrf.mxu0 }
 0x112   : > { %v1904_v10 = vpop.f32.mrf.mxu1  ;;  %v1903_v17 = vadd.f32 %v1902_v8, %v1901_v6 }
 0x113   : > { %v1859_v41 = vpop.f32.mrf.mxu0 }
 0x114   : > { %v1905_v14 = vpop.f32.mrf.mxu1 }
 0x115   : > { %v2543_v20 = vpop.f32.mrf.mxu0  ;;  %v1857_v14 = vadd.f32 %v1856_v34, %v1855_v15 }
 0x116   : > { %v2535_v33 = vpop.f32.mrf.mxu1 }
 0x117   : > { %2648 = vst [vmem:[#allocation4_spill] sm:$0xff] %v2535_v33  ;;  %v2547_v22 = vpop.f32.mrf.mxu0  ;;  %v1894_v33 = vadd.f32 %v2529_v59, %v2527_v56 }
 0x118   : > { %v2537_v16 = vpop.f32.mrf.mxu1 }
 0x119   : > { %2649 = vst [vmem:[#allocation5_spill] sm:$0xff] %v2537_v16  ;;  %v2551_v38 = vpop.f32.mrf.mxu0  ;;  %v1848_v16 = vadd.f32 %v1847_v5, %v1846_v2 }
 0x11a   : > { %v2539_v18 = vpop.f32.mrf.mxu1 }
 0x11b   : > { %2650 = vst [vmem:[#allocation6_spill] sm:$0xff] %v2539_v18  ;;  %v2555_v25 = vpop.f32.mrf.mxu0  ;;  %v707_v36 = vadd.f32 %v1894_v33, %v1848_v16 }
 0x11c   : > { %v2541_v19 = vpop.f32.mrf.mxu1  ;;  %v1928_v33 = vadd.f32 %v2555_v25, %v2551_v38 }
 0x11d   : > { %2651 = vst [vmem:[#allocation7_spill] sm:$0xff] %v2541_v19  ;;  %v1929_v27 = vpop.f32.mrf.mxu0  ;;  %v715_v19 = vadd.f32 %v1900_v58, %v1854_v57 }
 0x11e   : > { %v2545_v21 = vpop.f32.mrf.mxu1 }
 0x11f   : > { %2652 = vst [vmem:[#allocation8_spill] sm:$0xff] %v2545_v21  ;;  %v1930_v29 = vpop.f32.mrf.mxu0  ;;  %v720_v21 = vadd.f32 %v1903_v17, %v1857_v14 }
 0x120   : > { %v2549_v23 = vpop.f32.mrf.mxu1  ;;  %v1931_v34 = vadd.f32 %v1930_v29, %v1929_v27  ;;  %v1925_v27 = vadd.f32 %v2547_v22, %v2543_v20  ;;  %v2657_v22 = vld [vmem:[#allocation3_spill] sm:$0xff] }
 0x121   : > { %2653 = vst [vmem:[#allocation9_spill] sm:$0xff] %v2549_v23  ;;  %v1932_v31 = vpop.f32.mrf.mxu0 }
 0x122   : > { %v2553_v24 = vpop.f32.mrf.mxu1 }
 0x123   : > { %v1933_v37 = vpop.f32.mrf.mxu0 }
 0x124   : > { %v2557_v26 = vpop.f32.mrf.mxu1  ;;  %v1934_v2 = vadd.f32 %v1933_v37, %v1932_v31  ;;  %v2658_v31 = vld [vmem:[#allocation6_spill] sm:$0xff] }
 0x125   : > { %v1935_v42 = vpop.f32.mrf.mxu0  ;;  %v1980_v29 = vadd.f32 %v2557_v26, %v2553_v24  ;;  %v1028_v24 = vadd.f32 %v1928_v33, %v2657_v22 }
 0x126   : > { %v1981_v28 = vpop.f32.mrf.mxu1 }
 0x127   : > { %v1936_v45 = vpop.f32.mrf.mxu0 }
 0x128   : > { %v1982_v30 = vpop.f32.mrf.mxu1  ;;  %v1937_v62 = vadd.f32 %v1936_v45, %v1935_v42 }
 0x129   : > { %v1938_v47 = vpop.f32.mrf.mxu0  ;;  %v1983_v16 = vadd.f32 %v1982_v30, %v1981_v28  ;;  %v2655_v28 = vld [vmem:[#allocation8_spill] sm:$0xff]  ;;  %v2656_v30 = vld [vmem:[#allocation9_spill] sm:$0xff] }
 0x12a   : > { %v1984_v32 = vpop.f32.mrf.mxu1  ;;  %v1977_v20 = vadd.f32 %v2656_v30, %v2655_v28 }
 0x12b   : > { %v1939_v49 = vpop.f32.mrf.mxu0 }
 0x12c   : > { %v1985_v40 = vpop.f32.mrf.mxu1  ;;  %v1940_v9 = vadd.f32 %v1939_v49, %v1938_v47  ;;  %v1031_v47 = vadd.f32 %v1937_v62, %v2533_v3 }
 0x12d   : > { %v1941_v52 = vpop.f32.mrf.mxu0 }
 0x12e   : > { %v1987_v44 = vpop.f32.mrf.mxu1  ;;  %v1032_v11 = vadd.f32 %v1940_v9, %v707_v36  ;;  %v2587_v38 = vadd.f32 %v1983_v16, %v1031_v47 }
 0x12f   : > { %v1942_v39 = vpop.f32.mrf.mxu0 }
 0x130   : > { %v1988_v46 = vpop.f32.mrf.mxu1  ;;  %v1943_v18 = vadd.f32 %v1942_v39, %v1941_v52  ;;  %v1354_v45 = vmul.f32 %v2587_v38, %v2587_v38 }
 0x131   : > { %v1944_v54 = vpop.f32.mrf.mxu0  ;;  %v1989_v56 = vadd.f32 %v1988_v46, %v1987_v44  ;;  %v2661_v46 = vld [vmem:[#allocation4_spill] sm:$0xff] }
 0x132   : > { %v1990_v48 = vpop.f32.mrf.mxu1  ;;  %v1033_v7 = vadd.f32 %v1943_v18, %v712_v50  ;;  %v2654_v18 = vmov 0.0  }
 0x133   : > { %v1945_v10 = vpop.f32.mrf.mxu0 }
 0x134   : > { %v1991_v51 = vpop.f32.mrf.mxu1  ;;  %v1946_v41 = vadd.f32 %v1945_v10, %v1944_v54  ;;  %v1275_v54 = vld [vmem:[%s2642_s2] sm:$0x1] }
 0x135   : > { %v1947_v43 = vpop.f32.mrf.mxu0  ;;  %v1992_v6 = vadd.f32 %v1991_v51, %v1990_v48  ;;  %v2662_v48 = vld [vmem:[#allocation5_spill] sm:$0xff] }
 0x136   : > { %v1993_v53 = vpop.f32.mrf.mxu1  ;;  %v1034_v4 = vadd.f32 %v1946_v41, %v715_v19  ;;  %v1986_v19 = vadd.f32 %v1985_v40, %v1984_v32  ;;  %v2659_v32 = vld [vmem:[#allocation7_spill] sm:$0xff]  ;;  %v2660_v40 = vld [vmem:[#allocation2_spill] sm:$0xff]  ;;  %v1971_v49 = vadd.f32 %v2662_v48, %v2661_v46 }
 0x137   : > { %v1948_v23 = vpop.f32.mrf.mxu0  ;;  %v1974_v37 = vadd.f32 %v2659_v32, %v2658_v31  ;;  %v1027_v42 = vadd.f32 %v1925_v27, %v2660_v40 }
 0x138   : > { %v1994_v12 = vpop.f32.mrf.mxu1  ;;  %v1949_v13 = vadd.f32 %v1948_v23, %v1947_v43  ;;  %v2561_v59 = vadd.f32 %v1992_v6, %v1034_v4  ;;  %v2566_v43 = vadd.f32 %v1989_v56, %v1033_v7  ;;  %v2575_v23 = vadd.f32 %v1986_v19, %v1032_v11 }
 0x139   : > { %v1950_v1 = vpop.f32.mrf.mxu0  ;;  %v1267_v51 = vadd.f32 %v1974_v37, %v1028_v24  ;;  %v1434_v4 = vlaneseq }
 0x13a   : > { %v1996_v60 = vpop.f32.mrf.mxu1  ;;  %v1035_v8 = vadd.f32 %v1949_v13, %v720_v21  ;;  %v1030_v21 = vadd.f32 %v1934_v2, %v2531_v61  ;;  %v1357_v3 = vmul.f32 %v2561_v59, %v2561_v59  ;;  %v1029_v61 = vadd.f32 %v1931_v34, %v2525_v55 }
 0x13b   : > { %v1951_v5 = vpop.f32.mrf.mxu0  ;;  %v1356_v25 = vmul.f32 %v2566_v43, %v2566_v43  ;;  %v1355_v55 = vmul.f32 %v2575_v23, %v2575_v23  ;;  %v1435_v36 = vshrl.u32 %v1434_v4, 7 }
 0x13c   : > { %v1997_v35 = vpop.f32.mrf.mxu1  ;;  %v2597_v26 = vadd.f32 %v1980_v29, %v1030_v21  ;;  %v1268_v44 = vadd.f32 %v1977_v20, %v1029_v61 }
 0x13d   : > { %v1995_v35 = vadd.f32 %v1994_v12, %v1993_v53  ;;  %v1266_v53 = vadd.f32 %v1971_v49, %v1027_v42  ;;  %v1351_v12 = vmul.f32 %v1267_v51, %v1267_v51  ;;  %v1436_v62 = vsub.s32 0, %v1435_v36 }
 0x13e   : > { %v1353_v52 = vmul.f32 %v2597_v26, %v2597_v26  ;;  %v1352_v39 = vmul.f32 %v1268_v44, %v1268_v44 }
 0x13f   : > { %v2563_v15 = vadd.f32 %v1995_v35, %v1035_v8  ;;  %v1350_v57 = vmul.f32 %v1266_v53, %v1266_v53 }
 0x141   : > { %v1358_v50 = vmul.f32 %v2563_v15, %v2563_v15  ;;  %2020 = vmatpush3.msra.mxu0 %v2563_v15 }
 0x142   : > { %2021 = vmatprep.subr.mxu0 %v2654_v18 }
 0x143   : > { %2022 = vmatpush3.msra.mxu0 %v2561_v59  ;;  %2041 = vmatpush3.msra.mxu1 %v1358_v50 }
 0x144   : > { %2023 = vmatprep.subr.mxu0 %v2654_v18  ;;  %2042 = vmatprep.subr.mxu1 %v2654_v18 }
 0x145   : > { %2024 = vmatpush3.msra.mxu0 %v2566_v43  ;;  %2043 = vmatpush3.msra.mxu1 %v1357_v3 }
 0x146   : > { %2025 = vmatprep.subr.mxu0 %v2654_v18  ;;  %2044 = vmatprep.subr.mxu1 %v2654_v18 }
 0x147   : > { %2026 = vmatpush3.msra.mxu0 %v2575_v23  ;;  %2045 = vmatpush3.msra.mxu1 %v1356_v25 }
 0x148   : > { %2027 = vmatprep.subr.mxu0 %v2654_v18  ;;  %2046 = vmatprep.subr.mxu1 %v2654_v18 }
 0x149   : > { %2028 = vmatpush3.msra.mxu0 %v2587_v38  ;;  %2047 = vmatpush3.msra.mxu1 %v1355_v55 }
 0x14a   : > { %2029 = vmatprep.subr.mxu0 %v2654_v18  ;;  %2048 = vmatprep.subr.mxu1 %v2654_v18 }
 0x14b   : > { %2030 = vmatpush3.msra.mxu0 %v2597_v26  ;;  %2049 = vmatpush3.msra.mxu1 %v1354_v45 }
 0x14c   : > { %2031 = vmatprep.subr.mxu0 %v2654_v18  ;;  %2050 = vmatprep.subr.mxu1 %v2654_v18 }
 0x14d   : > { %2032 = vmatpush3.msra.mxu0 %v1268_v44  ;;  %2051 = vmatpush3.msra.mxu1 %v1353_v52 }
 0x14e   : > { %2033 = vmatprep.subr.mxu0 %v2654_v18  ;;  %2052 = vmatprep.subr.mxu1 %v2654_v18 }
 0x14f   : > { %2034 = vmatpush3.msra.mxu0 %v1267_v51  ;;  %2053 = vmatpush3.msra.mxu1 %v1352_v39 }
 0x150   : > { %2035 = vmatprep.subr.mxu0 %v2654_v18  ;;  %2054 = vmatprep.subr.mxu1 %v2654_v18 }
 0x151   : > { %2036 = vmatpush3.msra.mxu0 %v1266_v53  ;;  %2055 = vmatpush3.msra.mxu1 %v1351_v12 }
 0x152   : > { %2038 = vmatmul.mubr.msk.f32.vlgmr.msra.gmra.mxu0 %vm1276_vm3, %v1275_v54  ;;  %2056 = vmatprep.subr.mxu1 %v2654_v18 }
 0x153   : > { %2057 = vmatpush3.msra.mxu1 %v1350_v57 }
 0x154   : > { %2059 = vmatmul.mubr.msk.f32.vlgmr.msra.gmra.mxu1 %vm1276_vm3, %v1275_v54 }
 0x212   : > { %v1346_v58 = vpop.f32.mrf.mxu0 }
 0x213   : > { %v1429_v60 = vmul.f32 0.015625, %v1346_v58 }
 0x214   : > { %v1425_v63 = vpop.f32.mrf.mxu1  ;;  %v2039_v0 = vpop.f32.mrf.mxu0 }
 0x215   : > { %v1431_v10 = vmul.f32 %v1429_v60, %v1429_v60  ;;  %v1430_v14 = vmul.f32 0.015625, %v1425_v63  ;;  %v1437_v1 = vrot.slane %v1429_v60, %v1436_v62 }
 0x216   : > { %v2060_v17 = vpop.f32.mrf.mxu1 }
 0x217   : > { %v1432_v41 = vsub.f32 %v1430_v14, %v1431_v10  ;;  %v1438_v6 = vsub.f32 %v1266_v53, %v1437_v1  ;;  %v1439_v8 = vsub.f32 %v1267_v51, %v1437_v1  ;;  %v1440_v35 = vsub.f32 %v1268_v44, %v1437_v1 }
 0x218   : > { %v1441_v2 = vsub.f32 %v2597_v26, %v1437_v1  ;;  %v1442_v5 = vsub.f32 %v2587_v38, %v1437_v1  ;;  %v1443_v56 = vsub.f32 %v2575_v23, %v1437_v1  ;;  %v1444_v34 = vsub.f32 %v2566_v43, %v1437_v1 }
 0x219   : > { %v1433_v9 = vmax.f32 %v1432_v41, 0.0  ;;  %v1445_v47 = vsub.f32 %v2561_v59, %v1437_v1  ;;  %v1446_v19 = vsub.f32 %v2563_v15, %v1437_v1 }
 0x21b   : > { %v1447_v13 = vadd.f32 1e-05, %v1433_v9 }
 0x21d   : > { %2159 = vrsqrt.f32 %v1447_v13 }
 0x22a   : > { %v2160_v7 = vpop.eup %2159 }
 0x22b   : > { %v1452_v11 = vrot.slane %v2160_v7, %v1436_v62 }
 0x22d   : > { %v1453_v50 = vmul.f32 %v1452_v11, %v1438_v6  ;;  %v1454_v33 = vmul.f32 %v1452_v11, %v1439_v8  ;;  %v1455_v16 = vmul.f32 %v1452_v11, %v1440_v35  ;;  %v1456_v18 = vmul.f32 %v1452_v11, %v1441_v2 }
 0x22e   : > { %v1457_v21 = vmul.f32 %v1452_v11, %v1442_v5  ;;  %v1458_v3 = vmul.f32 %v1452_v11, %v1443_v56  ;;  %v1459_v27 = vmul.f32 %v1452_v11, %v1444_v34  ;;  %v1460_v29 = vmul.f32 %v1452_v11, %v1445_v47 }
 0x22f   : > { %v1461_v61 = vmul.f32 %v1452_v11, %v1446_v19  ;;  %v1462_v38 = vmul.f32 0.01, %v1453_v50  ;;  %v1463_v25 = vmul.f32 0.01, %v1454_v33  ;;  %v1464_v28 = vmul.f32 0.01, %v1455_v16 }
 0x230   : > { %v1465_v23 = vmul.f32 0.01, %v1456_v18  ;;  %v1466_v30 = vmul.f32 0.01, %v1457_v21  ;;  %v1467_v43 = vmul.f32 0.01, %v1458_v3 }
 0x231   : > { %v1468_v20 = vmul.f32 0.01, %v1459_v27  ;;  %v1469_v59 = vmul.f32 0.01, %v1460_v29  ;;  %v1470_v22 = vmul.f32 0.01, %v1461_v61  ;;  %v1471_v15 = vmax.f32 %v1453_v50, %v1462_v38 }
 0x232   : > { %v1472_v24 = vmax.f32 %v1454_v33, %v1463_v25  ;;  %v1473_v26 = vmax.f32 %v1455_v16, %v1464_v28  ;;  %v1474_v55 = vmax.f32 %v1456_v18, %v1465_v23  ;;  %v1475_v31 = vmax.f32 %v1457_v21, %v1466_v30 }
 0x233   : > { %v1476_v32 = vmax.f32 %v1458_v3, %v1467_v43  ;;  %v1477_v37 = vmax.f32 %v1459_v27, %v1468_v20  ;;  %v1478_v40 = vmax.f32 %v1460_v29, %v1469_v59  ;;  %v1479_v42 = vmax.f32 %v1461_v61, %v1470_v22 }
 0x234   : > { %v1795_v44 = vpack.c.bf16 %v1472_v24, %v1471_v15  ;;  %v1800_v45 = vpack.c.bf16 %v1474_v55, %v1473_v26 }
 0x235   : > { %v1791_v46 = vpack.c.bf16 %v1479_v42, %v1479_v42  ;;  %v1805_v48 = vpack.c.bf16 %v1476_v32, %v1475_v31  ;;  %v1810_v49 = vpack.c.bf16 %v1478_v40, %v1477_v37 }
 0x236   : > { %1796 = vst [vmem:[%s170_s26] sm:$0xff] %v1795_v44   ;;  %1812 = vst [vmem:[%s170_s26 + $0x8] sm:$0xff] %v1800_v45  }
 0x237   : > { %1813 = vst [vmem:[%s170_s26 + $0x10] sm:$0xff] %v1805_v48   ;;  %1814 = vst [vmem:[%s170_s26 + $0x18] sm:$0xff] %v1810_v49  }
 0x238   : > { %1525 = vst [vmem:[%s170_s26 + $0x20] sm:$0xf] %v1791_v46 }
 0x239 PF: > { %s13_s12 = sadd.s32 1, %s2167_s12  }
 0x23a   : > { %p10_p4 = scmp.ge.s32.totalorder %s13_s12, 4  }
 0x23c   :  { %12 = sbr.rel (!%p10_p4) target bundleno = 1 (0x1), region = 65 }

// kernel: patchgan_discriminator_forward.7
= control target key start
LH: loop header
LB: loop body
LE: loop exit
PB: predicated region body
PF: predicated region fallthrough
CT: control target
= control target key end

     0   :  { %s3556_s12 = smov 0   ;;  %s4558_s0 = inlined_call_operand.vmem [shape: bf16[2,33,512], index: 0, kind: input, shape index: {}]   ;;  %s4559_s1 = inlined_call_operand.vmem [shape: bf16[4,512,256], index: 1, kind: input, shape index: {}]   ;;  %s4560_s2 = inlined_call_operand.vmem [shape: f32[1,20], index: 2, kind: input, shape index: {}]   ;;  %s4561_s3 = inlined_call_operand.vmem [shape: bf16[2,20,256], index: 3, kind: output, shape index: {}]  }
   0x1 LB: > { %s2627_s13 = sadd.s32 4294967295, %s3533_s12   ;;  %p2631_p0 = scmp.ge.s32.totalorder %s3533_s12, 1  ;;  %s3533_s12 = sphi %s3556_s12, %s13_s12  }
   0x2   : > { %p137_p1 = scmp.lt.s32.totalorder %s3533_s12, 3 }
   0x4   : > { %p138_p2 = pnand %p2631_p0, %p137_p1 }
   0x5   : > { %p161_p3 = scmp.lt.s32.totalorder (!%p138_p2), %s2627_s13, 1 }
   0x6   : > { %141 = sbr.rel (%p138_p2) target bundleno = 713 (0x2c9), region = 32 }
   0xb   : > { %v3119_v0 = vld [vmem:[%s4559_s1 + $0x274] ss:$8 sps:$4 sm:$0xff]   ;;  %v3123_v2 = vld [vmem:[%s4559_s1 + $0x270] ss:$8 sps:$4 sm:$0xff]   ;;  %v3125_v4 = vld [vmem:[%s4559_s1 + $0x264] ss:$8 sps:$4 sm:$0xff]  }
   0xc   : > { %v3121_v1 = vld [vmem:[%s4559_s1 + $0x374] ss:$8 sps:$4 sm:$0xff]   ;;  %723 = vmatprep.subr.bf16.mxu0 %v3119_v0  ;;  %v3124_v3 = vld [vmem:[%s4559_s1 + $0x370] ss:$8 sps:$4 sm:$0xff]   ;;  %v3127_v5 = vld [vmem:[%s4559_s1 + $0x364] ss:$8 sps:$4 sm:$0xff]  }
   0xd   : > { %774 = vmatprep.subr.bf16.mxu1 %v3121_v1  ;;  %724 = vmatpush1.bf16.msra.mxu0 %v3123_v2  ;;  %v3129_v6 = vld [vmem:[%s4559_s1 + $0x260] ss:$8 sps:$4 sm:$0xff]   ;;  %v3131_v8 = vld [vmem:[%s4559_s1 + $0x254] ss:$8 sps:$4 sm:$0xff]   ;;  %v3135_v10 = vld [vmem:[%s4559_s1 + $0x250] ss:$8 sps:$4 sm:$0xff]  }
   0xe   : > { %775 = vmatpush1.bf16.msra.mxu1 %v3124_v3  ;;  %725 = vmatprep.subr.bf16.mxu0 %v3125_v4  ;;  %v3130_v7 = vld [vmem:[%s4559_s1 + $0x360] ss:$8 sps:$4 sm:$0xff]   ;;  %v3133_v9 = vld [vmem:[%s4559_s1 + $0x354] ss:$8 sps:$4 sm:$0xff]   ;;  %v3136_v11 = vld [vmem:[%s4559_s1 + $0x350] ss:$8 sps:$4 sm:$0xff]  }
   0xf   : > { %776 = vmatprep.subr.bf16.mxu1 %v3127_v5  ;;  %v3137_v12 = vld [vmem:[%s4559_s1 + $0x244] ss:$8 sps:$4 sm:$0xff]   ;;  %v3141_v14 = vld [vmem:[%s4559_s1 + $0x240] ss:$8 sps:$4 sm:$0xff]   ;;  %v3143_v16 = vld [vmem:[%s4559_s1 + $0x234] ss:$8 sps:$4 sm:$0xff]  }
  0x10   : > { %v3139_v13 = vld [vmem:[%s4559_s1 + $0x344] ss:$8 sps:$4 sm:$0xff]   ;;  %v3142_v15 = vld [vmem:[%s4559_s1 + $0x340] ss:$8 sps:$4 sm:$0xff]   ;;  %v3145_v17 = vld [vmem:[%s4559_s1 + $0x334] ss:$8 sps:$4 sm:$0xff]  }
  0x11   : > { %726 = vmatpush1.bf16.msra.mxu0 %v3129_v6  ;;  %v3147_v18 = vld [vmem:[%s4559_s1 + $0x230] ss:$8 sps:$4 sm:$0xff]   ;;  %v3149_v20 = vld [vmem:[%s4559_s1 + $0x224] ss:$8 sps:$4 sm:$0xff]   ;;  %v3153_v22 = vld [vmem:[%s4559_s1 + $0x220] ss:$8 sps:$4 sm:$0xff]  }
  0x12   : > { %777 = vmatpush1.bf16.msra.mxu1 %v3130_v7  ;;  %727 = vmatprep.subr.bf16.mxu0 %v3131_v8  ;;  %v3148_v19 = vld [vmem:[%s4559_s1 + $0x330] ss:$8 sps:$4 sm:$0xff]   ;;  %v3151_v21 = vld [vmem:[%s4559_s1 + $0x324] ss:$8 sps:$4 sm:$0xff]   ;;  %v3154_v23 = vld [vmem:[%s4559_s1 + $0x320] ss:$8 sps:$4 sm:$0xff]  }
  0x13   : > { %778 = vmatprep.subr.bf16.mxu1 %v3133_v9  ;;  %v3155_v24 = vld [vmem:[%s4559_s1 + $0x214] ss:$8 sps:$4 sm:$0xff]   ;;  %v3159_v26 = vld [vmem:[%s4559_s1 + $0x210] ss:$8 sps:$4 sm:$0xff]   ;;  %v3161_v28 = vld [vmem:[%s4559_s1 + $0x204] ss:$8 sps:$4 sm:$0xff]  }
  0x14   : > { %v3157_v25 = vld [vmem:[%s4559_s1 + $0x314] ss:$8 sps:$4 sm:$0xff]   ;;  %v3160_v27 = vld [vmem:[%s4559_s1 + $0x310] ss:$8 sps:$4 sm:$0xff]   ;;  %v3163_v29 = vld [vmem:[%s4559_s1 + $0x304] ss:$8 sps:$4 sm:$0xff]  }
  0x15   : > { %728 = vmatpush1.bf16.msra.mxu0 %v3135_v10  ;;  %v3165_v30 = vld [vmem:[%s4559_s1 + $0x200] ss:$8 sps:$4 sm:$0xff]   ;;  %v3167_v32 = vld [vmem:[%s4559_s1 + $0x2f4] ss:$8 sps:$4 sm:$0xff]   ;;  %v3171_v34 = vld [vmem:[%s4559_s1 + $0x2f0] ss:$8 sps:$4 sm:$0xff]  }
  0x16   : > { %779 = vmatpush1.bf16.msra.mxu1 %v3136_v11  ;;  %729 = vmatprep.subr.bf16.mxu0 %v3137_v12  ;;  %v3166_v31 = vld [vmem:[%s4559_s1 + $0x300] ss:$8 sps:$4 sm:$0xff]   ;;  %v3169_v33 = vld [vmem:[%s4559_s1 + $0x3f4] ss:$8 sps:$4 sm:$0xff]   ;;  %v3172_v35 = vld [vmem:[%s4559_s1 + $0x3f0] ss:$8 sps:$4 sm:$0xff]  }
  0x17   : > { %780 = vmatprep.subr.bf16.mxu1 %v3139_v13  ;;  %v3173_v36 = vld [vmem:[%s4559_s1 + $0x2e4] ss:$8 sps:$4 sm:$0xff]   ;;  %s4563_s13 = smov (!%p161_p3, %s2627_s13), 1  ;;  %v3177_v38 = vld [vmem:[%s4559_s1 + $0x2e0] ss:$8 sps:$4 sm:$0xff]   ;;  %vm1880_vm2 = vcmask 1044480  }
  0x18   : > { %v3175_v37 = vld [vmem:[%s4559_s1 + $0x3e4] ss:$8 sps:$4 sm:$0xff]   ;;  %v3178_v39 = vld [vmem:[%s4559_s1 + $0x3e0] ss:$8 sps:$4 sm:$0xff]   ;;  %v3179_v40 = vld [vmem:[%s4559_s1 + $0x2d4] ss:$8 sps:$4 sm:$0xff]  }
  0x19   : > { %730 = vmatpush1.bf16.msra.mxu0 %v3141_v14  ;;  %s3108_s21 = smul.u32 80, %s4563_s13  ;;  %v3181_v41 = vld [vmem:[%s4559_s1 + $0x3d4] ss:$8 sps:$4 sm:$0xff]   ;;  %v3183_v42 = vld [vmem:[%s4559_s1 + $0x2d0] ss:$8 sps:$4 sm:$0xff]   ;;  %vm2334_vm3 = vcmask 1043456  }
  0x1a   : > { %781 = vmatpush1.bf16.msra.mxu1 %v3142_v15  ;;  %731 = vmatprep.subr.bf16.mxu0 %v3143_v16  ;;  %v3184_v43 = vld [vmem:[%s4559_s1 + $0x3d0] ss:$8 sps:$4 sm:$0xff]   ;;  %v3185_v44 = vld [vmem:[%s4559_s1 + $0x2c4] ss:$8 sps:$4 sm:$0xff]   ;;  %v3189_v46 = vld [vmem:[%s4559_s1 + $0x2c0] ss:$8 sps:$4 sm:$0xff]  }
  0x1b   : > { %782 = vmatprep.subr.bf16.mxu1 %v3145_v17  ;;  %s3709_s5 = scalar_lea.vmem %s4558_s0, %s3108_s21  ;;  %v3187_v45 = vld [vmem:[%s4559_s1 + $0x3c4] ss:$8 sps:$4 sm:$0xff]   ;;  %v3190_v47 = vld [vmem:[%s4559_s1 + $0x3c0] ss:$8 sps:$4 sm:$0xff]   ;;  %v3191_v48 = vld [vmem:[%s4559_s1 + $0x2b4] ss:$8 sps:$4 sm:$0xff]  }
  0x1c   : > { %v3724_v49 = vld [vmem:[%s3709_s5 + $0x20] sm:$0xff]  ;;  %vm334_vm0 = vsmask.f32 7424  ;;  %v3734_v52 = vld [vmem:[%s3709_s5 + $0x28] sm:$0xff]  ;;  %v3193_v53 = vld [vmem:[%s4559_s1 + $0x3b4] ss:$8 sps:$4 sm:$0xff]  }
  0x1d   : > { %732 = vmatpush1.bf16.msra.mxu0 %v3147_v18  ;;  %v3727_v50 = vld [vmem:[%s3709_s5 + $0x4] ss:$16 sps:$4 sm:$0xff]   ;;  %v3731_v51 = vcombine.high %v3724_v49, %v3724_v49  ;;  %v3742_v56 = vld [vmem:[%s3709_s5 + $0xc] ss:$16 sps:$4 sm:$0xff]   ;;  %v3746_v57 = vcombine.high %v3734_v52, %v3734_v52  ;;  %v3195_v58 = vld [vmem:[%s4559_s1 + $0x2b0] ss:$8 sps:$4 sm:$0xff]   ;;  %v3785_v12 = vcombine.low %v3724_v49, %v3724_v49  ;;  %v3793_v15 = vcombine.low %v3734_v52, %v3734_v52 }
  0x1e   : > { %783 = vmatpush1.bf16.msra.mxu1 %v3148_v19  ;;  %733 = vmatprep.subr.bf16.mxu0 %v3149_v20  ;;  %v348_v54 = vshrl.u32 %v3727_v50, 16  ;;  %v350_v55 = vshll.u32 %v3727_v50, 16  ;;  %v3196_v59 = vld [vmem:[%s4559_s1 + $0x3b0] ss:$8 sps:$4 sm:$0xff]   ;;  %v3197_v61 = vld [vmem:[%s4559_s1 + $0x2a4] ss:$8 sps:$4 sm:$0xff]  }
  0x1f   : > { %784 = vmatprep.subr.bf16.mxu1 %v3151_v21  ;;  %v355_v60 = vshll.u32 %v3731_v51, 16  ;;  %v3199_v62 = vld [vmem:[%s4559_s1 + $0x3a4] ss:$8 sps:$4 sm:$0xff]   ;;  %v372_v0 = vshrl.u32 %v3742_v56, 16  ;;  %v374_v1 = vshll.u32 %v3742_v56, 16  ;;  %v379_v2 = vshll.u32 %v3746_v57, 16 }
  0x20   : > { %v352_v63 = vrot.slane %v350_v55, 1  ;;  %v3769_v4 = vld [vmem:[%s3709_s5] ss:$16 sps:$4 sm:$0xff]   ;;  %v3772_v5 = vld [vmem:[%s3709_s5 + $0x8] ss:$16 sps:$4 sm:$0xff]   ;;  %vm2330_vm4 = vcmask 162816  }
  0x21   : > { %734 = vmatpush1.bf16.msra.mxu0 %v3153_v22  ;;  %v3766_v3 = vrot.slane %v355_v60, 1  ;;  %v376_v7 = vrot.slane %v374_v1, 1  ;;  %v3776_v8 = vrot.slane %v379_v2, 1  ;;  %v3201_v9 = vld [vmem:[%s4559_s1 + $0x2a0] ss:$8 sps:$4 sm:$0xff]   ;;  %v338_v14 = vshll.u32 %v3769_v4, 16 }
  0x22   : > { %785 = vmatpush1.bf16.msra.mxu1 %v3154_v23  ;;  %735 = vmatprep.subr.bf16.mxu0 %v3155_v24  ;;  %v353_v6 = vor.u32 %v352_v63, %v348_v54  ;;  %v3202_v13 = vld [vmem:[%s4559_s1 + $0x3a0] ss:$8 sps:$4 sm:$0xff]   ;;  %v362_v16 = vshll.u32 %v3772_v5, 16  ;;  %v3203_v17 = vld [vmem:[%s4559_s1 + $0x294] ss:$8 sps:$4 sm:$0xff]   ;;  %v336_v22 = vshrl.u32 %v3769_v4, 16 }
  0x23   : > { %786 = vmatprep.subr.bf16.mxu1 %v3157_v25  ;;  %v377_v11 = vor.u32 %v376_v7, %v372_v0  ;;  %v3205_v18 = vld [vmem:[%s4559_s1 + $0x394] ss:$8 sps:$4 sm:$0xff]   ;;  %v3207_v20 = vld [vmem:[%s4559_s1 + $0x290] ss:$8 sps:$4 sm:$0xff]   ;;  %v343_v23 = vshll.u32 %v3785_v12, 16  ;;  %v340_v24 = vrot.slane %v338_v14, 1 }
  0x24   : > { %v358_v10 = vsel %vm334_vm0, %v353_v6, %v3766_v3  ;;  %v3208_v21 = vld [vmem:[%s4559_s1 + $0x390] ss:$8 sps:$4 sm:$0xff]   ;;  %v360_v25 = vshrl.u32 %v3772_v5, 16  ;;  %v3868_v60 = vrot.slane %v338_v14, 3  ;;  %v3872_v63 = vrot.slane %v362_v16, 3  ;;  %s3109_s23 = smul.u32 24, %s4563_s13 }
  0x25   : > { %736 = vmatpush1.bf16.msra.mxu0 %v3159_v26  ;;  %v382_v19 = vsel %vm334_vm0, %v377_v11, %v3776_v8  ;;  %755 = vmatprep.mubr.bf16.mxu0 %v358_v10  ;;  %v364_v26 = vrot.slane %v362_v16, 1  ;;  %v389_v2 = vshrl.u32 %v3793_v15, 16  ;;  %v3237_v10 = vld [vmem:[%s4559_s1 + $0x50] ss:$8 sps:$4 sm:$0xff]   ;;  %v3245_v16 = vld [vmem:[%s4559_s1 + $0x44] ss:$8 sps:$4 sm:$0xff]  }
  0x26   : > { %787 = vmatpush1.bf16.msra.mxu1 %v3160_v27  ;;  %737 = vmatprep.subr.bf16.mxu0 %v3161_v28  ;;  %v367_v27 = vshll.u32 %v3793_v15, 16  ;;  %v3209_v28 = vld [vmem:[%s4559_s1 + $0x284] ss:$8 sps:$4 sm:$0xff]   ;;  %v3240_v14 = vld [vmem:[%s4559_s1 + $0x150] ss:$8 sps:$4 sm:$0xff]   ;;  %s170_s26 = scalar_lea.vmem %s4561_s3, %s3109_s23 }
  0x27   : > { %788 = vmatprep.subr.bf16.mxu1 %v3163_v29  ;;  %806 = vmatprep.mubr.bf16.mxu1 %v382_v19  ;;  %v3211_v29 = vld [vmem:[%s4559_s1 + $0x384] ss:$8 sps:$4 sm:$0xff]   ;;  %v3246_v19 = vld [vmem:[%s4559_s1 + $0x140] ss:$8 sps:$4 sm:$0xff]   ;;  %vm1330_vm1 = vsmask.f32 5376 }
  0x29   : > { %738 = vmatpush1.bf16.msra.mxu0 %v3165_v30  ;;  %v3213_v30 = vld [vmem:[%s4559_s1 + $0x280] ss:$8 sps:$4 sm:$0xff]  }
  0x2a   : > { %789 = vmatpush1.bf16.msra.mxu1 %v3166_v31  ;;  %739 = vmatprep.subr.bf16.mxu0 %v3167_v32  ;;  %v3214_v31 = vld [vmem:[%s4559_s1 + $0x380] ss:$8 sps:$4 sm:$0xff]   ;;  %v341_v32 = vor.u32 %v340_v24, %v336_v22  ;;  %v3257_v24 = vld [vmem:[%s4559_s1 + $0x24] ss:$8 sps:$4 sm:$0xff]  }
  0x2b   : > { %790 = vmatprep.subr.bf16.mxu1 %v3169_v33  ;;  %v345_v33 = vrot.slane %v343_v23, 1  ;;  %v3252_v23 = vld [vmem:[%s4559_s1 + $0x130] ss:$8 sps:$4 sm:$0xff]  }
  0x2d   : > { %740 = vmatpush2.bf16.msra.mxu0 %v3171_v34  ;;  %v365_v34 = vor.u32 %v364_v26, %v360_v25  ;;  %v3263_v26 = vld [vmem:[%s4559_s1 + $0x14] ss:$8 sps:$4 sm:$0xff]  }
  0x2e   : > { %791 = vmatpush2.bf16.msra.mxu1 %v3172_v35  ;;  %741 = vmatprep.subr.bf16.mxu0 %v3173_v36  ;;  %v369_v35 = vrot.slane %v367_v27, 1  ;;  %v3227_v36 = vld [vmem:[%s4559_s1 + $0x74] ss:$8 sps:$4 sm:$0xff]  }
  0x2f   : > { %792 = vmatprep.subr.bf16.mxu1 %v3175_v37  ;;  %v3230_v37 = vld [vmem:[%s4559_s1 + $0x174] ss:$8 sps:$4 sm:$0xff]  }
  0x30   : > { %v3266_v27 = vld [vmem:[%s4559_s1 + $0x114] ss:$8 sps:$4 sm:$0xff]  }
  0x31   : > { %742 = vmatpush2.bf16.msra.mxu0 %v3177_v38  ;;  %v3834_v38 = vrot.slane %v348_v54, 2 }
  0x32   : > { %793 = vmatpush2.bf16.msra.mxu1 %v3178_v39  ;;  %743 = vmatprep.subr.bf16.mxu0 %v3179_v40  ;;  %v3225_v39 = vld [vmem:[%s4559_s1 + $0x70] ss:$8 sps:$4 sm:$0xff]   ;;  %v386_v40 = vshrl.u32 %v3731_v51, 16 }
  0x33   : > { %794 = vmatprep.subr.bf16.mxu1 %v3181_v41  ;;  %v392_v41 = vshrl.u32 %v3746_v57, 16 }
  0x35   : > { %744 = vmatpush2.bf16.msra.mxu0 %v3183_v42  ;;  %v3843_v42 = vrot.slane %v350_v55, 3  ;;  %v3233_v55 = vld [vmem:[%s4559_s1 + $0x64] ss:$8 sps:$4 sm:$0xff]  }
  0x36   : > { %795 = vmatpush2.bf16.msra.mxu1 %v3184_v43  ;;  %745 = vmatprep.subr.bf16.mxu0 %v3185_v44  ;;  %v3845_v43 = vrot.slane %v336_v22, 2  ;;  %v3847_v44 = vrot.slane %v372_v0, 2  ;;  %v3231_v0 = vld [vmem:[%s4559_s1 + $0x60] ss:$8 sps:$4 sm:$0xff]   ;;  %v3249_v22 = vld [vmem:[%s4559_s1 + $0x30] ss:$8 sps:$4 sm:$0xff]  }
  0x37   : > { %796 = vmatprep.subr.bf16.mxu1 %v3187_v45  ;;  %v3849_v45 = vrot.slane %v374_v1, 3  ;;  %v1345_v54 = vor.u32 %v3843_v42, %v3834_v38  ;;  %v383_v1 = vshrl.u32 %v3785_v12, 16  ;;  %v3353_v38 = vld [vmem:[%s4559_s1 + $0x424] ss:$8 sps:$4 sm:$0xff]  }
  0x38   : > { %v1333_v6 = vor.u32 %v3868_v60, %v3845_v43  ;;  %v3356_v42 = vld [vmem:[%s4559_s1 + $0x524] ss:$8 sps:$4 sm:$0xff]   ;;  %v3427_v60 = vld [vmem:[%s4559_s1 + $0x660] ss:$8 sps:$4 sm:$0xff]  }
  0x39   : > { %746 = vmatpush2.bf16.msra.mxu0 %v3189_v46  ;;  %v346_v46 = vsel %vm334_vm0, %v341_v32, %v345_v33  ;;  %v385_v11 = vor.u32 %v383_v1, %v345_v33  ;;  %v3267_v32 = vld [vmem:[%s4559_s1] ss:$8 sps:$4 sm:$0xff]   ;;  %v3429_v43 = vld [vmem:[%s4559_s1 + $0x664] ss:$8 sps:$4 sm:$0xff]  }
  0x3a   : > { %797 = vmatpush2.bf16.msra.mxu1 %v3190_v47  ;;  %747 = vmatprep.subr.bf16.mxu0 %v3191_v48  ;;  %v370_v47 = vsel %vm334_vm0, %v365_v34, %v369_v35  ;;  %v3853_v48 = vrot.slane %v360_v25, 2  ;;  %v3258_v25 = vld [vmem:[%s4559_s1 + $0x120] ss:$8 sps:$4 sm:$0xff]   ;;  %v3275_v34 = vld [vmem:[%s4559_s1 + $0xf4] ss:$8 sps:$4 sm:$0xff]  }
  0x3b   : > { %798 = vmatprep.subr.bf16.mxu1 %v3193_v53  ;;  %v3228_v53 = vld [vmem:[%s4559_s1 + $0x170] ss:$8 sps:$4 sm:$0xff]   ;;  %v3270_v33 = vld [vmem:[%s4559_s1 + $0x100] ss:$8 sps:$4 sm:$0xff]  }
  0x3c   : > { %v1357_v7 = vor.u32 %v3872_v63, %v3853_v48  ;;  %v3294_v1 = vld [vmem:[%s4559_s1 + $0x1c0] ss:$8 sps:$4 sm:$0xff]   ;;  %v3432_v48 = vld [vmem:[%s4559_s1 + $0x764] ss:$8 sps:$4 sm:$0xff]  }
  0x3d   : > { %748 = vmatpush2.bf16.msra.mxu0 %v3195_v58  ;;  %v3236_v58 = vld [vmem:[%s4559_s1 + $0x164] ss:$8 sps:$4 sm:$0xff]   ;;  %v3430_v63 = vld [vmem:[%s4559_s1 + $0x760] ss:$8 sps:$4 sm:$0xff]  }
  0x3e   : > { %799 = vmatpush2.bf16.msra.mxu1 %v3196_v59  ;;  %749 = vmatprep.subr.bf16.mxu0 %v3197_v61  ;;  %v1369_v59 = vor.u32 %v3849_v45, %v3847_v44  ;;  %v388_v61 = vor.u32 %v386_v40, %v3766_v3  ;;  %v3234_v3 = vld [vmem:[%s4559_s1 + $0x160] ss:$8 sps:$4 sm:$0xff]   ;;  %v3284_v40 = vld [vmem:[%s4559_s1 + $0x1e4] ss:$8 sps:$4 sm:$0xff]  }
  0x3f   : > { %800 = vmatprep.subr.bf16.mxu1 %v3199_v62  ;;  %v394_v62 = vor.u32 %v392_v41, %v3776_v8  ;;  %v3239_v8 = vld [vmem:[%s4559_s1 + $0x54] ss:$8 sps:$4 sm:$0xff]   ;;  %v3279_v41 = vld [vmem:[%s4559_s1 + $0xe0] ss:$8 sps:$4 sm:$0xff]  }
  0x40   : > { %v3351_v44 = vld [vmem:[%s4559_s1 + $0x420] ss:$8 sps:$4 sm:$0xff]  }
  0x41   : > { %750 = vmatpush2.bf16.msra.mxu0 %v3201_v9  ;;  %v3242_v9 = vld [vmem:[%s4559_s1 + $0x154] ss:$8 sps:$4 sm:$0xff]   ;;  %v3354_v45 = vld [vmem:[%s4559_s1 + $0x520] ss:$8 sps:$4 sm:$0xff]  }
  0x42   : > { %801 = vmatpush2.bf16.msra.mxu1 %v3202_v13  ;;  %751 = vmatprep.subr.bf16.mxu0 %v3203_v17  ;;  %v391_v13 = vor.u32 %v389_v2, %v369_v35  ;;  %v3248_v17 = vld [vmem:[%s4559_s1 + $0x144] ss:$8 sps:$4 sm:$0xff]   ;;  %v3278_v35 = vld [vmem:[%s4559_s1 + $0x1f4] ss:$8 sps:$4 sm:$0xff]  }
  0x43   : > { %802 = vmatprep.subr.bf16.mxu1 %v3205_v18  ;;  %v3243_v18 = vld [vmem:[%s4559_s1 + $0x40] ss:$8 sps:$4 sm:$0xff]   ;;  %v3299_v2 = vld [vmem:[%s4559_s1 + $0xb4] ss:$8 sps:$4 sm:$0xff]  }
  0x45   : > { %752 = vmatpush2.bf16.msra.mxu0 %v3207_v20  ;;  %v3251_v20 = vld [vmem:[%s4559_s1 + $0x34] ss:$8 sps:$4 sm:$0xff]  }
  0x46   : > { %803 = vmatpush2.bf16.msra.mxu1 %v3208_v21  ;;  %753 = vmatprep.subr.bf16.mxu0 %v3209_v28  ;;  %v3254_v21 = vld [vmem:[%s4559_s1 + $0x134] ss:$8 sps:$4 sm:$0xff]   ;;  %v3261_v28 = vld [vmem:[%s4559_s1 + $0x10] ss:$8 sps:$4 sm:$0xff]  }
  0x47   : > { %804 = vmatprep.subr.bf16.mxu1 %v3211_v29  ;;  %v3264_v29 = vld [vmem:[%s4559_s1 + $0x110] ss:$8 sps:$4 sm:$0xff]  }
  0x49   : > { %754 = vmatpush2.bf16.msra.mxu0 %v3213_v30  ;;  %v3269_v30 = vld [vmem:[%s4559_s1 + $0x4] ss:$8 sps:$4 sm:$0xff]  }
  0x4a   : > { %805 = vmatpush2.bf16.msra.mxu1 %v3214_v31  ;;  %1153 = vmatprep.subr.bf16.mxu0 %v3227_v36  ;;  %v3272_v31 = vld [vmem:[%s4559_s1 + $0x104] ss:$8 sps:$4 sm:$0xff]   ;;  %v3273_v36 = vld [vmem:[%s4559_s1 + $0xf0] ss:$8 sps:$4 sm:$0xff]  }
  0x4b   : > { %1204 = vmatprep.subr.bf16.mxu1 %v3230_v37  ;;  %v3276_v37 = vld [vmem:[%s4559_s1 + $0x1f0] ss:$8 sps:$4 sm:$0xff]  }
  0x4c   : > { %756 = vmatmul.mubr.bf16.vlgmr.msra.gmra.mxu0 %v346_v46  ;;  %v3282_v46 = vld [vmem:[%s4559_s1 + $0x1e0] ss:$8 sps:$4 sm:$0xff]  }
  0x4d   : > { %807 = vmatmul.mubr.bf16.vlgmr.msra.gmra.mxu1 %v370_v47  ;;  %1154 = vmatpush1.bf16.msra.mxu0 %v3225_v39  ;;  %v3281_v39 = vld [vmem:[%s4559_s1 + $0xe4] ss:$8 sps:$4 sm:$0xff]   ;;  %v3287_v47 = vld [vmem:[%s4559_s1 + $0xd4] ss:$8 sps:$4 sm:$0xff]  }
  0x4e   : > { %1205 = vmatpush1.bf16.msra.mxu1 %v3228_v53  ;;  %1155 = vmatprep.subr.bf16.mxu0 %v3233_v55  ;;  %v3290_v53 = vld [vmem:[%s4559_s1 + $0x1d4] ss:$8 sps:$4 sm:$0xff]   ;;  %v3285_v55 = vld [vmem:[%s4559_s1 + $0xd0] ss:$8 sps:$4 sm:$0xff]  }
  0x4f   : > { %1206 = vmatprep.subr.bf16.mxu1 %v3236_v58  ;;  %765 = vmatprep.mubr.bf16.mxu0 %v388_v61  ;;  %v3288_v58 = vld [vmem:[%s4559_s1 + $0x1d0] ss:$8 sps:$4 sm:$0xff]   ;;  %v3293_v61 = vld [vmem:[%s4559_s1 + $0xc4] ss:$8 sps:$4 sm:$0xff]  }
  0x50   : > { %816 = vmatprep.mubr.bf16.mxu1 %v394_v62  ;;  %v3296_v62 = vld [vmem:[%s4559_s1 + $0x1c4] ss:$8 sps:$4 sm:$0xff]  }
  0x51   : > { %1156 = vmatpush1.bf16.msra.mxu0 %v3231_v0  ;;  %v3291_v0 = vld [vmem:[%s4559_s1 + $0xc0] ss:$8 sps:$4 sm:$0xff]  }
  0x52   : > { %1207 = vmatpush1.bf16.msra.mxu1 %v3234_v3  ;;  %1157 = vmatprep.subr.bf16.mxu0 %v3239_v8  ;;  %v3302_v3 = vld [vmem:[%s4559_s1 + $0x1b4] ss:$8 sps:$4 sm:$0xff]   ;;  %v3297_v8 = vld [vmem:[%s4559_s1 + $0xb0] ss:$8 sps:$4 sm:$0xff]  }
  0x53   : > { %1208 = vmatprep.subr.bf16.mxu1 %v3242_v9  ;;  %v3300_v9 = vld [vmem:[%s4559_s1 + $0x1b0] ss:$8 sps:$4 sm:$0xff]  }
  0x54   : > { %766 = vmatmul.mubr.bf16.gmra.mxu0 %v385_v11  ;;  %v3308_v11 = vld [vmem:[%s4559_s1 + $0x1a4] ss:$8 sps:$4 sm:$0xff]  }
  0x55   : > { %817 = vmatmul.mubr.bf16.gmra.mxu1 %v391_v13  ;;  %1158 = vmatpush1.bf16.msra.mxu0 %v3237_v10  ;;  %v3305_v10 = vld [vmem:[%s4559_s1 + $0xa4] ss:$8 sps:$4 sm:$0xff]   ;;  %v3303_v13 = vld [vmem:[%s4559_s1 + $0xa0] ss:$8 sps:$4 sm:$0xff]  }
  0x56   : > { %1209 = vmatpush1.bf16.msra.mxu1 %v3240_v14  ;;  %1159 = vmatprep.subr.bf16.mxu0 %v3245_v16  ;;  %v3306_v14 = vld [vmem:[%s4559_s1 + $0x1a0] ss:$8 sps:$4 sm:$0xff]   ;;  %v3311_v16 = vld [vmem:[%s4559_s1 + $0x94] ss:$8 sps:$4 sm:$0xff]  }
  0x57   : > { %1210 = vmatprep.subr.bf16.mxu1 %v3248_v17  ;;  %1185 = vmatprep.mubr.bf16.mxu0 %v3727_v50  ;;  %v3260_v50 = vld [vmem:[%s4559_s1 + $0x124] ss:$8 sps:$4 sm:$0xff]   ;;  %v3314_v17 = vld [vmem:[%s4559_s1 + $0x194] ss:$8 sps:$4 sm:$0xff]  }
  0x58   : > { %1236 = vmatprep.mubr.bf16.mxu1 %v3742_v56  ;;  %v3255_v56 = vld [vmem:[%s4559_s1 + $0x20] ss:$8 sps:$4 sm:$0xff]  }
  0x59   : > { %1160 = vmatpush1.bf16.msra.mxu0 %v3243_v18  ;;  %v3309_v18 = vld [vmem:[%s4559_s1 + $0x90] ss:$8 sps:$4 sm:$0xff]  }
  0x5a   : > { %1211 = vmatpush1.bf16.msra.mxu1 %v3246_v19  ;;  %1161 = vmatprep.subr.bf16.mxu0 %v3251_v20  ;;  %v3312_v19 = vld [vmem:[%s4559_s1 + $0x190] ss:$8 sps:$4 sm:$0xff]   ;;  %v3317_v20 = vld [vmem:[%s4559_s1 + $0x84] ss:$8 sps:$4 sm:$0xff]  }
  0x5b   : > { %1212 = vmatprep.subr.bf16.mxu1 %v3254_v21  ;;  %v3320_v21 = vld [vmem:[%s4559_s1 + $0x184] ss:$8 sps:$4 sm:$0xff]  }
  0x5d   : > { %1162 = vmatpush1.bf16.msra.mxu0 %v3249_v22  ;;  %v3315_v22 = vld [vmem:[%s4559_s1 + $0x80] ss:$8 sps:$4 sm:$0xff]  }
  0x5e   : > { %1213 = vmatpush1.bf16.msra.mxu1 %v3252_v23  ;;  %1163 = vmatprep.subr.bf16.mxu0 %v3257_v24  ;;  %v3318_v23 = vld [vmem:[%s4559_s1 + $0x180] ss:$8 sps:$4 sm:$0xff]   ;;  %v3323_v24 = vld [vmem:[%s4559_s1 + $0x474] ss:$8 sps:$4 sm:$0xff]  }
  0x5f   : > { %1214 = vmatprep.subr.bf16.mxu1 %v3260_v50  ;;  %v3326_v50 = vld [vmem:[%s4559_s1 + $0x574] ss:$8 sps:$4 sm:$0xff]  }
  0x61   : > { %1164 = vmatpush1.bf16.msra.mxu0 %v3255_v56  ;;  %v3321_v56 = vld [vmem:[%s4559_s1 + $0x470] ss:$8 sps:$4 sm:$0xff]  }
  0x62   : > { %1215 = vmatpush1.bf16.msra.mxu1 %v3258_v25  ;;  %1165 = vmatprep.subr.bf16.mxu0 %v3263_v26  ;;  %v3324_v25 = vld [vmem:[%s4559_s1 + $0x570] ss:$8 sps:$4 sm:$0xff]   ;;  %v3329_v26 = vld [vmem:[%s4559_s1 + $0x464] ss:$8 sps:$4 sm:$0xff]  }
  0x63   : > { %1216 = vmatprep.subr.bf16.mxu1 %v3266_v27  ;;  %v3332_v27 = vld [vmem:[%s4559_s1 + $0x564] ss:$8 sps:$4 sm:$0xff]  }
  0x65   : > { %1166 = vmatpush1.bf16.msra.mxu0 %v3261_v28  ;;  %v3327_v28 = vld [vmem:[%s4559_s1 + $0x460] ss:$8 sps:$4 sm:$0xff]  }
  0x66   : > { %1217 = vmatpush1.bf16.msra.mxu1 %v3264_v29  ;;  %1167 = vmatprep.subr.bf16.mxu0 %v3269_v30  ;;  %v3330_v29 = vld [vmem:[%s4559_s1 + $0x560] ss:$8 sps:$4 sm:$0xff]   ;;  %v3335_v30 = vld [vmem:[%s4559_s1 + $0x454] ss:$8 sps:$4 sm:$0xff]  }
  0x67   : > { %1218 = vmatprep.subr.bf16.mxu1 %v3272_v31 }
  0x69   : > { %1168 = vmatpush1.bf16.msra.mxu0 %v3267_v32  ;;  %v4098_v32 = vld [vmem:[%s3709_s5 + $0x38] sm:$0xff] }
  0x6a   : > { %1219 = vmatpush1.bf16.msra.mxu1 %v3270_v33  ;;  %1169 = vmatprep.subr.bf16.mxu0 %v3275_v34  ;;  %v3333_v33 = vld [vmem:[%s4559_s1 + $0x450] ss:$8 sps:$4 sm:$0xff]   ;;  %v4105_v34 = vcombine.high %v3734_v52, %v4098_v32  ;;  %v3344_v52 = vld [vmem:[%s4559_s1 + $0x544] ss:$8 sps:$4 sm:$0xff]  }
  0x6b   : > { %1220 = vmatprep.subr.bf16.mxu1 %v3278_v35  ;;  %v3341_v35 = vld [vmem:[%s4559_s1 + $0x444] ss:$8 sps:$4 sm:$0xff]  }
  0x6d   : > { %1170 = vmatpush2.bf16.msra.mxu0 %v3273_v36  ;;  %v1371_v36 = vshrl.u32 %v4105_v34, 16 }
  0x6e   : > { %1221 = vmatpush2.bf16.msra.mxu1 %v3276_v37  ;;  %1171 = vmatprep.subr.bf16.mxu0 %v3281_v39  ;;  %v1374_v37 = vshll.u32 %v4105_v34, 16 }
  0x6f   : > { %1222 = vmatprep.subr.bf16.mxu1 %v3284_v40 }
  0x71   : > { %1172 = vmatpush2.bf16.msra.mxu0 %v3279_v41  ;;  %v1373_v41 = vrot.slane %v1371_v36, 2  ;;  %v3399_v36 = vld [vmem:[%s4559_s1 + $0x4a0] ss:$8 sps:$4 sm:$0xff]  }
  0x72   : > { %1223 = vmatpush2.bf16.msra.mxu1 %v3282_v46  ;;  %1173 = vmatprep.subr.bf16.mxu0 %v3287_v47  ;;  %v1376_v46 = vrot.slane %v1374_v37, 3  ;;  %v3339_v47 = vld [vmem:[%s4559_s1 + $0x440] ss:$8 sps:$4 sm:$0xff]  }
  0x73   : > { %1224 = vmatprep.subr.bf16.mxu1 %v3290_v53  ;;  %v3342_v53 = vld [vmem:[%s4559_s1 + $0x540] ss:$8 sps:$4 sm:$0xff]  }
  0x75   : > { %1174 = vmatpush2.bf16.msra.mxu0 %v3285_v55 }
  0x76   : > { %1225 = vmatpush2.bf16.msra.mxu1 %v3288_v58  ;;  %1175 = vmatprep.subr.bf16.mxu0 %v3293_v61  ;;  %v4136_v58 = vor.u32 %v1376_v46, %v1373_v41  ;;  %v3407_v41 = vld [vmem:[%s4559_s1 + $0x494] ss:$8 sps:$4 sm:$0xff]  }
  0x77   : > { %1226 = vmatprep.subr.bf16.mxu1 %v3296_v62  ;;  %v3345_v62 = vld [vmem:[%s4559_s1 + $0x430] ss:$8 sps:$4 sm:$0xff]   ;;  %v3410_v46 = vld [vmem:[%s4559_s1 + $0x594] ss:$8 sps:$4 sm:$0xff]  }
  0x79   : > { %1176 = vmatpush2.bf16.msra.mxu0 %v3291_v0  ;;  %v1378_v0 = vsel %vm1330_vm1, %v1369_v59, %v4136_v58  ;;  %v3362_v59 = vld [vmem:[%s4559_s1 + $0x514] ss:$8 sps:$4 sm:$0xff]  }
  0x7a   : > { %1227 = vmatpush2.bf16.msra.mxu1 %v3294_v1  ;;  %1177 = vmatprep.subr.bf16.mxu0 %v3299_v2  ;;  %v3348_v1 = vld [vmem:[%s4559_s1 + $0x530] ss:$8 sps:$4 sm:$0xff]  }
  0x7b   : > { %1228 = vmatprep.subr.bf16.mxu1 %v3302_v3  ;;  %v3357_v2 = vld [vmem:[%s4559_s1 + $0x410] ss:$8 sps:$4 sm:$0xff]  }
  0x7c   : > { %v3360_v3 = vld [vmem:[%s4559_s1 + $0x510] ss:$8 sps:$4 sm:$0xff]  }
  0x7d   : > { %1178 = vmatpush2.bf16.msra.mxu0 %v3297_v8  ;;  %v3365_v8 = vld [vmem:[%s4559_s1 + $0x404] ss:$8 sps:$4 sm:$0xff]  }
  0x7e   : > { %1229 = vmatpush2.bf16.msra.mxu1 %v3300_v9  ;;  %1179 = vmatprep.subr.bf16.mxu0 %v3305_v10  ;;  %v3368_v9 = vld [vmem:[%s4559_s1 + $0x504] ss:$8 sps:$4 sm:$0xff]   ;;  %v3363_v10 = vld [vmem:[%s4559_s1 + $0x400] ss:$8 sps:$4 sm:$0xff]  }
  0x7f   : > { %1230 = vmatprep.subr.bf16.mxu1 %v3308_v11  ;;  %v3366_v11 = vld [vmem:[%s4559_s1 + $0x500] ss:$8 sps:$4 sm:$0xff]  }
  0x81   : > { %1180 = vmatpush2.bf16.msra.mxu0 %v3303_v13  ;;  %v3371_v13 = vld [vmem:[%s4559_s1 + $0x4f4] ss:$8 sps:$4 sm:$0xff]  }
  0x82   : > { %1231 = vmatpush2.bf16.msra.mxu1 %v3306_v14  ;;  %1181 = vmatprep.subr.bf16.mxu0 %v3311_v16  ;;  %v3374_v14 = vld [vmem:[%s4559_s1 + $0x5f4] ss:$8 sps:$4 sm:$0xff]   ;;  %v3369_v16 = vld [vmem:[%s4559_s1 + $0x4f0] ss:$8 sps:$4 sm:$0xff]  }
  0x83   : > { %1232 = vmatprep.subr.bf16.mxu1 %v3314_v17  ;;  %v3372_v17 = vld [vmem:[%s4559_s1 + $0x5f0] ss:$8 sps:$4 sm:$0xff]  }
  0x85   : > { %1182 = vmatpush2.bf16.msra.mxu0 %v3309_v18  ;;  %v3377_v18 = vld [vmem:[%s4559_s1 + $0x4e4] ss:$8 sps:$4 sm:$0xff]  }
  0x86   : > { %1233 = vmatpush2.bf16.msra.mxu1 %v3312_v19  ;;  %1183 = vmatprep.subr.bf16.mxu0 %v3317_v20  ;;  %v3380_v19 = vld [vmem:[%s4559_s1 + $0x5e4] ss:$8 sps:$4 sm:$0xff]   ;;  %v3375_v20 = vld [vmem:[%s4559_s1 + $0x4e0] ss:$8 sps:$4 sm:$0xff]  }
  0x87   : > { %1234 = vmatprep.subr.bf16.mxu1 %v3320_v21  ;;  %v3378_v21 = vld [vmem:[%s4559_s1 + $0x5e0] ss:$8 sps:$4 sm:$0xff]  }
  0x89   : > { %1184 = vmatpush2.bf16.msra.mxu0 %v3315_v22  ;;  %v3383_v22 = vld [vmem:[%s4559_s1 + $0x4d4] ss:$8 sps:$4 sm:$0xff]  }
  0x8a   : > { %1235 = vmatpush2.bf16.msra.mxu1 %v3318_v23  ;;  %1707 = vmatprep.subr.bf16.mxu0 %v3323_v24  ;;  %v3386_v23 = vld [vmem:[%s4559_s1 + $0x5d4] ss:$8 sps:$4 sm:$0xff]   ;;  %v3381_v24 = vld [vmem:[%s4559_s1 + $0x4d0] ss:$8 sps:$4 sm:$0xff]  }
  0x8b   : > { %1758 = vmatprep.subr.bf16.mxu1 %v3326_v50  ;;  %v3384_v50 = vld [vmem:[%s4559_s1 + $0x5d0] ss:$8 sps:$4 sm:$0xff]  }
  0x8c   : > { %1186 = vmatmul.mubr.bf16.vlgmr.msra.gmra.mxu0 %v3769_v4  ;;  %v3338_v4 = vld [vmem:[%s4559_s1 + $0x554] ss:$8 sps:$4 sm:$0xff]  }
  0x8d   : > { %1237 = vmatmul.mubr.bf16.vlgmr.msra.gmra.mxu1 %v3772_v5  ;;  %1708 = vmatpush1.bf16.msra.mxu0 %v3321_v56  ;;  %v4089_v5 = vld [vmem:[%s3709_s5 + $0x30] sm:$0xff]  ;;  %v3389_v56 = vld [vmem:[%s4559_s1 + $0x4c4] ss:$8 sps:$4 sm:$0xff]  }
  0x8e   : > { %1759 = vmatpush1.bf16.msra.mxu1 %v3324_v25  ;;  %1709 = vmatprep.subr.bf16.mxu0 %v3329_v26  ;;  %v4095_v31 = vcombine.high %v3724_v49, %v4089_v5  ;;  %v3392_v25 = vld [vmem:[%s4559_s1 + $0x5c4] ss:$8 sps:$4 sm:$0xff]   ;;  %v3387_v26 = vld [vmem:[%s4559_s1 + $0x4c0] ss:$8 sps:$4 sm:$0xff]  }
  0x8f   : > { %1760 = vmatprep.subr.bf16.mxu1 %v3332_v27  ;;  %1195 = vmatprep.mubr.bf16.mxu0 %v3731_v51  ;;  %v3336_v51 = vld [vmem:[%s4559_s1 + $0x550] ss:$8 sps:$4 sm:$0xff]   ;;  %v3390_v27 = vld [vmem:[%s4559_s1 + $0x5c0] ss:$8 sps:$4 sm:$0xff]  }
  0x90   : > { %1246 = vmatprep.mubr.bf16.mxu1 %v3746_v57  ;;  %v1347_v57 = vshrl.u32 %v4095_v31, 16  ;;  %v1350_v49 = vshll.u32 %v4095_v31, 16 }
  0x91   : > { %1710 = vmatpush1.bf16.msra.mxu0 %v3327_v28  ;;  %v3395_v28 = vld [vmem:[%s4559_s1 + $0x4b4] ss:$8 sps:$4 sm:$0xff]  }
  0x92   : > { %1761 = vmatpush1.bf16.msra.mxu1 %v3330_v29  ;;  %1711 = vmatprep.subr.bf16.mxu0 %v3335_v30  ;;  %v1349_v39 = vrot.slane %v1347_v57, 2  ;;  %v1352_v40 = vrot.slane %v1350_v49, 3  ;;  %v3398_v29 = vld [vmem:[%s4559_s1 + $0x5b4] ss:$8 sps:$4 sm:$0xff]   ;;  %v3393_v30 = vld [vmem:[%s4559_s1 + $0x4b0] ss:$8 sps:$4 sm:$0xff]  }
  0x93   : > { %1762 = vmatprep.subr.bf16.mxu1 %v3338_v4  ;;  %v3396_v4 = vld [vmem:[%s4559_s1 + $0x5b0] ss:$8 sps:$4 sm:$0xff]   ;;  %v3522_v57 = vld [vmem:[%s3709_s5 + $0x28] sm:$0xff] }
  0x94   : > { %1196 = vmatmul.mubr.bf16.gmra.mxu0 %v3785_v12  ;;  %v4128_v55 = vor.u32 %v1352_v40, %v1349_v39  ;;  %v3347_v12 = vld [vmem:[%s4559_s1 + $0x434] ss:$8 sps:$4 sm:$0xff]   ;;  %v4256_v49 = vcombine.low %v3522_v57, %v4098_v32  ;;  %v3460_v57 = vld [vmem:[%s4559_s1 + $0x710] ss:$8 sps:$4 sm:$0xff]  }
  0x95   : > { %1247 = vmatmul.mubr.bf16.gmra.mxu1 %v3793_v15  ;;  %1712 = vmatpush1.bf16.msra.mxu0 %v3333_v33  ;;  %v3350_v15 = vld [vmem:[%s4559_s1 + $0x534] ss:$8 sps:$4 sm:$0xff]   ;;  %v3521_v33 = vld [vmem:[%s3709_s5 + $0x20] sm:$0xff] }
  0x96   : > { %1763 = vmatpush1.bf16.msra.mxu1 %v3336_v51  ;;  %1713 = vmatprep.subr.bf16.mxu0 %v3341_v35  ;;  %v1354_v61 = vsel %vm1330_vm1, %v1345_v54, %v4128_v55  ;;  %v3359_v54 = vld [vmem:[%s4559_s1 + $0x414] ss:$8 sps:$4 sm:$0xff]   ;;  %v4252_v51 = vcombine.low %v3521_v33, %v4089_v5  ;;  %v3401_v35 = vld [vmem:[%s4559_s1 + $0x4a4] ss:$8 sps:$4 sm:$0xff]   ;;  %v3402_v5 = vld [vmem:[%s4559_s1 + $0x5a0] ss:$8 sps:$4 sm:$0xff]  }
  0x97   : > { %1764 = vmatprep.subr.bf16.mxu1 %v3344_v52  ;;  %1739 = vmatprep.mubr.bf16.mxu0 %v1354_v61  ;;  %v3404_v52 = vld [vmem:[%s4559_s1 + $0x5a4] ss:$8 sps:$4 sm:$0xff]   ;;  %v1359_v39 = vshrl.u32 %v4256_v49, 16  ;;  %v1362_v40 = vshll.u32 %v4256_v49, 16  ;;  %v3457_v33 = vld [vmem:[%s4559_s1 + $0x610] ss:$8 sps:$4 sm:$0xff]  }
  0x98   : > { %1790 = vmatprep.mubr.bf16.mxu1 %v1378_v0  ;;  %v1335_v32 = vshrl.u32 %v4252_v51, 16  ;;  %v1338_v37 = vshll.u32 %v4252_v51, 16  ;;  %v3413_v0 = vld [vmem:[%s4559_s1 + $0x484] ss:$8 sps:$4 sm:$0xff]  }
  0x99   : > { %1714 = vmatpush1.bf16.msra.mxu0 %v3339_v47  ;;  %v3405_v47 = vld [vmem:[%s4559_s1 + $0x490] ss:$8 sps:$4 sm:$0xff]   ;;  %v1361_v61 = vrot.slane %v1359_v39, 2 }
  0x9a   : > { %1765 = vmatpush1.bf16.msra.mxu1 %v3342_v53  ;;  %1715 = vmatprep.subr.bf16.mxu0 %v3347_v12  ;;  %v3408_v53 = vld [vmem:[%s4559_s1 + $0x590] ss:$8 sps:$4 sm:$0xff]   ;;  %v1337_v12 = vrot.slane %v1335_v32, 2  ;;  %v3471_v32 = vld [vmem:[%s4559_s1 + $0x6f4] ss:$8 sps:$4 sm:$0xff]  }
  0x9b   : > { %1766 = vmatprep.subr.bf16.mxu1 %v3350_v15  ;;  %v1340_v15 = vrot.slane %v1338_v37, 3  ;;  %v3474_v37 = vld [vmem:[%s4559_s1 + $0x7f4] ss:$8 sps:$4 sm:$0xff]   ;;  %v3469_v39 = vld [vmem:[%s4559_s1 + $0x6f0] ss:$8 sps:$4 sm:$0xff]  }
  0x9d   : > { %1716 = vmatpush1.bf16.msra.mxu0 %v3345_v62  ;;  %v1364_v62 = vrot.slane %v1362_v40, 3  ;;  %v3472_v40 = vld [vmem:[%s4559_s1 + $0x7f0] ss:$8 sps:$4 sm:$0xff]  }
  0x9e   : > { %1767 = vmatpush1.bf16.msra.mxu1 %v3348_v1  ;;  %1717 = vmatprep.subr.bf16.mxu0 %v3353_v38  ;;  %v3416_v1 = vld [vmem:[%s4559_s1 + $0x584] ss:$8 sps:$4 sm:$0xff]   ;;  %v3411_v38 = vld [vmem:[%s4559_s1 + $0x480] ss:$8 sps:$4 sm:$0xff]  }
  0x9f   : > { %1768 = vmatprep.subr.bf16.mxu1 %v3356_v42  ;;  %v3414_v42 = vld [vmem:[%s4559_s1 + $0x580] ss:$8 sps:$4 sm:$0xff]  }
  0xa1   : > { %1718 = vmatpush1.bf16.msra.mxu0 %v3351_v44  ;;  %v1341_v44 = vor.u32 %v1340_v15, %v1337_v12  ;;  %v3483_v12 = vld [vmem:[%s4559_s1 + $0x6d4] ss:$8 sps:$4 sm:$0xff]  }
  0xa2   : > { %1769 = vmatpush1.bf16.msra.mxu1 %v3354_v45  ;;  %1719 = vmatprep.subr.bf16.mxu0 %v3359_v54  ;;  %v1365_v45 = vor.u32 %v1364_v62, %v1361_v61  ;;  %v3423_v54 = vld [vmem:[%s4559_s1 + $0x674] ss:$8 sps:$4 sm:$0xff]   ;;  %v3481_v61 = vld [vmem:[%s4559_s1 + $0x6d0] ss:$8 sps:$4 sm:$0xff]  }
  0xa3   : > { %1770 = vmatprep.subr.bf16.mxu1 %v3362_v59  ;;  %v3426_v59 = vld [vmem:[%s4559_s1 + $0x774] ss:$8 sps:$4 sm:$0xff]   ;;  %v3484_v62 = vld [vmem:[%s4559_s1 + $0x7d0] ss:$8 sps:$4 sm:$0xff]  }
  0xa4   : > { %v3486_v15 = vld [vmem:[%s4559_s1 + $0x7d4] ss:$8 sps:$4 sm:$0xff]  }
  0xa5   : > { %1720 = vmatpush1.bf16.msra.mxu0 %v3357_v2  ;;  %v1342_v2 = vsel %vm1330_vm1, %v1333_v6, %v1341_v44  ;;  %v3435_v6 = vld [vmem:[%s4559_s1 + $0x654] ss:$8 sps:$4 sm:$0xff]  }
  0xa6   : > { %1771 = vmatpush1.bf16.msra.mxu1 %v3360_v3  ;;  %1721 = vmatprep.subr.bf16.mxu0 %v3365_v8  ;;  %v1366_v3 = vsel %vm1330_vm1, %v1357_v7, %v1365_v45  ;;  %v3421_v8 = vld [vmem:[%s4559_s1 + $0x670] ss:$8 sps:$4 sm:$0xff]   ;;  %v3438_v7 = vld [vmem:[%s4559_s1 + $0x754] ss:$8 sps:$4 sm:$0xff]  }
  0xa7   : > { %1772 = vmatprep.subr.bf16.mxu1 %v3368_v9  ;;  %v3424_v9 = vld [vmem:[%s4559_s1 + $0x770] ss:$8 sps:$4 sm:$0xff]  }
  0xa9   : > { %1722 = vmatpush1.bf16.msra.mxu0 %v3363_v10  ;;  %v3523_v10 = vld [vmem:[%s3709_s5 + $0x4] ss:$16 sps:$4 sm:$0xff]  }
  0xaa   : > { %1773 = vmatpush1.bf16.msra.mxu1 %v3366_v11  ;;  %1723 = vmatprep.subr.bf16.mxu0 %v3371_v13  ;;  %v1884_v11 = vrot.slane %v3523_v10, 3  ;;  %v1885_v13 = vrot.slane %v4095_v31, 3  ;;  %v3525_v10 = vld [vmem:[%s3709_s5] ss:$16 sps:$4 sm:$0xff]  }
  0xab   : > { %1774 = vmatprep.subr.bf16.mxu1 %v3374_v14  ;;  %v3524_v14 = vld [vmem:[%s3709_s5 + $0xc] ss:$16 sps:$4 sm:$0xff]  }
  0xad   : > { %1724 = vmatpush2.bf16.msra.mxu0 %v3369_v16  ;;  %v1890_v16 = vrot.slane %v3524_v14, 3  ;;  %v3526_v14 = vld [vmem:[%s3709_s5 + $0x8] ss:$16 sps:$4 sm:$0xff]  }
  0xae   : > { %1775 = vmatpush2.bf16.msra.mxu1 %v3372_v17  ;;  %1725 = vmatprep.subr.bf16.mxu0 %v3377_v18  ;;  %v1891_v17 = vrot.slane %v4105_v34, 3  ;;  %v3433_v18 = vld [vmem:[%s4559_s1 + $0x650] ss:$8 sps:$4 sm:$0xff]  }
  0xaf   : > { %1776 = vmatprep.subr.bf16.mxu1 %v3380_v19  ;;  %v3444_v19 = vld [vmem:[%s4559_s1 + $0x744] ss:$8 sps:$4 sm:$0xff]  }
  0xb1   : > { %1726 = vmatpush2.bf16.msra.mxu0 %v3375_v20  ;;  %v1886_v20 = vsel %vm1880_vm2, %v1884_v11, %v1885_v13  ;;  %v1881_v11 = vrot.slane %v3525_v10, 3 }
  0xb2   : > { %1777 = vmatpush2.bf16.msra.mxu1 %v3378_v21  ;;  %1727 = vmatprep.subr.bf16.mxu0 %v3383_v22  ;;  %v1892_v21 = vsel %vm1880_vm2, %v1890_v16, %v1891_v17  ;;  %v3439_v22 = vld [vmem:[%s4559_s1 + $0x640] ss:$8 sps:$4 sm:$0xff]   ;;  %v1887_v16 = vrot.slane %v3526_v14, 3 }
  0xb3   : > { %1778 = vmatprep.subr.bf16.mxu1 %v3386_v23  ;;  %v3442_v23 = vld [vmem:[%s4559_s1 + $0x740] ss:$8 sps:$4 sm:$0xff]  }
  0xb5   : > { %1728 = vmatpush2.bf16.msra.mxu0 %v3381_v24  ;;  %v3447_v24 = vld [vmem:[%s4559_s1 + $0x634] ss:$8 sps:$4 sm:$0xff]  }
  0xb6   : > { %1779 = vmatpush2.bf16.msra.mxu1 %v3384_v50  ;;  %1729 = vmatprep.subr.bf16.mxu0 %v3389_v56  ;;  %v3450_v50 = vld [vmem:[%s4559_s1 + $0x734] ss:$8 sps:$4 sm:$0xff]   ;;  %v3445_v56 = vld [vmem:[%s4559_s1 + $0x630] ss:$8 sps:$4 sm:$0xff]  }
  0xb7   : > { %1780 = vmatprep.subr.bf16.mxu1 %v3392_v25  ;;  %v3448_v25 = vld [vmem:[%s4559_s1 + $0x730] ss:$8 sps:$4 sm:$0xff]  }
  0xb9   : > { %1730 = vmatpush2.bf16.msra.mxu0 %v3387_v26  ;;  %v3453_v26 = vld [vmem:[%s4559_s1 + $0x624] ss:$8 sps:$4 sm:$0xff]  }
  0xba   : > { %1781 = vmatpush2.bf16.msra.mxu1 %v3390_v27  ;;  %1731 = vmatprep.subr.bf16.mxu0 %v3395_v28  ;;  %v3456_v27 = vld [vmem:[%s4559_s1 + $0x724] ss:$8 sps:$4 sm:$0xff]   ;;  %v3451_v28 = vld [vmem:[%s4559_s1 + $0x620] ss:$8 sps:$4 sm:$0xff]  }
  0xbb   : > { %1782 = vmatprep.subr.bf16.mxu1 %v3398_v29  ;;  %v3454_v29 = vld [vmem:[%s4559_s1 + $0x720] ss:$8 sps:$4 sm:$0xff]  }
  0xbd   : > { %1732 = vmatpush2.bf16.msra.mxu0 %v3393_v30  ;;  %v3459_v30 = vld [vmem:[%s4559_s1 + $0x614] ss:$8 sps:$4 sm:$0xff]  }
  0xbe   : > { %1783 = vmatpush2.bf16.msra.mxu1 %v3396_v4  ;;  %1733 = vmatprep.subr.bf16.mxu0 %v3401_v35  ;;  %v3462_v4 = vld [vmem:[%s4559_s1 + $0x714] ss:$8 sps:$4 sm:$0xff]   ;;  %v3465_v35 = vld [vmem:[%s4559_s1 + $0x604] ss:$8 sps:$4 sm:$0xff]  }
  0xbf   : > { %1784 = vmatprep.subr.bf16.mxu1 %v3404_v52  ;;  %v3468_v52 = vld [vmem:[%s4559_s1 + $0x704] ss:$8 sps:$4 sm:$0xff]  }
  0xc1   : > { %1734 = vmatpush2.bf16.msra.mxu0 %v3399_v36  ;;  %v3463_v36 = vld [vmem:[%s4559_s1 + $0x600] ss:$8 sps:$4 sm:$0xff]  }
  0xc2   : > { %1785 = vmatpush2.bf16.msra.mxu1 %v3402_v5  ;;  %1735 = vmatprep.subr.bf16.mxu0 %v3407_v41  ;;  %v3466_v5 = vld [vmem:[%s4559_s1 + $0x700] ss:$8 sps:$4 sm:$0xff]   ;;  %v3477_v41 = vld [vmem:[%s4559_s1 + $0x6e4] ss:$8 sps:$4 sm:$0xff]  }
  0xc3   : > { %1786 = vmatprep.subr.bf16.mxu1 %v3410_v46  ;;  %v3480_v46 = vld [vmem:[%s4559_s1 + $0x7e4] ss:$8 sps:$4 sm:$0xff]  }
  0xc5   : > { %1736 = vmatpush2.bf16.msra.mxu0 %v3405_v47  ;;  %v3475_v47 = vld [vmem:[%s4559_s1 + $0x6e0] ss:$8 sps:$4 sm:$0xff]  }
  0xc6   : > { %1787 = vmatpush2.bf16.msra.mxu1 %v3408_v53  ;;  %1737 = vmatprep.subr.bf16.mxu0 %v3413_v0  ;;  %v3478_v53 = vld [vmem:[%s4559_s1 + $0x7e0] ss:$8 sps:$4 sm:$0xff]   ;;  %v3489_v0 = vld [vmem:[%s4559_s1 + $0x6c4] ss:$8 sps:$4 sm:$0xff]  }
  0xc7   : > { %1788 = vmatprep.subr.bf16.mxu1 %v3416_v1  ;;  %v3492_v1 = vld [vmem:[%s4559_s1 + $0x7c4] ss:$8 sps:$4 sm:$0xff]  }
  0xc9   : > { %1738 = vmatpush2.bf16.msra.mxu0 %v3411_v38  ;;  %v3487_v38 = vld [vmem:[%s4559_s1 + $0x6c0] ss:$8 sps:$4 sm:$0xff]  }
  0xca   : > { %1789 = vmatpush2.bf16.msra.mxu1 %v3414_v42  ;;  %2221 = vmatprep.subr.bf16.mxu0 %v3423_v54  ;;  %v3490_v42 = vld [vmem:[%s4559_s1 + $0x7c0] ss:$8 sps:$4 sm:$0xff]   ;;  %v3493_v54 = vld [vmem:[%s4559_s1 + $0x6b0] ss:$8 sps:$4 sm:$0xff]  }
  0xcb   : > { %2272 = vmatprep.subr.bf16.mxu1 %v3426_v59  ;;  %v3496_v59 = vld [vmem:[%s4559_s1 + $0x7b0] ss:$8 sps:$4 sm:$0xff]  }
  0xcc   : > { %1740 = vmatmul.mubr.bf16.vlgmr.msra.gmra.mxu0 %v1342_v2  ;;  %v3501_v2 = vld [vmem:[%s4559_s1 + $0x6a4] ss:$8 sps:$4 sm:$0xff]  }
  0xcd   : > { %1791 = vmatmul.mubr.bf16.vlgmr.msra.gmra.mxu1 %v1366_v3  ;;  %2222 = vmatpush1.bf16.msra.mxu0 %v3421_v8  ;;  %v3504_v3 = vld [vmem:[%s4559_s1 + $0x7a4] ss:$8 sps:$4 sm:$0xff]   ;;  %v3499_v8 = vld [vmem:[%s4559_s1 + $0x6a0] ss:$8 sps:$4 sm:$0xff]  }
  0xce   : > { %2273 = vmatpush1.bf16.msra.mxu1 %v3424_v9  ;;  %2223 = vmatprep.subr.bf16.mxu0 %v3429_v43  ;;  %v3502_v9 = vld [vmem:[%s4559_s1 + $0x7a0] ss:$8 sps:$4 sm:$0xff]   ;;  %v3507_v43 = vld [vmem:[%s4559_s1 + $0x694] ss:$8 sps:$4 sm:$0xff]  }
  0xcf   : > { %2274 = vmatprep.subr.bf16.mxu1 %v3432_v48  ;;  %1749 = vmatprep.mubr.bf16.mxu0 %v4128_v55  ;;  %v3436_v55 = vld [vmem:[%s4559_s1 + $0x750] ss:$8 sps:$4 sm:$0xff]   ;;  %v3510_v48 = vld [vmem:[%s4559_s1 + $0x794] ss:$8 sps:$4 sm:$0xff]  }
  0xd0   : > { %1800 = vmatprep.mubr.bf16.mxu1 %v4136_v58  ;;  %v3441_v58 = vld [vmem:[%s4559_s1 + $0x644] ss:$8 sps:$4 sm:$0xff]  }
  0xd1   : > { %2224 = vmatpush1.bf16.msra.mxu0 %v3427_v60  ;;  %v3505_v60 = vld [vmem:[%s4559_s1 + $0x690] ss:$8 sps:$4 sm:$0xff]  }
  0xd2   : > { %2275 = vmatpush1.bf16.msra.mxu1 %v3430_v63  ;;  %2225 = vmatprep.subr.bf16.mxu0 %v3435_v6  ;;  %v3508_v63 = vld [vmem:[%s4559_s1 + $0x790] ss:$8 sps:$4 sm:$0xff]   ;;  %v3513_v6 = vld [vmem:[%s4559_s1 + $0x684] ss:$8 sps:$4 sm:$0xff]  }
  0xd3   : > { %2276 = vmatprep.subr.bf16.mxu1 %v3438_v7  ;;  %v3516_v7 = vld [vmem:[%s4559_s1 + $0x784] ss:$8 sps:$4 sm:$0xff]  }
  0xd4   : > { %1750 = vmatmul.mubr.bf16.gmra.mxu0 %v1341_v44  ;;  %v3495_v44 = vld [vmem:[%s4559_s1 + $0x6b4] ss:$8 sps:$4 sm:$0xff]  }
  0xd5   : > { %1801 = vmatmul.mubr.bf16.gmra.mxu1 %v1365_v45  ;;  %2226 = vmatpush1.bf16.msra.mxu0 %v3433_v18  ;;  %v3498_v45 = vld [vmem:[%s4559_s1 + $0x7b4] ss:$8 sps:$4 sm:$0xff]   ;;  %v3511_v18 = vld [vmem:[%s4559_s1 + $0x680] ss:$8 sps:$4 sm:$0xff]  }
  0xd6   : > { %2277 = vmatpush1.bf16.msra.mxu1 %v3436_v55  ;;  %2227 = vmatprep.subr.bf16.mxu0 %v3441_v58  ;;  %v3514_v55 = vld [vmem:[%s4559_s1 + $0x780] ss:$8 sps:$4 sm:$0xff]   ;;  %v1882_v58 = vrot.slane %v4252_v51, 3 }
  0xd7   : > { %2278 = vmatprep.subr.bf16.mxu1 %v3444_v19  ;;  %2253 = vmatprep.mubr.bf16.mxu0 %v1886_v20  ;;  %v1888_v19 = vrot.slane %v4256_v49, 3 }
  0xd8   : > { %2304 = vmatprep.mubr.bf16.mxu1 %v1892_v21  ;;  %v1883_v20 = vsel %vm1880_vm2, %v1881_v11, %v1882_v58 }
  0xd9   : > { %2228 = vmatpush1.bf16.msra.mxu0 %v3439_v22  ;;  %v1889_v21 = vsel %vm1880_vm2, %v1887_v16, %v1888_v19 }
  0xda   : > { %2279 = vmatpush1.bf16.msra.mxu1 %v3442_v23  ;;  %2229 = vmatprep.subr.bf16.mxu0 %v3447_v24 }
  0xdb   : > { %2280 = vmatprep.subr.bf16.mxu1 %v3450_v50 }
  0xdd   : > { %2230 = vmatpush1.bf16.msra.mxu0 %v3445_v56 }
  0xde   : > { %2281 = vmatpush1.bf16.msra.mxu1 %v3448_v25  ;;  %2231 = vmatprep.subr.bf16.mxu0 %v3453_v26 }
  0xdf   : > { %2282 = vmatprep.subr.bf16.mxu1 %v3456_v27 }
  0xe1   : > { %2232 = vmatpush1.bf16.msra.mxu0 %v3451_v28 }
  0xe2   : > { %2283 = vmatpush1.bf16.msra.mxu1 %v3454_v29  ;;  %2233 = vmatprep.subr.bf16.mxu0 %v3459_v30 }
  0xe3   : > { %2284 = vmatprep.subr.bf16.mxu1 %v3462_v4 }
  0xe5   : > { %2234 = vmatpush1.bf16.msra.mxu0 %v3457_v33 }
  0xe6   : > { %2285 = vmatpush1.bf16.msra.mxu1 %v3460_v57  ;;  %2235 = vmatprep.subr.bf16.mxu0 %v3465_v35 }
  0xe7   : > { %2286 = vmatprep.subr.bf16.mxu1 %v3468_v52 }
  0xe9   : > { %2236 = vmatpush1.bf16.msra.mxu0 %v3463_v36 }
  0xea   : > { %2287 = vmatpush1.bf16.msra.mxu1 %v3466_v5  ;;  %2237 = vmatprep.subr.bf16.mxu0 %v3471_v32 }
  0xeb   : > { %2288 = vmatprep.subr.bf16.mxu1 %v3474_v37 }
  0xed   : > { %2238 = vmatpush2.bf16.msra.mxu0 %v3469_v39 }
  0xee   : > { %2289 = vmatpush2.bf16.msra.mxu1 %v3472_v40  ;;  %2239 = vmatprep.subr.bf16.mxu0 %v3477_v41 }
  0xef   : > { %2290 = vmatprep.subr.bf16.mxu1 %v3480_v46 }
  0xf1   : > { %2240 = vmatpush2.bf16.msra.mxu0 %v3475_v47 }
  0xf2   : > { %2291 = vmatpush2.bf16.msra.mxu1 %v3478_v53  ;;  %2241 = vmatprep.subr.bf16.mxu0 %v3483_v12 }
  0xf3   : > { %2292 = vmatprep.subr.bf16.mxu1 %v3486_v15 }
  0xf5   : > { %2242 = vmatpush2.bf16.msra.mxu0 %v3481_v61 }
  0xf6   : > { %2293 = vmatpush2.bf16.msra.mxu1 %v3484_v62  ;;  %2243 = vmatprep.subr.bf16.mxu0 %v3489_v0 }
  0xf7   : > { %2294 = vmatprep.subr.bf16.mxu1 %v3492_v1 }
  0xf9   : > { %2244 = vmatpush2.bf16.msra.mxu0 %v3487_v38 }
  0xfa   : > { %2295 = vmatpush2.bf16.msra.mxu1 %v3490_v42  ;;  %2245 = vmatprep.subr.bf16.mxu0 %v3495_v44 }
  0xfb   : > { %2296 = vmatprep.subr.bf16.mxu1 %v3498_v45 }
  0xfd   : > { %2246 = vmatpush2.bf16.msra.mxu0 %v3493_v54 }
  0xfe   : > { %2297 = vmatpush2.bf16.msra.mxu1 %v3496_v59  ;;  %2247 = vmatprep.subr.bf16.mxu0 %v3501_v2 }
  0xff   : > { %2298 = vmatprep.subr.bf16.mxu1 %v3504_v3 }
 0x101   : > { %2248 = vmatpush2.bf16.msra.mxu0 %v3499_v8 }
 0x102   : > { %2299 = vmatpush2.bf16.msra.mxu1 %v3502_v9  ;;  %2249 = vmatprep.subr.bf16.mxu0 %v3507_v43 }
 0x103   : > { %2300 = vmatprep.subr.bf16.mxu1 %v3510_v48 }
 0x105   : > { %2250 = vmatpush2.bf16.msra.mxu0 %v3505_v60  ;;  %v3535_v60 = vmov 0.0  }
 0x106   : > { %2301 = vmatpush2.bf16.msra.mxu1 %v3508_v63  ;;  %2251 = vmatprep.subr.bf16.mxu0 %v3513_v6 }
 0x107   : > { %2302 = vmatprep.subr.bf16.mxu1 %v3516_v7 }
 0x109   : > { %2252 = vmatpush2.bf16.msra.mxu0 %v3511_v18 }
 0x10a   : > { %2303 = vmatpush2.bf16.msra.mxu1 %v3514_v55 }
 0x10c   : > { %v757_v22 = vpop.f32.mrf.mxu0  ;;  %2254 = vmatmul.mubr.bf16.vlgmr.msra.gmra.mxu0 %v1883_v20 }
 0x10d   : > { %v808_v23 = vpop.f32.mrf.mxu1  ;;  %2305 = vmatmul.mubr.bf16.vlgmr.msra.gmra.mxu1 %v1889_v21  ;;  %2263 = vmatprep.mubr.bf16.mxu0 %v1885_v13 }
 0x10e   : > { %v809_v24 = vadd.f32 %v808_v23, %v757_v22  ;;  %2314 = vmatprep.mubr.bf16.mxu1 %v1891_v17  ;;  %v759_v51 = vpop.f32.mrf.mxu0 }
 0x10f   : > { %v810_v49 = vpop.f32.mrf.mxu1 }
 0x110   : > { %v811_v50 = vadd.f32 %v810_v49, %v759_v51  ;;  %v761_v56 = vpop.f32.mrf.mxu0 }
 0x111   : > { %v812_v25 = vpop.f32.mrf.mxu1 }
 0x112   : > { %v813_v26 = vadd.f32 %v812_v25, %v761_v56  ;;  %v763_v27 = vpop.f32.mrf.mxu0 }
 0x113   : > { %v814_v28 = vpop.f32.mrf.mxu1 }
 0x114   : > { %v815_v29 = vadd.f32 %v814_v28, %v763_v27  ;;  %2264 = vmatmul.mubr.bf16.gmra.mxu0 %v1882_v58  ;;  %v767_v30 = vpop.f32.mrf.mxu0 }
 0x115   : > { %2315 = vmatmul.mubr.bf16.gmra.mxu1 %v1888_v19  ;;  %v818_v4 = vpop.f32.mrf.mxu1  ;;  %2405 = vmatprep.mubr.f32.mxu0 %v3535_v60 }
 0x116   : > { %v819_v33 = vadd.f32 %v818_v4, %v767_v30  ;;  %v769_v57 = vpop.f32.mrf.mxu0  ;;  %2488 = vmatprep.mubr.f32.mxu1 %v3535_v60 }
 0x117   : > { %v820_v31 = vpop.f32.mrf.mxu1 }
 0x118   : > { %v821_v13 = vadd.f32 %v820_v31, %v769_v57  ;;  %v771_v35 = vpop.f32.mrf.mxu0 }
 0x119   : > { %v822_v34 = vpop.f32.mrf.mxu1 }
 0x11a   : > { %v772_v17 = vpop.f32.mrf.mxu0 }
 0x11b   : > { %v823_v52 = vpop.f32.mrf.mxu1 }
 0x14c   : > { %v1187_v36 = vpop.f32.mrf.mxu0 }
 0x14d   : > { %v1238_v5 = vpop.f32.mrf.mxu1  ;;  %v1188_v32 = vadd.f32 %v1187_v36, %v809_v24 }
 0x14e   : > { %v1189_v37 = vpop.f32.mrf.mxu0 }
 0x14f   : > { %v1240_v39 = vpop.f32.mrf.mxu1  ;;  %v1239_v40 = vadd.f32 %v1238_v5, %v1188_v32  ;;  %v1190_v41 = vadd.f32 %v1189_v37, %v811_v50 }
 0x150   : > { %v1191_v46 = vpop.f32.mrf.mxu0 }
 0x151   : > { %v1242_v47 = vpop.f32.mrf.mxu1  ;;  %v1241_v53 = vadd.f32 %v1240_v39, %v1190_v41  ;;  %v1192_v12 = vadd.f32 %v1191_v46, %v813_v26 }
 0x152   : > { %v1193_v15 = vpop.f32.mrf.mxu0 }
 0x153   : > { %v1244_v61 = vpop.f32.mrf.mxu1  ;;  %v1243_v62 = vadd.f32 %v1242_v47, %v1192_v12  ;;  %v1194_v0 = vadd.f32 %v1193_v15, %v815_v29 }
 0x154   : > { %v1197_v1 = vpop.f32.mrf.mxu0 }
 0x155   : > { %v1248_v38 = vpop.f32.mrf.mxu1  ;;  %v1245_v42 = vadd.f32 %v1244_v61, %v1194_v0  ;;  %v1198_v44 = vadd.f32 %v1197_v1, %v819_v33 }
 0x156   : > { %v1199_v45 = vpop.f32.mrf.mxu0 }
 0x157   : > { %v1250_v54 = vpop.f32.mrf.mxu1  ;;  %v1200_v59 = vadd.f32 %v1199_v45, %v821_v13  ;;  %v1249_v2 = vadd.f32 %v1248_v38, %v1198_v44 }
 0x158   : > { %v1201_v3 = vpop.f32.mrf.mxu0 }
 0x159   : > { %v1252_v8 = vpop.f32.mrf.mxu1  ;;  %v1251_v9 = vadd.f32 %v1250_v54, %v1200_v59 }
 0x15a   : > { %v1202_v43 = vpop.f32.mrf.mxu0 }
 0x15b   : > { %v1253_v48 = vpop.f32.mrf.mxu1 }
 0x18c   : > { %v1741_v63 = vpop.f32.mrf.mxu0 }
 0x18d   : > { %v1792_v6 = vpop.f32.mrf.mxu1 }
 0x18e   : > { %v1793_v7 = vadd.f32 %v1792_v6, %v1741_v63  ;;  %v1743_v10 = vpop.f32.mrf.mxu0 }
 0x18f   : > { %v1794_v11 = vpop.f32.mrf.mxu1 }
 0x190   : > { %v1809_v14 = vadd.f32 %v1793_v7, %v1239_v40  ;;  %v1795_v16 = vadd.f32 %v1794_v11, %v1743_v10  ;;  %v1745_v18 = vpop.f32.mrf.mxu0 }
 0x191   : > { %v1796_v55 = vpop.f32.mrf.mxu1 }
 0x192   : > { %v1810_v58 = vadd.f32 %v1795_v16, %v1241_v53  ;;  %v1797_v19 = vadd.f32 %v1796_v55, %v1745_v18  ;;  %v1747_v20 = vpop.f32.mrf.mxu0 }
 0x193   : > { %v1798_v21 = vpop.f32.mrf.mxu1 }
 0x194   : > { %v1811_v22 = vadd.f32 %v1797_v19, %v1243_v62  ;;  %v1799_v23 = vadd.f32 %v1798_v21, %v1747_v20  ;;  %v1751_v24 = vpop.f32.mrf.mxu0  ;;  %v2505_v21 = vlaneseq }
 0x195   : > { %v1802_v51 = vpop.f32.mrf.mxu1 }
 0x196   : > { %v1812_v49 = vadd.f32 %v1799_v23, %v1245_v42  ;;  %v1803_v50 = vadd.f32 %v1802_v51, %v1751_v24  ;;  %v1753_v56 = vpop.f32.mrf.mxu0  ;;  %v2506_v51 = vshrl.u32 %v2505_v21, 7 }
 0x197   : > { %v1804_v25 = vpop.f32.mrf.mxu1 }
 0x198   : > { %v1813_v26 = vadd.f32 %v1803_v50, %v1249_v2  ;;  %v1755_v27 = vpop.f32.mrf.mxu0  ;;  %v1805_v52 = vadd.f32 %v1804_v25, %v1753_v56 }
 0x199   : > { %v1806_v28 = vpop.f32.mrf.mxu1 }
 0x19a   : > { %v1756_v29 = vpop.f32.mrf.mxu0  ;;  %v1814_v46 = vadd.f32 %v1805_v52, %v1251_v9  ;;  %v2329_v9 = vld [vmem:[%s4560_s2] sm:$0x1] }
 0x19b   : > { %v1807_v30 = vpop.f32.mrf.mxu1 }
 0x1cc   : > { %v2255_v4 = vpop.f32.mrf.mxu0 }
 0x1cd   : > { %v2306_v33 = vpop.f32.mrf.mxu1 }
 0x1ce   : > { %v2257_v57 = vpop.f32.mrf.mxu0  ;;  %v2307_v12 = vadd.f32 %v2306_v33, %v2255_v4 }
 0x1cf   : > { %v2308_v31 = vpop.f32.mrf.mxu1 }
 0x1d0   : > { %v2259_v13 = vpop.f32.mrf.mxu0  ;;  %v2309_v47 = vadd.f32 %v2308_v31, %v2257_v57  ;;  %v2323_v59 = vadd.f32 %v2307_v12, %v1809_v14 }
 0x1d1   : > { %v2310_v35 = vpop.f32.mrf.mxu1 }
 0x1d2   : > { %v2261_v34 = vpop.f32.mrf.mxu0  ;;  %v2311_v39 = vadd.f32 %v2310_v35, %v2259_v13  ;;  %v4526_v45 = vadd.f32 %v2309_v47, %v1810_v58  ;;  %v2412_v48 = vmul.f32 %v2323_v59, %v2323_v59 }
 0x1d3   : > { %v2312_v17 = vpop.f32.mrf.mxu1 }
 0x1d4   : > { %v2265_v36 = vpop.f32.mrf.mxu0  ;;  %v2313_v32 = vadd.f32 %v2312_v17, %v2261_v34  ;;  %v2325_v38 = vadd.f32 %v2311_v39, %v1811_v22  ;;  %v2413_v43 = vmul.f32 %v4526_v45, %v4526_v45 }
 0x1d5   : > { %v2316_v5 = vpop.f32.mrf.mxu1 }
 0x1d6   : > { %v2317_v37 = vadd.f32 %v2316_v5, %v2265_v36  ;;  %v2267_v40 = vpop.f32.mrf.mxu0  ;;  %v4522_v0 = vadd.f32 %v2313_v32, %v1812_v49  ;;  %v2414_v8 = vmul.f32 %v2325_v38, %v2325_v38  ;;  %v2507_v49 = vsub.s32 0, %v2506_v51 }
 0x1d7   : > { %v2318_v41 = vpop.f32.mrf.mxu1 }
 0x1d8   : > { %v2319_v53 = vadd.f32 %v2318_v41, %v2267_v40  ;;  %v4520_v15 = vadd.f32 %v2317_v37, %v1813_v26  ;;  %v2269_v61 = vpop.f32.mrf.mxu0  ;;  %v2415_v3 = vmul.f32 %v4522_v0, %v4522_v0 }
 0x1d9   : > { %v2320_v62 = vpop.f32.mrf.mxu1 }
 0x1da   : > { %v4524_v1 = vadd.f32 %v2319_v53, %v1814_v46  ;;  %v2270_v42 = vpop.f32.mrf.mxu0  ;;  %v2416_v2 = vmul.f32 %v4520_v15, %v4520_v15 }
 0x1db   : > { %v2321_v44 = vpop.f32.mrf.mxu1 }
 0x1dc   : > { %v2417_v54 = vmul.f32 %v4524_v1, %v4524_v1  ;;  %3094 = vmatprep.subr.msk.mxu0 %vm2334_vm3, %v4524_v1 }
 0x1dd   : > { %3095 = vmatpush1.msk.msra.mxu0 %vm2334_vm3, %v4520_v15 }
 0x1de   : > { %2369 = vmatprep.subr.mxu0 %v4522_v0  ;;  %3097 = vmatprep.subr.msk.mxu1 %vm2334_vm3, %v2417_v54 }
 0x1df   : > { %2370 = vmatpush1.msra.mxu0 %v2325_v38  ;;  %3098 = vmatpush1.msk.msra.mxu1 %vm2334_vm3, %v2416_v2 }
 0x1e0   : > { %2371 = vmatprep.subr.mxu0 %v4526_v45  ;;  %2452 = vmatprep.subr.mxu1 %v2415_v3 }
 0x1e1   : > { %2372 = vmatpush1.msra.mxu0 %v2323_v59  ;;  %2453 = vmatpush1.msra.mxu1 %v2414_v8 }
 0x1e2   : > { %3096 = vmatmul.mubr.msk.f32.vlgmr.msra.gmra.mxu0 %vm2330_vm4, %v2329_v9  ;;  %2454 = vmatprep.subr.mxu1 %v2413_v43 }
 0x1e3   : > { %2455 = vmatpush1.msra.mxu1 %v2412_v48 }
 0x1e4   : > { %3099 = vmatmul.mubr.msk.f32.vlgmr.msra.gmra.mxu1 %vm2330_vm4, %v2329_v9 }
 0x2a2   : > { %v2407_v60 = vpop.f32.mrf.mxu0 }
 0x2a3   : > { %v2495_v63 = vmul.f32 0.0625, %v2407_v60 }
 0x2a4   : > { %v2409_v6 = vpop.f32.mrf.mxu0  ;;  %v2490_v7 = vpop.f32.mrf.mxu1 }
 0x2a5   : > { %v2499_v10 = vmul.f32 %v2495_v63, %v2495_v63  ;;  %v2496_v11 = vmul.f32 0.0625, %v2409_v6  ;;  %v2497_v14 = vmul.f32 0.0625, %v2490_v7  ;;  %v2508_v50 = vrot.slane %v2495_v63, %v2507_v49 }
 0x2a6   : > { %v2492_v16 = vpop.f32.mrf.mxu1 }
 0x2a7   : > { %v2500_v18 = vmul.f32 %v2496_v11, %v2496_v11  ;;  %v2501_v55 = vsub.f32 %v2497_v14, %v2499_v10  ;;  %v2498_v58 = vmul.f32 0.0625, %v2492_v16  ;;  %v2512_v25 = vrot.slane %v2496_v11, %v2507_v49 }
 0x2a8   : > { %v2513_v26 = vsub.f32 %v2323_v59, %v2508_v50  ;;  %v2515_v27 = vsub.f32 %v2325_v38, %v2508_v50  ;;  %v2517_v28 = vsub.f32 %v4520_v15, %v2508_v50 }
 0x2a9   : > { %v2503_v19 = vmax.f32 %v2501_v55, 0.0  ;;  %v2502_v20 = vsub.f32 %v2498_v58, %v2500_v18  ;;  %v2514_v31 = vsub.f32 %v4526_v45, %v2512_v25  ;;  %v2516_v13 = vsub.f32 %v4522_v0, %v2512_v25 }
 0x2aa   : > { %v2518_v35 = vsub.f32 %v4524_v1, %v2512_v25 }
 0x2ab   : > { %v2519_v22 = vadd.f32 1e-05, %v2503_v19  ;;  %v2504_v23 = vmax.f32 %v2502_v20, 0.0 }
 0x2ad   : > { %3517 = vrsqrt.f32 %v2519_v22  ;;  %v2520_v24 = vadd.f32 1e-05, %v2504_v23 }
 0x2af   : > { %3519 = vrsqrt.f32 %v2520_v24 }
 0x2ba   : > { %v3518_v56 = vpop.eup %3517 }
 0x2bb   : > { %v2526_v29 = vrot.slane %v3518_v56, %v2507_v49 }
 0x2bc   : > { %v3520_v30 = vpop.eup %3519 }
 0x2bd   : > { %v2531_v4 = vmul.f32 %v2526_v29, %v2513_v26  ;;  %v2533_v33 = vmul.f32 %v2526_v29, %v2515_v27  ;;  %v2535_v57 = vmul.f32 %v2526_v29, %v2517_v28  ;;  %v2530_v34 = vrot.slane %v3520_v30, %v2507_v49 }
 0x2bf   : > { %v2537_v17 = vmul.f32 0.01, %v2531_v4  ;;  %v2539_v52 = vmul.f32 0.01, %v2533_v33  ;;  %v2541_v36 = vmul.f32 0.01, %v2535_v57  ;;  %v2532_v5 = vmul.f32 %v2530_v34, %v2514_v31 }
 0x2c0   : > { %v2534_v32 = vmul.f32 %v2530_v34, %v2516_v13  ;;  %v2536_v37 = vmul.f32 %v2530_v34, %v2518_v35 }
 0x2c1   : > { %v2538_v39 = vmul.f32 0.01, %v2532_v5  ;;  %v2543_v46 = vmax.f32 %v2531_v4, %v2537_v17  ;;  %v2545_v47 = vmax.f32 %v2533_v33, %v2539_v52  ;;  %v2547_v53 = vmax.f32 %v2535_v57, %v2541_v36 }
 0x2c2   : > { %v2540_v40 = vmul.f32 0.01, %v2534_v32  ;;  %v2542_v41 = vmul.f32 0.01, %v2536_v37 }
 0x2c3   : > { %v2544_v12 = vmax.f32 %v2532_v5, %v2538_v39 }
 0x2c4   : > { %v2546_v15 = vmax.f32 %v2534_v32, %v2540_v40  ;;  %v2548_v61 = vmax.f32 %v2536_v37, %v2542_v41 }
 0x2c5   : > { %v3105_v62 = vpack.c.bf16 %v2544_v12, %v2543_v46 }
 0x2c6   : > { %v3106_v0 = vpack.c.bf16 %v2546_v15, %v2545_v47  ;;  %v3107_v1 = vpack.c.bf16 %v2548_v61, %v2547_v53 }
 0x2c7   : > { %2569 = vst [vmem:[%s170_s26] sm:$0xff] %v3105_v62 }
 0x2c8   : > { %2570 = vst [vmem:[%s170_s26 + $0x8] sm:$0xff] %v3106_v0  ;;  %2571 = vst [vmem:[%s170_s26 + $0x10] sm:$0x33] %v3107_v1 }
 0x2c9 PF: > { %s13_s12 = sadd.s32 1, %s3533_s12  }
 0x2ca   : > { %p10_p4 = scmp.ge.s32.totalorder %s13_s12, 4  }
 0x2cc   :  { %12 = sbr.rel (!%p10_p4) target bundleno = 1 (0x1), region = 65 }

// kernel: patchgan_discriminator_forward.9
= control target key start
LH: loop header
LB: loop body
LE: loop exit
PB: predicated region body
PF: predicated region fallthrough
CT: control target
= control target key end

     0   :  { %s646_s1 = inlined_call_operand.vmem [shape: bf16[512,128], index: 1, kind: input, shape index: {}]   ;;  %s647_s0 = inlined_call_operand.vmem [shape: bf16[16,512], index: 0, kind: input, shape index: {}]   ;;  %s648_s2 = inlined_call_operand.vmem [shape: f32[1,128], index: 2, kind: input, shape index: {}]   ;;  %s649_s3 = inlined_call_operand.vmem [shape: f32[16,128], index: 3, kind: output, shape index: {}]  }
   0x1   :  { %v471_v0 = vld [vmem:[%s646_s1 + $0x78] sm:$0xff]   ;;  %v475_v4 = vld [vmem:[%s646_s1 + $0x70] sm:$0xff]   ;;  %v479_v8 = vld [vmem:[%s646_s1 + $0x68] sm:$0xff]  }
   0x2   :  { %v472_v1 = vld [vmem:[%s646_s1 + $0xf8] sm:$0xff]   ;;  %427 = vmatprep.subr.bf16.mxu0 %v471_v0  ;;  %v476_v5 = vld [vmem:[%s646_s1 + $0xf0] sm:$0xff]   ;;  %v480_v9 = vld [vmem:[%s646_s1 + $0xe8] sm:$0xff]  }
   0x3   :  { %v473_v2 = vld [vmem:[%s646_s1 + $0x38] sm:$0xff]   ;;  %449 = vmatprep.subr.bf16.mxu1 %v472_v1  ;;  %v477_v6 = vld [vmem:[%s646_s1 + $0x30] sm:$0xff]   ;;  %v481_v10 = vld [vmem:[%s646_s1 + $0x28] sm:$0xff]  }
   0x4   :  { %v474_v3 = vld [vmem:[%s646_s1 + $0xb8] sm:$0xff]   ;;  %428 = vmatpush3.bf16.msra.mxu0 %v473_v2  ;;  %v478_v7 = vld [vmem:[%s646_s1 + $0xb0] sm:$0xff]   ;;  %v482_v11 = vld [vmem:[%s646_s1 + $0xa8] sm:$0xff]  }
   0x5   :  { %450 = vmatpush3.bf16.msra.mxu1 %v474_v3  ;;  %429 = vmatprep.subr.bf16.mxu0 %v475_v4  ;;  %v483_v12 = vld [vmem:[%s646_s1 + $0x60] sm:$0xff]   ;;  %v487_v16 = vld [vmem:[%s646_s1 + $0x58] sm:$0xff]   ;;  %v491_v20 = vld [vmem:[%s646_s1 + $0x50] sm:$0xff]  }
   0x6   :  { %451 = vmatprep.subr.bf16.mxu1 %v476_v5  ;;  %v484_v13 = vld [vmem:[%s646_s1 + $0xe0] sm:$0xff]   ;;  %v488_v17 = vld [vmem:[%s646_s1 + $0xd8] sm:$0xff]   ;;  %v492_v21 = vld [vmem:[%s646_s1 + $0xd0] sm:$0xff]  }
   0x7   :  { %v485_v14 = vld [vmem:[%s646_s1 + $0x20] sm:$0xff]   ;;  %v489_v18 = vld [vmem:[%s646_s1 + $0x18] sm:$0xff]   ;;  %v493_v22 = vld [vmem:[%s646_s1 + $0x10] sm:$0xff]  }
   0x8   :  { %430 = vmatpush3.bf16.msra.mxu0 %v477_v6  ;;  %v486_v15 = vld [vmem:[%s646_s1 + $0xa0] sm:$0xff]   ;;  %v490_v19 = vld [vmem:[%s646_s1 + $0x98] sm:$0xff]   ;;  %v494_v23 = vld [vmem:[%s646_s1 + $0x90] sm:$0xff]  }
   0x9   :  { %452 = vmatpush3.bf16.msra.mxu1 %v478_v7  ;;  %431 = vmatprep.subr.bf16.mxu0 %v479_v8  ;;  %v495_v24 = vld [vmem:[%s646_s1 + $0x48] sm:$0xff]   ;;  %v499_v28 = vld [vmem:[%s646_s1 + $0x40] sm:$0xff]  }
   0xa   :  { %453 = vmatprep.subr.bf16.mxu1 %v480_v9  ;;  %v496_v25 = vld [vmem:[%s646_s1 + $0xc8] sm:$0xff]   ;;  %v500_v29 = vld [vmem:[%s646_s1 + $0xc0] sm:$0xff]  }
   0xb   :  { %v497_v26 = vld [vmem:[%s646_s1 + $0x8] sm:$0xff]   ;;  %v501_v30 = vld [vmem:[%s646_s1] sm:$0xff]  }
   0xc   :  { %432 = vmatpush3.bf16.msra.mxu0 %v481_v10  ;;  %v498_v27 = vld [vmem:[%s646_s1 + $0x88] sm:$0xff]   ;;  %v502_v31 = vld [vmem:[%s646_s1 + $0x80] sm:$0xff]  }
   0xd   :  { %454 = vmatpush3.bf16.msra.mxu1 %v482_v11  ;;  %433 = vmatprep.subr.bf16.mxu0 %v483_v12  ;;  %v503_v32 = vld [vmem:[%s647_s0] ss:$16 sps:$4 sm:$0xff]   ;;  %v505_v33 = vld [vmem:[%s647_s0 + $0x4] ss:$16 sps:$4 sm:$0xff]   ;;  %v506_v34 = vld [vmem:[%s647_s0 + $0x8] ss:$16 sps:$4 sm:$0xff]  }
   0xe   :  { %455 = vmatprep.subr.bf16.mxu1 %v484_v13  ;;  %v508_v35 = vld [vmem:[%s647_s0 + $0xc] ss:$16 sps:$4 sm:$0xff]   ;;  %334 = vmatprep.mubr.bf16.mxu0 %v505_v33  ;;  %v390_v38 = vld [vmem:[%s648_s2] ss:$0 sm:$0xff] }
   0xf   :  { %375 = vmatprep.mubr.bf16.mxu1 %v508_v35 }
  0x10   :  { %434 = vmatpush3.bf16.msra.mxu0 %v485_v14 }
  0x11   :  { %456 = vmatpush3.bf16.msra.mxu1 %v486_v15  ;;  %435 = vmatprep.subr.bf16.mxu0 %v487_v16 }
  0x12   :  { %457 = vmatprep.subr.bf16.mxu1 %v488_v17 }
  0x14   :  { %436 = vmatpush3.bf16.msra.mxu0 %v489_v18 }
  0x15   :  { %458 = vmatpush3.bf16.msra.mxu1 %v490_v19  ;;  %437 = vmatprep.subr.bf16.mxu0 %v491_v20 }
  0x16   :  { %459 = vmatprep.subr.bf16.mxu1 %v492_v21 }
  0x18   :  { %438 = vmatpush3.bf16.msra.mxu0 %v493_v22 }
  0x19   :  { %460 = vmatpush3.bf16.msra.mxu1 %v494_v23  ;;  %439 = vmatprep.subr.bf16.mxu0 %v495_v24 }
  0x1a   :  { %461 = vmatprep.subr.bf16.mxu1 %v496_v25 }
  0x1c   :  { %440 = vmatpush3.bf16.msra.mxu0 %v497_v26 }
  0x1d   :  { %462 = vmatpush3.bf16.msra.mxu1 %v498_v27  ;;  %441 = vmatprep.subr.bf16.mxu0 %v499_v28 }
  0x1e   :  { %463 = vmatprep.subr.bf16.mxu1 %v500_v29 }
  0x20   :  { %442 = vmatpush3.bf16.msra.mxu0 %v501_v30 }
  0x21   :  { %464 = vmatpush3.bf16.msra.mxu1 %v502_v31 }
  0x23   :  { %335 = vmatmul.mubr.bf16.vlgmr.msra.gmra.mxu0 %v503_v32 }
  0x24   :  { %376 = vmatmul.mubr.bf16.vlgmr.msra.gmra.mxu1 %v506_v34 }
  0xe3   :  { %v443_v36 = vpop.f32.mrf.mxu0 }
  0xe4   :  { %v465_v37 = vpop.f32.mrf.mxu1 }
  0xe5   :  { %v444_v39 = vpop.f32.mrf.mxu0 }
  0xe6   :  { %v445_v40 = vadd.f32 %v444_v39, %v443_v36  ;;  %v466_v41 = vpop.f32.mrf.mxu1 }
  0xe7   :  { %v446_v42 = vpop.f32.mrf.mxu0  ;;  %v467_v44 = vadd.f32 %v466_v41, %v465_v37 }
  0xe8   :  { %v337_v43 = vadd.f32 %v445_v40, %v390_v38  ;;  %v468_v45 = vpop.f32.mrf.mxu1 }
  0xe9   :  { %v447_v46 = vpop.f32.mrf.mxu0 }
  0xea   :  { %v378_v47 = vadd.f32 %v467_v44, %v337_v43  ;;  %v448_v48 = vadd.f32 %v447_v46, %v446_v42  ;;  %v469_v49 = vpop.f32.mrf.mxu1 }
  0xeb   :  { %v470_v51 = vadd.f32 %v469_v49, %v468_v45 }
  0xec   :  { %384 = vst [vmem:[%s649_s3] sm:$0xff] %v378_v47  ;;  %v340_v50 = vadd.f32 %v448_v48, %v390_v38 }
  0xee   :  { %v381_v52 = vadd.f32 %v470_v51, %v340_v50 }
  0xf0   :  { %385 = vst [vmem:[%s649_s3 + $0x8] sm:$0xff] %v381_v52 }

// kernel: patchgan_discriminator_forward.8
= control target key start
LH: loop header
LB: loop body
LE: loop exit
PB: predicated region body
PF: predicated region fallthrough
CT: control target
= control target key end

     0   :  { %s11743_s12 = smov 0   ;;  %s15201_s0 = inlined_call_operand.vmem [shape: bf16[2,17,1024], index: 0, kind: input, shape index: {}]   ;;  %s15202_s1 = inlined_call_operand.vmem [shape: bf16[4,1024,512], index: 1, kind: input, shape index: {}]   ;;  %s15203_s2 = inlined_call_operand.vmem [shape: f32[1,6], index: 2, kind: input, shape index: {}]   ;;  %s15204_s3 = inlined_call_operand.vmem [shape: bf16[2,6,512], index: 3, kind: output, shape index: {}]  }
   0x1 LB: > { %s8313_s13 = sadd.s32 4294967295, %s11720_s12   ;;  %p8317_p0 = scmp.ge.s32.totalorder %s11720_s12, 1  ;;  %s11720_s12 = sphi %s11743_s12, %s13_s12  }
   0x2   : > { %p137_p1 = scmp.lt.s32.totalorder %s11720_s12, 3 }
   0x4   : > { %p138_p2 = pnand %p8317_p0, %p137_p1 }
   0x5   : > { %p161_p3 = scmp.lt.s32.totalorder (!%p138_p2), %s8313_s13, 1 }
   0x6   : > { %141 = sbr.rel (%p138_p2) target bundleno = 1471 (0x5bf), region = 32 }
   0xb   : > { %v10158_v0 = vld [vmem:[%s15202_s1 + $0x8e4] ss:$16 sps:$4 sm:$0xff]   ;;  %v10162_v2 = vld [vmem:[%s15202_s1 + $0x8e0] ss:$16 sps:$4 sm:$0xff]   ;;  %s15206_s13 = smov (!%p161_p3, %s8313_s13), 1  ;;  %vm7851_vm0 = vcmask 1045504  }
   0xc   : > { %v10160_v1 = vld [vmem:[%s15202_s1 + $0xae4] ss:$16 sps:$4 sm:$0xff]   ;;  %2056 = vmatprep.subr.bf16.mxu0 %v10158_v0  ;;  %v10163_v3 = vld [vmem:[%s15202_s1 + $0xae0] ss:$16 sps:$4 sm:$0xff]   ;;  %s10148_s17 = smul.u32 96, %s15206_s13  ;;  %vm7847_vm1 = vcmask 48128  }
   0xd   : > { %2097 = vmatprep.subr.bf16.mxu1 %v10160_v1  ;;  %v10164_v4 = vld [vmem:[%s15202_s1 + $0x8c4] ss:$16 sps:$4 sm:$0xff]   ;;  %2057 = vmatpush1.bf16.msra.mxu0 %v10162_v2  ;;  %v10168_v6 = vld [vmem:[%s15202_s1 + $0x8c0] ss:$16 sps:$4 sm:$0xff]   ;;  %s10145_s9 = sshll.u32 %s15206_s13, 4 }
   0xe   : > { %2098 = vmatpush1.bf16.msra.mxu1 %v10163_v3  ;;  %v10166_v5 = vld [vmem:[%s15202_s1 + $0xac4] ss:$16 sps:$4 sm:$0xff]   ;;  %2058 = vmatprep.subr.bf16.mxu0 %v10164_v4  ;;  %v10169_v7 = vld [vmem:[%s15202_s1 + $0xac0] ss:$16 sps:$4 sm:$0xff]   ;;  %s11893_s30 = scalar_lea.vmem %s15201_s0, %s10148_s17  ;;  %s15192_s14 = scalar_lea.vmem %s15204_s3, %s10145_s9 }
   0xf   : > { %2099 = vmatprep.subr.bf16.mxu1 %v10166_v5  ;;  %v10170_v8 = vld [vmem:[%s15202_s1 + $0x8a4] ss:$16 sps:$4 sm:$0xff]   ;;  %v10174_v10 = vld [vmem:[%s15202_s1 + $0x8a0] ss:$16 sps:$4 sm:$0xff]   ;;  %v172_v49 = vld [vmem:[%s11893_s30 + $0x8] sm:$0xff] }
  0x10   : > { %v10172_v9 = vld [vmem:[%s15202_s1 + $0xaa4] ss:$16 sps:$4 sm:$0xff]   ;;  %v10175_v11 = vld [vmem:[%s15202_s1 + $0xaa0] ss:$16 sps:$4 sm:$0xff]   ;;  %v11914_v52 = vcombine.high %v172_v49, %v172_v49  ;;  %v11942_v3 = vcombine.low %v172_v49, %v172_v49 }
  0x11   : > { %2059 = vmatpush1.bf16.msra.mxu0 %v10168_v6  ;;  %v10176_v12 = vld [vmem:[%s15202_s1 + $0x884] ss:$16 sps:$4 sm:$0xff]   ;;  %v10180_v14 = vld [vmem:[%s15202_s1 + $0x880] ss:$16 sps:$4 sm:$0xff]  }
  0x12   : > { %2100 = vmatpush1.bf16.msra.mxu1 %v10169_v7  ;;  %2060 = vmatprep.subr.bf16.mxu0 %v10170_v8  ;;  %v10178_v13 = vld [vmem:[%s15202_s1 + $0xa84] ss:$16 sps:$4 sm:$0xff]   ;;  %v10181_v15 = vld [vmem:[%s15202_s1 + $0xa80] ss:$16 sps:$4 sm:$0xff]   ;;  %v734_v56 = vshrl.u32 %v11914_v52, 16  ;;  %v736_v57 = vshll.u32 %v11914_v52, 16 }
  0x13   : > { %2101 = vmatprep.subr.bf16.mxu1 %v10172_v9  ;;  %v10182_v16 = vld [vmem:[%s15202_s1 + $0x864] ss:$16 sps:$4 sm:$0xff]   ;;  %v10186_v18 = vld [vmem:[%s15202_s1 + $0x860] ss:$16 sps:$4 sm:$0xff]   ;;  %v729_v9 = vshll.u32 %v11942_v3, 16 }
  0x14   : > { %v10184_v17 = vld [vmem:[%s15202_s1 + $0xa64] ss:$16 sps:$4 sm:$0xff]   ;;  %v10187_v19 = vld [vmem:[%s15202_s1 + $0xa60] ss:$16 sps:$4 sm:$0xff]   ;;  %v738_v61 = vrot.slane %v736_v57, 1 }
  0x15   : > { %2061 = vmatpush1.bf16.msra.mxu0 %v10174_v10  ;;  %v10188_v20 = vld [vmem:[%s15202_s1 + $0x844] ss:$16 sps:$4 sm:$0xff]   ;;  %v10192_v22 = vld [vmem:[%s15202_s1 + $0x840] ss:$16 sps:$4 sm:$0xff]  }
  0x16   : > { %2102 = vmatpush1.bf16.msra.mxu1 %v10175_v11  ;;  %2062 = vmatprep.subr.bf16.mxu0 %v10176_v12  ;;  %v10190_v21 = vld [vmem:[%s15202_s1 + $0xa44] ss:$16 sps:$4 sm:$0xff]   ;;  %v10193_v23 = vld [vmem:[%s15202_s1 + $0xa40] ss:$16 sps:$4 sm:$0xff]   ;;  %v11937_v1 = vor.u32 %v738_v61, %v734_v56 }
  0x17   : > { %2103 = vmatprep.subr.bf16.mxu1 %v10178_v13  ;;  %v10194_v24 = vld [vmem:[%s15202_s1 + $0x824] ss:$16 sps:$4 sm:$0xff]   ;;  %v10198_v26 = vld [vmem:[%s15202_s1 + $0x820] ss:$16 sps:$4 sm:$0xff]  }
  0x18   : > { %v10196_v25 = vld [vmem:[%s15202_s1 + $0xa24] ss:$16 sps:$4 sm:$0xff]   ;;  %v10199_v27 = vld [vmem:[%s15202_s1 + $0xa20] ss:$16 sps:$4 sm:$0xff]   ;;  %2129 = vmatprep.mubr.bf16.mxu1 %v11937_v1 }
  0x19   : > { %2063 = vmatpush1.bf16.msra.mxu0 %v10180_v14  ;;  %v10200_v28 = vld [vmem:[%s15202_s1 + $0x804] ss:$16 sps:$4 sm:$0xff]   ;;  %v10204_v30 = vld [vmem:[%s15202_s1 + $0x800] ss:$16 sps:$4 sm:$0xff]  }
  0x1a   : > { %2104 = vmatpush1.bf16.msra.mxu1 %v10181_v15  ;;  %2064 = vmatprep.subr.bf16.mxu0 %v10182_v16  ;;  %v10202_v29 = vld [vmem:[%s15202_s1 + $0xa04] ss:$16 sps:$4 sm:$0xff]   ;;  %v10205_v31 = vld [vmem:[%s15202_s1 + $0xa00] ss:$16 sps:$4 sm:$0xff]   ;;  %v727_v16 = vshrl.u32 %v11942_v3, 16 }
  0x1b   : > { %2105 = vmatprep.subr.bf16.mxu1 %v10184_v17  ;;  %v10206_v32 = vld [vmem:[%s15202_s1 + $0x9e4] ss:$16 sps:$4 sm:$0xff]   ;;  %v10210_v34 = vld [vmem:[%s15202_s1 + $0x9e0] ss:$16 sps:$4 sm:$0xff]   ;;  %v731_v17 = vrot.slane %v729_v9, 1 }
  0x1c   : > { %v10208_v33 = vld [vmem:[%s15202_s1 + $0xbe4] ss:$16 sps:$4 sm:$0xff]   ;;  %v10211_v35 = vld [vmem:[%s15202_s1 + $0xbe0] ss:$16 sps:$4 sm:$0xff]  }
  0x1d   : > { %2065 = vmatpush1.bf16.msra.mxu0 %v10186_v18  ;;  %v10212_v36 = vld [vmem:[%s15202_s1 + $0x9c4] ss:$16 sps:$4 sm:$0xff]   ;;  %v10216_v38 = vld [vmem:[%s15202_s1 + $0x9c0] ss:$16 sps:$4 sm:$0xff]  }
  0x1e   : > { %2106 = vmatpush1.bf16.msra.mxu1 %v10187_v19  ;;  %2066 = vmatprep.subr.bf16.mxu0 %v10188_v20  ;;  %v10214_v37 = vld [vmem:[%s15202_s1 + $0xbc4] ss:$16 sps:$4 sm:$0xff]   ;;  %v10217_v39 = vld [vmem:[%s15202_s1 + $0xbc0] ss:$16 sps:$4 sm:$0xff]  }
  0x1f   : > { %2107 = vmatprep.subr.bf16.mxu1 %v10190_v21  ;;  %v10218_v40 = vld [vmem:[%s15202_s1 + $0x9a4] ss:$16 sps:$4 sm:$0xff]   ;;  %v10222_v42 = vld [vmem:[%s15202_s1 + $0x9a0] ss:$16 sps:$4 sm:$0xff]  }
  0x20   : > { %v10220_v41 = vld [vmem:[%s15202_s1 + $0xba4] ss:$16 sps:$4 sm:$0xff]   ;;  %v10223_v43 = vld [vmem:[%s15202_s1 + $0xba0] ss:$16 sps:$4 sm:$0xff]  }
  0x21   : > { %2067 = vmatpush1.bf16.msra.mxu0 %v10192_v22  ;;  %v10224_v44 = vld [vmem:[%s15202_s1 + $0x984] ss:$16 sps:$4 sm:$0xff]   ;;  %v10228_v46 = vld [vmem:[%s15202_s1 + $0x980] ss:$16 sps:$4 sm:$0xff]  }
  0x22   : > { %2108 = vmatpush1.bf16.msra.mxu1 %v10193_v23  ;;  %2068 = vmatprep.subr.bf16.mxu0 %v10194_v24  ;;  %v10226_v45 = vld [vmem:[%s15202_s1 + $0xb84] ss:$16 sps:$4 sm:$0xff]   ;;  %v10229_v50 = vld [vmem:[%s15202_s1 + $0xb80] ss:$16 sps:$4 sm:$0xff]   ;;  %v11987_v23 = vor.u32 %v731_v17, %v727_v16 }
  0x23   : > { %2109 = vmatprep.subr.bf16.mxu1 %v10196_v25  ;;  %v171_v47 = vld [vmem:[%s11893_s30] sm:$0xff] }
  0x24   : > { %v11905_v48 = vcombine.high %v171_v47, %v171_v47  ;;  %v10230_v51 = vld [vmem:[%s15202_s1 + $0x964] ss:$16 sps:$4 sm:$0xff]   ;;  %v10234_v59 = vld [vmem:[%s15202_s1 + $0x960] ss:$16 sps:$4 sm:$0xff]   ;;  %v11940_v2 = vcombine.low %v171_v47, %v171_v47 }
  0x25   : > { %2069 = vmatpush1.bf16.msra.mxu0 %v10198_v26  ;;  %v10232_v53 = vld [vmem:[%s15202_s1 + $0xb64] ss:$16 sps:$4 sm:$0xff]   ;;  %v10235_v60 = vld [vmem:[%s15202_s1 + $0xb60] ss:$16 sps:$4 sm:$0xff]  }
  0x26   : > { %2110 = vmatpush1.bf16.msra.mxu1 %v10199_v27  ;;  %2070 = vmatprep.subr.bf16.mxu0 %v10200_v28  ;;  %v720_v54 = vshrl.u32 %v11905_v48, 16  ;;  %v722_v55 = vshll.u32 %v11905_v48, 16  ;;  %v10236_v62 = vld [vmem:[%s15202_s1 + $0x944] ss:$16 sps:$4 sm:$0xff]   ;;  %v10240_v4 = vld [vmem:[%s15202_s1 + $0x940] ss:$16 sps:$4 sm:$0xff]  }
  0x27   : > { %2111 = vmatprep.subr.bf16.mxu1 %v10202_v29  ;;  %v10238_v63 = vld [vmem:[%s15202_s1 + $0xb44] ss:$16 sps:$4 sm:$0xff]   ;;  %v10241_v5 = vld [vmem:[%s15202_s1 + $0xb40] ss:$16 sps:$4 sm:$0xff]   ;;  %v715_v8 = vshll.u32 %v11940_v2, 16  ;;  %v713_v14 = vshrl.u32 %v11940_v2, 16 }
  0x28   : > { %v724_v58 = vrot.slane %v722_v55, 1  ;;  %v10242_v6 = vld [vmem:[%s15202_s1 + $0x924] ss:$16 sps:$4 sm:$0xff]   ;;  %v10246_v10 = vld [vmem:[%s15202_s1 + $0x920] ss:$16 sps:$4 sm:$0xff]  }
  0x29   : > { %2071 = vmatpush1.bf16.msra.mxu0 %v10204_v30  ;;  %v10244_v7 = vld [vmem:[%s15202_s1 + $0xb24] ss:$16 sps:$4 sm:$0xff]   ;;  %v10247_v11 = vld [vmem:[%s15202_s1 + $0xb20] ss:$16 sps:$4 sm:$0xff]   ;;  %v717_v15 = vrot.slane %v715_v8, 1 }
  0x2a   : > { %2112 = vmatpush1.bf16.msra.mxu1 %v10205_v31  ;;  %2072 = vmatprep.subr.bf16.mxu0 %v10206_v32  ;;  %v11935_v0 = vor.u32 %v724_v58, %v720_v54  ;;  %v10248_v12 = vld [vmem:[%s15202_s1 + $0x904] ss:$16 sps:$4 sm:$0xff]   ;;  %v10252_v18 = vld [vmem:[%s15202_s1 + $0x900] ss:$16 sps:$4 sm:$0xff]  }
  0x2b   : > { %2113 = vmatprep.subr.bf16.mxu1 %v10208_v33  ;;  %v10250_v13 = vld [vmem:[%s15202_s1 + $0xb04] ss:$16 sps:$4 sm:$0xff]   ;;  %v10253_v19 = vld [vmem:[%s15202_s1 + $0xb00] ss:$16 sps:$4 sm:$0xff]   ;;  %v11985_v22 = vor.u32 %v717_v15, %v713_v14 }
  0x2c   : > { %2088 = vmatprep.mubr.bf16.mxu0 %v11935_v0  ;;  %v10260_v20 = vld [vmem:[%s15202_s1 + $0xce4] ss:$16 sps:$4 sm:$0xff]   ;;  %v10258_v24 = vld [vmem:[%s15202_s1 + $0xce0] ss:$16 sps:$4 sm:$0xff]  }
  0x2d   : > { %2073 = vmatpush2.bf16.msra.mxu0 %v10210_v34  ;;  %v10263_v21 = vld [vmem:[%s15202_s1 + $0xee4] ss:$16 sps:$4 sm:$0xff]   ;;  %v10261_v25 = vld [vmem:[%s15202_s1 + $0xee0] ss:$16 sps:$4 sm:$0xff]  }
  0x2e   : > { %2114 = vmatpush2.bf16.msra.mxu1 %v10211_v35  ;;  %2074 = vmatprep.subr.bf16.mxu0 %v10212_v36  ;;  %v10266_v26 = vld [vmem:[%s15202_s1 + $0xcc4] ss:$16 sps:$4 sm:$0xff]   ;;  %v10264_v28 = vld [vmem:[%s15202_s1 + $0xcc0] ss:$16 sps:$4 sm:$0xff]  }
  0x2f   : > { %2115 = vmatprep.subr.bf16.mxu1 %v10214_v37  ;;  %v10269_v27 = vld [vmem:[%s15202_s1 + $0xec4] ss:$16 sps:$4 sm:$0xff]   ;;  %v10267_v29 = vld [vmem:[%s15202_s1 + $0xec0] ss:$16 sps:$4 sm:$0xff]  }
  0x30   : > { %v10272_v30 = vld [vmem:[%s15202_s1 + $0xca4] ss:$16 sps:$4 sm:$0xff]   ;;  %v10270_v32 = vld [vmem:[%s15202_s1 + $0xca0] ss:$16 sps:$4 sm:$0xff]  }
  0x31   : > { %2075 = vmatpush2.bf16.msra.mxu0 %v10216_v38  ;;  %v10275_v31 = vld [vmem:[%s15202_s1 + $0xea4] ss:$16 sps:$4 sm:$0xff]   ;;  %v10273_v33 = vld [vmem:[%s15202_s1 + $0xea0] ss:$16 sps:$4 sm:$0xff]  }
  0x32   : > { %2116 = vmatpush2.bf16.msra.mxu1 %v10217_v39  ;;  %2076 = vmatprep.subr.bf16.mxu0 %v10218_v40  ;;  %v10278_v34 = vld [vmem:[%s15202_s1 + $0xc84] ss:$16 sps:$4 sm:$0xff]   ;;  %v10276_v36 = vld [vmem:[%s15202_s1 + $0xc80] ss:$16 sps:$4 sm:$0xff]  }
  0x33   : > { %2117 = vmatprep.subr.bf16.mxu1 %v10220_v41  ;;  %v10281_v35 = vld [vmem:[%s15202_s1 + $0xe84] ss:$16 sps:$4 sm:$0xff]   ;;  %v10279_v37 = vld [vmem:[%s15202_s1 + $0xe80] ss:$16 sps:$4 sm:$0xff]  }
  0x34   : > { %v10284_v38 = vld [vmem:[%s15202_s1 + $0xc64] ss:$16 sps:$4 sm:$0xff]   ;;  %v10282_v40 = vld [vmem:[%s15202_s1 + $0xc60] ss:$16 sps:$4 sm:$0xff]  }
  0x35   : > { %2077 = vmatpush2.bf16.msra.mxu0 %v10222_v42  ;;  %v10287_v39 = vld [vmem:[%s15202_s1 + $0xe64] ss:$16 sps:$4 sm:$0xff]   ;;  %v10285_v41 = vld [vmem:[%s15202_s1 + $0xe60] ss:$16 sps:$4 sm:$0xff]  }
  0x36   : > { %2118 = vmatpush2.bf16.msra.mxu1 %v10223_v43  ;;  %2078 = vmatprep.subr.bf16.mxu0 %v10224_v44  ;;  %v10290_v42 = vld [vmem:[%s15202_s1 + $0xc44] ss:$16 sps:$4 sm:$0xff]   ;;  %v10288_v44 = vld [vmem:[%s15202_s1 + $0xc40] ss:$16 sps:$4 sm:$0xff]  }
  0x37   : > { %2119 = vmatprep.subr.bf16.mxu1 %v10226_v45  ;;  %v10293_v43 = vld [vmem:[%s15202_s1 + $0xe44] ss:$16 sps:$4 sm:$0xff]   ;;  %v10291_v45 = vld [vmem:[%s15202_s1 + $0xe40] ss:$16 sps:$4 sm:$0xff]  }
  0x38   : > { %v10299_v47 = vld [vmem:[%s15202_s1 + $0xe24] ss:$16 sps:$4 sm:$0xff]   ;;  %v10294_v49 = vld [vmem:[%s15202_s1 + $0xc20] ss:$16 sps:$4 sm:$0xff]  }
  0x39   : > { %2079 = vmatpush2.bf16.msra.mxu0 %v10228_v46  ;;  %v10296_v46 = vld [vmem:[%s15202_s1 + $0xc24] ss:$16 sps:$4 sm:$0xff]   ;;  %v10312_v14 = vld [vmem:[%s15202_s1 + $0xdc0] ss:$16 sps:$4 sm:$0xff]  }
  0x3a   : > { %2120 = vmatpush2.bf16.msra.mxu1 %v10229_v50  ;;  %2080 = vmatprep.subr.bf16.mxu0 %v10230_v51  ;;  %v10297_v50 = vld [vmem:[%s15202_s1 + $0xe20] ss:$16 sps:$4 sm:$0xff]   ;;  %v10302_v54 = vld [vmem:[%s15202_s1 + $0xc04] ss:$16 sps:$4 sm:$0xff]  }
  0x3b   : > { %2121 = vmatprep.subr.bf16.mxu1 %v10232_v53  ;;  %v12070_v51 = vld [vmem:[%s11893_s30 + $0x10] sm:$0xff]  ;;  %v12073_v53 = vld [vmem:[%s11893_s30 + $0x18] sm:$0xff] }
  0x3c   : > { %v12080_v55 = vcombine.high %v12070_v51, %v12070_v51  ;;  %v12084_v56 = vcombine.high %v12073_v53, %v12073_v53  ;;  %v10305_v57 = vld [vmem:[%s15202_s1 + $0xe04] ss:$16 sps:$4 sm:$0xff]   ;;  %v10315_v15 = vld [vmem:[%s15202_s1 + $0xfc0] ss:$16 sps:$4 sm:$0xff]  }
  0x3d   : > { %2081 = vmatpush2.bf16.msra.mxu0 %v10234_v59  ;;  %v10320_v16 = vld [vmem:[%s15202_s1 + $0xda4] ss:$16 sps:$4 sm:$0xff]  }
  0x3e   : > { %2122 = vmatpush2.bf16.msra.mxu1 %v10235_v60  ;;  %2082 = vmatprep.subr.bf16.mxu0 %v10236_v62  ;;  %v748_v58 = vshrl.u32 %v12080_v55, 16  ;;  %v750_v59 = vshll.u32 %v12080_v55, 16  ;;  %v762_v60 = vshrl.u32 %v12084_v56, 16  ;;  %v764_v61 = vshll.u32 %v12084_v56, 16  ;;  %v10300_v62 = vld [vmem:[%s15202_s1 + $0xc00] ss:$16 sps:$4 sm:$0xff]  }
  0x3f   : > { %2123 = vmatprep.subr.bf16.mxu1 %v10238_v63  ;;  %v10303_v63 = vld [vmem:[%s15202_s1 + $0xe00] ss:$16 sps:$4 sm:$0xff]   ;;  %v10323_v17 = vld [vmem:[%s15202_s1 + $0xfa4] ss:$16 sps:$4 sm:$0xff]  }
  0x41   : > { %2083 = vmatpush2.bf16.msra.mxu0 %v10240_v4  ;;  %v10308_v4 = vld [vmem:[%s15202_s1 + $0xde4] ss:$16 sps:$4 sm:$0xff]  }
  0x42   : > { %2124 = vmatpush2.bf16.msra.mxu1 %v10241_v5  ;;  %2084 = vmatprep.subr.bf16.mxu0 %v10242_v6  ;;  %v752_v5 = vrot.slane %v750_v59, 1  ;;  %v766_v6 = vrot.slane %v764_v61, 1  ;;  %v10361_v59 = vld [vmem:[%s15202_s1 + $0xae8] ss:$16 sps:$4 sm:$0xff]   ;;  %v10369_v61 = vld [vmem:[%s15202_s1 + $0xacc] ss:$16 sps:$4 sm:$0xff]  }
  0x43   : > { %2125 = vmatprep.subr.bf16.mxu1 %v10244_v7  ;;  %v10311_v7 = vld [vmem:[%s15202_s1 + $0xfe4] ss:$16 sps:$4 sm:$0xff]  }
  0x44   : > { %v12105_v8 = vor.u32 %v752_v5, %v748_v58  ;;  %v12107_v9 = vor.u32 %v766_v6, %v762_v60  ;;  %v10358_v58 = vld [vmem:[%s15202_s1 + $0x8e8] ss:$16 sps:$4 sm:$0xff]   ;;  %v10366_v60 = vld [vmem:[%s15202_s1 + $0x8cc] ss:$16 sps:$4 sm:$0xff]  }
  0x45   : > { %2085 = vmatpush2.bf16.msra.mxu0 %v10246_v10  ;;  %v10306_v10 = vld [vmem:[%s15202_s1 + $0xde0] ss:$16 sps:$4 sm:$0xff]   ;;  %v10375_v5 = vld [vmem:[%s15202_s1 + $0xaac] ss:$16 sps:$4 sm:$0xff]   ;;  %v10370_v6 = vld [vmem:[%s15202_s1 + $0x8a8] ss:$16 sps:$4 sm:$0xff]  }
  0x46   : > { %2126 = vmatpush2.bf16.msra.mxu1 %v10247_v11  ;;  %2086 = vmatprep.subr.bf16.mxu0 %v10248_v12  ;;  %v10309_v11 = vld [vmem:[%s15202_s1 + $0xfe0] ss:$16 sps:$4 sm:$0xff]   ;;  %v10314_v12 = vld [vmem:[%s15202_s1 + $0xdc4] ss:$16 sps:$4 sm:$0xff]  }
  0x47   : > { %2127 = vmatprep.subr.bf16.mxu1 %v10250_v13  ;;  %v10317_v13 = vld [vmem:[%s15202_s1 + $0xfc4] ss:$16 sps:$4 sm:$0xff]  }
  0x49   : > { %2087 = vmatpush2.bf16.msra.mxu0 %v10252_v18  ;;  %v10318_v18 = vld [vmem:[%s15202_s1 + $0xda0] ss:$16 sps:$4 sm:$0xff]  }
  0x4a   : > { %2128 = vmatpush2.bf16.msra.mxu1 %v10253_v19  ;;  %2138 = vmatprep.subr.bf16.mxu0 %v10260_v20  ;;  %v10321_v19 = vld [vmem:[%s15202_s1 + $0xfa0] ss:$16 sps:$4 sm:$0xff]   ;;  %v10326_v20 = vld [vmem:[%s15202_s1 + $0xd84] ss:$16 sps:$4 sm:$0xff]  }
  0x4b   : > { %2179 = vmatprep.subr.bf16.mxu1 %v10263_v21  ;;  %v10329_v21 = vld [vmem:[%s15202_s1 + $0xf84] ss:$16 sps:$4 sm:$0xff]  }
  0x4c   : > { %2089 = vmatmul.mubr.bf16.vlgmr.msra.gmra.mxu0 %v11985_v22 }
  0x4d   : > { %2130 = vmatmul.mubr.bf16.vlgmr.msra.gmra.mxu1 %v11987_v23  ;;  %2139 = vmatpush1.bf16.msra.mxu0 %v10258_v24  ;;  %v10324_v24 = vld [vmem:[%s15202_s1 + $0xd80] ss:$16 sps:$4 sm:$0xff]  }
  0x4e   : > { %2180 = vmatpush1.bf16.msra.mxu1 %v10261_v25  ;;  %2140 = vmatprep.subr.bf16.mxu0 %v10266_v26  ;;  %v10327_v25 = vld [vmem:[%s15202_s1 + $0xf80] ss:$16 sps:$4 sm:$0xff]   ;;  %v10332_v26 = vld [vmem:[%s15202_s1 + $0xd64] ss:$16 sps:$4 sm:$0xff]  }
  0x4f   : > { %2181 = vmatprep.subr.bf16.mxu1 %v10269_v27  ;;  %2170 = vmatprep.mubr.bf16.mxu0 %v12105_v8  ;;  %v10335_v27 = vld [vmem:[%s15202_s1 + $0xf64] ss:$16 sps:$4 sm:$0xff]  }
  0x50   : > { %2211 = vmatprep.mubr.bf16.mxu1 %v12107_v9 }
  0x51   : > { %2141 = vmatpush1.bf16.msra.mxu0 %v10264_v28  ;;  %v10330_v28 = vld [vmem:[%s15202_s1 + $0xd60] ss:$16 sps:$4 sm:$0xff]  }
  0x52   : > { %2182 = vmatpush1.bf16.msra.mxu1 %v10267_v29  ;;  %2142 = vmatprep.subr.bf16.mxu0 %v10272_v30  ;;  %v10333_v29 = vld [vmem:[%s15202_s1 + $0xf60] ss:$16 sps:$4 sm:$0xff]   ;;  %v10338_v30 = vld [vmem:[%s15202_s1 + $0xd44] ss:$16 sps:$4 sm:$0xff]  }
  0x53   : > { %2183 = vmatprep.subr.bf16.mxu1 %v10275_v31  ;;  %v10341_v31 = vld [vmem:[%s15202_s1 + $0xf44] ss:$16 sps:$4 sm:$0xff]  }
  0x55   : > { %2143 = vmatpush1.bf16.msra.mxu0 %v10270_v32  ;;  %v10336_v32 = vld [vmem:[%s15202_s1 + $0xd40] ss:$16 sps:$4 sm:$0xff]  }
  0x56   : > { %2184 = vmatpush1.bf16.msra.mxu1 %v10273_v33  ;;  %2144 = vmatprep.subr.bf16.mxu0 %v10278_v34  ;;  %v10339_v33 = vld [vmem:[%s15202_s1 + $0xf40] ss:$16 sps:$4 sm:$0xff]   ;;  %v12179_v34 = vcombine.low %v12070_v51, %v12070_v51  ;;  %v10360_v51 = vld [vmem:[%s15202_s1 + $0x8ec] ss:$16 sps:$4 sm:$0xff]  }
  0x57   : > { %2185 = vmatprep.subr.bf16.mxu1 %v10281_v35  ;;  %v12183_v35 = vcombine.low %v12073_v53, %v12073_v53  ;;  %v10363_v53 = vld [vmem:[%s15202_s1 + $0xaec] ss:$16 sps:$4 sm:$0xff]  }
  0x59   : > { %2145 = vmatpush1.bf16.msra.mxu0 %v10276_v36  ;;  %v10344_v36 = vld [vmem:[%s15202_s1 + $0xd24] ss:$16 sps:$4 sm:$0xff]  }
  0x5a   : > { %2186 = vmatpush1.bf16.msra.mxu1 %v10279_v37  ;;  %2146 = vmatprep.subr.bf16.mxu0 %v10284_v38  ;;  %v10347_v37 = vld [vmem:[%s15202_s1 + $0xf24] ss:$16 sps:$4 sm:$0xff]   ;;  %v10342_v38 = vld [vmem:[%s15202_s1 + $0xd20] ss:$16 sps:$4 sm:$0xff]  }
  0x5b   : > { %2187 = vmatprep.subr.bf16.mxu1 %v10287_v39  ;;  %v10345_v39 = vld [vmem:[%s15202_s1 + $0xf20] ss:$16 sps:$4 sm:$0xff]  }
  0x5d   : > { %2147 = vmatpush1.bf16.msra.mxu0 %v10282_v40  ;;  %v743_v40 = vshll.u32 %v12179_v34, 16 }
  0x5e   : > { %2188 = vmatpush1.bf16.msra.mxu1 %v10285_v41  ;;  %2148 = vmatprep.subr.bf16.mxu0 %v10290_v42  ;;  %v757_v41 = vshll.u32 %v12183_v35, 16  ;;  %v10350_v42 = vld [vmem:[%s15202_s1 + $0xd04] ss:$16 sps:$4 sm:$0xff]  }
  0x5f   : > { %2189 = vmatprep.subr.bf16.mxu1 %v10293_v43  ;;  %v10353_v43 = vld [vmem:[%s15202_s1 + $0xf04] ss:$16 sps:$4 sm:$0xff]  }
  0x61   : > { %2149 = vmatpush1.bf16.msra.mxu0 %v10288_v44  ;;  %v10348_v44 = vld [vmem:[%s15202_s1 + $0xd00] ss:$16 sps:$4 sm:$0xff]  }
  0x62   : > { %2190 = vmatpush1.bf16.msra.mxu1 %v10291_v45  ;;  %2150 = vmatprep.subr.bf16.mxu0 %v10296_v46  ;;  %v10351_v45 = vld [vmem:[%s15202_s1 + $0xf00] ss:$16 sps:$4 sm:$0xff]   ;;  %v741_v46 = vshrl.u32 %v12179_v34, 16 }
  0x63   : > { %2191 = vmatprep.subr.bf16.mxu1 %v10299_v47  ;;  %v745_v47 = vrot.slane %v743_v40, 1  ;;  %v10420_v40 = vld [vmem:[%s15202_s1 + $0x9ac] ss:$16 sps:$4 sm:$0xff]  }
  0x65   : > { %2151 = vmatpush1.bf16.msra.mxu0 %v10294_v49  ;;  %v755_v49 = vshrl.u32 %v12183_v35, 16 }
  0x66   : > { %2192 = vmatpush1.bf16.msra.mxu1 %v10297_v50  ;;  %2152 = vmatprep.subr.bf16.mxu0 %v10302_v54  ;;  %v759_v50 = vrot.slane %v757_v41, 1  ;;  %v12219_v54 = vor.u32 %v745_v47, %v741_v46  ;;  %v10423_v41 = vld [vmem:[%s15202_s1 + $0xbac] ss:$16 sps:$4 sm:$0xff]   ;;  %v10424_v46 = vld [vmem:[%s15202_s1 + $0x988] ss:$16 sps:$4 sm:$0xff]  }
  0x67   : > { %2193 = vmatprep.subr.bf16.mxu1 %v10305_v57  ;;  %v10427_v47 = vld [vmem:[%s15202_s1 + $0xb88] ss:$16 sps:$4 sm:$0xff]  }
  0x68   : > { %v12221_v57 = vor.u32 %v759_v50, %v755_v49  ;;  %v10432_v49 = vld [vmem:[%s15202_s1 + $0x96c] ss:$16 sps:$4 sm:$0xff]  }
  0x69   : > { %2153 = vmatpush1.bf16.msra.mxu0 %v10300_v62  ;;  %v10364_v62 = vld [vmem:[%s15202_s1 + $0x8c8] ss:$16 sps:$4 sm:$0xff]   ;;  %v10435_v50 = vld [vmem:[%s15202_s1 + $0xb6c] ss:$16 sps:$4 sm:$0xff]  }
  0x6a   : > { %2194 = vmatpush1.bf16.msra.mxu1 %v10303_v63  ;;  %2154 = vmatprep.subr.bf16.mxu0 %v10308_v4  ;;  %v10367_v63 = vld [vmem:[%s15202_s1 + $0xac8] ss:$16 sps:$4 sm:$0xff]   ;;  %v10372_v4 = vld [vmem:[%s15202_s1 + $0x8ac] ss:$16 sps:$4 sm:$0xff]  }
  0x6b   : > { %2195 = vmatprep.subr.bf16.mxu1 %v10311_v7  ;;  %v10373_v7 = vld [vmem:[%s15202_s1 + $0xaa8] ss:$16 sps:$4 sm:$0xff]  }
  0x6d   : > { %2155 = vmatpush2.bf16.msra.mxu0 %v10306_v10  ;;  %v10378_v10 = vld [vmem:[%s15202_s1 + $0x88c] ss:$16 sps:$4 sm:$0xff]  }
  0x6e   : > { %2196 = vmatpush2.bf16.msra.mxu1 %v10309_v11  ;;  %2156 = vmatprep.subr.bf16.mxu0 %v10314_v12  ;;  %v10379_v11 = vld [vmem:[%s15202_s1 + $0xa88] ss:$16 sps:$4 sm:$0xff]   ;;  %v10384_v12 = vld [vmem:[%s15202_s1 + $0x86c] ss:$16 sps:$4 sm:$0xff]  }
  0x6f   : > { %2197 = vmatprep.subr.bf16.mxu1 %v10317_v13  ;;  %v10387_v13 = vld [vmem:[%s15202_s1 + $0xa6c] ss:$16 sps:$4 sm:$0xff]  }
  0x71   : > { %2157 = vmatpush2.bf16.msra.mxu0 %v10312_v14  ;;  %v10382_v14 = vld [vmem:[%s15202_s1 + $0x868] ss:$16 sps:$4 sm:$0xff]  }
  0x72   : > { %2198 = vmatpush2.bf16.msra.mxu1 %v10315_v15  ;;  %2158 = vmatprep.subr.bf16.mxu0 %v10320_v16  ;;  %v10385_v15 = vld [vmem:[%s15202_s1 + $0xa68] ss:$16 sps:$4 sm:$0xff]   ;;  %v10390_v16 = vld [vmem:[%s15202_s1 + $0x84c] ss:$16 sps:$4 sm:$0xff]  }
  0x73   : > { %2199 = vmatprep.subr.bf16.mxu1 %v10323_v17  ;;  %v10393_v17 = vld [vmem:[%s15202_s1 + $0xa4c] ss:$16 sps:$4 sm:$0xff]  }
  0x75   : > { %2159 = vmatpush2.bf16.msra.mxu0 %v10318_v18  ;;  %v10388_v18 = vld [vmem:[%s15202_s1 + $0x848] ss:$16 sps:$4 sm:$0xff]  }
  0x76   : > { %2200 = vmatpush2.bf16.msra.mxu1 %v10321_v19  ;;  %2160 = vmatprep.subr.bf16.mxu0 %v10326_v20  ;;  %v10391_v19 = vld [vmem:[%s15202_s1 + $0xa48] ss:$16 sps:$4 sm:$0xff]   ;;  %v10396_v20 = vld [vmem:[%s15202_s1 + $0x82c] ss:$16 sps:$4 sm:$0xff]  }
  0x77   : > { %2201 = vmatprep.subr.bf16.mxu1 %v10329_v21  ;;  %v10399_v21 = vld [vmem:[%s15202_s1 + $0xa2c] ss:$16 sps:$4 sm:$0xff]  }
  0x79   : > { %2161 = vmatpush2.bf16.msra.mxu0 %v10324_v24  ;;  %v10394_v24 = vld [vmem:[%s15202_s1 + $0x828] ss:$16 sps:$4 sm:$0xff]  }
  0x7a   : > { %2202 = vmatpush2.bf16.msra.mxu1 %v10327_v25  ;;  %2162 = vmatprep.subr.bf16.mxu0 %v10332_v26  ;;  %v10397_v25 = vld [vmem:[%s15202_s1 + $0xa28] ss:$16 sps:$4 sm:$0xff]   ;;  %v10402_v26 = vld [vmem:[%s15202_s1 + $0x80c] ss:$16 sps:$4 sm:$0xff]  }
  0x7b   : > { %2203 = vmatprep.subr.bf16.mxu1 %v10335_v27  ;;  %v10405_v27 = vld [vmem:[%s15202_s1 + $0xa0c] ss:$16 sps:$4 sm:$0xff]  }
  0x7d   : > { %2163 = vmatpush2.bf16.msra.mxu0 %v10330_v28  ;;  %v10400_v28 = vld [vmem:[%s15202_s1 + $0x808] ss:$16 sps:$4 sm:$0xff]  }
  0x7e   : > { %2204 = vmatpush2.bf16.msra.mxu1 %v10333_v29  ;;  %2164 = vmatprep.subr.bf16.mxu0 %v10338_v30  ;;  %v10403_v29 = vld [vmem:[%s15202_s1 + $0xa08] ss:$16 sps:$4 sm:$0xff]   ;;  %v10408_v30 = vld [vmem:[%s15202_s1 + $0x9ec] ss:$16 sps:$4 sm:$0xff]  }
  0x7f   : > { %2205 = vmatprep.subr.bf16.mxu1 %v10341_v31  ;;  %v10411_v31 = vld [vmem:[%s15202_s1 + $0xbec] ss:$16 sps:$4 sm:$0xff]  }
  0x81   : > { %2165 = vmatpush2.bf16.msra.mxu0 %v10336_v32  ;;  %v10406_v32 = vld [vmem:[%s15202_s1 + $0x9e8] ss:$16 sps:$4 sm:$0xff]  }
  0x82   : > { %2206 = vmatpush2.bf16.msra.mxu1 %v10339_v33  ;;  %2166 = vmatprep.subr.bf16.mxu0 %v10344_v36  ;;  %v10409_v33 = vld [vmem:[%s15202_s1 + $0xbe8] ss:$16 sps:$4 sm:$0xff]   ;;  %v10414_v36 = vld [vmem:[%s15202_s1 + $0x9cc] ss:$16 sps:$4 sm:$0xff]  }
  0x83   : > { %2207 = vmatprep.subr.bf16.mxu1 %v10347_v37  ;;  %v10417_v37 = vld [vmem:[%s15202_s1 + $0xbcc] ss:$16 sps:$4 sm:$0xff]  }
  0x85   : > { %2167 = vmatpush2.bf16.msra.mxu0 %v10342_v38  ;;  %v10412_v38 = vld [vmem:[%s15202_s1 + $0x9c8] ss:$16 sps:$4 sm:$0xff]  }
  0x86   : > { %2208 = vmatpush2.bf16.msra.mxu1 %v10345_v39  ;;  %2168 = vmatprep.subr.bf16.mxu0 %v10350_v42  ;;  %v10415_v39 = vld [vmem:[%s15202_s1 + $0xbc8] ss:$16 sps:$4 sm:$0xff]  }
  0x87   : > { %2209 = vmatprep.subr.bf16.mxu1 %v10353_v43  ;;  %v10418_v42 = vld [vmem:[%s15202_s1 + $0x9a8] ss:$16 sps:$4 sm:$0xff]  }
  0x88   : > { %v10421_v43 = vld [vmem:[%s15202_s1 + $0xba8] ss:$16 sps:$4 sm:$0xff]  }
  0x89   : > { %2169 = vmatpush2.bf16.msra.mxu0 %v10348_v44  ;;  %v10426_v44 = vld [vmem:[%s15202_s1 + $0x98c] ss:$16 sps:$4 sm:$0xff]  }
  0x8a   : > { %2210 = vmatpush2.bf16.msra.mxu1 %v10351_v45  ;;  %2220 = vmatprep.subr.bf16.mxu0 %v10360_v51  ;;  %v10429_v45 = vld [vmem:[%s15202_s1 + $0xb8c] ss:$16 sps:$4 sm:$0xff]   ;;  %v10430_v51 = vld [vmem:[%s15202_s1 + $0x968] ss:$16 sps:$4 sm:$0xff]  }
  0x8b   : > { %2261 = vmatprep.subr.bf16.mxu1 %v10363_v53  ;;  %v10433_v53 = vld [vmem:[%s15202_s1 + $0xb68] ss:$16 sps:$4 sm:$0xff]  }
  0x8c   : > { %2171 = vmatmul.mubr.bf16.vlgmr.msra.gmra.mxu0 %v12219_v54 }
  0x8d   : > { %2212 = vmatmul.mubr.bf16.vlgmr.msra.gmra.mxu1 %v12221_v57  ;;  %2221 = vmatpush1.bf16.msra.mxu0 %v10358_v58  ;;  %v10438_v58 = vld [vmem:[%s15202_s1 + $0x94c] ss:$16 sps:$4 sm:$0xff]  }
  0x8e   : > { %2262 = vmatpush1.bf16.msra.mxu1 %v10361_v59  ;;  %2222 = vmatprep.subr.bf16.mxu0 %v10366_v60  ;;  %v10441_v59 = vld [vmem:[%s15202_s1 + $0xb4c] ss:$16 sps:$4 sm:$0xff]   ;;  %v10436_v60 = vld [vmem:[%s15202_s1 + $0x948] ss:$16 sps:$4 sm:$0xff]  }
  0x8f   : > { %2263 = vmatprep.subr.bf16.mxu1 %v10369_v61  ;;  %2252 = vmatprep.mubr.bf16.mxu0 %v11935_v0  ;;  %v10381_v0 = vld [vmem:[%s15202_s1 + $0xa8c] ss:$16 sps:$4 sm:$0xff]   ;;  %v10439_v61 = vld [vmem:[%s15202_s1 + $0xb48] ss:$16 sps:$4 sm:$0xff]  }
  0x90   : > { %2293 = vmatprep.mubr.bf16.mxu1 %v11937_v1  ;;  %v10376_v1 = vld [vmem:[%s15202_s1 + $0x888] ss:$16 sps:$4 sm:$0xff]  }
  0x91   : > { %2223 = vmatpush1.bf16.msra.mxu0 %v10364_v62  ;;  %v10444_v62 = vld [vmem:[%s15202_s1 + $0x92c] ss:$16 sps:$4 sm:$0xff]  }
  0x92   : > { %2264 = vmatpush1.bf16.msra.mxu1 %v10367_v63  ;;  %2224 = vmatprep.subr.bf16.mxu0 %v10372_v4  ;;  %v10447_v63 = vld [vmem:[%s15202_s1 + $0xb2c] ss:$16 sps:$4 sm:$0xff]   ;;  %v10442_v4 = vld [vmem:[%s15202_s1 + $0x928] ss:$16 sps:$4 sm:$0xff]  }
  0x93   : > { %2265 = vmatprep.subr.bf16.mxu1 %v10375_v5  ;;  %v10445_v5 = vld [vmem:[%s15202_s1 + $0xb28] ss:$16 sps:$4 sm:$0xff]  }
  0x95   : > { %2225 = vmatpush1.bf16.msra.mxu0 %v10370_v6  ;;  %v10450_v6 = vld [vmem:[%s15202_s1 + $0x90c] ss:$16 sps:$4 sm:$0xff]  }
  0x96   : > { %2266 = vmatpush1.bf16.msra.mxu1 %v10373_v7  ;;  %2226 = vmatprep.subr.bf16.mxu0 %v10378_v10  ;;  %v10453_v7 = vld [vmem:[%s15202_s1 + $0xb0c] ss:$16 sps:$4 sm:$0xff]   ;;  %v10448_v10 = vld [vmem:[%s15202_s1 + $0x908] ss:$16 sps:$4 sm:$0xff]  }
  0x97   : > { %2267 = vmatprep.subr.bf16.mxu1 %v10381_v0  ;;  %v10451_v0 = vld [vmem:[%s15202_s1 + $0xb08] ss:$16 sps:$4 sm:$0xff]  }
  0x99   : > { %2227 = vmatpush1.bf16.msra.mxu0 %v10376_v1  ;;  %v10456_v1 = vld [vmem:[%s15202_s1 + $0xcec] ss:$16 sps:$4 sm:$0xff]  }
  0x9a   : > { %2268 = vmatpush1.bf16.msra.mxu1 %v10379_v11  ;;  %2228 = vmatprep.subr.bf16.mxu0 %v10384_v12  ;;  %v10459_v11 = vld [vmem:[%s15202_s1 + $0xeec] ss:$16 sps:$4 sm:$0xff]   ;;  %v10454_v12 = vld [vmem:[%s15202_s1 + $0xce8] ss:$16 sps:$4 sm:$0xff]  }
  0x9b   : > { %2269 = vmatprep.subr.bf16.mxu1 %v10387_v13  ;;  %v10457_v13 = vld [vmem:[%s15202_s1 + $0xee8] ss:$16 sps:$4 sm:$0xff]  }
  0x9d   : > { %2229 = vmatpush1.bf16.msra.mxu0 %v10382_v14  ;;  %v10462_v14 = vld [vmem:[%s15202_s1 + $0xccc] ss:$16 sps:$4 sm:$0xff]  }
  0x9e   : > { %2270 = vmatpush1.bf16.msra.mxu1 %v10385_v15  ;;  %2230 = vmatprep.subr.bf16.mxu0 %v10390_v16  ;;  %v10465_v15 = vld [vmem:[%s15202_s1 + $0xecc] ss:$16 sps:$4 sm:$0xff]   ;;  %v10460_v16 = vld [vmem:[%s15202_s1 + $0xcc8] ss:$16 sps:$4 sm:$0xff]  }
  0x9f   : > { %2271 = vmatprep.subr.bf16.mxu1 %v10393_v17  ;;  %v10463_v17 = vld [vmem:[%s15202_s1 + $0xec8] ss:$16 sps:$4 sm:$0xff]  }
  0xa1   : > { %2231 = vmatpush1.bf16.msra.mxu0 %v10388_v18  ;;  %v10468_v18 = vld [vmem:[%s15202_s1 + $0xcac] ss:$16 sps:$4 sm:$0xff]  }
  0xa2   : > { %2272 = vmatpush1.bf16.msra.mxu1 %v10391_v19  ;;  %2232 = vmatprep.subr.bf16.mxu0 %v10396_v20  ;;  %v10469_v19 = vld [vmem:[%s15202_s1 + $0xea8] ss:$16 sps:$4 sm:$0xff]   ;;  %v10474_v20 = vld [vmem:[%s15202_s1 + $0xc8c] ss:$16 sps:$4 sm:$0xff]  }
  0xa3   : > { %2273 = vmatprep.subr.bf16.mxu1 %v10399_v21  ;;  %v10475_v21 = vld [vmem:[%s15202_s1 + $0xe88] ss:$16 sps:$4 sm:$0xff]  }
  0xa5   : > { %2233 = vmatpush1.bf16.msra.mxu0 %v10394_v24  ;;  %v10480_v24 = vld [vmem:[%s15202_s1 + $0xc6c] ss:$16 sps:$4 sm:$0xff]  }
  0xa6   : > { %2274 = vmatpush1.bf16.msra.mxu1 %v10397_v25  ;;  %2234 = vmatprep.subr.bf16.mxu0 %v10402_v26  ;;  %v10483_v25 = vld [vmem:[%s15202_s1 + $0xe6c] ss:$16 sps:$4 sm:$0xff]   ;;  %v10478_v26 = vld [vmem:[%s15202_s1 + $0xc68] ss:$16 sps:$4 sm:$0xff]  }
  0xa7   : > { %2275 = vmatprep.subr.bf16.mxu1 %v10405_v27  ;;  %v10481_v27 = vld [vmem:[%s15202_s1 + $0xe68] ss:$16 sps:$4 sm:$0xff]  }
  0xa9   : > { %2235 = vmatpush1.bf16.msra.mxu0 %v10400_v28  ;;  %v10486_v28 = vld [vmem:[%s15202_s1 + $0xc4c] ss:$16 sps:$4 sm:$0xff]  }
  0xaa   : > { %2276 = vmatpush1.bf16.msra.mxu1 %v10403_v29  ;;  %2236 = vmatprep.subr.bf16.mxu0 %v10408_v30  ;;  %v10489_v29 = vld [vmem:[%s15202_s1 + $0xe4c] ss:$16 sps:$4 sm:$0xff]   ;;  %v10484_v30 = vld [vmem:[%s15202_s1 + $0xc48] ss:$16 sps:$4 sm:$0xff]  }
  0xab   : > { %2277 = vmatprep.subr.bf16.mxu1 %v10411_v31  ;;  %v10487_v31 = vld [vmem:[%s15202_s1 + $0xe48] ss:$16 sps:$4 sm:$0xff]  }
  0xad   : > { %2237 = vmatpush2.bf16.msra.mxu0 %v10406_v32  ;;  %v10492_v32 = vld [vmem:[%s15202_s1 + $0xc2c] ss:$16 sps:$4 sm:$0xff]  }
  0xae   : > { %2278 = vmatpush2.bf16.msra.mxu1 %v10409_v33  ;;  %2238 = vmatprep.subr.bf16.mxu0 %v10414_v36  ;;  %v10495_v33 = vld [vmem:[%s15202_s1 + $0xe2c] ss:$16 sps:$4 sm:$0xff]   ;;  %v10490_v36 = vld [vmem:[%s15202_s1 + $0xc28] ss:$16 sps:$4 sm:$0xff]  }
  0xaf   : > { %2279 = vmatprep.subr.bf16.mxu1 %v10417_v37  ;;  %v10493_v37 = vld [vmem:[%s15202_s1 + $0xe28] ss:$16 sps:$4 sm:$0xff]  }
  0xb1   : > { %2239 = vmatpush2.bf16.msra.mxu0 %v10412_v38  ;;  %v10498_v38 = vld [vmem:[%s15202_s1 + $0xc0c] ss:$16 sps:$4 sm:$0xff]  }
  0xb2   : > { %2280 = vmatpush2.bf16.msra.mxu1 %v10415_v39  ;;  %2240 = vmatprep.subr.bf16.mxu0 %v10420_v40  ;;  %v10501_v39 = vld [vmem:[%s15202_s1 + $0xe0c] ss:$16 sps:$4 sm:$0xff]   ;;  %v10496_v40 = vld [vmem:[%s15202_s1 + $0xc08] ss:$16 sps:$4 sm:$0xff]  }
  0xb3   : > { %2281 = vmatprep.subr.bf16.mxu1 %v10423_v41  ;;  %v10499_v41 = vld [vmem:[%s15202_s1 + $0xe08] ss:$16 sps:$4 sm:$0xff]  }
  0xb5   : > { %2241 = vmatpush2.bf16.msra.mxu0 %v10418_v42  ;;  %v10504_v42 = vld [vmem:[%s15202_s1 + $0xdec] ss:$16 sps:$4 sm:$0xff]  }
  0xb6   : > { %2282 = vmatpush2.bf16.msra.mxu1 %v10421_v43  ;;  %2242 = vmatprep.subr.bf16.mxu0 %v10426_v44  ;;  %v10507_v43 = vld [vmem:[%s15202_s1 + $0xfec] ss:$16 sps:$4 sm:$0xff]   ;;  %v10502_v44 = vld [vmem:[%s15202_s1 + $0xde8] ss:$16 sps:$4 sm:$0xff]  }
  0xb7   : > { %2283 = vmatprep.subr.bf16.mxu1 %v10429_v45  ;;  %v10505_v45 = vld [vmem:[%s15202_s1 + $0xfe8] ss:$16 sps:$4 sm:$0xff]  }
  0xb9   : > { %2243 = vmatpush2.bf16.msra.mxu0 %v10424_v46  ;;  %v10510_v46 = vld [vmem:[%s15202_s1 + $0xdcc] ss:$16 sps:$4 sm:$0xff]  }
  0xba   : > { %2284 = vmatpush2.bf16.msra.mxu1 %v10427_v47  ;;  %2244 = vmatprep.subr.bf16.mxu0 %v10432_v49  ;;  %v10513_v47 = vld [vmem:[%s15202_s1 + $0xfcc] ss:$16 sps:$4 sm:$0xff]   ;;  %v10508_v49 = vld [vmem:[%s15202_s1 + $0xdc8] ss:$16 sps:$4 sm:$0xff]  }
  0xbb   : > { %2285 = vmatprep.subr.bf16.mxu1 %v10435_v50  ;;  %v10511_v50 = vld [vmem:[%s15202_s1 + $0xfc8] ss:$16 sps:$4 sm:$0xff]  }
  0xbd   : > { %2245 = vmatpush2.bf16.msra.mxu0 %v10430_v51  ;;  %v10516_v51 = vld [vmem:[%s15202_s1 + $0xdac] ss:$16 sps:$4 sm:$0xff]  }
  0xbe   : > { %2286 = vmatpush2.bf16.msra.mxu1 %v10433_v53  ;;  %2246 = vmatprep.subr.bf16.mxu0 %v10438_v58  ;;  %v10519_v53 = vld [vmem:[%s15202_s1 + $0xfac] ss:$16 sps:$4 sm:$0xff]   ;;  %v10514_v58 = vld [vmem:[%s15202_s1 + $0xda8] ss:$16 sps:$4 sm:$0xff]  }
  0xbf   : > { %2287 = vmatprep.subr.bf16.mxu1 %v10441_v59  ;;  %v10517_v59 = vld [vmem:[%s15202_s1 + $0xfa8] ss:$16 sps:$4 sm:$0xff]  }
  0xc1   : > { %2247 = vmatpush2.bf16.msra.mxu0 %v10436_v60  ;;  %v10522_v60 = vld [vmem:[%s15202_s1 + $0xd8c] ss:$16 sps:$4 sm:$0xff]  }
  0xc2   : > { %2288 = vmatpush2.bf16.msra.mxu1 %v10439_v61  ;;  %2248 = vmatprep.subr.bf16.mxu0 %v10444_v62  ;;  %v10525_v61 = vld [vmem:[%s15202_s1 + $0xf8c] ss:$16 sps:$4 sm:$0xff]   ;;  %v10520_v62 = vld [vmem:[%s15202_s1 + $0xd88] ss:$16 sps:$4 sm:$0xff]  }
  0xc3   : > { %2289 = vmatprep.subr.bf16.mxu1 %v10447_v63  ;;  %v10523_v63 = vld [vmem:[%s15202_s1 + $0xf88] ss:$16 sps:$4 sm:$0xff]  }
  0xc5   : > { %2249 = vmatpush2.bf16.msra.mxu0 %v10442_v4  ;;  %v10528_v4 = vld [vmem:[%s15202_s1 + $0xd6c] ss:$16 sps:$4 sm:$0xff]  }
  0xc6   : > { %2290 = vmatpush2.bf16.msra.mxu1 %v10445_v5  ;;  %2250 = vmatprep.subr.bf16.mxu0 %v10450_v6  ;;  %v10531_v5 = vld [vmem:[%s15202_s1 + $0xf6c] ss:$16 sps:$4 sm:$0xff]   ;;  %v10526_v6 = vld [vmem:[%s15202_s1 + $0xd68] ss:$16 sps:$4 sm:$0xff]  }
  0xc7   : > { %2291 = vmatprep.subr.bf16.mxu1 %v10453_v7  ;;  %v10529_v7 = vld [vmem:[%s15202_s1 + $0xf68] ss:$16 sps:$4 sm:$0xff]  }
  0xc9   : > { %2251 = vmatpush2.bf16.msra.mxu0 %v10448_v10  ;;  %v10534_v10 = vld [vmem:[%s15202_s1 + $0xd4c] ss:$16 sps:$4 sm:$0xff]  }
  0xca   : > { %2292 = vmatpush2.bf16.msra.mxu1 %v10451_v0  ;;  %2302 = vmatprep.subr.bf16.mxu0 %v10456_v1  ;;  %v10537_v0 = vld [vmem:[%s15202_s1 + $0xf4c] ss:$16 sps:$4 sm:$0xff]   ;;  %v10532_v1 = vld [vmem:[%s15202_s1 + $0xd48] ss:$16 sps:$4 sm:$0xff]  }
  0xcb   : > { %2343 = vmatprep.subr.bf16.mxu1 %v10459_v11  ;;  %v10535_v11 = vld [vmem:[%s15202_s1 + $0xf48] ss:$16 sps:$4 sm:$0xff]  }
  0xcc   : > { %2253 = vmatmul.mubr.bf16.vlgmr.msra.gmra.mxu0 %v11985_v22  ;;  %v10471_v22 = vld [vmem:[%s15202_s1 + $0xeac] ss:$16 sps:$4 sm:$0xff]  }
  0xcd   : > { %2294 = vmatmul.mubr.bf16.vlgmr.msra.gmra.mxu1 %v11987_v23  ;;  %2303 = vmatpush1.bf16.msra.mxu0 %v10454_v12  ;;  %v10466_v23 = vld [vmem:[%s15202_s1 + $0xca8] ss:$16 sps:$4 sm:$0xff]   ;;  %v10540_v12 = vld [vmem:[%s15202_s1 + $0xd2c] ss:$16 sps:$4 sm:$0xff]  }
  0xce   : > { %2344 = vmatpush1.bf16.msra.mxu1 %v10457_v13  ;;  %2304 = vmatprep.subr.bf16.mxu0 %v10462_v14  ;;  %v10543_v13 = vld [vmem:[%s15202_s1 + $0xf2c] ss:$16 sps:$4 sm:$0xff]   ;;  %v10538_v14 = vld [vmem:[%s15202_s1 + $0xd28] ss:$16 sps:$4 sm:$0xff]  }
  0xcf   : > { %2345 = vmatprep.subr.bf16.mxu1 %v10465_v15  ;;  %2334 = vmatprep.mubr.bf16.mxu0 %v12105_v8  ;;  %v10477_v8 = vld [vmem:[%s15202_s1 + $0xe8c] ss:$16 sps:$4 sm:$0xff]   ;;  %v10541_v15 = vld [vmem:[%s15202_s1 + $0xf28] ss:$16 sps:$4 sm:$0xff]  }
  0xd0   : > { %2375 = vmatprep.mubr.bf16.mxu1 %v12107_v9  ;;  %v10472_v9 = vld [vmem:[%s15202_s1 + $0xc88] ss:$16 sps:$4 sm:$0xff]  }
  0xd1   : > { %2305 = vmatpush1.bf16.msra.mxu0 %v10460_v16  ;;  %v10546_v16 = vld [vmem:[%s15202_s1 + $0xd0c] ss:$16 sps:$4 sm:$0xff]  }
  0xd2   : > { %2346 = vmatpush1.bf16.msra.mxu1 %v10463_v17  ;;  %2306 = vmatprep.subr.bf16.mxu0 %v10468_v18  ;;  %v10549_v17 = vld [vmem:[%s15202_s1 + $0xf0c] ss:$16 sps:$4 sm:$0xff]   ;;  %v10544_v18 = vld [vmem:[%s15202_s1 + $0xd08] ss:$16 sps:$4 sm:$0xff]  }
  0xd3   : > { %2347 = vmatprep.subr.bf16.mxu1 %v10471_v22  ;;  %v10547_v22 = vld [vmem:[%s15202_s1 + $0xf08] ss:$16 sps:$4 sm:$0xff]  }
  0xd5   : > { %2307 = vmatpush1.bf16.msra.mxu0 %v10466_v23  ;;  %v10552_v23 = vld [vmem:[%s15202_s1 + $0xe4] ss:$16 sps:$4 sm:$0xff]  }
  0xd6   : > { %2348 = vmatpush1.bf16.msra.mxu1 %v10469_v19  ;;  %2308 = vmatprep.subr.bf16.mxu0 %v10474_v20  ;;  %v10555_v19 = vld [vmem:[%s15202_s1 + $0x2e4] ss:$16 sps:$4 sm:$0xff]   ;;  %v10550_v20 = vld [vmem:[%s15202_s1 + $0xe0] ss:$16 sps:$4 sm:$0xff]  }
  0xd7   : > { %2349 = vmatprep.subr.bf16.mxu1 %v10477_v8  ;;  %v10553_v8 = vld [vmem:[%s15202_s1 + $0x2e0] ss:$16 sps:$4 sm:$0xff]  }
  0xd9   : > { %2309 = vmatpush1.bf16.msra.mxu0 %v10472_v9  ;;  %v10558_v9 = vld [vmem:[%s15202_s1 + $0xc4] ss:$16 sps:$4 sm:$0xff]  }
  0xda   : > { %2350 = vmatpush1.bf16.msra.mxu1 %v10475_v21  ;;  %2310 = vmatprep.subr.bf16.mxu0 %v10480_v24  ;;  %v10561_v21 = vld [vmem:[%s15202_s1 + $0x2c4] ss:$16 sps:$4 sm:$0xff]  }
  0xdb   : > { %2351 = vmatprep.subr.bf16.mxu1 %v10483_v25 }
  0xdd   : > { %2311 = vmatpush1.bf16.msra.mxu0 %v10478_v26  ;;  %v10556_v26 = vld [vmem:[%s15202_s1 + $0xc0] ss:$16 sps:$4 sm:$0xff]  }
  0xde   : > { %2352 = vmatpush1.bf16.msra.mxu1 %v10481_v27  ;;  %2312 = vmatprep.subr.bf16.mxu0 %v10486_v28  ;;  %v10559_v27 = vld [vmem:[%s15202_s1 + $0x2c0] ss:$16 sps:$4 sm:$0xff]  }
  0xdf   : > { %2353 = vmatprep.subr.bf16.mxu1 %v10489_v29  ;;  %v10564_v29 = vld [vmem:[%s15202_s1 + $0xa4] ss:$16 sps:$4 sm:$0xff]  }
  0xe1   : > { %2313 = vmatpush1.bf16.msra.mxu0 %v10484_v30 }
  0xe2   : > { %2354 = vmatpush1.bf16.msra.mxu1 %v10487_v31  ;;  %2314 = vmatprep.subr.bf16.mxu0 %v10492_v32 }
  0xe3   : > { %2355 = vmatprep.subr.bf16.mxu1 %v10495_v33 }
  0xe5   : > { %2315 = vmatpush1.bf16.msra.mxu0 %v10490_v36  ;;  %v10562_v36 = vld [vmem:[%s15202_s1 + $0xa0] ss:$16 sps:$4 sm:$0xff]  }
  0xe6   : > { %2356 = vmatpush1.bf16.msra.mxu1 %v10493_v37  ;;  %2316 = vmatprep.subr.bf16.mxu0 %v10498_v38  ;;  %v10565_v37 = vld [vmem:[%s15202_s1 + $0x2a0] ss:$16 sps:$4 sm:$0xff]   ;;  %v10570_v38 = vld [vmem:[%s15202_s1 + $0x84] ss:$16 sps:$4 sm:$0xff]  }
  0xe7   : > { %2357 = vmatprep.subr.bf16.mxu1 %v10501_v39 }
  0xe9   : > { %2317 = vmatpush1.bf16.msra.mxu0 %v10496_v40 }
  0xea   : > { %2358 = vmatpush1.bf16.msra.mxu1 %v10499_v41  ;;  %2318 = vmatprep.subr.bf16.mxu0 %v10504_v42  ;;  %v10573_v41 = vld [vmem:[%s15202_s1 + $0x284] ss:$16 sps:$4 sm:$0xff]   ;;  %v10568_v42 = vld [vmem:[%s15202_s1 + $0x80] ss:$16 sps:$4 sm:$0xff]  }
  0xeb   : > { %2359 = vmatprep.subr.bf16.mxu1 %v10507_v43  ;;  %v10571_v43 = vld [vmem:[%s15202_s1 + $0x280] ss:$16 sps:$4 sm:$0xff]  }
  0xed   : > { %2319 = vmatpush2.bf16.msra.mxu0 %v10502_v44  ;;  %v10576_v44 = vld [vmem:[%s15202_s1 + $0x64] ss:$16 sps:$4 sm:$0xff]  }
  0xee   : > { %2360 = vmatpush2.bf16.msra.mxu1 %v10505_v45  ;;  %2320 = vmatprep.subr.bf16.mxu0 %v10510_v46  ;;  %v10579_v45 = vld [vmem:[%s15202_s1 + $0x264] ss:$16 sps:$4 sm:$0xff]   ;;  %v10574_v46 = vld [vmem:[%s15202_s1 + $0x60] ss:$16 sps:$4 sm:$0xff]  }
  0xef   : > { %2361 = vmatprep.subr.bf16.mxu1 %v10513_v47  ;;  %v10577_v47 = vld [vmem:[%s15202_s1 + $0x260] ss:$16 sps:$4 sm:$0xff]  }
  0xf1   : > { %2321 = vmatpush2.bf16.msra.mxu0 %v10508_v49  ;;  %v10582_v49 = vld [vmem:[%s15202_s1 + $0x44] ss:$16 sps:$4 sm:$0xff]  }
  0xf2   : > { %2362 = vmatpush2.bf16.msra.mxu1 %v10511_v50  ;;  %2322 = vmatprep.subr.bf16.mxu0 %v10516_v51  ;;  %v10585_v50 = vld [vmem:[%s15202_s1 + $0x244] ss:$16 sps:$4 sm:$0xff]   ;;  %v10580_v51 = vld [vmem:[%s15202_s1 + $0x40] ss:$16 sps:$4 sm:$0xff]  }
  0xf3   : > { %2363 = vmatprep.subr.bf16.mxu1 %v10519_v53  ;;  %v10583_v53 = vld [vmem:[%s15202_s1 + $0x240] ss:$16 sps:$4 sm:$0xff]  }
  0xf5   : > { %2323 = vmatpush2.bf16.msra.mxu0 %v10514_v58  ;;  %v10588_v58 = vld [vmem:[%s15202_s1 + $0x24] ss:$16 sps:$4 sm:$0xff]  }
  0xf6   : > { %2364 = vmatpush2.bf16.msra.mxu1 %v10517_v59  ;;  %2324 = vmatprep.subr.bf16.mxu0 %v10522_v60  ;;  %v10591_v59 = vld [vmem:[%s15202_s1 + $0x224] ss:$16 sps:$4 sm:$0xff]   ;;  %v10586_v60 = vld [vmem:[%s15202_s1 + $0x20] ss:$16 sps:$4 sm:$0xff]  }
  0xf7   : > { %2365 = vmatprep.subr.bf16.mxu1 %v10525_v61  ;;  %v10589_v61 = vld [vmem:[%s15202_s1 + $0x220] ss:$16 sps:$4 sm:$0xff]  }
  0xf9   : > { %2325 = vmatpush2.bf16.msra.mxu0 %v10520_v62  ;;  %v10594_v62 = vld [vmem:[%s15202_s1 + $0x4] ss:$16 sps:$4 sm:$0xff]  }
  0xfa   : > { %2366 = vmatpush2.bf16.msra.mxu1 %v10523_v63  ;;  %2326 = vmatprep.subr.bf16.mxu0 %v10528_v4  ;;  %v10597_v63 = vld [vmem:[%s15202_s1 + $0x204] ss:$16 sps:$4 sm:$0xff]   ;;  %v10592_v4 = vld [vmem:[%s15202_s1] ss:$16 sps:$4 sm:$0xff]  }
  0xfb   : > { %2367 = vmatprep.subr.bf16.mxu1 %v10531_v5  ;;  %v10595_v5 = vld [vmem:[%s15202_s1 + $0x200] ss:$16 sps:$4 sm:$0xff]  }
  0xfd   : > { %2327 = vmatpush2.bf16.msra.mxu0 %v10526_v6  ;;  %v10600_v6 = vld [vmem:[%s15202_s1 + $0x1e4] ss:$16 sps:$4 sm:$0xff]  }
  0xfe   : > { %2368 = vmatpush2.bf16.msra.mxu1 %v10529_v7  ;;  %2328 = vmatprep.subr.bf16.mxu0 %v10534_v10  ;;  %v10603_v7 = vld [vmem:[%s15202_s1 + $0x3e4] ss:$16 sps:$4 sm:$0xff]   ;;  %v10598_v10 = vld [vmem:[%s15202_s1 + $0x1e0] ss:$16 sps:$4 sm:$0xff]  }
  0xff   : > { %2369 = vmatprep.subr.bf16.mxu1 %v10537_v0  ;;  %v10601_v0 = vld [vmem:[%s15202_s1 + $0x3e0] ss:$16 sps:$4 sm:$0xff]  }
 0x101   : > { %2329 = vmatpush2.bf16.msra.mxu0 %v10532_v1  ;;  %v10606_v1 = vld [vmem:[%s15202_s1 + $0x1c4] ss:$16 sps:$4 sm:$0xff]  }
 0x102   : > { %2370 = vmatpush2.bf16.msra.mxu1 %v10535_v11  ;;  %2330 = vmatprep.subr.bf16.mxu0 %v10540_v12  ;;  %v10609_v11 = vld [vmem:[%s15202_s1 + $0x3c4] ss:$16 sps:$4 sm:$0xff]   ;;  %v10604_v12 = vld [vmem:[%s15202_s1 + $0x1c0] ss:$16 sps:$4 sm:$0xff]  }
 0x103   : > { %2371 = vmatprep.subr.bf16.mxu1 %v10543_v13  ;;  %v10607_v13 = vld [vmem:[%s15202_s1 + $0x3c0] ss:$16 sps:$4 sm:$0xff]  }
 0x105   : > { %2331 = vmatpush2.bf16.msra.mxu0 %v10538_v14  ;;  %v10612_v14 = vld [vmem:[%s15202_s1 + $0x1a4] ss:$16 sps:$4 sm:$0xff]  }
 0x106   : > { %2372 = vmatpush2.bf16.msra.mxu1 %v10541_v15  ;;  %2332 = vmatprep.subr.bf16.mxu0 %v10546_v16  ;;  %v10615_v15 = vld [vmem:[%s15202_s1 + $0x3a4] ss:$16 sps:$4 sm:$0xff]   ;;  %v10610_v16 = vld [vmem:[%s15202_s1 + $0x1a0] ss:$16 sps:$4 sm:$0xff]  }
 0x107   : > { %2373 = vmatprep.subr.bf16.mxu1 %v10549_v17  ;;  %v10613_v17 = vld [vmem:[%s15202_s1 + $0x3a0] ss:$16 sps:$4 sm:$0xff]  }
 0x109   : > { %2333 = vmatpush2.bf16.msra.mxu0 %v10544_v18  ;;  %v10618_v18 = vld [vmem:[%s15202_s1 + $0x184] ss:$16 sps:$4 sm:$0xff]  }
 0x10a   : > { %2374 = vmatpush2.bf16.msra.mxu1 %v10547_v22  ;;  %3672 = vmatprep.subr.bf16.mxu0 %v10552_v23  ;;  %v10621_v22 = vld [vmem:[%s15202_s1 + $0x384] ss:$16 sps:$4 sm:$0xff]   ;;  %v10616_v23 = vld [vmem:[%s15202_s1 + $0x180] ss:$16 sps:$4 sm:$0xff]  }
 0x10b   : > { %3713 = vmatprep.subr.bf16.mxu1 %v10555_v19  ;;  %v10619_v19 = vld [vmem:[%s15202_s1 + $0x380] ss:$16 sps:$4 sm:$0xff]  }
 0x10c   : > { %v2090_v24 = vpop.f32.mrf.mxu0  ;;  %2335 = vmatmul.mubr.bf16.vlgmr.msra.gmra.mxu0 %v12219_v54 }
 0x10d   : > { %v2131_v25 = vpop.f32.mrf.mxu1  ;;  %2376 = vmatmul.mubr.bf16.vlgmr.msra.gmra.mxu1 %v12221_v57  ;;  %3673 = vmatpush1.bf16.msra.mxu0 %v10550_v20  ;;  %v10567_v57 = vld [vmem:[%s15202_s1 + $0x2a4] ss:$16 sps:$4 sm:$0xff]  }
 0x10e   : > { %v12635_v28 = vadd.f32 %v2131_v25, %v2090_v24  ;;  %3714 = vmatpush1.bf16.msra.mxu1 %v10553_v8  ;;  %v2092_v30 = vpop.f32.mrf.mxu0  ;;  %3674 = vmatprep.subr.bf16.mxu0 %v10558_v9  ;;  %v10624_v20 = vld [vmem:[%s15202_s1 + $0x164] ss:$16 sps:$4 sm:$0xff]   ;;  %v10622_v9 = vld [vmem:[%s15202_s1 + $0x160] ss:$16 sps:$4 sm:$0xff]  }
 0x10f   : > { %v2133_v54 = vpop.f32.mrf.mxu1  ;;  %3715 = vmatprep.subr.bf16.mxu1 %v10561_v21  ;;  %3704 = vmatprep.mubr.bf16.mxu0 %v11905_v48  ;;  %v10627_v8 = vld [vmem:[%s15202_s1 + $0x364] ss:$16 sps:$4 sm:$0xff]   ;;  %v10625_v21 = vld [vmem:[%s15202_s1 + $0x360] ss:$16 sps:$4 sm:$0xff]  }
 0x110   : > { %v12643_v31 = vadd.f32 %v2133_v54, %v2092_v30  ;;  %3745 = vmatprep.mubr.bf16.mxu1 %v11914_v52  ;;  %v2094_v32 = vpop.f32.mrf.mxu0  ;;  %v10630_v24 = vld [vmem:[%s15202_s1 + $0x144] ss:$16 sps:$4 sm:$0xff]   ;;  %v10634_v54 = vld [vmem:[%s15202_s1 + $0x120] ss:$16 sps:$4 sm:$0xff]  }
 0x111   : > { %v2135_v33 = vpop.f32.mrf.mxu1  ;;  %3675 = vmatpush1.bf16.msra.mxu0 %v10556_v26  ;;  %v10633_v25 = vld [vmem:[%s15202_s1 + $0x344] ss:$16 sps:$4 sm:$0xff]   ;;  %v10628_v26 = vld [vmem:[%s15202_s1 + $0x140] ss:$16 sps:$4 sm:$0xff]  }
 0x112   : > { %3716 = vmatpush1.bf16.msra.mxu1 %v10559_v27  ;;  %v2095_v39 = vpop.f32.mrf.mxu0  ;;  %3676 = vmatprep.subr.bf16.mxu0 %v10564_v29  ;;  %v10631_v27 = vld [vmem:[%s15202_s1 + $0x340] ss:$16 sps:$4 sm:$0xff]   ;;  %v10636_v29 = vld [vmem:[%s15202_s1 + $0x124] ss:$16 sps:$4 sm:$0xff]  }
 0x113   : > { %v2136_v40 = vpop.f32.mrf.mxu1  ;;  %3717 = vmatprep.subr.bf16.mxu1 %v10567_v57  ;;  %v10639_v30 = vld [vmem:[%s15202_s1 + $0x324] ss:$16 sps:$4 sm:$0xff]   ;;  %v10637_v57 = vld [vmem:[%s15202_s1 + $0x320] ss:$16 sps:$4 sm:$0xff]  }
 0x114   : > { %v10642_v32 = vld [vmem:[%s15202_s1 + $0x104] ss:$16 sps:$4 sm:$0xff]   ;;  %v10646_v40 = vld [vmem:[%s15202_s1 + $0x4e0] ss:$16 sps:$4 sm:$0xff]  }
 0x115   : > { %3677 = vmatpush1.bf16.msra.mxu0 %v10562_v36  ;;  %v10645_v33 = vld [vmem:[%s15202_s1 + $0x304] ss:$16 sps:$4 sm:$0xff]   ;;  %v10640_v36 = vld [vmem:[%s15202_s1 + $0x100] ss:$16 sps:$4 sm:$0xff]  }
 0x116   : > { %3718 = vmatpush1.bf16.msra.mxu1 %v10565_v37  ;;  %3678 = vmatprep.subr.bf16.mxu0 %v10570_v38  ;;  %v10643_v37 = vld [vmem:[%s15202_s1 + $0x300] ss:$16 sps:$4 sm:$0xff]   ;;  %v10648_v38 = vld [vmem:[%s15202_s1 + $0x4e4] ss:$16 sps:$4 sm:$0xff]  }
 0x117   : > { %3719 = vmatprep.subr.bf16.mxu1 %v10573_v41  ;;  %v10651_v39 = vld [vmem:[%s15202_s1 + $0x6e4] ss:$16 sps:$4 sm:$0xff]   ;;  %v10649_v41 = vld [vmem:[%s15202_s1 + $0x6e0] ss:$16 sps:$4 sm:$0xff]  }
 0x119   : > { %3679 = vmatpush1.bf16.msra.mxu0 %v10568_v42  ;;  %v10654_v42 = vld [vmem:[%s15202_s1 + $0x4c4] ss:$16 sps:$4 sm:$0xff]  }
 0x11a   : > { %3720 = vmatpush1.bf16.msra.mxu1 %v10571_v43  ;;  %3680 = vmatprep.subr.bf16.mxu0 %v10576_v44  ;;  %v10657_v43 = vld [vmem:[%s15202_s1 + $0x6c4] ss:$16 sps:$4 sm:$0xff]   ;;  %v10652_v44 = vld [vmem:[%s15202_s1 + $0x4c0] ss:$16 sps:$4 sm:$0xff]  }
 0x11b   : > { %3721 = vmatprep.subr.bf16.mxu1 %v10579_v45  ;;  %v10655_v45 = vld [vmem:[%s15202_s1 + $0x6c0] ss:$16 sps:$4 sm:$0xff]  }
 0x11d   : > { %3681 = vmatpush1.bf16.msra.mxu0 %v10574_v46 }
 0x11e   : > { %3722 = vmatpush1.bf16.msra.mxu1 %v10577_v47  ;;  %3682 = vmatprep.subr.bf16.mxu0 %v10582_v49 }
 0x11f   : > { %3723 = vmatprep.subr.bf16.mxu1 %v10585_v50 }
 0x121   : > { %3683 = vmatpush1.bf16.msra.mxu0 %v10580_v51 }
 0x122   : > { %3724 = vmatpush1.bf16.msra.mxu1 %v10583_v53  ;;  %3684 = vmatprep.subr.bf16.mxu0 %v10588_v58  ;;  %v10660_v53 = vld [vmem:[%s15202_s1 + $0x4a4] ss:$16 sps:$4 sm:$0xff]  }
 0x123   : > { %3725 = vmatprep.subr.bf16.mxu1 %v10591_v59  ;;  %v10663_v58 = vld [vmem:[%s15202_s1 + $0x6a4] ss:$16 sps:$4 sm:$0xff]  }
 0x125   : > { %3685 = vmatpush1.bf16.msra.mxu0 %v10586_v60 }
 0x126   : > { %3726 = vmatpush1.bf16.msra.mxu1 %v10589_v61  ;;  %3686 = vmatprep.subr.bf16.mxu0 %v10594_v62  ;;  %v10661_v61 = vld [vmem:[%s15202_s1 + $0x6a0] ss:$16 sps:$4 sm:$0xff]  }
 0x127   : > { %3727 = vmatprep.subr.bf16.mxu1 %v10597_v63 }
 0x129   : > { %3687 = vmatpush1.bf16.msra.mxu0 %v10592_v4 }
 0x12a   : > { %3728 = vmatpush1.bf16.msra.mxu1 %v10595_v5  ;;  %3688 = vmatprep.subr.bf16.mxu0 %v10600_v6  ;;  %v10666_v6 = vld [vmem:[%s15202_s1 + $0x484] ss:$16 sps:$4 sm:$0xff]  }
 0x12b   : > { %3729 = vmatprep.subr.bf16.mxu1 %v10603_v7  ;;  %v10669_v7 = vld [vmem:[%s15202_s1 + $0x684] ss:$16 sps:$4 sm:$0xff]  }
 0x12d   : > { %3689 = vmatpush2.bf16.msra.mxu0 %v10598_v10  ;;  %v10664_v10 = vld [vmem:[%s15202_s1 + $0x480] ss:$16 sps:$4 sm:$0xff]  }
 0x12e   : > { %3730 = vmatpush2.bf16.msra.mxu1 %v10601_v0  ;;  %3690 = vmatprep.subr.bf16.mxu0 %v10606_v1  ;;  %v10667_v0 = vld [vmem:[%s15202_s1 + $0x680] ss:$16 sps:$4 sm:$0xff]   ;;  %v10672_v1 = vld [vmem:[%s15202_s1 + $0x464] ss:$16 sps:$4 sm:$0xff]  }
 0x12f   : > { %3731 = vmatprep.subr.bf16.mxu1 %v10609_v11  ;;  %v10675_v11 = vld [vmem:[%s15202_s1 + $0x664] ss:$16 sps:$4 sm:$0xff]  }
 0x131   : > { %3691 = vmatpush2.bf16.msra.mxu0 %v10604_v12  ;;  %v10670_v12 = vld [vmem:[%s15202_s1 + $0x460] ss:$16 sps:$4 sm:$0xff]  }
 0x132   : > { %3732 = vmatpush2.bf16.msra.mxu1 %v10607_v13  ;;  %3692 = vmatprep.subr.bf16.mxu0 %v10612_v14  ;;  %v10673_v13 = vld [vmem:[%s15202_s1 + $0x660] ss:$16 sps:$4 sm:$0xff]   ;;  %v10678_v14 = vld [vmem:[%s15202_s1 + $0x444] ss:$16 sps:$4 sm:$0xff]  }
 0x133   : > { %3733 = vmatprep.subr.bf16.mxu1 %v10615_v15  ;;  %v10681_v15 = vld [vmem:[%s15202_s1 + $0x644] ss:$16 sps:$4 sm:$0xff]  }
 0x135   : > { %3693 = vmatpush2.bf16.msra.mxu0 %v10610_v16  ;;  %v10676_v16 = vld [vmem:[%s15202_s1 + $0x440] ss:$16 sps:$4 sm:$0xff]  }
 0x136   : > { %3734 = vmatpush2.bf16.msra.mxu1 %v10613_v17  ;;  %3694 = vmatprep.subr.bf16.mxu0 %v10618_v18  ;;  %v10679_v17 = vld [vmem:[%s15202_s1 + $0x640] ss:$16 sps:$4 sm:$0xff]   ;;  %v10684_v18 = vld [vmem:[%s15202_s1 + $0x424] ss:$16 sps:$4 sm:$0xff]  }
 0x137   : > { %3735 = vmatprep.subr.bf16.mxu1 %v10621_v22  ;;  %v10687_v22 = vld [vmem:[%s15202_s1 + $0x624] ss:$16 sps:$4 sm:$0xff]  }
 0x139   : > { %3695 = vmatpush2.bf16.msra.mxu0 %v10616_v23  ;;  %v10682_v23 = vld [vmem:[%s15202_s1 + $0x420] ss:$16 sps:$4 sm:$0xff]  }
 0x13a   : > { %3736 = vmatpush2.bf16.msra.mxu1 %v10619_v19  ;;  %3696 = vmatprep.subr.bf16.mxu0 %v10624_v20  ;;  %v10685_v19 = vld [vmem:[%s15202_s1 + $0x620] ss:$16 sps:$4 sm:$0xff]   ;;  %v10690_v20 = vld [vmem:[%s15202_s1 + $0x404] ss:$16 sps:$4 sm:$0xff]  }
 0x13b   : > { %3737 = vmatprep.subr.bf16.mxu1 %v10627_v8  ;;  %v10693_v8 = vld [vmem:[%s15202_s1 + $0x604] ss:$16 sps:$4 sm:$0xff]  }
 0x13d   : > { %3697 = vmatpush2.bf16.msra.mxu0 %v10622_v9  ;;  %v10688_v9 = vld [vmem:[%s15202_s1 + $0x400] ss:$16 sps:$4 sm:$0xff]  }
 0x13e   : > { %3738 = vmatpush2.bf16.msra.mxu1 %v10625_v21  ;;  %3698 = vmatprep.subr.bf16.mxu0 %v10630_v24  ;;  %v10691_v21 = vld [vmem:[%s15202_s1 + $0x600] ss:$16 sps:$4 sm:$0xff]   ;;  %v10696_v24 = vld [vmem:[%s15202_s1 + $0x5e4] ss:$16 sps:$4 sm:$0xff]  }
 0x13f   : > { %3739 = vmatprep.subr.bf16.mxu1 %v10633_v25  ;;  %v10699_v25 = vld [vmem:[%s15202_s1 + $0x7e4] ss:$16 sps:$4 sm:$0xff]  }
 0x141   : > { %3699 = vmatpush2.bf16.msra.mxu0 %v10628_v26  ;;  %v10694_v26 = vld [vmem:[%s15202_s1 + $0x5e0] ss:$16 sps:$4 sm:$0xff]  }
 0x142   : > { %3740 = vmatpush2.bf16.msra.mxu1 %v10631_v27  ;;  %3700 = vmatprep.subr.bf16.mxu0 %v10636_v29  ;;  %v10697_v27 = vld [vmem:[%s15202_s1 + $0x7e0] ss:$16 sps:$4 sm:$0xff]   ;;  %v10702_v29 = vld [vmem:[%s15202_s1 + $0x5c4] ss:$16 sps:$4 sm:$0xff]  }
 0x143   : > { %3741 = vmatprep.subr.bf16.mxu1 %v10639_v30  ;;  %v10705_v30 = vld [vmem:[%s15202_s1 + $0x7c4] ss:$16 sps:$4 sm:$0xff]  }
 0x145   : > { %3701 = vmatpush2.bf16.msra.mxu0 %v10634_v54  ;;  %v10700_v54 = vld [vmem:[%s15202_s1 + $0x5c0] ss:$16 sps:$4 sm:$0xff]  }
 0x146   : > { %3742 = vmatpush2.bf16.msra.mxu1 %v10637_v57  ;;  %3702 = vmatprep.subr.bf16.mxu0 %v10642_v32  ;;  %v10703_v57 = vld [vmem:[%s15202_s1 + $0x7c0] ss:$16 sps:$4 sm:$0xff]   ;;  %v10708_v32 = vld [vmem:[%s15202_s1 + $0x5a4] ss:$16 sps:$4 sm:$0xff]  }
 0x147   : > { %3743 = vmatprep.subr.bf16.mxu1 %v10645_v33  ;;  %v10711_v33 = vld [vmem:[%s15202_s1 + $0x7a4] ss:$16 sps:$4 sm:$0xff]  }
 0x149   : > { %3703 = vmatpush2.bf16.msra.mxu0 %v10640_v36  ;;  %v10706_v36 = vld [vmem:[%s15202_s1 + $0x5a0] ss:$16 sps:$4 sm:$0xff]  }
 0x14a   : > { %3744 = vmatpush2.bf16.msra.mxu1 %v10643_v37  ;;  %3754 = vmatprep.subr.bf16.mxu0 %v10648_v38  ;;  %v10709_v37 = vld [vmem:[%s15202_s1 + $0x7a0] ss:$16 sps:$4 sm:$0xff]   ;;  %v10714_v38 = vld [vmem:[%s15202_s1 + $0x584] ss:$16 sps:$4 sm:$0xff]  }
 0x14b   : > { %3795 = vmatprep.subr.bf16.mxu1 %v10651_v39  ;;  %v10717_v39 = vld [vmem:[%s15202_s1 + $0x784] ss:$16 sps:$4 sm:$0xff]  }
 0x14c   : > { %v2172_v46 = vpop.f32.mrf.mxu0  ;;  %3705 = vmatmul.mubr.bf16.vlgmr.msra.gmra.mxu0 %v11940_v2 }
 0x14d   : > { %v2213_v47 = vpop.f32.mrf.mxu1  ;;  %3746 = vmatmul.mubr.bf16.vlgmr.msra.gmra.mxu1 %v11942_v3  ;;  %v2173_v49 = vadd.f32 %v2172_v46, %v12635_v28  ;;  %3755 = vmatpush1.bf16.msra.mxu0 %v10646_v40  ;;  %v10658_v28 = vld [vmem:[%s15202_s1 + $0x4a0] ss:$16 sps:$4 sm:$0xff]   ;;  %v10726_v46 = vld [vmem:[%s15202_s1 + $0x544] ss:$16 sps:$4 sm:$0xff]  }
 0x14e   : > { %3796 = vmatpush1.bf16.msra.mxu1 %v10649_v41  ;;  %v2174_v50 = vpop.f32.mrf.mxu0  ;;  %3756 = vmatprep.subr.bf16.mxu0 %v10654_v42  ;;  %v10712_v40 = vld [vmem:[%s15202_s1 + $0x580] ss:$16 sps:$4 sm:$0xff]   ;;  %v10720_v42 = vld [vmem:[%s15202_s1 + $0x564] ss:$16 sps:$4 sm:$0xff]  }
 0x14f   : > { %v2215_v51 = vpop.f32.mrf.mxu1  ;;  %3797 = vmatprep.subr.bf16.mxu1 %v10657_v43  ;;  %v12842_v59 = vadd.f32 %v2213_v47, %v2173_v49  ;;  %v2175_v60 = vadd.f32 %v2174_v50, %v12643_v31  ;;  %3786 = vmatprep.mubr.bf16.mxu0 %v12080_v55  ;;  %v10715_v41 = vld [vmem:[%s15202_s1 + $0x780] ss:$16 sps:$4 sm:$0xff]   ;;  %v10723_v43 = vld [vmem:[%s15202_s1 + $0x764] ss:$16 sps:$4 sm:$0xff]  }
 0x150   : > { %3827 = vmatprep.mubr.bf16.mxu1 %v12084_v56  ;;  %v2176_v62 = vpop.f32.mrf.mxu0  ;;  %v10729_v47 = vld [vmem:[%s15202_s1 + $0x744] ss:$16 sps:$4 sm:$0xff]   ;;  %v10724_v49 = vld [vmem:[%s15202_s1 + $0x540] ss:$16 sps:$4 sm:$0xff]  }
 0x151   : > { %v2217_v63 = vpop.f32.mrf.mxu1  ;;  %v12853_v4 = vadd.f32 %v2215_v51, %v2175_v60  ;;  %3757 = vmatpush1.bf16.msra.mxu0 %v10652_v44  ;;  %v10718_v44 = vld [vmem:[%s15202_s1 + $0x560] ss:$16 sps:$4 sm:$0xff]   ;;  %v10732_v51 = vld [vmem:[%s15202_s1 + $0x524] ss:$16 sps:$4 sm:$0xff]  }
 0x152   : > { %3798 = vmatpush1.bf16.msra.mxu1 %v10655_v45  ;;  %v2177_v5 = vpop.f32.mrf.mxu0  ;;  %3758 = vmatprep.subr.bf16.mxu0 %v10660_v53  ;;  %v10721_v45 = vld [vmem:[%s15202_s1 + $0x760] ss:$16 sps:$4 sm:$0xff]   ;;  %v10735_v53 = vld [vmem:[%s15202_s1 + $0x724] ss:$16 sps:$4 sm:$0xff]  }
 0x153   : > { %v2218_v31 = vpop.f32.mrf.mxu1  ;;  %3799 = vmatprep.subr.bf16.mxu1 %v10663_v58  ;;  %v10727_v50 = vld [vmem:[%s15202_s1 + $0x740] ss:$16 sps:$4 sm:$0xff]   ;;  %v10744_v5 = vld [vmem:[%s15202_s1 + $0xec] ss:$16 sps:$4 sm:$0xff]  }
 0x154   : > { %v10730_v58 = vld [vmem:[%s15202_s1 + $0x520] ss:$16 sps:$4 sm:$0xff]   ;;  %v10747_v31 = vld [vmem:[%s15202_s1 + $0x2ec] ss:$16 sps:$4 sm:$0xff]  }
 0x155   : > { %3759 = vmatpush1.bf16.msra.mxu0 %v10658_v28  ;;  %v10733_v60 = vld [vmem:[%s15202_s1 + $0x720] ss:$16 sps:$4 sm:$0xff]   ;;  %v10738_v28 = vld [vmem:[%s15202_s1 + $0x504] ss:$16 sps:$4 sm:$0xff]  }
 0x156   : > { %3800 = vmatpush1.bf16.msra.mxu1 %v10661_v61  ;;  %3760 = vmatprep.subr.bf16.mxu0 %v10666_v6  ;;  %v10741_v61 = vld [vmem:[%s15202_s1 + $0x704] ss:$16 sps:$4 sm:$0xff]   ;;  %v10736_v62 = vld [vmem:[%s15202_s1 + $0x500] ss:$16 sps:$4 sm:$0xff]   ;;  %v10742_v6 = vld [vmem:[%s15202_s1 + $0xe8] ss:$16 sps:$4 sm:$0xff]  }
 0x157   : > { %3801 = vmatprep.subr.bf16.mxu1 %v10669_v7  ;;  %v10739_v63 = vld [vmem:[%s15202_s1 + $0x700] ss:$16 sps:$4 sm:$0xff]   ;;  %v10745_v7 = vld [vmem:[%s15202_s1 + $0x2e8] ss:$16 sps:$4 sm:$0xff]  }
 0x159   : > { %3761 = vmatpush1.bf16.msra.mxu0 %v10664_v10  ;;  %v10750_v10 = vld [vmem:[%s15202_s1 + $0xcc] ss:$16 sps:$4 sm:$0xff]  }
 0x15a   : > { %3802 = vmatpush1.bf16.msra.mxu1 %v10667_v0  ;;  %3762 = vmatprep.subr.bf16.mxu0 %v10672_v1  ;;  %v10753_v0 = vld [vmem:[%s15202_s1 + $0x2cc] ss:$16 sps:$4 sm:$0xff]   ;;  %v10748_v1 = vld [vmem:[%s15202_s1 + $0xc8] ss:$16 sps:$4 sm:$0xff]  }
 0x15b   : > { %3803 = vmatprep.subr.bf16.mxu1 %v10675_v11  ;;  %v10751_v11 = vld [vmem:[%s15202_s1 + $0x2c8] ss:$16 sps:$4 sm:$0xff]  }
 0x15d   : > { %3763 = vmatpush1.bf16.msra.mxu0 %v10670_v12 }
 0x15e   : > { %3804 = vmatpush1.bf16.msra.mxu1 %v10673_v13  ;;  %3764 = vmatprep.subr.bf16.mxu0 %v10678_v14 }
 0x15f   : > { %3805 = vmatprep.subr.bf16.mxu1 %v10681_v15 }
 0x161   : > { %3765 = vmatpush1.bf16.msra.mxu0 %v10676_v16 }
 0x162   : > { %3806 = vmatpush1.bf16.msra.mxu1 %v10679_v17  ;;  %3766 = vmatprep.subr.bf16.mxu0 %v10684_v18  ;;  %v10756_v17 = vld [vmem:[%s15202_s1 + $0xac] ss:$16 sps:$4 sm:$0xff]  }
 0x163   : > { %3807 = vmatprep.subr.bf16.mxu1 %v10687_v22  ;;  %v10759_v18 = vld [vmem:[%s15202_s1 + $0x2ac] ss:$16 sps:$4 sm:$0xff]  }
 0x165   : > { %3767 = vmatpush1.bf16.msra.mxu0 %v10682_v23  ;;  %v10754_v23 = vld [vmem:[%s15202_s1 + $0xa8] ss:$16 sps:$4 sm:$0xff]  }
 0x166   : > { %3808 = vmatpush1.bf16.msra.mxu1 %v10685_v19  ;;  %3768 = vmatprep.subr.bf16.mxu0 %v10690_v20  ;;  %v10757_v19 = vld [vmem:[%s15202_s1 + $0x2a8] ss:$16 sps:$4 sm:$0xff]  }
 0x167   : > { %3809 = vmatprep.subr.bf16.mxu1 %v10693_v8 }
 0x169   : > { %3769 = vmatpush1.bf16.msra.mxu0 %v10688_v9 }
 0x16a   : > { %3810 = vmatpush1.bf16.msra.mxu1 %v10691_v21  ;;  %3770 = vmatprep.subr.bf16.mxu0 %v10696_v24  ;;  %v10762_v24 = vld [vmem:[%s15202_s1 + $0x8c] ss:$16 sps:$4 sm:$0xff]  }
 0x16b   : > { %3811 = vmatprep.subr.bf16.mxu1 %v10699_v25  ;;  %v10765_v25 = vld [vmem:[%s15202_s1 + $0x28c] ss:$16 sps:$4 sm:$0xff]  }
 0x16d   : > { %3771 = vmatpush2.bf16.msra.mxu0 %v10694_v26  ;;  %v10768_v26 = vld [vmem:[%s15202_s1 + $0x6c] ss:$16 sps:$4 sm:$0xff]  }
 0x16e   : > { %3812 = vmatpush2.bf16.msra.mxu1 %v10697_v27  ;;  %3772 = vmatprep.subr.bf16.mxu0 %v10702_v29  ;;  %v10771_v27 = vld [vmem:[%s15202_s1 + $0x26c] ss:$16 sps:$4 sm:$0xff]   ;;  %v10766_v29 = vld [vmem:[%s15202_s1 + $0x68] ss:$16 sps:$4 sm:$0xff]  }
 0x16f   : > { %3813 = vmatprep.subr.bf16.mxu1 %v10705_v30  ;;  %v10769_v30 = vld [vmem:[%s15202_s1 + $0x268] ss:$16 sps:$4 sm:$0xff]  }
 0x171   : > { %3773 = vmatpush2.bf16.msra.mxu0 %v10700_v54  ;;  %v10774_v54 = vld [vmem:[%s15202_s1 + $0x4c] ss:$16 sps:$4 sm:$0xff]  }
 0x172   : > { %3814 = vmatpush2.bf16.msra.mxu1 %v10703_v57  ;;  %3774 = vmatprep.subr.bf16.mxu0 %v10708_v32  ;;  %v10777_v57 = vld [vmem:[%s15202_s1 + $0x24c] ss:$16 sps:$4 sm:$0xff]   ;;  %v10772_v32 = vld [vmem:[%s15202_s1 + $0x48] ss:$16 sps:$4 sm:$0xff]  }
 0x173   : > { %3815 = vmatprep.subr.bf16.mxu1 %v10711_v33  ;;  %v10775_v33 = vld [vmem:[%s15202_s1 + $0x248] ss:$16 sps:$4 sm:$0xff]  }
 0x175   : > { %3775 = vmatpush2.bf16.msra.mxu0 %v10706_v36  ;;  %v10780_v36 = vld [vmem:[%s15202_s1 + $0x2c] ss:$16 sps:$4 sm:$0xff]  }
 0x176   : > { %3816 = vmatpush2.bf16.msra.mxu1 %v10709_v37  ;;  %3776 = vmatprep.subr.bf16.mxu0 %v10714_v38  ;;  %v10783_v37 = vld [vmem:[%s15202_s1 + $0x22c] ss:$16 sps:$4 sm:$0xff]   ;;  %v10778_v38 = vld [vmem:[%s15202_s1 + $0x28] ss:$16 sps:$4 sm:$0xff]  }
 0x177   : > { %3817 = vmatprep.subr.bf16.mxu1 %v10717_v39  ;;  %v10781_v39 = vld [vmem:[%s15202_s1 + $0x228] ss:$16 sps:$4 sm:$0xff]  }
 0x179   : > { %3777 = vmatpush2.bf16.msra.mxu0 %v10712_v40  ;;  %v10786_v40 = vld [vmem:[%s15202_s1 + $0xc] ss:$16 sps:$4 sm:$0xff]  }
 0x17a   : > { %3818 = vmatpush2.bf16.msra.mxu1 %v10715_v41  ;;  %3778 = vmatprep.subr.bf16.mxu0 %v10720_v42  ;;  %v10789_v41 = vld [vmem:[%s15202_s1 + $0x20c] ss:$16 sps:$4 sm:$0xff]   ;;  %v10784_v42 = vld [vmem:[%s15202_s1 + $0x8] ss:$16 sps:$4 sm:$0xff]  }
 0x17b   : > { %3819 = vmatprep.subr.bf16.mxu1 %v10723_v43  ;;  %v10787_v43 = vld [vmem:[%s15202_s1 + $0x208] ss:$16 sps:$4 sm:$0xff]  }
 0x17d   : > { %3779 = vmatpush2.bf16.msra.mxu0 %v10718_v44  ;;  %v10792_v44 = vld [vmem:[%s15202_s1 + $0x1ec] ss:$16 sps:$4 sm:$0xff]  }
 0x17e   : > { %3820 = vmatpush2.bf16.msra.mxu1 %v10721_v45  ;;  %3780 = vmatprep.subr.bf16.mxu0 %v10726_v46  ;;  %v10795_v45 = vld [vmem:[%s15202_s1 + $0x3ec] ss:$16 sps:$4 sm:$0xff]   ;;  %v10790_v46 = vld [vmem:[%s15202_s1 + $0x1e8] ss:$16 sps:$4 sm:$0xff]  }
 0x17f   : > { %3821 = vmatprep.subr.bf16.mxu1 %v10729_v47  ;;  %v10793_v47 = vld [vmem:[%s15202_s1 + $0x3e8] ss:$16 sps:$4 sm:$0xff]  }
 0x181   : > { %3781 = vmatpush2.bf16.msra.mxu0 %v10724_v49  ;;  %v10798_v49 = vld [vmem:[%s15202_s1 + $0x1cc] ss:$16 sps:$4 sm:$0xff]  }
 0x182   : > { %3822 = vmatpush2.bf16.msra.mxu1 %v10727_v50  ;;  %3782 = vmatprep.subr.bf16.mxu0 %v10732_v51  ;;  %v10801_v50 = vld [vmem:[%s15202_s1 + $0x3cc] ss:$16 sps:$4 sm:$0xff]   ;;  %v10796_v51 = vld [vmem:[%s15202_s1 + $0x1c8] ss:$16 sps:$4 sm:$0xff]  }
 0x183   : > { %3823 = vmatprep.subr.bf16.mxu1 %v10735_v53  ;;  %v10799_v53 = vld [vmem:[%s15202_s1 + $0x3c8] ss:$16 sps:$4 sm:$0xff]  }
 0x185   : > { %3783 = vmatpush2.bf16.msra.mxu0 %v10730_v58  ;;  %v10804_v58 = vld [vmem:[%s15202_s1 + $0x1ac] ss:$16 sps:$4 sm:$0xff]  }
 0x186   : > { %3824 = vmatpush2.bf16.msra.mxu1 %v10733_v60  ;;  %3784 = vmatprep.subr.bf16.mxu0 %v10738_v28  ;;  %v10807_v60 = vld [vmem:[%s15202_s1 + $0x3ac] ss:$16 sps:$4 sm:$0xff]   ;;  %v10802_v28 = vld [vmem:[%s15202_s1 + $0x1a8] ss:$16 sps:$4 sm:$0xff]  }
 0x187   : > { %3825 = vmatprep.subr.bf16.mxu1 %v10741_v61  ;;  %v10805_v61 = vld [vmem:[%s15202_s1 + $0x3a8] ss:$16 sps:$4 sm:$0xff]  }
 0x189   : > { %3785 = vmatpush2.bf16.msra.mxu0 %v10736_v62  ;;  %v10810_v62 = vld [vmem:[%s15202_s1 + $0x18c] ss:$16 sps:$4 sm:$0xff]  }
 0x18a   : > { %3826 = vmatpush2.bf16.msra.mxu1 %v10739_v63  ;;  %3836 = vmatprep.subr.bf16.mxu0 %v10744_v5  ;;  %v10813_v63 = vld [vmem:[%s15202_s1 + $0x38c] ss:$16 sps:$4 sm:$0xff]   ;;  %v10808_v5 = vld [vmem:[%s15202_s1 + $0x188] ss:$16 sps:$4 sm:$0xff]  }
 0x18b   : > { %3877 = vmatprep.subr.bf16.mxu1 %v10747_v31  ;;  %v10811_v31 = vld [vmem:[%s15202_s1 + $0x388] ss:$16 sps:$4 sm:$0xff]  }
 0x18c   : > { %v2254_v12 = vpop.f32.mrf.mxu0  ;;  %3787 = vmatmul.mubr.bf16.vlgmr.msra.gmra.mxu0 %v12179_v34 }
 0x18d   : > { %v2295_v13 = vpop.f32.mrf.mxu1  ;;  %3828 = vmatmul.mubr.bf16.vlgmr.msra.gmra.mxu1 %v12183_v35  ;;  %3837 = vmatpush1.bf16.msra.mxu0 %v10742_v6  ;;  %v10816_v6 = vld [vmem:[%s15202_s1 + $0x16c] ss:$16 sps:$4 sm:$0xff]  }
 0x18e   : > { %v13037_v14 = vadd.f32 %v2295_v13, %v2254_v12  ;;  %3878 = vmatpush1.bf16.msra.mxu1 %v10745_v7  ;;  %v2256_v15 = vpop.f32.mrf.mxu0  ;;  %3838 = vmatprep.subr.bf16.mxu0 %v10750_v10  ;;  %v10819_v7 = vld [vmem:[%s15202_s1 + $0x36c] ss:$16 sps:$4 sm:$0xff]   ;;  %v10814_v10 = vld [vmem:[%s15202_s1 + $0x168] ss:$16 sps:$4 sm:$0xff]  }
 0x18f   : > { %v2297_v16 = vpop.f32.mrf.mxu1  ;;  %3879 = vmatprep.subr.bf16.mxu1 %v10753_v0  ;;  %3868 = vmatprep.mubr.bf16.mxu0 %v11905_v48  ;;  %v10760_v48 = vld [vmem:[%s15202_s1 + $0x88] ss:$16 sps:$4 sm:$0xff]  }
 0x190   : > { %v13045_v22 = vadd.f32 %v2297_v16, %v2256_v15  ;;  %3909 = vmatprep.mubr.bf16.mxu1 %v11914_v52  ;;  %v2258_v20 = vpop.f32.mrf.mxu0  ;;  %v10763_v52 = vld [vmem:[%s15202_s1 + $0x288] ss:$16 sps:$4 sm:$0xff]   ;;  %v10828_v15 = vld [vmem:[%s15202_s1 + $0x12c] ss:$16 sps:$4 sm:$0xff]  }
 0x191   : > { %v2299_v8 = vpop.f32.mrf.mxu1  ;;  %3839 = vmatpush1.bf16.msra.mxu0 %v10748_v1  ;;  %v10817_v0 = vld [vmem:[%s15202_s1 + $0x368] ss:$16 sps:$4 sm:$0xff]   ;;  %v10822_v1 = vld [vmem:[%s15202_s1 + $0x14c] ss:$16 sps:$4 sm:$0xff]  }
 0x192   : > { %3880 = vmatpush1.bf16.msra.mxu1 %v10751_v11  ;;  %v2259_v9 = vpop.f32.mrf.mxu0  ;;  %3840 = vmatprep.subr.bf16.mxu0 %v10756_v17  ;;  %v10825_v11 = vld [vmem:[%s15202_s1 + $0x34c] ss:$16 sps:$4 sm:$0xff]   ;;  %v10820_v12 = vld [vmem:[%s15202_s1 + $0x148] ss:$16 sps:$4 sm:$0xff]  }
 0x193   : > { %v2300_v21 = vpop.f32.mrf.mxu1  ;;  %3881 = vmatprep.subr.bf16.mxu1 %v10759_v18  ;;  %v10823_v13 = vld [vmem:[%s15202_s1 + $0x348] ss:$16 sps:$4 sm:$0xff]   ;;  %v10831_v16 = vld [vmem:[%s15202_s1 + $0x32c] ss:$16 sps:$4 sm:$0xff]  }
 0x194   : > { %v10826_v17 = vld [vmem:[%s15202_s1 + $0x128] ss:$16 sps:$4 sm:$0xff]   ;;  %v10840_v9 = vld [vmem:[%s15202_s1 + $0x4ec] ss:$16 sps:$4 sm:$0xff]  }
 0x195   : > { %3841 = vmatpush1.bf16.msra.mxu0 %v10754_v23  ;;  %v10829_v18 = vld [vmem:[%s15202_s1 + $0x328] ss:$16 sps:$4 sm:$0xff]   ;;  %v10834_v23 = vld [vmem:[%s15202_s1 + $0x10c] ss:$16 sps:$4 sm:$0xff]  }
 0x196   : > { %3882 = vmatpush1.bf16.msra.mxu1 %v10757_v19  ;;  %3842 = vmatprep.subr.bf16.mxu0 %v10762_v24  ;;  %v10837_v19 = vld [vmem:[%s15202_s1 + $0x30c] ss:$16 sps:$4 sm:$0xff]   ;;  %v10832_v20 = vld [vmem:[%s15202_s1 + $0x108] ss:$16 sps:$4 sm:$0xff]  }
 0x197   : > { %3883 = vmatprep.subr.bf16.mxu1 %v10765_v25  ;;  %v10835_v8 = vld [vmem:[%s15202_s1 + $0x308] ss:$16 sps:$4 sm:$0xff]   ;;  %v10843_v21 = vld [vmem:[%s15202_s1 + $0x6ec] ss:$16 sps:$4 sm:$0xff]  }
 0x198   : > { %v10838_v24 = vld [vmem:[%s15202_s1 + $0x4e8] ss:$16 sps:$4 sm:$0xff]  }
 0x199   : > { %3843 = vmatpush1.bf16.msra.mxu0 %v10760_v48  ;;  %v10841_v25 = vld [vmem:[%s15202_s1 + $0x6e8] ss:$16 sps:$4 sm:$0xff]   ;;  %v10846_v48 = vld [vmem:[%s15202_s1 + $0x4cc] ss:$16 sps:$4 sm:$0xff]  }
 0x19a   : > { %3884 = vmatpush1.bf16.msra.mxu1 %v10763_v52  ;;  %3844 = vmatprep.subr.bf16.mxu0 %v10768_v26  ;;  %v10849_v52 = vld [vmem:[%s15202_s1 + $0x6cc] ss:$16 sps:$4 sm:$0xff]   ;;  %v10844_v26 = vld [vmem:[%s15202_s1 + $0x4c8] ss:$16 sps:$4 sm:$0xff]  }
 0x19b   : > { %3885 = vmatprep.subr.bf16.mxu1 %v10771_v27  ;;  %v10847_v27 = vld [vmem:[%s15202_s1 + $0x6c8] ss:$16 sps:$4 sm:$0xff]  }
 0x19d   : > { %3845 = vmatpush1.bf16.msra.mxu0 %v10766_v29 }
 0x19e   : > { %3886 = vmatpush1.bf16.msra.mxu1 %v10769_v30  ;;  %3846 = vmatprep.subr.bf16.mxu0 %v10774_v54 }
 0x19f   : > { %3887 = vmatprep.subr.bf16.mxu1 %v10777_v57 }
 0x1a1   : > { %3847 = vmatpush1.bf16.msra.mxu0 %v10772_v32 }
 0x1a2   : > { %3888 = vmatpush1.bf16.msra.mxu1 %v10775_v33  ;;  %3848 = vmatprep.subr.bf16.mxu0 %v10780_v36  ;;  %v10852_v33 = vld [vmem:[%s15202_s1 + $0x4ac] ss:$16 sps:$4 sm:$0xff]  }
 0x1a3   : > { %3889 = vmatprep.subr.bf16.mxu1 %v10783_v37  ;;  %v10855_v36 = vld [vmem:[%s15202_s1 + $0x6ac] ss:$16 sps:$4 sm:$0xff]  }
 0x1a5   : > { %3849 = vmatpush1.bf16.msra.mxu0 %v10778_v38 }
 0x1a6   : > { %3890 = vmatpush1.bf16.msra.mxu1 %v10781_v39  ;;  %3850 = vmatprep.subr.bf16.mxu0 %v10786_v40 }
 0x1a7   : > { %3891 = vmatprep.subr.bf16.mxu1 %v10789_v41 }
 0x1a9   : > { %3851 = vmatpush1.bf16.msra.mxu0 %v10784_v42  ;;  %v10858_v42 = vld [vmem:[%s15202_s1 + $0x48c] ss:$16 sps:$4 sm:$0xff]  }
 0x1aa   : > { %3892 = vmatpush1.bf16.msra.mxu1 %v10787_v43  ;;  %3852 = vmatprep.subr.bf16.mxu0 %v10792_v44  ;;  %v10859_v43 = vld [vmem:[%s15202_s1 + $0x688] ss:$16 sps:$4 sm:$0xff]   ;;  %v10864_v44 = vld [vmem:[%s15202_s1 + $0x46c] ss:$16 sps:$4 sm:$0xff]  }
 0x1ab   : > { %3893 = vmatprep.subr.bf16.mxu1 %v10795_v45  ;;  %v10867_v45 = vld [vmem:[%s15202_s1 + $0x66c] ss:$16 sps:$4 sm:$0xff]  }
 0x1ad   : > { %3853 = vmatpush2.bf16.msra.mxu0 %v10790_v46  ;;  %v10862_v46 = vld [vmem:[%s15202_s1 + $0x468] ss:$16 sps:$4 sm:$0xff]  }
 0x1ae   : > { %3894 = vmatpush2.bf16.msra.mxu1 %v10793_v47  ;;  %3854 = vmatprep.subr.bf16.mxu0 %v10798_v49  ;;  %v10865_v47 = vld [vmem:[%s15202_s1 + $0x668] ss:$16 sps:$4 sm:$0xff]   ;;  %v10870_v49 = vld [vmem:[%s15202_s1 + $0x44c] ss:$16 sps:$4 sm:$0xff]  }
 0x1af   : > { %3895 = vmatprep.subr.bf16.mxu1 %v10801_v50  ;;  %v10873_v50 = vld [vmem:[%s15202_s1 + $0x64c] ss:$16 sps:$4 sm:$0xff]  }
 0x1b1   : > { %3855 = vmatpush2.bf16.msra.mxu0 %v10796_v51  ;;  %v10868_v51 = vld [vmem:[%s15202_s1 + $0x448] ss:$16 sps:$4 sm:$0xff]  }
 0x1b2   : > { %3896 = vmatpush2.bf16.msra.mxu1 %v10799_v53  ;;  %3856 = vmatprep.subr.bf16.mxu0 %v10804_v58  ;;  %v10871_v53 = vld [vmem:[%s15202_s1 + $0x648] ss:$16 sps:$4 sm:$0xff]   ;;  %v10876_v58 = vld [vmem:[%s15202_s1 + $0x42c] ss:$16 sps:$4 sm:$0xff]  }
 0x1b3   : > { %3897 = vmatprep.subr.bf16.mxu1 %v10807_v60  ;;  %v10879_v60 = vld [vmem:[%s15202_s1 + $0x62c] ss:$16 sps:$4 sm:$0xff]  }
 0x1b5   : > { %3857 = vmatpush2.bf16.msra.mxu0 %v10802_v28  ;;  %v10874_v28 = vld [vmem:[%s15202_s1 + $0x428] ss:$16 sps:$4 sm:$0xff]  }
 0x1b6   : > { %3898 = vmatpush2.bf16.msra.mxu1 %v10805_v61  ;;  %3858 = vmatprep.subr.bf16.mxu0 %v10810_v62  ;;  %v10877_v61 = vld [vmem:[%s15202_s1 + $0x628] ss:$16 sps:$4 sm:$0xff]   ;;  %v10882_v62 = vld [vmem:[%s15202_s1 + $0x40c] ss:$16 sps:$4 sm:$0xff]  }
 0x1b7   : > { %3899 = vmatprep.subr.bf16.mxu1 %v10813_v63  ;;  %v10885_v63 = vld [vmem:[%s15202_s1 + $0x60c] ss:$16 sps:$4 sm:$0xff]  }
 0x1b9   : > { %3859 = vmatpush2.bf16.msra.mxu0 %v10808_v5  ;;  %v10880_v5 = vld [vmem:[%s15202_s1 + $0x408] ss:$16 sps:$4 sm:$0xff]  }
 0x1ba   : > { %3900 = vmatpush2.bf16.msra.mxu1 %v10811_v31  ;;  %3860 = vmatprep.subr.bf16.mxu0 %v10816_v6  ;;  %v10883_v31 = vld [vmem:[%s15202_s1 + $0x608] ss:$16 sps:$4 sm:$0xff]   ;;  %v10888_v6 = vld [vmem:[%s15202_s1 + $0x5ec] ss:$16 sps:$4 sm:$0xff]  }
 0x1bb   : > { %3901 = vmatprep.subr.bf16.mxu1 %v10819_v7  ;;  %v10891_v7 = vld [vmem:[%s15202_s1 + $0x7ec] ss:$16 sps:$4 sm:$0xff]  }
 0x1bd   : > { %3861 = vmatpush2.bf16.msra.mxu0 %v10814_v10  ;;  %v10886_v10 = vld [vmem:[%s15202_s1 + $0x5e8] ss:$16 sps:$4 sm:$0xff]  }
 0x1be   : > { %3902 = vmatpush2.bf16.msra.mxu1 %v10817_v0  ;;  %3862 = vmatprep.subr.bf16.mxu0 %v10822_v1  ;;  %v10889_v0 = vld [vmem:[%s15202_s1 + $0x7e8] ss:$16 sps:$4 sm:$0xff]   ;;  %v10894_v1 = vld [vmem:[%s15202_s1 + $0x5cc] ss:$16 sps:$4 sm:$0xff]  }
 0x1bf   : > { %3903 = vmatprep.subr.bf16.mxu1 %v10825_v11  ;;  %v10897_v11 = vld [vmem:[%s15202_s1 + $0x7cc] ss:$16 sps:$4 sm:$0xff]  }
 0x1c1   : > { %3863 = vmatpush2.bf16.msra.mxu0 %v10820_v12  ;;  %v10892_v12 = vld [vmem:[%s15202_s1 + $0x5c8] ss:$16 sps:$4 sm:$0xff]  }
 0x1c2   : > { %3904 = vmatpush2.bf16.msra.mxu1 %v10823_v13  ;;  %3864 = vmatprep.subr.bf16.mxu0 %v10828_v15  ;;  %v10895_v13 = vld [vmem:[%s15202_s1 + $0x7c8] ss:$16 sps:$4 sm:$0xff]   ;;  %v10900_v15 = vld [vmem:[%s15202_s1 + $0x5ac] ss:$16 sps:$4 sm:$0xff]  }
 0x1c3   : > { %3905 = vmatprep.subr.bf16.mxu1 %v10831_v16  ;;  %v10903_v16 = vld [vmem:[%s15202_s1 + $0x7ac] ss:$16 sps:$4 sm:$0xff]  }
 0x1c5   : > { %3865 = vmatpush2.bf16.msra.mxu0 %v10826_v17  ;;  %v10898_v17 = vld [vmem:[%s15202_s1 + $0x5a8] ss:$16 sps:$4 sm:$0xff]  }
 0x1c6   : > { %3906 = vmatpush2.bf16.msra.mxu1 %v10829_v18  ;;  %3866 = vmatprep.subr.bf16.mxu0 %v10834_v23  ;;  %v10901_v18 = vld [vmem:[%s15202_s1 + $0x7a8] ss:$16 sps:$4 sm:$0xff]   ;;  %v10906_v23 = vld [vmem:[%s15202_s1 + $0x58c] ss:$16 sps:$4 sm:$0xff]  }
 0x1c7   : > { %3907 = vmatprep.subr.bf16.mxu1 %v10837_v19  ;;  %v10909_v19 = vld [vmem:[%s15202_s1 + $0x78c] ss:$16 sps:$4 sm:$0xff]  }
 0x1c9   : > { %3867 = vmatpush2.bf16.msra.mxu0 %v10832_v20  ;;  %v10904_v20 = vld [vmem:[%s15202_s1 + $0x588] ss:$16 sps:$4 sm:$0xff]  }
 0x1ca   : > { %3908 = vmatpush2.bf16.msra.mxu1 %v10835_v8  ;;  %3918 = vmatprep.subr.bf16.mxu0 %v10840_v9  ;;  %v10907_v8 = vld [vmem:[%s15202_s1 + $0x788] ss:$16 sps:$4 sm:$0xff]   ;;  %v10912_v9 = vld [vmem:[%s15202_s1 + $0x56c] ss:$16 sps:$4 sm:$0xff]  }
 0x1cb   : > { %3959 = vmatprep.subr.bf16.mxu1 %v10843_v21  ;;  %v10915_v21 = vld [vmem:[%s15202_s1 + $0x76c] ss:$16 sps:$4 sm:$0xff]  }
 0x1cc   : > { %v2336_v29 = vpop.f32.mrf.mxu0  ;;  %3869 = vmatmul.mubr.bf16.vlgmr.msra.gmra.mxu0 %v11940_v2 }
 0x1cd   : > { %v2377_v30 = vpop.f32.mrf.mxu1  ;;  %3910 = vmatmul.mubr.bf16.vlgmr.msra.gmra.mxu1 %v11942_v3  ;;  %v2337_v54 = vadd.f32 %v2336_v29, %v13037_v14  ;;  %3919 = vmatpush1.bf16.msra.mxu0 %v10838_v24  ;;  %v10850_v3 = vld [vmem:[%s15202_s1 + $0x4a8] ss:$16 sps:$4 sm:$0xff]  }
 0x1ce   : > { %3960 = vmatpush1.bf16.msra.mxu1 %v10841_v25  ;;  %v2338_v57 = vpop.f32.mrf.mxu0  ;;  %3920 = vmatprep.subr.bf16.mxu0 %v10846_v48  ;;  %v10853_v14 = vld [vmem:[%s15202_s1 + $0x6a8] ss:$16 sps:$4 sm:$0xff]   ;;  %v10918_v48 = vld [vmem:[%s15202_s1 + $0x54c] ss:$16 sps:$4 sm:$0xff]  }
 0x1cf   : > { %v2379_v32 = vpop.f32.mrf.mxu1  ;;  %3961 = vmatprep.subr.bf16.mxu1 %v10849_v52  ;;  %v13244_v37 = vadd.f32 %v2377_v30, %v2337_v54  ;;  %v2339_v2 = vadd.f32 %v2338_v57, %v13045_v22  ;;  %3950 = vmatprep.mubr.bf16.mxu0 %v12080_v55  ;;  %v10861_v55 = vld [vmem:[%s15202_s1 + $0x68c] ss:$16 sps:$4 sm:$0xff]   ;;  %v10910_v24 = vld [vmem:[%s15202_s1 + $0x568] ss:$16 sps:$4 sm:$0xff]  }
 0x1d0   : > { %3991 = vmatprep.mubr.bf16.mxu1 %v12084_v56  ;;  %v2340_v38 = vpop.f32.mrf.mxu0  ;;  %v10856_v56 = vld [vmem:[%s15202_s1 + $0x488] ss:$16 sps:$4 sm:$0xff]   ;;  %v10921_v52 = vld [vmem:[%s15202_s1 + $0x74c] ss:$16 sps:$4 sm:$0xff]  }
 0x1d1   : > { %v2381_v39 = vpop.f32.mrf.mxu1  ;;  %v13255_v40 = vadd.f32 %v2379_v32, %v2339_v2  ;;  %3921 = vmatpush1.bf16.msra.mxu0 %v10844_v26  ;;  %v10913_v25 = vld [vmem:[%s15202_s1 + $0x768] ss:$16 sps:$4 sm:$0xff]   ;;  %v13384_v26 = vld [vmem:[%s11893_s30 + $0x20] sm:$0xff]  ;;  %v10924_v54 = vld [vmem:[%s15202_s1 + $0x52c] ss:$16 sps:$4 sm:$0xff]  }
 0x1d2   : > { %3962 = vmatpush1.bf16.msra.mxu1 %v10847_v27  ;;  %v2341_v41 = vpop.f32.mrf.mxu0  ;;  %3922 = vmatprep.subr.bf16.mxu0 %v10852_v33  ;;  %v13387_v27 = vld [vmem:[%s11893_s30 + $0x28] sm:$0xff]  ;;  %v13402_v32 = vld [vmem:[%s11893_s30] sm:$0xff] }
 0x1d3   : > { %v2382_v22 = vpop.f32.mrf.mxu1  ;;  %3963 = vmatprep.subr.bf16.mxu1 %v10855_v36  ;;  %v10916_v29 = vld [vmem:[%s15202_s1 + $0x548] ss:$16 sps:$4 sm:$0xff]   ;;  %v10927_v57 = vld [vmem:[%s15202_s1 + $0x72c] ss:$16 sps:$4 sm:$0xff]   ;;  %v13406_v33 = vcombine.high %v13402_v32, %v13384_v26 }
 0x1d4   : > { %v10919_v30 = vld [vmem:[%s15202_s1 + $0x748] ss:$16 sps:$4 sm:$0xff]   ;;  %v10930_v38 = vld [vmem:[%s15202_s1 + $0x50c] ss:$16 sps:$4 sm:$0xff]  }
 0x1d5   : > { %3923 = vmatpush1.bf16.msra.mxu0 %v10850_v3  ;;  %v13409_v36 = vld [vmem:[%s11893_s30 + $0x8] sm:$0xff]  ;;  %v4286_v41 = vshrl.u32 %v13406_v33, 16  ;;  %v4289_v22 = vshll.u32 %v13406_v33, 16 }
 0x1d6   : > { %3964 = vmatpush1.bf16.msra.mxu1 %v10853_v14  ;;  %3924 = vmatprep.subr.bf16.mxu0 %v10858_v42  ;;  %v13413_v2 = vcombine.high %v13409_v36, %v13387_v27  ;;  %v10922_v3 = vld [vmem:[%s15202_s1 + $0x528] ss:$16 sps:$4 sm:$0xff]   ;;  %v10933_v39 = vld [vmem:[%s15202_s1 + $0x70c] ss:$16 sps:$4 sm:$0xff]  }
 0x1d7   : > { %3965 = vmatprep.subr.bf16.mxu1 %v10861_v55  ;;  %v10925_v14 = vld [vmem:[%s15202_s1 + $0x728] ss:$16 sps:$4 sm:$0xff]  }
 0x1d8   : > { %v4302_v42 = vshrl.u32 %v13413_v2, 16  ;;  %v4305_v55 = vshll.u32 %v13413_v2, 16 }
 0x1d9   : > { %3925 = vmatpush1.bf16.msra.mxu0 %v10856_v56  ;;  %v10928_v56 = vld [vmem:[%s15202_s1 + $0x508] ss:$16 sps:$4 sm:$0xff]  }
 0x1da   : > { %3966 = vmatpush1.bf16.msra.mxu1 %v10859_v43  ;;  %3926 = vmatprep.subr.bf16.mxu0 %v10864_v44  ;;  %v10931_v43 = vld [vmem:[%s15202_s1 + $0x708] ss:$16 sps:$4 sm:$0xff]   ;;  %v10936_v44 = vld [vmem:[%s15202_s1 + $0x10e4] ss:$16 sps:$4 sm:$0xff]  }
 0x1db   : > { %3967 = vmatprep.subr.bf16.mxu1 %v10867_v45  ;;  %v10939_v45 = vld [vmem:[%s15202_s1 + $0x12e4] ss:$16 sps:$4 sm:$0xff]  }
 0x1dd   : > { %3927 = vmatpush1.bf16.msra.mxu0 %v10862_v46  ;;  %v10934_v46 = vld [vmem:[%s15202_s1 + $0x10e0] ss:$16 sps:$4 sm:$0xff]  }
 0x1de   : > { %3968 = vmatpush1.bf16.msra.mxu1 %v10865_v47  ;;  %3928 = vmatprep.subr.bf16.mxu0 %v10870_v49  ;;  %v4288_v47 = vrot.slane %v4286_v41, 1  ;;  %v4291_v49 = vrot.slane %v4289_v22, 2  ;;  %v10984_v41 = vld [vmem:[%s15202_s1 + $0x11e4] ss:$16 sps:$4 sm:$0xff]  }
 0x1df   : > { %3969 = vmatprep.subr.bf16.mxu1 %v10873_v50  ;;  %v4304_v50 = vrot.slane %v4302_v42, 1  ;;  %v10987_v22 = vld [vmem:[%s15202_s1 + $0x13e4] ss:$16 sps:$4 sm:$0xff]   ;;  %v10982_v42 = vld [vmem:[%s15202_s1 + $0x11e0] ss:$16 sps:$4 sm:$0xff]  }
 0x1e1   : > { %3929 = vmatpush1.bf16.msra.mxu0 %v10868_v51  ;;  %v4307_v51 = vrot.slane %v4305_v55, 2  ;;  %v10985_v55 = vld [vmem:[%s15202_s1 + $0x13e0] ss:$16 sps:$4 sm:$0xff]  }
 0x1e2   : > { %3970 = vmatpush1.bf16.msra.mxu1 %v10871_v53  ;;  %3930 = vmatprep.subr.bf16.mxu0 %v10876_v58  ;;  %v10937_v53 = vld [vmem:[%s15202_s1 + $0x12e0] ss:$16 sps:$4 sm:$0xff]   ;;  %v10942_v58 = vld [vmem:[%s15202_s1 + $0x10c4] ss:$16 sps:$4 sm:$0xff]  }
 0x1e3   : > { %3971 = vmatprep.subr.bf16.mxu1 %v10879_v60  ;;  %v10945_v60 = vld [vmem:[%s15202_s1 + $0x12c4] ss:$16 sps:$4 sm:$0xff]  }
 0x1e5   : > { %3931 = vmatpush1.bf16.msra.mxu0 %v10874_v28  ;;  %v10940_v28 = vld [vmem:[%s15202_s1 + $0x10c0] ss:$16 sps:$4 sm:$0xff]  }
 0x1e6   : > { %3972 = vmatpush1.bf16.msra.mxu1 %v10877_v61  ;;  %3932 = vmatprep.subr.bf16.mxu0 %v10882_v62  ;;  %v10943_v61 = vld [vmem:[%s15202_s1 + $0x12c0] ss:$16 sps:$4 sm:$0xff]   ;;  %v13461_v62 = vor.u32 %v4291_v49, %v4288_v47  ;;  %v10999_v47 = vld [vmem:[%s15202_s1 + $0x13a4] ss:$16 sps:$4 sm:$0xff]  }
 0x1e7   : > { %3973 = vmatprep.subr.bf16.mxu1 %v10885_v63  ;;  %v13463_v63 = vor.u32 %v4307_v51, %v4304_v50  ;;  %v10994_v49 = vld [vmem:[%s15202_s1 + $0x11a0] ss:$16 sps:$4 sm:$0xff]   ;;  %v11002_v51 = vld [vmem:[%s15202_s1 + $0x1184] ss:$16 sps:$4 sm:$0xff]  }
 0x1e8   : > { %v10997_v50 = vld [vmem:[%s15202_s1 + $0x13a0] ss:$16 sps:$4 sm:$0xff]  }
 0x1e9   : > { %3933 = vmatpush1.bf16.msra.mxu0 %v10880_v5 }
 0x1ea   : > { %3974 = vmatpush1.bf16.msra.mxu1 %v10883_v31  ;;  %3934 = vmatprep.subr.bf16.mxu0 %v10888_v6 }
 0x1eb   : > { %3975 = vmatprep.subr.bf16.mxu1 %v10891_v7 }
 0x1ed   : > { %3935 = vmatpush2.bf16.msra.mxu0 %v10886_v10 }
 0x1ee   : > { %3976 = vmatpush2.bf16.msra.mxu1 %v10889_v0  ;;  %3936 = vmatprep.subr.bf16.mxu0 %v10894_v1  ;;  %v10948_v0 = vld [vmem:[%s15202_s1 + $0x10a4] ss:$16 sps:$4 sm:$0xff]  }
 0x1ef   : > { %3977 = vmatprep.subr.bf16.mxu1 %v10897_v11  ;;  %v10951_v1 = vld [vmem:[%s15202_s1 + $0x12a4] ss:$16 sps:$4 sm:$0xff]  }
 0x1f1   : > { %3937 = vmatpush2.bf16.msra.mxu0 %v10892_v12 }
 0x1f2   : > { %3978 = vmatpush2.bf16.msra.mxu1 %v10895_v13  ;;  %3938 = vmatprep.subr.bf16.mxu0 %v10900_v15 }
 0x1f3   : > { %3979 = vmatprep.subr.bf16.mxu1 %v10903_v16 }
 0x1f5   : > { %3939 = vmatpush2.bf16.msra.mxu0 %v10898_v17  ;;  %v10954_v17 = vld [vmem:[%s15202_s1 + $0x1084] ss:$16 sps:$4 sm:$0xff]  }
 0x1f6   : > { %3980 = vmatpush2.bf16.msra.mxu1 %v10901_v18  ;;  %3940 = vmatprep.subr.bf16.mxu0 %v10906_v23  ;;  %v10957_v18 = vld [vmem:[%s15202_s1 + $0x1284] ss:$16 sps:$4 sm:$0xff]   ;;  %v10952_v23 = vld [vmem:[%s15202_s1 + $0x1080] ss:$16 sps:$4 sm:$0xff]  }
 0x1f7   : > { %3981 = vmatprep.subr.bf16.mxu1 %v10909_v19  ;;  %v10955_v19 = vld [vmem:[%s15202_s1 + $0x1280] ss:$16 sps:$4 sm:$0xff]  }
 0x1f9   : > { %3941 = vmatpush2.bf16.msra.mxu0 %v10904_v20  ;;  %v10960_v20 = vld [vmem:[%s15202_s1 + $0x1064] ss:$16 sps:$4 sm:$0xff]  }
 0x1fa   : > { %3982 = vmatpush2.bf16.msra.mxu1 %v10907_v8  ;;  %3942 = vmatprep.subr.bf16.mxu0 %v10912_v9  ;;  %v10963_v8 = vld [vmem:[%s15202_s1 + $0x1264] ss:$16 sps:$4 sm:$0xff]   ;;  %v10958_v9 = vld [vmem:[%s15202_s1 + $0x1060] ss:$16 sps:$4 sm:$0xff]  }
 0x1fb   : > { %3983 = vmatprep.subr.bf16.mxu1 %v10915_v21  ;;  %v10961_v21 = vld [vmem:[%s15202_s1 + $0x1260] ss:$16 sps:$4 sm:$0xff]  }
 0x1fd   : > { %3943 = vmatpush2.bf16.msra.mxu0 %v10910_v24  ;;  %v10966_v24 = vld [vmem:[%s15202_s1 + $0x1044] ss:$16 sps:$4 sm:$0xff]  }
 0x1fe   : > { %3984 = vmatpush2.bf16.msra.mxu1 %v10913_v25  ;;  %3944 = vmatprep.subr.bf16.mxu0 %v10918_v48  ;;  %v10969_v25 = vld [vmem:[%s15202_s1 + $0x1244] ss:$16 sps:$4 sm:$0xff]   ;;  %v10964_v48 = vld [vmem:[%s15202_s1 + $0x1040] ss:$16 sps:$4 sm:$0xff]  }
 0x1ff   : > { %3985 = vmatprep.subr.bf16.mxu1 %v10921_v52  ;;  %v10967_v52 = vld [vmem:[%s15202_s1 + $0x1240] ss:$16 sps:$4 sm:$0xff]  }
 0x201   : > { %3945 = vmatpush2.bf16.msra.mxu0 %v10916_v29  ;;  %v10972_v29 = vld [vmem:[%s15202_s1 + $0x1024] ss:$16 sps:$4 sm:$0xff]  }
 0x202   : > { %3986 = vmatpush2.bf16.msra.mxu1 %v10919_v30  ;;  %3946 = vmatprep.subr.bf16.mxu0 %v10924_v54  ;;  %v10975_v30 = vld [vmem:[%s15202_s1 + $0x1224] ss:$16 sps:$4 sm:$0xff]   ;;  %v10970_v54 = vld [vmem:[%s15202_s1 + $0x1020] ss:$16 sps:$4 sm:$0xff]  }
 0x203   : > { %3987 = vmatprep.subr.bf16.mxu1 %v10927_v57  ;;  %v10973_v57 = vld [vmem:[%s15202_s1 + $0x1220] ss:$16 sps:$4 sm:$0xff]  }
 0x205   : > { %3947 = vmatpush2.bf16.msra.mxu0 %v10922_v3  ;;  %v10978_v3 = vld [vmem:[%s15202_s1 + $0x1004] ss:$16 sps:$4 sm:$0xff]  }
 0x206   : > { %3988 = vmatpush2.bf16.msra.mxu1 %v10925_v14  ;;  %3948 = vmatprep.subr.bf16.mxu0 %v10930_v38  ;;  %v10981_v14 = vld [vmem:[%s15202_s1 + $0x1204] ss:$16 sps:$4 sm:$0xff]   ;;  %v10976_v38 = vld [vmem:[%s15202_s1 + $0x1000] ss:$16 sps:$4 sm:$0xff]  }
 0x207   : > { %3989 = vmatprep.subr.bf16.mxu1 %v10933_v39  ;;  %v10979_v39 = vld [vmem:[%s15202_s1 + $0x1200] ss:$16 sps:$4 sm:$0xff]  }
 0x209   : > { %3949 = vmatpush2.bf16.msra.mxu0 %v10928_v56  ;;  %v10990_v56 = vld [vmem:[%s15202_s1 + $0x11c4] ss:$16 sps:$4 sm:$0xff]  }
 0x20a   : > { %3990 = vmatpush2.bf16.msra.mxu1 %v10931_v43  ;;  %5629 = vmatprep.subr.bf16.mxu0 %v10936_v44  ;;  %v10993_v43 = vld [vmem:[%s15202_s1 + $0x13c4] ss:$16 sps:$4 sm:$0xff]   ;;  %v10988_v44 = vld [vmem:[%s15202_s1 + $0x11c0] ss:$16 sps:$4 sm:$0xff]  }
 0x20b   : > { %5670 = vmatprep.subr.bf16.mxu1 %v10939_v45  ;;  %v10991_v45 = vld [vmem:[%s15202_s1 + $0x13c0] ss:$16 sps:$4 sm:$0xff]  }
 0x20c   : > { %v3706_v5 = vpop.f32.mrf.mxu0  ;;  %3951 = vmatmul.mubr.bf16.vlgmr.msra.gmra.mxu0 %v12179_v34 }
 0x20d   : > { %v3747_v31 = vpop.f32.mrf.mxu1  ;;  %3992 = vmatmul.mubr.bf16.vlgmr.msra.gmra.mxu1 %v12183_v35  ;;  %v3707_v6 = vadd.f32 %v3706_v5, %v12842_v59  ;;  %5630 = vmatpush1.bf16.msra.mxu0 %v10934_v46  ;;  %v10946_v35 = vld [vmem:[%s15202_s1 + $0x10a0] ss:$16 sps:$4 sm:$0xff]   ;;  %v10996_v46 = vld [vmem:[%s15202_s1 + $0x11a4] ss:$16 sps:$4 sm:$0xff]  }
 0x20e   : > { %5671 = vmatpush1.bf16.msra.mxu1 %v10937_v53  ;;  %v3708_v7 = vpop.f32.mrf.mxu0  ;;  %5631 = vmatprep.subr.bf16.mxu0 %v10942_v58  ;;  %v10949_v59 = vld [vmem:[%s15202_s1 + $0x12a0] ss:$16 sps:$4 sm:$0xff]   ;;  %v11005_v53 = vld [vmem:[%s15202_s1 + $0x1384] ss:$16 sps:$4 sm:$0xff]  }
 0x20f   : > { %v3749_v10 = vpop.f32.mrf.mxu1  ;;  %5672 = vmatprep.subr.bf16.mxu1 %v10945_v60  ;;  %v13474_v11 = vadd.f32 %v3747_v31, %v3707_v6  ;;  %v3709_v34 = vadd.f32 %v3708_v7, %v12853_v4  ;;  %5661 = vmatprep.mubr.bf16.mxu0 %v13461_v62  ;;  %v11000_v58 = vld [vmem:[%s15202_s1 + $0x1180] ss:$16 sps:$4 sm:$0xff]   ;;  %v11014_v6 = vld [vmem:[%s15202_s1 + $0x1144] ss:$16 sps:$4 sm:$0xff]  }
 0x210   : > { %5702 = vmatprep.mubr.bf16.mxu1 %v13463_v63  ;;  %v3710_v12 = vpop.f32.mrf.mxu0  ;;  %v11003_v60 = vld [vmem:[%s15202_s1 + $0x1380] ss:$16 sps:$4 sm:$0xff]   ;;  %v11017_v7 = vld [vmem:[%s15202_s1 + $0x1344] ss:$16 sps:$4 sm:$0xff]  }
 0x211   : > { %v3751_v13 = vpop.f32.mrf.mxu1  ;;  %v13485_v15 = vadd.f32 %v3749_v10, %v3709_v34  ;;  %5632 = vmatpush1.bf16.msra.mxu0 %v10940_v28  ;;  %v11008_v28 = vld [vmem:[%s15202_s1 + $0x1164] ss:$16 sps:$4 sm:$0xff]   ;;  %v11006_v5 = vld [vmem:[%s15202_s1 + $0x1160] ss:$16 sps:$4 sm:$0xff]   ;;  %v13615_v10 = vcombine.low %v13402_v32, %v13384_v26  ;;  %v13625_v34 = vcombine.low %v13409_v36, %v13387_v27 }
 0x212   : > { %5673 = vmatpush1.bf16.msra.mxu1 %v10943_v61  ;;  %v3711_v16 = vpop.f32.mrf.mxu0  ;;  %5633 = vmatprep.subr.bf16.mxu0 %v10948_v0  ;;  %v11011_v61 = vld [vmem:[%s15202_s1 + $0x1364] ss:$16 sps:$4 sm:$0xff]   ;;  %v11009_v31 = vld [vmem:[%s15202_s1 + $0x1360] ss:$16 sps:$4 sm:$0xff]  }
 0x213   : > { %v3752_v4 = vpop.f32.mrf.mxu1  ;;  %5674 = vmatprep.subr.bf16.mxu1 %v10951_v1  ;;  %v13618_v0 = vld [vmem:[%s11893_s30 + $0x30] sm:$0xff]  ;;  %v13621_v1 = vld [vmem:[%s11893_s30 + $0x38] sm:$0xff]  ;;  %v4278_v36 = vshrl.u32 %v13615_v10, 16 }
 0x214   : > { %v11015_v26 = vld [vmem:[%s15202_s1 + $0x1340] ss:$16 sps:$4 sm:$0xff]   ;;  %v11020_v32 = vld [vmem:[%s15202_s1 + $0x1124] ss:$16 sps:$4 sm:$0xff]   ;;  %v13651_v16 = vld [vmem:[%s11893_s30 + $0x18] sm:$0xff] }
 0x215   : > { %5634 = vmatpush1.bf16.msra.mxu0 %v10946_v35  ;;  %v11012_v35 = vld [vmem:[%s15202_s1 + $0x1140] ss:$16 sps:$4 sm:$0xff]   ;;  %v11023_v27 = vld [vmem:[%s15202_s1 + $0x1324] ss:$16 sps:$4 sm:$0xff]   ;;  %v13655_v4 = vcombine.high %v13651_v16, %v13621_v1 }
 0x216   : > { %5675 = vmatpush1.bf16.msra.mxu1 %v10949_v59  ;;  %5635 = vmatprep.subr.bf16.mxu0 %v10954_v17  ;;  %v13641_v59 = vld [vmem:[%s11893_s30 + $0x10] sm:$0xff]  ;;  %v4281_v17 = vshll.u32 %v13615_v10, 16 }
 0x217   : > { %5676 = vmatprep.subr.bf16.mxu1 %v10957_v18  ;;  %v13645_v12 = vcombine.high %v13641_v59, %v13618_v0  ;;  %v11018_v13 = vld [vmem:[%s15202_s1 + $0x1120] ss:$16 sps:$4 sm:$0xff]   ;;  %v4294_v18 = vshrl.u32 %v13625_v34, 16 }
 0x219   : > { %5636 = vmatpush1.bf16.msra.mxu0 %v10952_v23  ;;  %v4297_v23 = vshll.u32 %v13625_v34, 16 }
 0x21a   : > { %5677 = vmatpush1.bf16.msra.mxu1 %v10955_v19  ;;  %5637 = vmatprep.subr.bf16.mxu0 %v10960_v20  ;;  %v11021_v19 = vld [vmem:[%s15202_s1 + $0x1320] ss:$16 sps:$4 sm:$0xff]   ;;  %v11026_v20 = vld [vmem:[%s15202_s1 + $0x1104] ss:$16 sps:$4 sm:$0xff]  }
 0x21b   : > { %5678 = vmatprep.subr.bf16.mxu1 %v10963_v8  ;;  %v11029_v8 = vld [vmem:[%s15202_s1 + $0x1304] ss:$16 sps:$4 sm:$0xff]  }
 0x21d   : > { %5638 = vmatpush1.bf16.msra.mxu0 %v10958_v9  ;;  %v4280_v9 = vrot.slane %v4278_v36, 1  ;;  %v11050_v36 = vld [vmem:[%s15202_s1 + $0x1484] ss:$16 sps:$4 sm:$0xff]  }
 0x21e   : > { %5679 = vmatpush1.bf16.msra.mxu1 %v10961_v21  ;;  %5639 = vmatprep.subr.bf16.mxu0 %v10966_v24  ;;  %v4318_v21 = vshrl.u32 %v13645_v12, 16  ;;  %v4321_v24 = vshll.u32 %v13645_v12, 16 }
 0x21f   : > { %5680 = vmatprep.subr.bf16.mxu1 %v10969_v25  ;;  %v4334_v25 = vshrl.u32 %v13655_v4, 16 }
 0x221   : > { %5640 = vmatpush1.bf16.msra.mxu0 %v10964_v48  ;;  %v4337_v48 = vshll.u32 %v13655_v4, 16 }
 0x222   : > { %5681 = vmatpush1.bf16.msra.mxu1 %v10967_v52  ;;  %5641 = vmatprep.subr.bf16.mxu0 %v10972_v29  ;;  %v4283_v52 = vrot.slane %v4281_v17, 2  ;;  %v4296_v29 = vrot.slane %v4294_v18, 1  ;;  %v11048_v17 = vld [vmem:[%s15202_s1 + $0x1480] ss:$16 sps:$4 sm:$0xff]  }
 0x223   : > { %5682 = vmatprep.subr.bf16.mxu1 %v10975_v30  ;;  %v4299_v30 = vrot.slane %v4297_v23, 2  ;;  %v11051_v18 = vld [vmem:[%s15202_s1 + $0x1680] ss:$16 sps:$4 sm:$0xff]   ;;  %v11056_v23 = vld [vmem:[%s15202_s1 + $0x1464] ss:$16 sps:$4 sm:$0xff]  }
 0x225   : > { %5642 = vmatpush1.bf16.msra.mxu0 %v10970_v54  ;;  %v11024_v54 = vld [vmem:[%s15202_s1 + $0x1100] ss:$16 sps:$4 sm:$0xff]  }
 0x226   : > { %5683 = vmatpush1.bf16.msra.mxu1 %v10973_v57  ;;  %5643 = vmatprep.subr.bf16.mxu0 %v10978_v3  ;;  %v11027_v57 = vld [vmem:[%s15202_s1 + $0x1300] ss:$16 sps:$4 sm:$0xff]   ;;  %v11032_v3 = vld [vmem:[%s15202_s1 + $0x14e4] ss:$16 sps:$4 sm:$0xff]  }
 0x227   : > { %5684 = vmatprep.subr.bf16.mxu1 %v10981_v14  ;;  %v11035_v14 = vld [vmem:[%s15202_s1 + $0x16e4] ss:$16 sps:$4 sm:$0xff]  }
 0x229   : > { %5644 = vmatpush1.bf16.msra.mxu0 %v10976_v38  ;;  %v4320_v38 = vrot.slane %v4318_v21, 1  ;;  %v11065_v21 = vld [vmem:[%s15202_s1 + $0x1644] ss:$16 sps:$4 sm:$0xff]  }
 0x22a   : > { %5685 = vmatpush1.bf16.msra.mxu1 %v10979_v39  ;;  %5645 = vmatprep.subr.bf16.mxu0 %v10984_v41  ;;  %v11030_v39 = vld [vmem:[%s15202_s1 + $0x14e0] ss:$16 sps:$4 sm:$0xff]  }
 0x22b   : > { %5686 = vmatprep.subr.bf16.mxu1 %v10987_v22  ;;  %v11033_v41 = vld [vmem:[%s15202_s1 + $0x16e0] ss:$16 sps:$4 sm:$0xff]   ;;  %v4323_v22 = vrot.slane %v4321_v24, 2 }
 0x22c   : > { %v11060_v24 = vld [vmem:[%s15202_s1 + $0x1440] ss:$16 sps:$4 sm:$0xff]  }
 0x22d   : > { %5646 = vmatpush2.bf16.msra.mxu0 %v10982_v42  ;;  %v4336_v42 = vrot.slane %v4334_v25, 1  ;;  %v11063_v25 = vld [vmem:[%s15202_s1 + $0x1640] ss:$16 sps:$4 sm:$0xff]  }
 0x22e   : > { %5687 = vmatpush2.bf16.msra.mxu1 %v10985_v55  ;;  %5647 = vmatprep.subr.bf16.mxu0 %v10990_v56  ;;  %v4339_v55 = vrot.slane %v4337_v48, 2  ;;  %v13691_v56 = vor.u32 %v4283_v52, %v4280_v9  ;;  %v11062_v9 = vld [vmem:[%s15202_s1 + $0x1444] ss:$16 sps:$4 sm:$0xff]  }
 0x22f   : > { %5688 = vmatprep.subr.bf16.mxu1 %v10993_v43  ;;  %v13693_v43 = vor.u32 %v4299_v30, %v4296_v29  ;;  %v11068_v48 = vld [vmem:[%s15202_s1 + $0x1424] ss:$16 sps:$4 sm:$0xff]   ;;  %v11066_v29 = vld [vmem:[%s15202_s1 + $0x1420] ss:$16 sps:$4 sm:$0xff]  }
 0x230   : > { %v11071_v52 = vld [vmem:[%s15202_s1 + $0x1624] ss:$16 sps:$4 sm:$0xff]   ;;  %v11069_v30 = vld [vmem:[%s15202_s1 + $0x1620] ss:$16 sps:$4 sm:$0xff]  }
 0x231   : > { %5648 = vmatpush2.bf16.msra.mxu0 %v10988_v44  ;;  %v11038_v44 = vld [vmem:[%s15202_s1 + $0x14c4] ss:$16 sps:$4 sm:$0xff]  }
 0x232   : > { %5689 = vmatpush2.bf16.msra.mxu1 %v10991_v45  ;;  %5649 = vmatprep.subr.bf16.mxu0 %v10996_v46  ;;  %v11041_v45 = vld [vmem:[%s15202_s1 + $0x16c4] ss:$16 sps:$4 sm:$0xff]   ;;  %v11036_v46 = vld [vmem:[%s15202_s1 + $0x14c0] ss:$16 sps:$4 sm:$0xff]  }
 0x233   : > { %5690 = vmatprep.subr.bf16.mxu1 %v10999_v47  ;;  %v11039_v47 = vld [vmem:[%s15202_s1 + $0x16c0] ss:$16 sps:$4 sm:$0xff]  }
 0x235   : > { %5650 = vmatpush2.bf16.msra.mxu0 %v10994_v49  ;;  %v13707_v49 = vor.u32 %v4323_v22, %v4320_v38  ;;  %v11080_v38 = vld [vmem:[%s15202_s1 + $0x15e4] ss:$16 sps:$4 sm:$0xff]   ;;  %v11081_v22 = vld [vmem:[%s15202_s1 + $0x17e0] ss:$16 sps:$4 sm:$0xff]  }
 0x236   : > { %5691 = vmatpush2.bf16.msra.mxu1 %v10997_v50  ;;  %5651 = vmatprep.subr.bf16.mxu0 %v11002_v51  ;;  %v13709_v50 = vor.u32 %v4339_v55, %v4336_v42  ;;  %v11086_v42 = vld [vmem:[%s15202_s1 + $0x15c4] ss:$16 sps:$4 sm:$0xff]  }
 0x237   : > { %5692 = vmatprep.subr.bf16.mxu1 %v11005_v53  ;;  %v11089_v55 = vld [vmem:[%s15202_s1 + $0x17c4] ss:$16 sps:$4 sm:$0xff]  }
 0x239   : > { %5652 = vmatpush2.bf16.msra.mxu0 %v11000_v58 }
 0x23a   : > { %5693 = vmatpush2.bf16.msra.mxu1 %v11003_v60  ;;  %5653 = vmatprep.subr.bf16.mxu0 %v11008_v28 }
 0x23b   : > { %5694 = vmatprep.subr.bf16.mxu1 %v11011_v61  ;;  %v11044_v61 = vld [vmem:[%s15202_s1 + $0x14a4] ss:$16 sps:$4 sm:$0xff]  }
 0x23d   : > { %5654 = vmatpush2.bf16.msra.mxu0 %v11006_v5  ;;  %v11047_v5 = vld [vmem:[%s15202_s1 + $0x16a4] ss:$16 sps:$4 sm:$0xff]  }
 0x23e   : > { %5695 = vmatpush2.bf16.msra.mxu1 %v11009_v31  ;;  %5655 = vmatprep.subr.bf16.mxu0 %v11014_v6 }
 0x23f   : > { %5696 = vmatprep.subr.bf16.mxu1 %v11017_v7  ;;  %v11045_v7 = vld [vmem:[%s15202_s1 + $0x16a0] ss:$16 sps:$4 sm:$0xff]  }
 0x241   : > { %5656 = vmatpush2.bf16.msra.mxu0 %v11012_v35 }
 0x242   : > { %5697 = vmatpush2.bf16.msra.mxu1 %v11015_v26  ;;  %5657 = vmatprep.subr.bf16.mxu0 %v11020_v32 }
 0x243   : > { %5698 = vmatprep.subr.bf16.mxu1 %v11023_v27 }
 0x245   : > { %5658 = vmatpush2.bf16.msra.mxu0 %v11018_v13  ;;  %v11053_v13 = vld [vmem:[%s15202_s1 + $0x1684] ss:$16 sps:$4 sm:$0xff]  }
 0x246   : > { %5699 = vmatpush2.bf16.msra.mxu1 %v11021_v19  ;;  %5659 = vmatprep.subr.bf16.mxu0 %v11026_v20  ;;  %v11059_v19 = vld [vmem:[%s15202_s1 + $0x1664] ss:$16 sps:$4 sm:$0xff]   ;;  %v11054_v20 = vld [vmem:[%s15202_s1 + $0x1460] ss:$16 sps:$4 sm:$0xff]  }
 0x247   : > { %5700 = vmatprep.subr.bf16.mxu1 %v11029_v8  ;;  %v11057_v8 = vld [vmem:[%s15202_s1 + $0x1660] ss:$16 sps:$4 sm:$0xff]  }
 0x249   : > { %5660 = vmatpush2.bf16.msra.mxu0 %v11024_v54  ;;  %v11074_v54 = vld [vmem:[%s15202_s1 + $0x1404] ss:$16 sps:$4 sm:$0xff]  }
 0x24a   : > { %5701 = vmatpush2.bf16.msra.mxu1 %v11027_v57  ;;  %5711 = vmatprep.subr.bf16.mxu0 %v11032_v3  ;;  %v11077_v57 = vld [vmem:[%s15202_s1 + $0x1604] ss:$16 sps:$4 sm:$0xff]   ;;  %v11072_v3 = vld [vmem:[%s15202_s1 + $0x1400] ss:$16 sps:$4 sm:$0xff]  }
 0x24b   : > { %5752 = vmatprep.subr.bf16.mxu1 %v11035_v14  ;;  %v11075_v14 = vld [vmem:[%s15202_s1 + $0x1600] ss:$16 sps:$4 sm:$0xff]  }
 0x24c   : > { %v3788_v51 = vpop.f32.mrf.mxu0  ;;  %5662 = vmatmul.mubr.bf16.vlgmr.msra.gmra.mxu0 %v13691_v56 }
 0x24d   : > { %v3829_v53 = vpop.f32.mrf.mxu1  ;;  %5703 = vmatmul.mubr.bf16.vlgmr.msra.gmra.mxu1 %v13693_v43  ;;  %v3789_v58 = vadd.f32 %v3788_v51, %v13474_v11  ;;  %5712 = vmatpush1.bf16.msra.mxu0 %v11030_v39  ;;  %v11042_v11 = vld [vmem:[%s15202_s1 + $0x14a0] ss:$16 sps:$4 sm:$0xff]   ;;  %v11083_v39 = vld [vmem:[%s15202_s1 + $0x17e4] ss:$16 sps:$4 sm:$0xff]  }
 0x24e   : > { %5753 = vmatpush1.bf16.msra.mxu1 %v11033_v41  ;;  %v3790_v60 = vpop.f32.mrf.mxu0  ;;  %5713 = vmatprep.subr.bf16.mxu0 %v11038_v44  ;;  %v11078_v41 = vld [vmem:[%s15202_s1 + $0x15e0] ss:$16 sps:$4 sm:$0xff]  }
 0x24f   : > { %v3831_v28 = vpop.f32.mrf.mxu1  ;;  %5754 = vmatprep.subr.bf16.mxu1 %v11041_v45  ;;  %v13720_v31 = vadd.f32 %v3829_v53, %v3789_v58  ;;  %v3791_v6 = vadd.f32 %v3790_v60, %v13485_v15  ;;  %5743 = vmatprep.mubr.bf16.mxu0 %v13707_v49  ;;  %v11084_v44 = vld [vmem:[%s15202_s1 + $0x15c0] ss:$16 sps:$4 sm:$0xff]   ;;  %v11098_v58 = vld [vmem:[%s15202_s1 + $0x1584] ss:$16 sps:$4 sm:$0xff]  }
 0x250   : > { %5784 = vmatprep.mubr.bf16.mxu1 %v13709_v50  ;;  %v3792_v35 = vpop.f32.mrf.mxu0  ;;  %v11087_v45 = vld [vmem:[%s15202_s1 + $0x17c0] ss:$16 sps:$4 sm:$0xff]   ;;  %v11101_v60 = vld [vmem:[%s15202_s1 + $0x1784] ss:$16 sps:$4 sm:$0xff]  }
 0x251   : > { %v3833_v26 = vpop.f32.mrf.mxu1  ;;  %v13731_v32 = vadd.f32 %v3831_v28, %v3791_v6  ;;  %5714 = vmatpush1.bf16.msra.mxu0 %v11036_v46  ;;  %v11092_v46 = vld [vmem:[%s15202_s1 + $0x15a4] ss:$16 sps:$4 sm:$0xff]   ;;  %v11090_v51 = vld [vmem:[%s15202_s1 + $0x15a0] ss:$16 sps:$4 sm:$0xff]  }
 0x252   : > { %5755 = vmatpush1.bf16.msra.mxu1 %v11039_v47  ;;  %v3793_v27 = vpop.f32.mrf.mxu0  ;;  %5715 = vmatprep.subr.bf16.mxu0 %v11044_v61  ;;  %v11095_v47 = vld [vmem:[%s15202_s1 + $0x17a4] ss:$16 sps:$4 sm:$0xff]   ;;  %v11093_v53 = vld [vmem:[%s15202_s1 + $0x17a0] ss:$16 sps:$4 sm:$0xff]  }
 0x253   : > { %v3834_v15 = vpop.f32.mrf.mxu1  ;;  %5756 = vmatprep.subr.bf16.mxu1 %v11047_v5  ;;  %v11096_v28 = vld [vmem:[%s15202_s1 + $0x1580] ss:$16 sps:$4 sm:$0xff]   ;;  %v11104_v5 = vld [vmem:[%s15202_s1 + $0x1564] ss:$16 sps:$4 sm:$0xff]   ;;  %v13861_v27 = vcombine.low %v13641_v59, %v13618_v0 }
 0x254   : > { %v11099_v61 = vld [vmem:[%s15202_s1 + $0x1780] ss:$16 sps:$4 sm:$0xff]   ;;  %v11107_v6 = vld [vmem:[%s15202_s1 + $0x1764] ss:$16 sps:$4 sm:$0xff]   ;;  %v13865_v15 = vcombine.low %v13651_v16, %v13621_v1 }
 0x255   : > { %5716 = vmatpush1.bf16.msra.mxu0 %v11042_v11  ;;  %v11102_v11 = vld [vmem:[%s15202_s1 + $0x1560] ss:$16 sps:$4 sm:$0xff]   ;;  %v11110_v35 = vld [vmem:[%s15202_s1 + $0x1544] ss:$16 sps:$4 sm:$0xff]   ;;  %v4310_v59 = vshrl.u32 %v13861_v27, 16  ;;  %v4313_v16 = vshll.u32 %v13861_v27, 16 }
 0x256   : > { %5757 = vmatpush1.bf16.msra.mxu1 %v11045_v7  ;;  %5717 = vmatprep.subr.bf16.mxu0 %v11050_v36  ;;  %v11105_v7 = vld [vmem:[%s15202_s1 + $0x1760] ss:$16 sps:$4 sm:$0xff]   ;;  %v11113_v26 = vld [vmem:[%s15202_s1 + $0x1744] ss:$16 sps:$4 sm:$0xff]  }
 0x257   : > { %5758 = vmatprep.subr.bf16.mxu1 %v11053_v13  ;;  %v11108_v36 = vld [vmem:[%s15202_s1 + $0x1540] ss:$16 sps:$4 sm:$0xff]   ;;  %v11116_v0 = vld [vmem:[%s15202_s1 + $0x1524] ss:$16 sps:$4 sm:$0xff]  }
 0x258   : > { %v11111_v13 = vld [vmem:[%s15202_s1 + $0x1740] ss:$16 sps:$4 sm:$0xff]   ;;  %v11119_v1 = vld [vmem:[%s15202_s1 + $0x1724] ss:$16 sps:$4 sm:$0xff]  }
 0x259   : > { %5718 = vmatpush1.bf16.msra.mxu0 %v11048_v17  ;;  %v4326_v17 = vshrl.u32 %v13865_v15, 16 }
 0x25a   : > { %5759 = vmatpush1.bf16.msra.mxu1 %v11051_v18  ;;  %5719 = vmatprep.subr.bf16.mxu0 %v11056_v23  ;;  %v4329_v18 = vshll.u32 %v13865_v15, 16  ;;  %v11114_v23 = vld [vmem:[%s15202_s1 + $0x1520] ss:$16 sps:$4 sm:$0xff]  }
 0x25b   : > { %5760 = vmatprep.subr.bf16.mxu1 %v11059_v19  ;;  %v11117_v19 = vld [vmem:[%s15202_s1 + $0x1720] ss:$16 sps:$4 sm:$0xff]  }
 0x25d   : > { %5720 = vmatpush1.bf16.msra.mxu0 %v11054_v20  ;;  %v11122_v20 = vld [vmem:[%s15202_s1 + $0x1504] ss:$16 sps:$4 sm:$0xff]  }
 0x25e   : > { %5761 = vmatpush1.bf16.msra.mxu1 %v11057_v8  ;;  %5721 = vmatprep.subr.bf16.mxu0 %v11062_v9  ;;  %v11125_v8 = vld [vmem:[%s15202_s1 + $0x1704] ss:$16 sps:$4 sm:$0xff]   ;;  %v4312_v9 = vrot.slane %v4310_v59, 1  ;;  %v11156_v59 = vld [vmem:[%s15202_s1 + $0x1048] ss:$16 sps:$4 sm:$0xff]  }
 0x25f   : > { %5762 = vmatprep.subr.bf16.mxu1 %v11065_v21  ;;  %v4315_v21 = vrot.slane %v4313_v16, 2  ;;  %v11159_v16 = vld [vmem:[%s15202_s1 + $0x1248] ss:$16 sps:$4 sm:$0xff]  }
 0x261   : > { %5722 = vmatpush1.bf16.msra.mxu0 %v11060_v24  ;;  %v4328_v24 = vrot.slane %v4326_v17, 1  ;;  %v11164_v17 = vld [vmem:[%s15202_s1 + $0x102c] ss:$16 sps:$4 sm:$0xff]  }
 0x262   : > { %5763 = vmatpush1.bf16.msra.mxu1 %v11063_v25  ;;  %5723 = vmatprep.subr.bf16.mxu0 %v11068_v48  ;;  %v4331_v25 = vrot.slane %v4329_v18, 2  ;;  %v11120_v48 = vld [vmem:[%s15202_s1 + $0x1500] ss:$16 sps:$4 sm:$0xff]   ;;  %v11167_v18 = vld [vmem:[%s15202_s1 + $0x122c] ss:$16 sps:$4 sm:$0xff]  }
 0x263   : > { %5764 = vmatprep.subr.bf16.mxu1 %v11071_v52  ;;  %v11123_v52 = vld [vmem:[%s15202_s1 + $0x1700] ss:$16 sps:$4 sm:$0xff]  }
 0x265   : > { %5724 = vmatpush1.bf16.msra.mxu0 %v11066_v29  ;;  %v11128_v29 = vld [vmem:[%s15202_s1 + $0x10ec] ss:$16 sps:$4 sm:$0xff]  }
 0x266   : > { %5765 = vmatpush1.bf16.msra.mxu1 %v11069_v30  ;;  %5725 = vmatprep.subr.bf16.mxu0 %v11074_v54  ;;  %v11131_v30 = vld [vmem:[%s15202_s1 + $0x12ec] ss:$16 sps:$4 sm:$0xff]   ;;  %v13907_v54 = vor.u32 %v4315_v21, %v4312_v9  ;;  %v11168_v9 = vld [vmem:[%s15202_s1 + $0x1008] ss:$16 sps:$4 sm:$0xff]  }
 0x267   : > { %5766 = vmatprep.subr.bf16.mxu1 %v11077_v57  ;;  %v13909_v57 = vor.u32 %v4331_v25, %v4328_v24  ;;  %v11171_v21 = vld [vmem:[%s15202_s1 + $0x1208] ss:$16 sps:$4 sm:$0xff]   ;;  %v11176_v24 = vld [vmem:[%s15202_s1 + $0x11ec] ss:$16 sps:$4 sm:$0xff]  }
 0x268   : > { %v11179_v25 = vld [vmem:[%s15202_s1 + $0x13ec] ss:$16 sps:$4 sm:$0xff]  }
 0x269   : > { %5726 = vmatpush1.bf16.msra.mxu0 %v11072_v3  ;;  %v11126_v3 = vld [vmem:[%s15202_s1 + $0x10e8] ss:$16 sps:$4 sm:$0xff]  }
 0x26a   : > { %5767 = vmatpush1.bf16.msra.mxu1 %v11075_v14  ;;  %5727 = vmatprep.subr.bf16.mxu0 %v11080_v38  ;;  %v11129_v14 = vld [vmem:[%s15202_s1 + $0x12e8] ss:$16 sps:$4 sm:$0xff]   ;;  %v11134_v38 = vld [vmem:[%s15202_s1 + $0x10cc] ss:$16 sps:$4 sm:$0xff]  }
 0x26b   : > { %5768 = vmatprep.subr.bf16.mxu1 %v11083_v39  ;;  %v11137_v39 = vld [vmem:[%s15202_s1 + $0x12cc] ss:$16 sps:$4 sm:$0xff]  }
 0x26d   : > { %5728 = vmatpush2.bf16.msra.mxu0 %v11078_v41 }
 0x26e   : > { %5769 = vmatpush2.bf16.msra.mxu1 %v11081_v22  ;;  %5729 = vmatprep.subr.bf16.mxu0 %v11086_v42 }
 0x26f   : > { %5770 = vmatprep.subr.bf16.mxu1 %v11089_v55  ;;  %v11132_v55 = vld [vmem:[%s15202_s1 + $0x10c8] ss:$16 sps:$4 sm:$0xff]  }
 0x271   : > { %5730 = vmatpush2.bf16.msra.mxu0 %v11084_v44  ;;  %v11135_v44 = vld [vmem:[%s15202_s1 + $0x12c8] ss:$16 sps:$4 sm:$0xff]  }
 0x272   : > { %5771 = vmatpush2.bf16.msra.mxu1 %v11087_v45  ;;  %5731 = vmatprep.subr.bf16.mxu0 %v11092_v46 }
 0x273   : > { %5772 = vmatprep.subr.bf16.mxu1 %v11095_v47  ;;  %v11140_v47 = vld [vmem:[%s15202_s1 + $0x10ac] ss:$16 sps:$4 sm:$0xff]  }
 0x275   : > { %5732 = vmatpush2.bf16.msra.mxu0 %v11090_v51 }
 0x276   : > { %5773 = vmatpush2.bf16.msra.mxu1 %v11093_v53  ;;  %5733 = vmatprep.subr.bf16.mxu0 %v11098_v58 }
 0x277   : > { %5774 = vmatprep.subr.bf16.mxu1 %v11101_v60 }
 0x279   : > { %5734 = vmatpush2.bf16.msra.mxu0 %v11096_v28 }
 0x27a   : > { %5775 = vmatpush2.bf16.msra.mxu1 %v11099_v61  ;;  %5735 = vmatprep.subr.bf16.mxu0 %v11104_v5  ;;  %v11138_v61 = vld [vmem:[%s15202_s1 + $0x10a8] ss:$16 sps:$4 sm:$0xff]  }
 0x27b   : > { %5776 = vmatprep.subr.bf16.mxu1 %v11107_v6  ;;  %v11141_v5 = vld [vmem:[%s15202_s1 + $0x12a8] ss:$16 sps:$4 sm:$0xff]  }
 0x27d   : > { %5736 = vmatpush2.bf16.msra.mxu0 %v11102_v11  ;;  %v11144_v11 = vld [vmem:[%s15202_s1 + $0x1088] ss:$16 sps:$4 sm:$0xff]  }
 0x27e   : > { %5777 = vmatpush2.bf16.msra.mxu1 %v11105_v7  ;;  %5737 = vmatprep.subr.bf16.mxu0 %v11110_v35  ;;  %v11147_v7 = vld [vmem:[%s15202_s1 + $0x1288] ss:$16 sps:$4 sm:$0xff]   ;;  %v11152_v35 = vld [vmem:[%s15202_s1 + $0x106c] ss:$16 sps:$4 sm:$0xff]  }
 0x27f   : > { %5778 = vmatprep.subr.bf16.mxu1 %v11113_v26  ;;  %v11155_v26 = vld [vmem:[%s15202_s1 + $0x126c] ss:$16 sps:$4 sm:$0xff]  }
 0x281   : > { %5738 = vmatpush2.bf16.msra.mxu0 %v11108_v36  ;;  %v11150_v36 = vld [vmem:[%s15202_s1 + $0x1068] ss:$16 sps:$4 sm:$0xff]  }
 0x282   : > { %5779 = vmatpush2.bf16.msra.mxu1 %v11111_v13  ;;  %5739 = vmatprep.subr.bf16.mxu0 %v11116_v0  ;;  %v11153_v13 = vld [vmem:[%s15202_s1 + $0x1268] ss:$16 sps:$4 sm:$0xff]   ;;  %v11158_v0 = vld [vmem:[%s15202_s1 + $0x104c] ss:$16 sps:$4 sm:$0xff]  }
 0x283   : > { %5780 = vmatprep.subr.bf16.mxu1 %v11119_v1  ;;  %v11161_v1 = vld [vmem:[%s15202_s1 + $0x124c] ss:$16 sps:$4 sm:$0xff]  }
 0x285   : > { %5740 = vmatpush2.bf16.msra.mxu0 %v11114_v23  ;;  %v11162_v23 = vld [vmem:[%s15202_s1 + $0x1028] ss:$16 sps:$4 sm:$0xff]  }
 0x286   : > { %5781 = vmatpush2.bf16.msra.mxu1 %v11117_v19  ;;  %5741 = vmatprep.subr.bf16.mxu0 %v11122_v20  ;;  %v11165_v19 = vld [vmem:[%s15202_s1 + $0x1228] ss:$16 sps:$4 sm:$0xff]   ;;  %v11170_v20 = vld [vmem:[%s15202_s1 + $0x100c] ss:$16 sps:$4 sm:$0xff]  }
 0x287   : > { %5782 = vmatprep.subr.bf16.mxu1 %v11125_v8  ;;  %v11173_v8 = vld [vmem:[%s15202_s1 + $0x120c] ss:$16 sps:$4 sm:$0xff]  }
 0x289   : > { %5742 = vmatpush2.bf16.msra.mxu0 %v11120_v48  ;;  %v11174_v48 = vld [vmem:[%s15202_s1 + $0x11e8] ss:$16 sps:$4 sm:$0xff]  }
 0x28a   : > { %5783 = vmatpush2.bf16.msra.mxu1 %v11123_v52  ;;  %5793 = vmatprep.subr.bf16.mxu0 %v11128_v29  ;;  %v11177_v52 = vld [vmem:[%s15202_s1 + $0x13e8] ss:$16 sps:$4 sm:$0xff]   ;;  %v11182_v29 = vld [vmem:[%s15202_s1 + $0x11cc] ss:$16 sps:$4 sm:$0xff]  }
 0x28b   : > { %5834 = vmatprep.subr.bf16.mxu1 %v11131_v30  ;;  %v11185_v30 = vld [vmem:[%s15202_s1 + $0x13cc] ss:$16 sps:$4 sm:$0xff]  }
 0x28c   : > { %v3870_v41 = vpop.f32.mrf.mxu0  ;;  %5744 = vmatmul.mubr.bf16.vlgmr.msra.gmra.mxu0 %v13907_v54 }
 0x28d   : > { %v3911_v22 = vpop.f32.mrf.mxu1  ;;  %5785 = vmatmul.mubr.bf16.vlgmr.msra.gmra.mxu1 %v13909_v57  ;;  %v3871_v42 = vadd.f32 %v3870_v41, %v13244_v37  ;;  %5794 = vmatpush1.bf16.msra.mxu0 %v11126_v3  ;;  %v11143_v37 = vld [vmem:[%s15202_s1 + $0x12ac] ss:$16 sps:$4 sm:$0xff]   ;;  %v11180_v3 = vld [vmem:[%s15202_s1 + $0x11c8] ss:$16 sps:$4 sm:$0xff]  }
 0x28e   : > { %5835 = vmatpush1.bf16.msra.mxu1 %v11129_v14  ;;  %v3872_v45 = vpop.f32.mrf.mxu0  ;;  %5795 = vmatprep.subr.bf16.mxu0 %v11134_v38  ;;  %v11183_v14 = vld [vmem:[%s15202_s1 + $0x13c8] ss:$16 sps:$4 sm:$0xff]   ;;  %v11188_v38 = vld [vmem:[%s15202_s1 + $0x11ac] ss:$16 sps:$4 sm:$0xff]  }
 0x28f   : > { %v3913_v46 = vpop.f32.mrf.mxu1  ;;  %5836 = vmatprep.subr.bf16.mxu1 %v11137_v39  ;;  %v13938_v51 = vadd.f32 %v3911_v22, %v3871_v42  ;;  %v3873_v53 = vadd.f32 %v3872_v45, %v13255_v40  ;;  %5825 = vmatprep.mubr.bf16.mxu0 %v13461_v62  ;;  %v11146_v62 = vld [vmem:[%s15202_s1 + $0x108c] ss:$16 sps:$4 sm:$0xff]   ;;  %v11186_v41 = vld [vmem:[%s15202_s1 + $0x11a8] ss:$16 sps:$4 sm:$0xff]  }
 0x290   : > { %5866 = vmatprep.mubr.bf16.mxu1 %v13463_v63  ;;  %v3874_v58 = vpop.f32.mrf.mxu0  ;;  %v11149_v63 = vld [vmem:[%s15202_s1 + $0x128c] ss:$16 sps:$4 sm:$0xff]   ;;  %v11189_v22 = vld [vmem:[%s15202_s1 + $0x13a8] ss:$16 sps:$4 sm:$0xff]  }
 0x291   : > { %v3915_v60 = vpop.f32.mrf.mxu1  ;;  %v13943_v28 = vadd.f32 %v3913_v46, %v3873_v53  ;;  %5796 = vmatpush1.bf16.msra.mxu0 %v11132_v55  ;;  %v11191_v39 = vld [vmem:[%s15202_s1 + $0x13ac] ss:$16 sps:$4 sm:$0xff]   ;;  %v11195_v45 = vld [vmem:[%s15202_s1 + $0x1388] ss:$16 sps:$4 sm:$0xff]  }
 0x292   : > { %5837 = vmatpush1.bf16.msra.mxu1 %v11135_v44  ;;  %v3875_v6 = vpop.f32.mrf.mxu0  ;;  %5797 = vmatprep.subr.bf16.mxu0 %v11140_v47  ;;  %v11194_v42 = vld [vmem:[%s15202_s1 + $0x118c] ss:$16 sps:$4 sm:$0xff]   ;;  %v11192_v44 = vld [vmem:[%s15202_s1 + $0x1188] ss:$16 sps:$4 sm:$0xff]  }
 0x293   : > { %v3916_v40 = vpop.f32.mrf.mxu1  ;;  %5838 = vmatprep.subr.bf16.mxu1 %v11143_v37  ;;  %v11197_v55 = vld [vmem:[%s15202_s1 + $0x138c] ss:$16 sps:$4 sm:$0xff]   ;;  %v11198_v37 = vld [vmem:[%s15202_s1 + $0x1168] ss:$16 sps:$4 sm:$0xff]  }
 0x294   : > { %v11200_v46 = vld [vmem:[%s15202_s1 + $0x116c] ss:$16 sps:$4 sm:$0xff]   ;;  %v11201_v53 = vld [vmem:[%s15202_s1 + $0x1368] ss:$16 sps:$4 sm:$0xff]  }
 0x295   : > { %5798 = vmatpush1.bf16.msra.mxu0 %v11138_v61  ;;  %v11203_v47 = vld [vmem:[%s15202_s1 + $0x136c] ss:$16 sps:$4 sm:$0xff]   ;;  %v11204_v61 = vld [vmem:[%s15202_s1 + $0x1148] ss:$16 sps:$4 sm:$0xff]  }
 0x296   : > { %5839 = vmatpush1.bf16.msra.mxu1 %v11141_v5  ;;  %5799 = vmatprep.subr.bf16.mxu0 %v11146_v62  ;;  %v11206_v58 = vld [vmem:[%s15202_s1 + $0x114c] ss:$16 sps:$4 sm:$0xff]   ;;  %v11207_v5 = vld [vmem:[%s15202_s1 + $0x1348] ss:$16 sps:$4 sm:$0xff]  }
 0x297   : > { %5840 = vmatprep.subr.bf16.mxu1 %v11149_v63  ;;  %v11209_v60 = vld [vmem:[%s15202_s1 + $0x134c] ss:$16 sps:$4 sm:$0xff]   ;;  %v11210_v62 = vld [vmem:[%s15202_s1 + $0x1128] ss:$16 sps:$4 sm:$0xff]  }
 0x298   : > { %v11212_v6 = vld [vmem:[%s15202_s1 + $0x112c] ss:$16 sps:$4 sm:$0xff]   ;;  %v11213_v63 = vld [vmem:[%s15202_s1 + $0x1328] ss:$16 sps:$4 sm:$0xff]  }
 0x299   : > { %5800 = vmatpush1.bf16.msra.mxu0 %v11144_v11  ;;  %v11215_v40 = vld [vmem:[%s15202_s1 + $0x132c] ss:$16 sps:$4 sm:$0xff]  }
 0x29a   : > { %5841 = vmatpush1.bf16.msra.mxu1 %v11147_v7  ;;  %5801 = vmatprep.subr.bf16.mxu0 %v11152_v35  ;;  %v11218_v11 = vld [vmem:[%s15202_s1 + $0x110c] ss:$16 sps:$4 sm:$0xff]   ;;  %v11216_v35 = vld [vmem:[%s15202_s1 + $0x1108] ss:$16 sps:$4 sm:$0xff]  }
 0x29b   : > { %5842 = vmatprep.subr.bf16.mxu1 %v11155_v26  ;;  %v11221_v7 = vld [vmem:[%s15202_s1 + $0x130c] ss:$16 sps:$4 sm:$0xff]   ;;  %v11219_v26 = vld [vmem:[%s15202_s1 + $0x1308] ss:$16 sps:$4 sm:$0xff]  }
 0x29d   : > { %5802 = vmatpush1.bf16.msra.mxu0 %v11150_v36  ;;  %v11224_v36 = vld [vmem:[%s15202_s1 + $0x14ec] ss:$16 sps:$4 sm:$0xff]  }
 0x29e   : > { %5843 = vmatpush1.bf16.msra.mxu1 %v11153_v13  ;;  %5803 = vmatprep.subr.bf16.mxu0 %v11158_v0  ;;  %v11227_v13 = vld [vmem:[%s15202_s1 + $0x16ec] ss:$16 sps:$4 sm:$0xff]   ;;  %v11222_v0 = vld [vmem:[%s15202_s1 + $0x14e8] ss:$16 sps:$4 sm:$0xff]  }
 0x29f   : > { %5844 = vmatprep.subr.bf16.mxu1 %v11161_v1  ;;  %v11225_v1 = vld [vmem:[%s15202_s1 + $0x16e8] ss:$16 sps:$4 sm:$0xff]  }
 0x2a1   : > { %5804 = vmatpush1.bf16.msra.mxu0 %v11156_v59  ;;  %v11230_v59 = vld [vmem:[%s15202_s1 + $0x14cc] ss:$16 sps:$4 sm:$0xff]  }
 0x2a2   : > { %5845 = vmatpush1.bf16.msra.mxu1 %v11159_v16  ;;  %5805 = vmatprep.subr.bf16.mxu0 %v11164_v17  ;;  %v11233_v16 = vld [vmem:[%s15202_s1 + $0x16cc] ss:$16 sps:$4 sm:$0xff]  }
 0x2a3   : > { %5846 = vmatprep.subr.bf16.mxu1 %v11167_v18 }
 0x2a5   : > { %5806 = vmatpush1.bf16.msra.mxu0 %v11162_v23 }
 0x2a6   : > { %5847 = vmatpush1.bf16.msra.mxu1 %v11165_v19  ;;  %5807 = vmatprep.subr.bf16.mxu0 %v11170_v20  ;;  %v11228_v19 = vld [vmem:[%s15202_s1 + $0x14c8] ss:$16 sps:$4 sm:$0xff]  }
 0x2a7   : > { %5848 = vmatprep.subr.bf16.mxu1 %v11173_v8  ;;  %v11231_v20 = vld [vmem:[%s15202_s1 + $0x16c8] ss:$16 sps:$4 sm:$0xff]  }
 0x2a9   : > { %5808 = vmatpush1.bf16.msra.mxu0 %v11168_v9 }
 0x2aa   : > { %5849 = vmatpush1.bf16.msra.mxu1 %v11171_v21  ;;  %5809 = vmatprep.subr.bf16.mxu0 %v11176_v24 }
 0x2ab   : > { %5850 = vmatprep.subr.bf16.mxu1 %v11179_v25 }
 0x2ad   : > { %5810 = vmatpush2.bf16.msra.mxu0 %v11174_v48 }
 0x2ae   : > { %5851 = vmatpush2.bf16.msra.mxu1 %v11177_v52  ;;  %5811 = vmatprep.subr.bf16.mxu0 %v11182_v29  ;;  %v11234_v52 = vld [vmem:[%s15202_s1 + $0x14a8] ss:$16 sps:$4 sm:$0xff]  }
 0x2af   : > { %5852 = vmatprep.subr.bf16.mxu1 %v11185_v30  ;;  %v11237_v29 = vld [vmem:[%s15202_s1 + $0x16a8] ss:$16 sps:$4 sm:$0xff]  }
 0x2b1   : > { %5812 = vmatpush2.bf16.msra.mxu0 %v11180_v3  ;;  %v11240_v3 = vld [vmem:[%s15202_s1 + $0x1488] ss:$16 sps:$4 sm:$0xff]  }
 0x2b2   : > { %5853 = vmatpush2.bf16.msra.mxu1 %v11183_v14  ;;  %5813 = vmatprep.subr.bf16.mxu0 %v11188_v38  ;;  %v11243_v14 = vld [vmem:[%s15202_s1 + $0x1688] ss:$16 sps:$4 sm:$0xff]   ;;  %v11248_v38 = vld [vmem:[%s15202_s1 + $0x146c] ss:$16 sps:$4 sm:$0xff]  }
 0x2b3   : > { %5854 = vmatprep.subr.bf16.mxu1 %v11191_v39  ;;  %v11251_v39 = vld [vmem:[%s15202_s1 + $0x166c] ss:$16 sps:$4 sm:$0xff]  }
 0x2b5   : > { %5814 = vmatpush2.bf16.msra.mxu0 %v11186_v41  ;;  %v11246_v41 = vld [vmem:[%s15202_s1 + $0x1468] ss:$16 sps:$4 sm:$0xff]  }
 0x2b6   : > { %5855 = vmatpush2.bf16.msra.mxu1 %v11189_v22  ;;  %5815 = vmatprep.subr.bf16.mxu0 %v11194_v42  ;;  %v11249_v22 = vld [vmem:[%s15202_s1 + $0x1668] ss:$16 sps:$4 sm:$0xff]   ;;  %v11254_v42 = vld [vmem:[%s15202_s1 + $0x144c] ss:$16 sps:$4 sm:$0xff]  }
 0x2b7   : > { %5856 = vmatprep.subr.bf16.mxu1 %v11197_v55  ;;  %v11257_v55 = vld [vmem:[%s15202_s1 + $0x164c] ss:$16 sps:$4 sm:$0xff]  }
 0x2b9   : > { %5816 = vmatpush2.bf16.msra.mxu0 %v11192_v44  ;;  %v11252_v44 = vld [vmem:[%s15202_s1 + $0x1448] ss:$16 sps:$4 sm:$0xff]  }
 0x2ba   : > { %5857 = vmatpush2.bf16.msra.mxu1 %v11195_v45  ;;  %5817 = vmatprep.subr.bf16.mxu0 %v11200_v46  ;;  %v11255_v45 = vld [vmem:[%s15202_s1 + $0x1648] ss:$16 sps:$4 sm:$0xff]   ;;  %v11260_v46 = vld [vmem:[%s15202_s1 + $0x142c] ss:$16 sps:$4 sm:$0xff]  }
 0x2bb   : > { %5858 = vmatprep.subr.bf16.mxu1 %v11203_v47  ;;  %v11263_v47 = vld [vmem:[%s15202_s1 + $0x162c] ss:$16 sps:$4 sm:$0xff]  }
 0x2bd   : > { %5818 = vmatpush2.bf16.msra.mxu0 %v11198_v37  ;;  %v11258_v37 = vld [vmem:[%s15202_s1 + $0x1428] ss:$16 sps:$4 sm:$0xff]  }
 0x2be   : > { %5859 = vmatpush2.bf16.msra.mxu1 %v11201_v53  ;;  %5819 = vmatprep.subr.bf16.mxu0 %v11206_v58  ;;  %v11261_v53 = vld [vmem:[%s15202_s1 + $0x1628] ss:$16 sps:$4 sm:$0xff]   ;;  %v11266_v58 = vld [vmem:[%s15202_s1 + $0x140c] ss:$16 sps:$4 sm:$0xff]  }
 0x2bf   : > { %5860 = vmatprep.subr.bf16.mxu1 %v11209_v60  ;;  %v11269_v60 = vld [vmem:[%s15202_s1 + $0x160c] ss:$16 sps:$4 sm:$0xff]  }
 0x2c1   : > { %5820 = vmatpush2.bf16.msra.mxu0 %v11204_v61  ;;  %v11264_v61 = vld [vmem:[%s15202_s1 + $0x1408] ss:$16 sps:$4 sm:$0xff]  }
 0x2c2   : > { %5861 = vmatpush2.bf16.msra.mxu1 %v11207_v5  ;;  %5821 = vmatprep.subr.bf16.mxu0 %v11212_v6  ;;  %v11267_v5 = vld [vmem:[%s15202_s1 + $0x1608] ss:$16 sps:$4 sm:$0xff]   ;;  %v11272_v6 = vld [vmem:[%s15202_s1 + $0x15ec] ss:$16 sps:$4 sm:$0xff]  }
 0x2c3   : > { %5862 = vmatprep.subr.bf16.mxu1 %v11215_v40  ;;  %v11275_v40 = vld [vmem:[%s15202_s1 + $0x17ec] ss:$16 sps:$4 sm:$0xff]  }
 0x2c5   : > { %5822 = vmatpush2.bf16.msra.mxu0 %v11210_v62  ;;  %v11270_v62 = vld [vmem:[%s15202_s1 + $0x15e8] ss:$16 sps:$4 sm:$0xff]  }
 0x2c6   : > { %5863 = vmatpush2.bf16.msra.mxu1 %v11213_v63  ;;  %5823 = vmatprep.subr.bf16.mxu0 %v11218_v11  ;;  %v11273_v63 = vld [vmem:[%s15202_s1 + $0x17e8] ss:$16 sps:$4 sm:$0xff]   ;;  %v11278_v11 = vld [vmem:[%s15202_s1 + $0x15cc] ss:$16 sps:$4 sm:$0xff]  }
 0x2c7   : > { %5864 = vmatprep.subr.bf16.mxu1 %v11221_v7  ;;  %v11281_v7 = vld [vmem:[%s15202_s1 + $0x17cc] ss:$16 sps:$4 sm:$0xff]  }
 0x2c9   : > { %5824 = vmatpush2.bf16.msra.mxu0 %v11216_v35  ;;  %v11276_v35 = vld [vmem:[%s15202_s1 + $0x15c8] ss:$16 sps:$4 sm:$0xff]  }
 0x2ca   : > { %5865 = vmatpush2.bf16.msra.mxu1 %v11219_v26  ;;  %5875 = vmatprep.subr.bf16.mxu0 %v11224_v36  ;;  %v11279_v26 = vld [vmem:[%s15202_s1 + $0x17c8] ss:$16 sps:$4 sm:$0xff]   ;;  %v11284_v36 = vld [vmem:[%s15202_s1 + $0x15ac] ss:$16 sps:$4 sm:$0xff]  }
 0x2cb   : > { %5916 = vmatprep.subr.bf16.mxu1 %v11227_v13  ;;  %v11287_v13 = vld [vmem:[%s15202_s1 + $0x17ac] ss:$16 sps:$4 sm:$0xff]  }
 0x2cc   : > { %v3952_v17 = vpop.f32.mrf.mxu0  ;;  %5826 = vmatmul.mubr.bf16.vlgmr.msra.gmra.mxu0 %v13691_v56  ;;  %v11236_v56 = vld [vmem:[%s15202_s1 + $0x14ac] ss:$16 sps:$4 sm:$0xff]  }
 0x2cd   : > { %v3993_v18 = vpop.f32.mrf.mxu1  ;;  %5867 = vmatmul.mubr.bf16.vlgmr.msra.gmra.mxu1 %v13693_v43  ;;  %v3953_v23 = vadd.f32 %v3952_v17, %v13938_v51  ;;  %5876 = vmatpush1.bf16.msra.mxu0 %v11222_v0  ;;  %v11239_v43 = vld [vmem:[%s15202_s1 + $0x16ac] ss:$16 sps:$4 sm:$0xff]   ;;  %v11282_v0 = vld [vmem:[%s15202_s1 + $0x15a8] ss:$16 sps:$4 sm:$0xff]  }
 0x2ce   : > { %5917 = vmatpush1.bf16.msra.mxu1 %v11225_v1  ;;  %v3954_v8 = vpop.f32.mrf.mxu0  ;;  %5877 = vmatprep.subr.bf16.mxu0 %v11230_v59  ;;  %v11285_v1 = vld [vmem:[%s15202_s1 + $0x17a8] ss:$16 sps:$4 sm:$0xff]   ;;  %v11290_v59 = vld [vmem:[%s15202_s1 + $0x158c] ss:$16 sps:$4 sm:$0xff]  }
 0x2cf   : > { %v3995_v9 = vpop.f32.mrf.mxu1  ;;  %5918 = vmatprep.subr.bf16.mxu1 %v11233_v16  ;;  %v14140_v51 = vadd.f32 %v3993_v18, %v3953_v23  ;;  %v3955_v21 = vadd.f32 %v3954_v8, %v13943_v28  ;;  %5907 = vmatprep.mubr.bf16.mxu0 %v13707_v49  ;;  %v11242_v49 = vld [vmem:[%s15202_s1 + $0x148c] ss:$16 sps:$4 sm:$0xff]   ;;  %v11288_v17 = vld [vmem:[%s15202_s1 + $0x1588] ss:$16 sps:$4 sm:$0xff]  }
 0x2d0   : > { %5948 = vmatprep.mubr.bf16.mxu1 %v13709_v50  ;;  %v3956_v24 = vpop.f32.mrf.mxu0  ;;  %v11245_v50 = vld [vmem:[%s15202_s1 + $0x168c] ss:$16 sps:$4 sm:$0xff]   ;;  %v11291_v18 = vld [vmem:[%s15202_s1 + $0x1788] ss:$16 sps:$4 sm:$0xff]  }
 0x2d1   : > { %v3997_v25 = vpop.f32.mrf.mxu1  ;;  %v14145_v48 = vadd.f32 %v3995_v9, %v3955_v21  ;;  %5878 = vmatpush1.bf16.msra.mxu0 %v11228_v19  ;;  %v11293_v16 = vld [vmem:[%s15202_s1 + $0x178c] ss:$16 sps:$4 sm:$0xff]   ;;  %v11297_v8 = vld [vmem:[%s15202_s1 + $0x1768] ss:$16 sps:$4 sm:$0xff]  }
 0x2d2   : > { %5919 = vmatpush1.bf16.msra.mxu1 %v11231_v20  ;;  %v3957_v30 = vpop.f32.mrf.mxu0  ;;  %5879 = vmatprep.subr.bf16.mxu0 %v11236_v56  ;;  %v11296_v23 = vld [vmem:[%s15202_s1 + $0x156c] ss:$16 sps:$4 sm:$0xff]   ;;  %v11294_v20 = vld [vmem:[%s15202_s1 + $0x1568] ss:$16 sps:$4 sm:$0xff]  }
 0x2d3   : > { %v3998_v28 = vpop.f32.mrf.mxu1  ;;  %5920 = vmatprep.subr.bf16.mxu1 %v11239_v43  ;;  %v11299_v19 = vld [vmem:[%s15202_s1 + $0x176c] ss:$16 sps:$4 sm:$0xff]   ;;  %v11300_v43 = vld [vmem:[%s15202_s1 + $0x1548] ss:$16 sps:$4 sm:$0xff]  }
 0x2d4   : > { %v11302_v9 = vld [vmem:[%s15202_s1 + $0x154c] ss:$16 sps:$4 sm:$0xff]   ;;  %v11303_v21 = vld [vmem:[%s15202_s1 + $0x1748] ss:$16 sps:$4 sm:$0xff]  }
 0x2d5   : > { %5880 = vmatpush1.bf16.msra.mxu0 %v11234_v52  ;;  %v11305_v56 = vld [vmem:[%s15202_s1 + $0x174c] ss:$16 sps:$4 sm:$0xff]   ;;  %v11306_v52 = vld [vmem:[%s15202_s1 + $0x1528] ss:$16 sps:$4 sm:$0xff]  }
 0x2d6   : > { %5921 = vmatpush1.bf16.msra.mxu1 %v11237_v29  ;;  %5881 = vmatprep.subr.bf16.mxu0 %v11242_v49  ;;  %v11308_v24 = vld [vmem:[%s15202_s1 + $0x152c] ss:$16 sps:$4 sm:$0xff]   ;;  %v11309_v29 = vld [vmem:[%s15202_s1 + $0x1728] ss:$16 sps:$4 sm:$0xff]  }
 0x2d7   : > { %5922 = vmatprep.subr.bf16.mxu1 %v11245_v50  ;;  %v11311_v25 = vld [vmem:[%s15202_s1 + $0x172c] ss:$16 sps:$4 sm:$0xff]   ;;  %v11312_v49 = vld [vmem:[%s15202_s1 + $0x1508] ss:$16 sps:$4 sm:$0xff]  }
 0x2d8   : > { %v11314_v30 = vld [vmem:[%s15202_s1 + $0x150c] ss:$16 sps:$4 sm:$0xff]   ;;  %v11315_v50 = vld [vmem:[%s15202_s1 + $0x1708] ss:$16 sps:$4 sm:$0xff]  }
 0x2d9   : > { %5882 = vmatpush1.bf16.msra.mxu0 %v11240_v3  ;;  %v11317_v28 = vld [vmem:[%s15202_s1 + $0x170c] ss:$16 sps:$4 sm:$0xff]   ;;  %v11320_v3 = vld [vmem:[%s15202_s1 + $0x18e4] ss:$16 sps:$4 sm:$0xff]  }
 0x2da   : > { %5923 = vmatpush1.bf16.msra.mxu1 %v11243_v14  ;;  %5883 = vmatprep.subr.bf16.mxu0 %v11248_v38  ;;  %v11323_v14 = vld [vmem:[%s15202_s1 + $0x1ae4] ss:$16 sps:$4 sm:$0xff]   ;;  %v11318_v38 = vld [vmem:[%s15202_s1 + $0x18e0] ss:$16 sps:$4 sm:$0xff]  }
 0x2db   : > { %5924 = vmatprep.subr.bf16.mxu1 %v11251_v39  ;;  %v11321_v39 = vld [vmem:[%s15202_s1 + $0x1ae0] ss:$16 sps:$4 sm:$0xff]  }
 0x2dd   : > { %5884 = vmatpush1.bf16.msra.mxu0 %v11246_v41  ;;  %v11326_v41 = vld [vmem:[%s15202_s1 + $0x18c4] ss:$16 sps:$4 sm:$0xff]  }
 0x2de   : > { %5925 = vmatpush1.bf16.msra.mxu1 %v11249_v22  ;;  %5885 = vmatprep.subr.bf16.mxu0 %v11254_v42  ;;  %v11329_v22 = vld [vmem:[%s15202_s1 + $0x1ac4] ss:$16 sps:$4 sm:$0xff]   ;;  %v6219_v42 = vrot.slane %v13406_v33, 2  ;;  %v11530_v33 = vld [vmem:[%s15202_s1 + $0x188c] ss:$16 sps:$4 sm:$0xff]  }
 0x2df   : > { %5926 = vmatprep.subr.bf16.mxu1 %v11257_v55  ;;  %v6221_v55 = vrot.slane %v13413_v2, 2  ;;  %v11533_v2 = vld [vmem:[%s15202_s1 + $0x1a8c] ss:$16 sps:$4 sm:$0xff]  }
 0x2e1   : > { %5886 = vmatpush1.bf16.msra.mxu0 %v11252_v44 }
 0x2e2   : > { %5927 = vmatpush1.bf16.msra.mxu1 %v11255_v45  ;;  %5887 = vmatprep.subr.bf16.mxu0 %v11260_v46 }
 0x2e3   : > { %5928 = vmatprep.subr.bf16.mxu1 %v11263_v47  ;;  %v11324_v47 = vld [vmem:[%s15202_s1 + $0x18c0] ss:$16 sps:$4 sm:$0xff]  }
 0x2e5   : > { %5888 = vmatpush1.bf16.msra.mxu0 %v11258_v37  ;;  %v11327_v37 = vld [vmem:[%s15202_s1 + $0x1ac0] ss:$16 sps:$4 sm:$0xff]  }
 0x2e6   : > { %5929 = vmatpush1.bf16.msra.mxu1 %v11261_v53  ;;  %5889 = vmatprep.subr.bf16.mxu0 %v11266_v58 }
 0x2e7   : > { %5930 = vmatprep.subr.bf16.mxu1 %v11269_v60 }
 0x2e9   : > { %5890 = vmatpush1.bf16.msra.mxu0 %v11264_v61 }
 0x2ea   : > { %5931 = vmatpush1.bf16.msra.mxu1 %v11267_v5  ;;  %5891 = vmatprep.subr.bf16.mxu0 %v11272_v6  ;;  %v11330_v6 = vld [vmem:[%s15202_s1 + $0x18a0] ss:$16 sps:$4 sm:$0xff]  }
 0x2eb   : > { %5932 = vmatprep.subr.bf16.mxu1 %v11275_v40  ;;  %v11333_v40 = vld [vmem:[%s15202_s1 + $0x1aa0] ss:$16 sps:$4 sm:$0xff]  }
 0x2ed   : > { %5892 = vmatpush2.bf16.msra.mxu0 %v11270_v62 }
 0x2ee   : > { %5933 = vmatpush2.bf16.msra.mxu1 %v11273_v63  ;;  %5893 = vmatprep.subr.bf16.mxu0 %v11278_v11  ;;  %v11338_v11 = vld [vmem:[%s15202_s1 + $0x1884] ss:$16 sps:$4 sm:$0xff]  }
 0x2ef   : > { %5934 = vmatprep.subr.bf16.mxu1 %v11281_v7  ;;  %v11341_v7 = vld [vmem:[%s15202_s1 + $0x1a84] ss:$16 sps:$4 sm:$0xff]  }
 0x2f1   : > { %5894 = vmatpush2.bf16.msra.mxu0 %v11276_v35  ;;  %v11336_v35 = vld [vmem:[%s15202_s1 + $0x1880] ss:$16 sps:$4 sm:$0xff]  }
 0x2f2   : > { %5935 = vmatpush2.bf16.msra.mxu1 %v11279_v26  ;;  %5895 = vmatprep.subr.bf16.mxu0 %v11284_v36  ;;  %v11339_v26 = vld [vmem:[%s15202_s1 + $0x1a80] ss:$16 sps:$4 sm:$0xff]   ;;  %v11344_v36 = vld [vmem:[%s15202_s1 + $0x1864] ss:$16 sps:$4 sm:$0xff]  }
 0x2f3   : > { %5936 = vmatprep.subr.bf16.mxu1 %v11287_v13  ;;  %v11347_v13 = vld [vmem:[%s15202_s1 + $0x1a64] ss:$16 sps:$4 sm:$0xff]  }
 0x2f5   : > { %5896 = vmatpush2.bf16.msra.mxu0 %v11282_v0  ;;  %v11342_v0 = vld [vmem:[%s15202_s1 + $0x1860] ss:$16 sps:$4 sm:$0xff]  }
 0x2f6   : > { %5937 = vmatpush2.bf16.msra.mxu1 %v11285_v1  ;;  %5897 = vmatprep.subr.bf16.mxu0 %v11290_v59  ;;  %v11345_v1 = vld [vmem:[%s15202_s1 + $0x1a60] ss:$16 sps:$4 sm:$0xff]   ;;  %v11350_v59 = vld [vmem:[%s15202_s1 + $0x1844] ss:$16 sps:$4 sm:$0xff]  }
 0x2f7   : > { %5938 = vmatprep.subr.bf16.mxu1 %v11293_v16  ;;  %v11353_v16 = vld [vmem:[%s15202_s1 + $0x1a44] ss:$16 sps:$4 sm:$0xff]  }
 0x2f9   : > { %5898 = vmatpush2.bf16.msra.mxu0 %v11288_v17  ;;  %v11348_v17 = vld [vmem:[%s15202_s1 + $0x1840] ss:$16 sps:$4 sm:$0xff]  }
 0x2fa   : > { %5939 = vmatpush2.bf16.msra.mxu1 %v11291_v18  ;;  %5899 = vmatprep.subr.bf16.mxu0 %v11296_v23  ;;  %v11351_v18 = vld [vmem:[%s15202_s1 + $0x1a40] ss:$16 sps:$4 sm:$0xff]   ;;  %v11356_v23 = vld [vmem:[%s15202_s1 + $0x1824] ss:$16 sps:$4 sm:$0xff]  }
 0x2fb   : > { %5940 = vmatprep.subr.bf16.mxu1 %v11299_v19  ;;  %v11359_v19 = vld [vmem:[%s15202_s1 + $0x1a24] ss:$16 sps:$4 sm:$0xff]  }
 0x2fd   : > { %5900 = vmatpush2.bf16.msra.mxu0 %v11294_v20  ;;  %v11354_v20 = vld [vmem:[%s15202_s1 + $0x1820] ss:$16 sps:$4 sm:$0xff]  }
 0x2fe   : > { %5941 = vmatpush2.bf16.msra.mxu1 %v11297_v8  ;;  %5901 = vmatprep.subr.bf16.mxu0 %v11302_v9  ;;  %v11357_v8 = vld [vmem:[%s15202_s1 + $0x1a20] ss:$16 sps:$4 sm:$0xff]   ;;  %v11362_v9 = vld [vmem:[%s15202_s1 + $0x1804] ss:$16 sps:$4 sm:$0xff]  }
 0x2ff   : > { %5942 = vmatprep.subr.bf16.mxu1 %v11305_v56  ;;  %v11365_v56 = vld [vmem:[%s15202_s1 + $0x1a04] ss:$16 sps:$4 sm:$0xff]  }
 0x301   : > { %5902 = vmatpush2.bf16.msra.mxu0 %v11300_v43  ;;  %v11360_v43 = vld [vmem:[%s15202_s1 + $0x1800] ss:$16 sps:$4 sm:$0xff]  }
 0x302   : > { %5943 = vmatpush2.bf16.msra.mxu1 %v11303_v21  ;;  %5903 = vmatprep.subr.bf16.mxu0 %v11308_v24  ;;  %v11363_v21 = vld [vmem:[%s15202_s1 + $0x1a00] ss:$16 sps:$4 sm:$0xff]   ;;  %v11368_v24 = vld [vmem:[%s15202_s1 + $0x19e4] ss:$16 sps:$4 sm:$0xff]  }
 0x303   : > { %5944 = vmatprep.subr.bf16.mxu1 %v11311_v25  ;;  %v11371_v25 = vld [vmem:[%s15202_s1 + $0x1be4] ss:$16 sps:$4 sm:$0xff]  }
 0x305   : > { %5904 = vmatpush2.bf16.msra.mxu0 %v11306_v52  ;;  %v11366_v52 = vld [vmem:[%s15202_s1 + $0x19e0] ss:$16 sps:$4 sm:$0xff]  }
 0x306   : > { %5945 = vmatpush2.bf16.msra.mxu1 %v11309_v29  ;;  %5905 = vmatprep.subr.bf16.mxu0 %v11314_v30  ;;  %v11369_v29 = vld [vmem:[%s15202_s1 + $0x1be0] ss:$16 sps:$4 sm:$0xff]   ;;  %v11374_v30 = vld [vmem:[%s15202_s1 + $0x19c4] ss:$16 sps:$4 sm:$0xff]  }
 0x307   : > { %5946 = vmatprep.subr.bf16.mxu1 %v11317_v28  ;;  %v11377_v28 = vld [vmem:[%s15202_s1 + $0x1bc4] ss:$16 sps:$4 sm:$0xff]  }
 0x309   : > { %5906 = vmatpush2.bf16.msra.mxu0 %v11312_v49  ;;  %v11372_v49 = vld [vmem:[%s15202_s1 + $0x19c0] ss:$16 sps:$4 sm:$0xff]  }
 0x30a   : > { %5947 = vmatpush2.bf16.msra.mxu1 %v11315_v50  ;;  %7514 = vmatprep.subr.bf16.mxu0 %v11320_v3  ;;  %v11375_v50 = vld [vmem:[%s15202_s1 + $0x1bc0] ss:$16 sps:$4 sm:$0xff]   ;;  %v11380_v3 = vld [vmem:[%s15202_s1 + $0x19a4] ss:$16 sps:$4 sm:$0xff]  }
 0x30b   : > { %7555 = vmatprep.subr.bf16.mxu1 %v11323_v14  ;;  %v11383_v14 = vld [vmem:[%s15202_s1 + $0x1ba4] ss:$16 sps:$4 sm:$0xff]  }
 0x30c   : > { %v5663_v44 = vpop.f32.mrf.mxu0  ;;  %5908 = vmatmul.mubr.bf16.vlgmr.msra.gmra.mxu0 %v13907_v54  ;;  %v11332_v54 = vld [vmem:[%s15202_s1 + $0x18a4] ss:$16 sps:$4 sm:$0xff]  }
 0x30d   : > { %v5704_v45 = vpop.f32.mrf.mxu1  ;;  %5949 = vmatmul.mubr.bf16.vlgmr.msra.gmra.mxu1 %v13909_v57  ;;  %7515 = vmatpush1.bf16.msra.mxu0 %v11318_v38  ;;  %v11335_v57 = vld [vmem:[%s15202_s1 + $0x1aa4] ss:$16 sps:$4 sm:$0xff]   ;;  %v11378_v38 = vld [vmem:[%s15202_s1 + $0x19a0] ss:$16 sps:$4 sm:$0xff]  }
 0x30e   : > { %v14331_v46 = vadd.f32 %v5704_v45, %v5663_v44  ;;  %7556 = vmatpush1.bf16.msra.mxu1 %v11321_v39  ;;  %v5665_v53 = vpop.f32.mrf.mxu0  ;;  %7516 = vmatprep.subr.bf16.mxu0 %v11326_v41  ;;  %v11381_v39 = vld [vmem:[%s15202_s1 + $0x1ba0] ss:$16 sps:$4 sm:$0xff]   ;;  %v11386_v41 = vld [vmem:[%s15202_s1 + $0x1984] ss:$16 sps:$4 sm:$0xff]  }
 0x30f   : > { %v5706_v58 = vpop.f32.mrf.mxu1  ;;  %7557 = vmatprep.subr.bf16.mxu1 %v11329_v22  ;;  %7546 = vmatprep.mubr.bf16.mxu0 %v6219_v42  ;;  %v11389_v22 = vld [vmem:[%s15202_s1 + $0x1b84] ss:$16 sps:$4 sm:$0xff]   ;;  %v11384_v44 = vld [vmem:[%s15202_s1 + $0x1980] ss:$16 sps:$4 sm:$0xff]  }
 0x310   : > { %v14345_v60 = vadd.f32 %v5706_v58, %v5665_v53  ;;  %7587 = vmatprep.mubr.bf16.mxu1 %v6221_v55  ;;  %v5667_v61 = vpop.f32.mrf.mxu0  ;;  %v11387_v45 = vld [vmem:[%s15202_s1 + $0x1b80] ss:$16 sps:$4 sm:$0xff]  }
 0x311   : > { %v5708_v5 = vpop.f32.mrf.mxu1  ;;  %7517 = vmatpush1.bf16.msra.mxu0 %v11324_v47  ;;  %v11392_v47 = vld [vmem:[%s15202_s1 + $0x1964] ss:$16 sps:$4 sm:$0xff]   ;;  %v11390_v53 = vld [vmem:[%s15202_s1 + $0x1960] ss:$16 sps:$4 sm:$0xff]  }
 0x312   : > { %7558 = vmatpush1.bf16.msra.mxu1 %v11327_v37  ;;  %v5668_v62 = vpop.f32.mrf.mxu0  ;;  %7518 = vmatprep.subr.bf16.mxu0 %v11332_v54  ;;  %v11395_v37 = vld [vmem:[%s15202_s1 + $0x1b64] ss:$16 sps:$4 sm:$0xff]   ;;  %v11393_v58 = vld [vmem:[%s15202_s1 + $0x1b60] ss:$16 sps:$4 sm:$0xff]  }
 0x313   : > { %v5709_v63 = vpop.f32.mrf.mxu1  ;;  %7559 = vmatprep.subr.bf16.mxu1 %v11335_v57  ;;  %v11398_v54 = vld [vmem:[%s15202_s1 + $0x1944] ss:$16 sps:$4 sm:$0xff]   ;;  %v11396_v61 = vld [vmem:[%s15202_s1 + $0x1940] ss:$16 sps:$4 sm:$0xff]  }
 0x314   : > { %v11401_v57 = vld [vmem:[%s15202_s1 + $0x1b44] ss:$16 sps:$4 sm:$0xff]   ;;  %v11399_v5 = vld [vmem:[%s15202_s1 + $0x1b40] ss:$16 sps:$4 sm:$0xff]  }
 0x315   : > { %7519 = vmatpush1.bf16.msra.mxu0 %v11330_v6  ;;  %v11404_v6 = vld [vmem:[%s15202_s1 + $0x1924] ss:$16 sps:$4 sm:$0xff]   ;;  %v11402_v62 = vld [vmem:[%s15202_s1 + $0x1920] ss:$16 sps:$4 sm:$0xff]  }
 0x316   : > { %7560 = vmatpush1.bf16.msra.mxu1 %v11333_v40  ;;  %7520 = vmatprep.subr.bf16.mxu0 %v11338_v11  ;;  %v11407_v40 = vld [vmem:[%s15202_s1 + $0x1b24] ss:$16 sps:$4 sm:$0xff]   ;;  %v11405_v63 = vld [vmem:[%s15202_s1 + $0x1b20] ss:$16 sps:$4 sm:$0xff]  }
 0x317   : > { %7561 = vmatprep.subr.bf16.mxu1 %v11341_v7  ;;  %v11410_v11 = vld [vmem:[%s15202_s1 + $0x1904] ss:$16 sps:$4 sm:$0xff]  }
 0x318   : > { %v11413_v7 = vld [vmem:[%s15202_s1 + $0x1b04] ss:$16 sps:$4 sm:$0xff]  }
 0x319   : > { %7521 = vmatpush1.bf16.msra.mxu0 %v11336_v35  ;;  %v11408_v35 = vld [vmem:[%s15202_s1 + $0x1900] ss:$16 sps:$4 sm:$0xff]  }
 0x31a   : > { %7562 = vmatpush1.bf16.msra.mxu1 %v11339_v26  ;;  %7522 = vmatprep.subr.bf16.mxu0 %v11344_v36  ;;  %v11411_v26 = vld [vmem:[%s15202_s1 + $0x1b00] ss:$16 sps:$4 sm:$0xff]   ;;  %v11416_v36 = vld [vmem:[%s15202_s1 + $0x1ce4] ss:$16 sps:$4 sm:$0xff]  }
 0x31b   : > { %7563 = vmatprep.subr.bf16.mxu1 %v11347_v13  ;;  %v11419_v13 = vld [vmem:[%s15202_s1 + $0x1ee4] ss:$16 sps:$4 sm:$0xff]  }
 0x31d   : > { %7523 = vmatpush1.bf16.msra.mxu0 %v11342_v0  ;;  %v6218_v0 = vrot.slane %v13615_v10, 2  ;;  %v11620_v10 = vld [vmem:[%s15202_s1 + $0x1cac] ss:$16 sps:$4 sm:$0xff]  }
 0x31e   : > { %7564 = vmatpush1.bf16.msra.mxu1 %v11345_v1  ;;  %7524 = vmatprep.subr.bf16.mxu0 %v11350_v59  ;;  %v6220_v1 = vrot.slane %v13625_v34, 2  ;;  %v11414_v59 = vld [vmem:[%s15202_s1 + $0x1ce0] ss:$16 sps:$4 sm:$0xff]   ;;  %v11623_v34 = vld [vmem:[%s15202_s1 + $0x1eac] ss:$16 sps:$4 sm:$0xff]  }
 0x31f   : > { %7565 = vmatprep.subr.bf16.mxu1 %v11353_v16  ;;  %v11417_v16 = vld [vmem:[%s15202_s1 + $0x1ee0] ss:$16 sps:$4 sm:$0xff]  }
 0x321   : > { %7525 = vmatpush1.bf16.msra.mxu0 %v11348_v17  ;;  %v11422_v17 = vld [vmem:[%s15202_s1 + $0x1cc4] ss:$16 sps:$4 sm:$0xff]  }
 0x322   : > { %7566 = vmatpush1.bf16.msra.mxu1 %v11351_v18  ;;  %7526 = vmatprep.subr.bf16.mxu0 %v11356_v23  ;;  %v11425_v18 = vld [vmem:[%s15202_s1 + $0x1ec4] ss:$16 sps:$4 sm:$0xff]   ;;  %v6223_v23 = vrot.slane %v13645_v12, 2  ;;  %v11621_v12 = vld [vmem:[%s15202_s1 + $0x1ea8] ss:$16 sps:$4 sm:$0xff]  }
 0x323   : > { %7567 = vmatprep.subr.bf16.mxu1 %v11359_v19  ;;  %v6225_v19 = vrot.slane %v13655_v4, 2  ;;  %v11626_v4 = vld [vmem:[%s15202_s1 + $0x1c8c] ss:$16 sps:$4 sm:$0xff]  }
 0x325   : > { %7527 = vmatpush1.bf16.msra.mxu0 %v11354_v20 }
 0x326   : > { %7568 = vmatpush1.bf16.msra.mxu1 %v11357_v8  ;;  %7528 = vmatprep.subr.bf16.mxu0 %v11362_v9 }
 0x327   : > { %7569 = vmatprep.subr.bf16.mxu1 %v11365_v56  ;;  %v11420_v56 = vld [vmem:[%s15202_s1 + $0x1cc0] ss:$16 sps:$4 sm:$0xff]  }
 0x329   : > { %7529 = vmatpush1.bf16.msra.mxu0 %v11360_v43  ;;  %v11423_v43 = vld [vmem:[%s15202_s1 + $0x1ec0] ss:$16 sps:$4 sm:$0xff]  }
 0x32a   : > { %7570 = vmatpush1.bf16.msra.mxu1 %v11363_v21  ;;  %7530 = vmatprep.subr.bf16.mxu0 %v11368_v24 }
 0x32b   : > { %7571 = vmatprep.subr.bf16.mxu1 %v11371_v25  ;;  %v11428_v25 = vld [vmem:[%s15202_s1 + $0x1ca4] ss:$16 sps:$4 sm:$0xff]  }
 0x32d   : > { %7531 = vmatpush2.bf16.msra.mxu0 %v11366_v52 }
 0x32e   : > { %7572 = vmatpush2.bf16.msra.mxu1 %v11369_v29  ;;  %7532 = vmatprep.subr.bf16.mxu0 %v11374_v30 }
 0x32f   : > { %7573 = vmatprep.subr.bf16.mxu1 %v11377_v28 }
 0x331   : > { %7533 = vmatpush2.bf16.msra.mxu0 %v11372_v49 }
 0x332   : > { %7574 = vmatpush2.bf16.msra.mxu1 %v11375_v50  ;;  %7534 = vmatprep.subr.bf16.mxu0 %v11380_v3  ;;  %v11426_v3 = vld [vmem:[%s15202_s1 + $0x1ca0] ss:$16 sps:$4 sm:$0xff]  }
 0x333   : > { %7575 = vmatprep.subr.bf16.mxu1 %v11383_v14 }
 0x335   : > { %7535 = vmatpush2.bf16.msra.mxu0 %v11378_v38 }
 0x336   : > { %7576 = vmatpush2.bf16.msra.mxu1 %v11381_v39  ;;  %7536 = vmatprep.subr.bf16.mxu0 %v11386_v41  ;;  %v11437_v39 = vld [vmem:[%s15202_s1 + $0x1e84] ss:$16 sps:$4 sm:$0xff]  }
 0x337   : > { %7577 = vmatprep.subr.bf16.mxu1 %v11389_v22  ;;  %v11432_v22 = vld [vmem:[%s15202_s1 + $0x1c80] ss:$16 sps:$4 sm:$0xff]  }
 0x339   : > { %7537 = vmatpush2.bf16.msra.mxu0 %v11384_v44  ;;  %v11435_v44 = vld [vmem:[%s15202_s1 + $0x1e80] ss:$16 sps:$4 sm:$0xff]  }
 0x33a   : > { %7578 = vmatpush2.bf16.msra.mxu1 %v11387_v45  ;;  %7538 = vmatprep.subr.bf16.mxu0 %v11392_v47  ;;  %v11440_v45 = vld [vmem:[%s15202_s1 + $0x1c64] ss:$16 sps:$4 sm:$0xff]   ;;  %v11438_v47 = vld [vmem:[%s15202_s1 + $0x1c60] ss:$16 sps:$4 sm:$0xff]  }
 0x33b   : > { %7579 = vmatprep.subr.bf16.mxu1 %v11395_v37  ;;  %v11441_v37 = vld [vmem:[%s15202_s1 + $0x1e60] ss:$16 sps:$4 sm:$0xff]  }
 0x33d   : > { %7539 = vmatpush2.bf16.msra.mxu0 %v11390_v53  ;;  %v11446_v53 = vld [vmem:[%s15202_s1 + $0x1c44] ss:$16 sps:$4 sm:$0xff]  }
 0x33e   : > { %7580 = vmatpush2.bf16.msra.mxu1 %v11393_v58  ;;  %7540 = vmatprep.subr.bf16.mxu0 %v11398_v54  ;;  %v11449_v58 = vld [vmem:[%s15202_s1 + $0x1e44] ss:$16 sps:$4 sm:$0xff]   ;;  %v11444_v54 = vld [vmem:[%s15202_s1 + $0x1c40] ss:$16 sps:$4 sm:$0xff]  }
 0x33f   : > { %7581 = vmatprep.subr.bf16.mxu1 %v11401_v57  ;;  %v11447_v57 = vld [vmem:[%s15202_s1 + $0x1e40] ss:$16 sps:$4 sm:$0xff]  }
 0x341   : > { %7541 = vmatpush2.bf16.msra.mxu0 %v11396_v61  ;;  %v11452_v61 = vld [vmem:[%s15202_s1 + $0x1c24] ss:$16 sps:$4 sm:$0xff]  }
 0x342   : > { %7582 = vmatpush2.bf16.msra.mxu1 %v11399_v5  ;;  %7542 = vmatprep.subr.bf16.mxu0 %v11404_v6  ;;  %v11455_v5 = vld [vmem:[%s15202_s1 + $0x1e24] ss:$16 sps:$4 sm:$0xff]   ;;  %v11450_v6 = vld [vmem:[%s15202_s1 + $0x1c20] ss:$16 sps:$4 sm:$0xff]  }
 0x343   : > { %7583 = vmatprep.subr.bf16.mxu1 %v11407_v40  ;;  %v11453_v40 = vld [vmem:[%s15202_s1 + $0x1e20] ss:$16 sps:$4 sm:$0xff]  }
 0x345   : > { %7543 = vmatpush2.bf16.msra.mxu0 %v11402_v62  ;;  %v11458_v62 = vld [vmem:[%s15202_s1 + $0x1c04] ss:$16 sps:$4 sm:$0xff]  }
 0x346   : > { %7584 = vmatpush2.bf16.msra.mxu1 %v11405_v63  ;;  %7544 = vmatprep.subr.bf16.mxu0 %v11410_v11  ;;  %v11461_v63 = vld [vmem:[%s15202_s1 + $0x1e04] ss:$16 sps:$4 sm:$0xff]   ;;  %v11456_v11 = vld [vmem:[%s15202_s1 + $0x1c00] ss:$16 sps:$4 sm:$0xff]  }
 0x347   : > { %7585 = vmatprep.subr.bf16.mxu1 %v11413_v7  ;;  %v11459_v7 = vld [vmem:[%s15202_s1 + $0x1e00] ss:$16 sps:$4 sm:$0xff]  }
 0x349   : > { %7545 = vmatpush2.bf16.msra.mxu0 %v11408_v35  ;;  %v11464_v35 = vld [vmem:[%s15202_s1 + $0x1de4] ss:$16 sps:$4 sm:$0xff]  }
 0x34a   : > { %7586 = vmatpush2.bf16.msra.mxu1 %v11411_v26  ;;  %7596 = vmatprep.subr.bf16.mxu0 %v11416_v36  ;;  %v11467_v26 = vld [vmem:[%s15202_s1 + $0x1fe4] ss:$16 sps:$4 sm:$0xff]   ;;  %v11462_v36 = vld [vmem:[%s15202_s1 + $0x1de0] ss:$16 sps:$4 sm:$0xff]  }
 0x34b   : > { %7637 = vmatprep.subr.bf16.mxu1 %v11419_v13  ;;  %v11465_v13 = vld [vmem:[%s15202_s1 + $0x1fe0] ss:$16 sps:$4 sm:$0xff]  }
 0x34c   : > { %v5745_v20 = vpop.f32.mrf.mxu0  ;;  %7547 = vmatmul.mubr.bf16.vlgmr.msra.gmra.mxu0 %v6218_v0 }
 0x34d   : > { %v5786_v8 = vpop.f32.mrf.mxu1  ;;  %7588 = vmatmul.mubr.bf16.vlgmr.msra.gmra.mxu1 %v6220_v1  ;;  %v5746_v9 = vadd.f32 %v5745_v20, %v14331_v46  ;;  %7597 = vmatpush1.bf16.msra.mxu0 %v11414_v59  ;;  %v11431_v46 = vld [vmem:[%s15202_s1 + $0x1ea4] ss:$16 sps:$4 sm:$0xff]  }
 0x34e   : > { %7638 = vmatpush1.bf16.msra.mxu1 %v11417_v16  ;;  %v5747_v21 = vpop.f32.mrf.mxu0  ;;  %7598 = vmatprep.subr.bf16.mxu0 %v11422_v17  ;;  %v11470_v59 = vld [vmem:[%s15202_s1 + $0x1dc4] ss:$16 sps:$4 sm:$0xff]   ;;  %v11468_v17 = vld [vmem:[%s15202_s1 + $0x1dc0] ss:$16 sps:$4 sm:$0xff]  }
 0x34f   : > { %v5788_v24 = vpop.f32.mrf.mxu1  ;;  %7639 = vmatprep.subr.bf16.mxu1 %v11425_v18  ;;  %v5787_v52 = vadd.f32 %v5786_v8, %v5746_v9  ;;  %v5748_v29 = vadd.f32 %v5747_v21, %v14345_v60  ;;  %7628 = vmatprep.mubr.bf16.mxu0 %v6223_v23  ;;  %v11429_v60 = vld [vmem:[%s15202_s1 + $0x1ea0] ss:$16 sps:$4 sm:$0xff]   ;;  %v11473_v16 = vld [vmem:[%s15202_s1 + $0x1fc4] ss:$16 sps:$4 sm:$0xff]  }
 0x350   : > { %7669 = vmatprep.mubr.bf16.mxu1 %v6225_v19  ;;  %v5749_v30 = vpop.f32.mrf.mxu0  ;;  %v11471_v18 = vld [vmem:[%s15202_s1 + $0x1fc0] ss:$16 sps:$4 sm:$0xff]   ;;  %v11476_v20 = vld [vmem:[%s15202_s1 + $0x1da4] ss:$16 sps:$4 sm:$0xff]  }
 0x351   : > { %v5790_v28 = vpop.f32.mrf.mxu1  ;;  %v14558_v49 = vadd.f32 %v5787_v52, %v13720_v31  ;;  %v5789_v50 = vadd.f32 %v5788_v24, %v5748_v29  ;;  %7599 = vmatpush1.bf16.msra.mxu0 %v11420_v56  ;;  %v11434_v31 = vld [vmem:[%s15202_s1 + $0x1c84] ss:$16 sps:$4 sm:$0xff]   ;;  %v11474_v9 = vld [vmem:[%s15202_s1 + $0x1da0] ss:$16 sps:$4 sm:$0xff]  }
 0x352   : > { %7640 = vmatpush1.bf16.msra.mxu1 %v11423_v43  ;;  %v5750_v14 = vpop.f32.mrf.mxu0  ;;  %7600 = vmatprep.subr.bf16.mxu0 %v11428_v25  ;;  %v11479_v8 = vld [vmem:[%s15202_s1 + $0x1fa4] ss:$16 sps:$4 sm:$0xff]   ;;  %v11477_v56 = vld [vmem:[%s15202_s1 + $0x1fa0] ss:$16 sps:$4 sm:$0xff]  }
 0x353   : > { %v5791_v38 = vpop.f32.mrf.mxu1  ;;  %7641 = vmatprep.subr.bf16.mxu1 %v11431_v46  ;;  %v14573_v41 = vadd.f32 %v5789_v50, %v13731_v32  ;;  %v11443_v32 = vld [vmem:[%s15202_s1 + $0x1e64] ss:$16 sps:$4 sm:$0xff]   ;;  %v11480_v24 = vld [vmem:[%s15202_s1 + $0x1d80] ss:$16 sps:$4 sm:$0xff]  }
 0x354   : > { %v11482_v43 = vld [vmem:[%s15202_s1 + $0x1d84] ss:$16 sps:$4 sm:$0xff]   ;;  %v11483_v25 = vld [vmem:[%s15202_s1 + $0x1f80] ss:$16 sps:$4 sm:$0xff]  }
 0x355   : > { %7601 = vmatpush1.bf16.msra.mxu0 %v11426_v3  ;;  %v11485_v21 = vld [vmem:[%s15202_s1 + $0x1f84] ss:$16 sps:$4 sm:$0xff]   ;;  %v11486_v29 = vld [vmem:[%s15202_s1 + $0x1d60] ss:$16 sps:$4 sm:$0xff]  }
 0x356   : > { %7642 = vmatpush1.bf16.msra.mxu1 %v11429_v60  ;;  %7602 = vmatprep.subr.bf16.mxu0 %v11434_v31  ;;  %v11488_v46 = vld [vmem:[%s15202_s1 + $0x1d64] ss:$16 sps:$4 sm:$0xff]   ;;  %v11489_v30 = vld [vmem:[%s15202_s1 + $0x1f60] ss:$16 sps:$4 sm:$0xff]  }
 0x357   : > { %7643 = vmatprep.subr.bf16.mxu1 %v11437_v39  ;;  %v11491_v52 = vld [vmem:[%s15202_s1 + $0x1f64] ss:$16 sps:$4 sm:$0xff]   ;;  %v11492_v3 = vld [vmem:[%s15202_s1 + $0x1d40] ss:$16 sps:$4 sm:$0xff]  }
 0x358   : > { %v11494_v28 = vld [vmem:[%s15202_s1 + $0x1d44] ss:$16 sps:$4 sm:$0xff]   ;;  %v11495_v60 = vld [vmem:[%s15202_s1 + $0x1f40] ss:$16 sps:$4 sm:$0xff]  }
 0x359   : > { %7603 = vmatpush1.bf16.msra.mxu0 %v11432_v22  ;;  %v11497_v50 = vld [vmem:[%s15202_s1 + $0x1f44] ss:$16 sps:$4 sm:$0xff]   ;;  %v11498_v31 = vld [vmem:[%s15202_s1 + $0x1d20] ss:$16 sps:$4 sm:$0xff]  }
 0x35a   : > { %7644 = vmatpush1.bf16.msra.mxu1 %v11435_v44  ;;  %7604 = vmatprep.subr.bf16.mxu0 %v11440_v45  ;;  %v11500_v14 = vld [vmem:[%s15202_s1 + $0x1d24] ss:$16 sps:$4 sm:$0xff]   ;;  %v11501_v39 = vld [vmem:[%s15202_s1 + $0x1f20] ss:$16 sps:$4 sm:$0xff]  }
 0x35b   : > { %7645 = vmatprep.subr.bf16.mxu1 %v11443_v32  ;;  %v11503_v38 = vld [vmem:[%s15202_s1 + $0x1f24] ss:$16 sps:$4 sm:$0xff]   ;;  %v11504_v45 = vld [vmem:[%s15202_s1 + $0x1d00] ss:$16 sps:$4 sm:$0xff]  }
 0x35c   : > { %v11506_v22 = vld [vmem:[%s15202_s1 + $0x1d04] ss:$16 sps:$4 sm:$0xff]   ;;  %v11507_v32 = vld [vmem:[%s15202_s1 + $0x1f00] ss:$16 sps:$4 sm:$0xff]  }
 0x35d   : > { %7605 = vmatpush1.bf16.msra.mxu0 %v11438_v47  ;;  %v11509_v44 = vld [vmem:[%s15202_s1 + $0x1f04] ss:$16 sps:$4 sm:$0xff]   ;;  %v11512_v47 = vld [vmem:[%s15202_s1 + $0x18ec] ss:$16 sps:$4 sm:$0xff]  }
 0x35e   : > { %7646 = vmatpush1.bf16.msra.mxu1 %v11441_v37  ;;  %7606 = vmatprep.subr.bf16.mxu0 %v11446_v53  ;;  %v11515_v37 = vld [vmem:[%s15202_s1 + $0x1aec] ss:$16 sps:$4 sm:$0xff]   ;;  %v6222_v53 = vrot.slane %v13861_v27, 2 }
 0x35f   : > { %7647 = vmatprep.subr.bf16.mxu1 %v11449_v58  ;;  %v6224_v58 = vrot.slane %v13865_v15, 2 }
 0x361   : > { %7607 = vmatpush1.bf16.msra.mxu0 %v11444_v54  ;;  %v11510_v54 = vld [vmem:[%s15202_s1 + $0x18e8] ss:$16 sps:$4 sm:$0xff]  }
 0x362   : > { %7648 = vmatpush1.bf16.msra.mxu1 %v11447_v57  ;;  %7608 = vmatprep.subr.bf16.mxu0 %v11452_v61  ;;  %v11513_v57 = vld [vmem:[%s15202_s1 + $0x1ae8] ss:$16 sps:$4 sm:$0xff]   ;;  %v11518_v61 = vld [vmem:[%s15202_s1 + $0x18cc] ss:$16 sps:$4 sm:$0xff]  }
 0x363   : > { %7649 = vmatprep.subr.bf16.mxu1 %v11455_v5  ;;  %v11521_v5 = vld [vmem:[%s15202_s1 + $0x1acc] ss:$16 sps:$4 sm:$0xff]  }
 0x365   : > { %7609 = vmatpush1.bf16.msra.mxu0 %v11450_v6 }
 0x366   : > { %7650 = vmatpush1.bf16.msra.mxu1 %v11453_v40  ;;  %7610 = vmatprep.subr.bf16.mxu0 %v11458_v62 }
 0x367   : > { %7651 = vmatprep.subr.bf16.mxu1 %v11461_v63  ;;  %v11516_v63 = vld [vmem:[%s15202_s1 + $0x18c8] ss:$16 sps:$4 sm:$0xff]  }
 0x369   : > { %7611 = vmatpush1.bf16.msra.mxu0 %v11456_v11  ;;  %v11519_v11 = vld [vmem:[%s15202_s1 + $0x1ac8] ss:$16 sps:$4 sm:$0xff]  }
 0x36a   : > { %7652 = vmatpush1.bf16.msra.mxu1 %v11459_v7  ;;  %7612 = vmatprep.subr.bf16.mxu0 %v11464_v35 }
 0x36b   : > { %7653 = vmatprep.subr.bf16.mxu1 %v11467_v26  ;;  %v11524_v26 = vld [vmem:[%s15202_s1 + $0x18ac] ss:$16 sps:$4 sm:$0xff]  }
 0x36d   : > { %7613 = vmatpush2.bf16.msra.mxu0 %v11462_v36  ;;  %v11527_v36 = vld [vmem:[%s15202_s1 + $0x1aac] ss:$16 sps:$4 sm:$0xff]  }
 0x36e   : > { %7654 = vmatpush2.bf16.msra.mxu1 %v11465_v13  ;;  %7614 = vmatprep.subr.bf16.mxu0 %v11470_v59 }
 0x36f   : > { %7655 = vmatprep.subr.bf16.mxu1 %v11473_v16 }
 0x371   : > { %7615 = vmatpush2.bf16.msra.mxu0 %v11468_v17  ;;  %v11522_v17 = vld [vmem:[%s15202_s1 + $0x18a8] ss:$16 sps:$4 sm:$0xff]  }
 0x372   : > { %7656 = vmatpush2.bf16.msra.mxu1 %v11471_v18  ;;  %7616 = vmatprep.subr.bf16.mxu0 %v11476_v20  ;;  %v11525_v18 = vld [vmem:[%s15202_s1 + $0x1aa8] ss:$16 sps:$4 sm:$0xff]  }
 0x373   : > { %7657 = vmatprep.subr.bf16.mxu1 %v11479_v8 }
 0x375   : > { %7617 = vmatpush2.bf16.msra.mxu0 %v11474_v9  ;;  %v11536_v9 = vld [vmem:[%s15202_s1 + $0x186c] ss:$16 sps:$4 sm:$0xff]  }
 0x376   : > { %7658 = vmatpush2.bf16.msra.mxu1 %v11477_v56  ;;  %7618 = vmatprep.subr.bf16.mxu0 %v11482_v43  ;;  %v11539_v56 = vld [vmem:[%s15202_s1 + $0x1a6c] ss:$16 sps:$4 sm:$0xff]   ;;  %v11534_v43 = vld [vmem:[%s15202_s1 + $0x1868] ss:$16 sps:$4 sm:$0xff]  }
 0x377   : > { %7659 = vmatprep.subr.bf16.mxu1 %v11485_v21  ;;  %v11537_v21 = vld [vmem:[%s15202_s1 + $0x1a68] ss:$16 sps:$4 sm:$0xff]  }
 0x379   : > { %7619 = vmatpush2.bf16.msra.mxu0 %v11480_v24  ;;  %v11542_v24 = vld [vmem:[%s15202_s1 + $0x184c] ss:$16 sps:$4 sm:$0xff]  }
 0x37a   : > { %7660 = vmatpush2.bf16.msra.mxu1 %v11483_v25  ;;  %7620 = vmatprep.subr.bf16.mxu0 %v11488_v46  ;;  %v11545_v25 = vld [vmem:[%s15202_s1 + $0x1a4c] ss:$16 sps:$4 sm:$0xff]   ;;  %v11540_v46 = vld [vmem:[%s15202_s1 + $0x1848] ss:$16 sps:$4 sm:$0xff]  }
 0x37b   : > { %7661 = vmatprep.subr.bf16.mxu1 %v11491_v52  ;;  %v11543_v52 = vld [vmem:[%s15202_s1 + $0x1a48] ss:$16 sps:$4 sm:$0xff]  }
 0x37d   : > { %7621 = vmatpush2.bf16.msra.mxu0 %v11486_v29  ;;  %v11548_v29 = vld [vmem:[%s15202_s1 + $0x182c] ss:$16 sps:$4 sm:$0xff]  }
 0x37e   : > { %7662 = vmatpush2.bf16.msra.mxu1 %v11489_v30  ;;  %7622 = vmatprep.subr.bf16.mxu0 %v11494_v28  ;;  %v11551_v30 = vld [vmem:[%s15202_s1 + $0x1a2c] ss:$16 sps:$4 sm:$0xff]   ;;  %v11546_v28 = vld [vmem:[%s15202_s1 + $0x1828] ss:$16 sps:$4 sm:$0xff]  }
 0x37f   : > { %7663 = vmatprep.subr.bf16.mxu1 %v11497_v50  ;;  %v11549_v50 = vld [vmem:[%s15202_s1 + $0x1a28] ss:$16 sps:$4 sm:$0xff]  }
 0x381   : > { %7623 = vmatpush2.bf16.msra.mxu0 %v11492_v3  ;;  %v11554_v3 = vld [vmem:[%s15202_s1 + $0x180c] ss:$16 sps:$4 sm:$0xff]  }
 0x382   : > { %7664 = vmatpush2.bf16.msra.mxu1 %v11495_v60  ;;  %7624 = vmatprep.subr.bf16.mxu0 %v11500_v14  ;;  %v11557_v60 = vld [vmem:[%s15202_s1 + $0x1a0c] ss:$16 sps:$4 sm:$0xff]   ;;  %v11552_v14 = vld [vmem:[%s15202_s1 + $0x1808] ss:$16 sps:$4 sm:$0xff]  }
 0x383   : > { %7665 = vmatprep.subr.bf16.mxu1 %v11503_v38  ;;  %v11555_v38 = vld [vmem:[%s15202_s1 + $0x1a08] ss:$16 sps:$4 sm:$0xff]  }
 0x385   : > { %7625 = vmatpush2.bf16.msra.mxu0 %v11498_v31  ;;  %v11560_v31 = vld [vmem:[%s15202_s1 + $0x19ec] ss:$16 sps:$4 sm:$0xff]  }
 0x386   : > { %7666 = vmatpush2.bf16.msra.mxu1 %v11501_v39  ;;  %7626 = vmatprep.subr.bf16.mxu0 %v11506_v22  ;;  %v11563_v39 = vld [vmem:[%s15202_s1 + $0x1bec] ss:$16 sps:$4 sm:$0xff]   ;;  %v11558_v22 = vld [vmem:[%s15202_s1 + $0x19e8] ss:$16 sps:$4 sm:$0xff]  }
 0x387   : > { %7667 = vmatprep.subr.bf16.mxu1 %v11509_v44  ;;  %v11561_v44 = vld [vmem:[%s15202_s1 + $0x1be8] ss:$16 sps:$4 sm:$0xff]  }
 0x389   : > { %7627 = vmatpush2.bf16.msra.mxu0 %v11504_v45  ;;  %v11566_v45 = vld [vmem:[%s15202_s1 + $0x19cc] ss:$16 sps:$4 sm:$0xff]  }
 0x38a   : > { %7668 = vmatpush2.bf16.msra.mxu1 %v11507_v32  ;;  %7678 = vmatprep.subr.bf16.mxu0 %v11512_v47  ;;  %v11569_v32 = vld [vmem:[%s15202_s1 + $0x1bcc] ss:$16 sps:$4 sm:$0xff]   ;;  %v11564_v47 = vld [vmem:[%s15202_s1 + $0x19c8] ss:$16 sps:$4 sm:$0xff]  }
 0x38b   : > { %7719 = vmatprep.subr.bf16.mxu1 %v11515_v37  ;;  %v11567_v37 = vld [vmem:[%s15202_s1 + $0x1bc8] ss:$16 sps:$4 sm:$0xff]  }
 0x38c   : > { %v5827_v6 = vpop.f32.mrf.mxu0  ;;  %7629 = vmatmul.mubr.bf16.vlgmr.msra.gmra.mxu0 %v6222_v53 }
 0x38d   : > { %v5868_v40 = vpop.f32.mrf.mxu1  ;;  %7670 = vmatmul.mubr.bf16.vlgmr.msra.gmra.mxu1 %v6224_v58  ;;  %7679 = vmatpush1.bf16.msra.mxu0 %v11510_v54  ;;  %v11572_v54 = vld [vmem:[%s15202_s1 + $0x19ac] ss:$16 sps:$4 sm:$0xff]  }
 0x38e   : > { %v14749_v62 = vadd.f32 %v5868_v40, %v5827_v6  ;;  %7720 = vmatpush1.bf16.msra.mxu1 %v11513_v57  ;;  %v5829_v7 = vpop.f32.mrf.mxu0  ;;  %7680 = vmatprep.subr.bf16.mxu0 %v11518_v61  ;;  %v11575_v57 = vld [vmem:[%s15202_s1 + $0x1bac] ss:$16 sps:$4 sm:$0xff]   ;;  %v11570_v61 = vld [vmem:[%s15202_s1 + $0x19a8] ss:$16 sps:$4 sm:$0xff]  }
 0x38f   : > { %v5870_v35 = vpop.f32.mrf.mxu1  ;;  %7721 = vmatprep.subr.bf16.mxu1 %v11521_v5  ;;  %7710 = vmatprep.mubr.bf16.mxu0 %v6219_v42  ;;  %v11528_v42 = vld [vmem:[%s15202_s1 + $0x1888] ss:$16 sps:$4 sm:$0xff]   ;;  %v11578_v6 = vld [vmem:[%s15202_s1 + $0x198c] ss:$16 sps:$4 sm:$0xff]  }
 0x390   : > { %v14763_v13 = vadd.f32 %v5870_v35, %v5829_v7  ;;  %7751 = vmatprep.mubr.bf16.mxu1 %v6221_v55  ;;  %v5831_v59 = vpop.f32.mrf.mxu0  ;;  %v11531_v55 = vld [vmem:[%s15202_s1 + $0x1a88] ss:$16 sps:$4 sm:$0xff]   ;;  %v11581_v40 = vld [vmem:[%s15202_s1 + $0x1b8c] ss:$16 sps:$4 sm:$0xff]  }
 0x391   : > { %v5872_v16 = vpop.f32.mrf.mxu1  ;;  %7681 = vmatpush1.bf16.msra.mxu0 %v11516_v63  ;;  %v11573_v5 = vld [vmem:[%s15202_s1 + $0x1ba8] ss:$16 sps:$4 sm:$0xff]   ;;  %v11584_v7 = vld [vmem:[%s15202_s1 + $0x196c] ss:$16 sps:$4 sm:$0xff]  }
 0x392   : > { %7722 = vmatpush1.bf16.msra.mxu1 %v11519_v11  ;;  %v5832_v20 = vpop.f32.mrf.mxu0  ;;  %7682 = vmatprep.subr.bf16.mxu0 %v11524_v26  ;;  %v11576_v63 = vld [vmem:[%s15202_s1 + $0x1988] ss:$16 sps:$4 sm:$0xff]   ;;  %v11587_v35 = vld [vmem:[%s15202_s1 + $0x1b6c] ss:$16 sps:$4 sm:$0xff]  }
 0x393   : > { %v5873_v8 = vpop.f32.mrf.mxu1  ;;  %7723 = vmatprep.subr.bf16.mxu1 %v11527_v36  ;;  %v11579_v11 = vld [vmem:[%s15202_s1 + $0x1b88] ss:$16 sps:$4 sm:$0xff]   ;;  %v11590_v59 = vld [vmem:[%s15202_s1 + $0x194c] ss:$16 sps:$4 sm:$0xff]  }
 0x394   : > { %v11582_v26 = vld [vmem:[%s15202_s1 + $0x1968] ss:$16 sps:$4 sm:$0xff]   ;;  %v11593_v16 = vld [vmem:[%s15202_s1 + $0x1b4c] ss:$16 sps:$4 sm:$0xff]  }
 0x395   : > { %7683 = vmatpush1.bf16.msra.mxu0 %v11522_v17  ;;  %v11585_v36 = vld [vmem:[%s15202_s1 + $0x1b68] ss:$16 sps:$4 sm:$0xff]   ;;  %v11596_v20 = vld [vmem:[%s15202_s1 + $0x192c] ss:$16 sps:$4 sm:$0xff]  }
 0x396   : > { %7724 = vmatpush1.bf16.msra.mxu1 %v11525_v18  ;;  %7684 = vmatprep.subr.bf16.mxu0 %v11530_v33  ;;  %v11588_v17 = vld [vmem:[%s15202_s1 + $0x1948] ss:$16 sps:$4 sm:$0xff]   ;;  %v11599_v8 = vld [vmem:[%s15202_s1 + $0x1b2c] ss:$16 sps:$4 sm:$0xff]  }
 0x397   : > { %7725 = vmatprep.subr.bf16.mxu1 %v11533_v2  ;;  %v11591_v18 = vld [vmem:[%s15202_s1 + $0x1b48] ss:$16 sps:$4 sm:$0xff]  }
 0x398   : > { %v11594_v33 = vld [vmem:[%s15202_s1 + $0x1928] ss:$16 sps:$4 sm:$0xff]  }
 0x399   : > { %7685 = vmatpush1.bf16.msra.mxu0 %v11528_v42  ;;  %v11597_v2 = vld [vmem:[%s15202_s1 + $0x1b28] ss:$16 sps:$4 sm:$0xff]   ;;  %v11602_v42 = vld [vmem:[%s15202_s1 + $0x190c] ss:$16 sps:$4 sm:$0xff]  }
 0x39a   : > { %7726 = vmatpush1.bf16.msra.mxu1 %v11531_v55  ;;  %7686 = vmatprep.subr.bf16.mxu0 %v11536_v9  ;;  %v11605_v55 = vld [vmem:[%s15202_s1 + $0x1b0c] ss:$16 sps:$4 sm:$0xff]   ;;  %v11600_v9 = vld [vmem:[%s15202_s1 + $0x1908] ss:$16 sps:$4 sm:$0xff]  }
 0x39b   : > { %7727 = vmatprep.subr.bf16.mxu1 %v11539_v56  ;;  %v11603_v56 = vld [vmem:[%s15202_s1 + $0x1b08] ss:$16 sps:$4 sm:$0xff]  }
 0x39d   : > { %7687 = vmatpush1.bf16.msra.mxu0 %v11534_v43  ;;  %v11608_v43 = vld [vmem:[%s15202_s1 + $0x1cec] ss:$16 sps:$4 sm:$0xff]  }
 0x39e   : > { %7728 = vmatpush1.bf16.msra.mxu1 %v11537_v21  ;;  %7688 = vmatprep.subr.bf16.mxu0 %v11542_v24  ;;  %v11611_v21 = vld [vmem:[%s15202_s1 + $0x1eec] ss:$16 sps:$4 sm:$0xff]   ;;  %v11606_v24 = vld [vmem:[%s15202_s1 + $0x1ce8] ss:$16 sps:$4 sm:$0xff]  }
 0x39f   : > { %7729 = vmatprep.subr.bf16.mxu1 %v11545_v25  ;;  %v11609_v25 = vld [vmem:[%s15202_s1 + $0x1ee8] ss:$16 sps:$4 sm:$0xff]  }
 0x3a1   : > { %7689 = vmatpush1.bf16.msra.mxu0 %v11540_v46  ;;  %v11614_v46 = vld [vmem:[%s15202_s1 + $0x1ccc] ss:$16 sps:$4 sm:$0xff]  }
 0x3a2   : > { %7730 = vmatpush1.bf16.msra.mxu1 %v11543_v52  ;;  %7690 = vmatprep.subr.bf16.mxu0 %v11548_v29  ;;  %v11617_v52 = vld [vmem:[%s15202_s1 + $0x1ecc] ss:$16 sps:$4 sm:$0xff]  }
 0x3a3   : > { %7731 = vmatprep.subr.bf16.mxu1 %v11551_v30 }
 0x3a5   : > { %7691 = vmatpush1.bf16.msra.mxu0 %v11546_v28 }
 0x3a6   : > { %7732 = vmatpush1.bf16.msra.mxu1 %v11549_v50  ;;  %7692 = vmatprep.subr.bf16.mxu0 %v11554_v3  ;;  %v11612_v50 = vld [vmem:[%s15202_s1 + $0x1cc8] ss:$16 sps:$4 sm:$0xff]  }
 0x3a7   : > { %7733 = vmatprep.subr.bf16.mxu1 %v11557_v60  ;;  %v11615_v3 = vld [vmem:[%s15202_s1 + $0x1ec8] ss:$16 sps:$4 sm:$0xff]  }
 0x3a9   : > { %7693 = vmatpush1.bf16.msra.mxu0 %v11552_v14 }
 0x3aa   : > { %7734 = vmatpush1.bf16.msra.mxu1 %v11555_v38  ;;  %7694 = vmatprep.subr.bf16.mxu0 %v11560_v31 }
 0x3ab   : > { %7735 = vmatprep.subr.bf16.mxu1 %v11563_v39 }
 0x3ad   : > { %7695 = vmatpush2.bf16.msra.mxu0 %v11558_v22  ;;  %v11618_v22 = vld [vmem:[%s15202_s1 + $0x1ca8] ss:$16 sps:$4 sm:$0xff]  }
 0x3ae   : > { %7736 = vmatpush2.bf16.msra.mxu1 %v11561_v44  ;;  %7696 = vmatprep.subr.bf16.mxu0 %v11566_v45  ;;  %v11624_v44 = vld [vmem:[%s15202_s1 + $0x1c88] ss:$16 sps:$4 sm:$0xff]  }
 0x3af   : > { %7737 = vmatprep.subr.bf16.mxu1 %v11569_v32  ;;  %v11627_v45 = vld [vmem:[%s15202_s1 + $0x1e88] ss:$16 sps:$4 sm:$0xff]   ;;  %v11632_v32 = vld [vmem:[%s15202_s1 + $0x1c6c] ss:$16 sps:$4 sm:$0xff]  }
 0x3b1   : > { %7697 = vmatpush2.bf16.msra.mxu0 %v11564_v47  ;;  %v11630_v47 = vld [vmem:[%s15202_s1 + $0x1c68] ss:$16 sps:$4 sm:$0xff]  }
 0x3b2   : > { %7738 = vmatpush2.bf16.msra.mxu1 %v11567_v37  ;;  %7698 = vmatprep.subr.bf16.mxu0 %v11572_v54  ;;  %v11633_v37 = vld [vmem:[%s15202_s1 + $0x1e68] ss:$16 sps:$4 sm:$0xff]   ;;  %v11638_v54 = vld [vmem:[%s15202_s1 + $0x1c4c] ss:$16 sps:$4 sm:$0xff]  }
 0x3b3   : > { %7739 = vmatprep.subr.bf16.mxu1 %v11575_v57  ;;  %v11641_v57 = vld [vmem:[%s15202_s1 + $0x1e4c] ss:$16 sps:$4 sm:$0xff]  }
 0x3b5   : > { %7699 = vmatpush2.bf16.msra.mxu0 %v11570_v61  ;;  %v11636_v61 = vld [vmem:[%s15202_s1 + $0x1c48] ss:$16 sps:$4 sm:$0xff]  }
 0x3b6   : > { %7740 = vmatpush2.bf16.msra.mxu1 %v11573_v5  ;;  %7700 = vmatprep.subr.bf16.mxu0 %v11578_v6  ;;  %v11639_v5 = vld [vmem:[%s15202_s1 + $0x1e48] ss:$16 sps:$4 sm:$0xff]   ;;  %v11644_v6 = vld [vmem:[%s15202_s1 + $0x1c2c] ss:$16 sps:$4 sm:$0xff]  }
 0x3b7   : > { %7741 = vmatprep.subr.bf16.mxu1 %v11581_v40  ;;  %v11647_v40 = vld [vmem:[%s15202_s1 + $0x1e2c] ss:$16 sps:$4 sm:$0xff]  }
 0x3b9   : > { %7701 = vmatpush2.bf16.msra.mxu0 %v11576_v63  ;;  %v11642_v63 = vld [vmem:[%s15202_s1 + $0x1c28] ss:$16 sps:$4 sm:$0xff]  }
 0x3ba   : > { %7742 = vmatpush2.bf16.msra.mxu1 %v11579_v11  ;;  %7702 = vmatprep.subr.bf16.mxu0 %v11584_v7  ;;  %v11645_v11 = vld [vmem:[%s15202_s1 + $0x1e28] ss:$16 sps:$4 sm:$0xff]   ;;  %v11650_v7 = vld [vmem:[%s15202_s1 + $0x1c0c] ss:$16 sps:$4 sm:$0xff]  }
 0x3bb   : > { %7743 = vmatprep.subr.bf16.mxu1 %v11587_v35  ;;  %v11653_v35 = vld [vmem:[%s15202_s1 + $0x1e0c] ss:$16 sps:$4 sm:$0xff]  }
 0x3bd   : > { %7703 = vmatpush2.bf16.msra.mxu0 %v11582_v26  ;;  %v11648_v26 = vld [vmem:[%s15202_s1 + $0x1c08] ss:$16 sps:$4 sm:$0xff]  }
 0x3be   : > { %7744 = vmatpush2.bf16.msra.mxu1 %v11585_v36  ;;  %7704 = vmatprep.subr.bf16.mxu0 %v11590_v59  ;;  %v11651_v36 = vld [vmem:[%s15202_s1 + $0x1e08] ss:$16 sps:$4 sm:$0xff]   ;;  %v11656_v59 = vld [vmem:[%s15202_s1 + $0x1dec] ss:$16 sps:$4 sm:$0xff]  }
 0x3bf   : > { %7745 = vmatprep.subr.bf16.mxu1 %v11593_v16  ;;  %v11659_v16 = vld [vmem:[%s15202_s1 + $0x1fec] ss:$16 sps:$4 sm:$0xff]  }
 0x3c1   : > { %7705 = vmatpush2.bf16.msra.mxu0 %v11588_v17  ;;  %v11654_v17 = vld [vmem:[%s15202_s1 + $0x1de8] ss:$16 sps:$4 sm:$0xff]  }
 0x3c2   : > { %7746 = vmatpush2.bf16.msra.mxu1 %v11591_v18  ;;  %7706 = vmatprep.subr.bf16.mxu0 %v11596_v20  ;;  %v11657_v18 = vld [vmem:[%s15202_s1 + $0x1fe8] ss:$16 sps:$4 sm:$0xff]   ;;  %v11662_v20 = vld [vmem:[%s15202_s1 + $0x1dcc] ss:$16 sps:$4 sm:$0xff]  }
 0x3c3   : > { %7747 = vmatprep.subr.bf16.mxu1 %v11599_v8  ;;  %v11665_v8 = vld [vmem:[%s15202_s1 + $0x1fcc] ss:$16 sps:$4 sm:$0xff]  }
 0x3c5   : > { %7707 = vmatpush2.bf16.msra.mxu0 %v11594_v33  ;;  %v11660_v33 = vld [vmem:[%s15202_s1 + $0x1dc8] ss:$16 sps:$4 sm:$0xff]  }
 0x3c6   : > { %7748 = vmatpush2.bf16.msra.mxu1 %v11597_v2  ;;  %7708 = vmatprep.subr.bf16.mxu0 %v11602_v42  ;;  %v11663_v2 = vld [vmem:[%s15202_s1 + $0x1fc8] ss:$16 sps:$4 sm:$0xff]   ;;  %v11668_v42 = vld [vmem:[%s15202_s1 + $0x1dac] ss:$16 sps:$4 sm:$0xff]  }
 0x3c7   : > { %7749 = vmatprep.subr.bf16.mxu1 %v11605_v55  ;;  %v11671_v55 = vld [vmem:[%s15202_s1 + $0x1fac] ss:$16 sps:$4 sm:$0xff]  }
 0x3c9   : > { %7709 = vmatpush2.bf16.msra.mxu0 %v11600_v9  ;;  %v11666_v9 = vld [vmem:[%s15202_s1 + $0x1da8] ss:$16 sps:$4 sm:$0xff]  }
 0x3ca   : > { %7750 = vmatpush2.bf16.msra.mxu1 %v11603_v56  ;;  %7760 = vmatprep.subr.bf16.mxu0 %v11608_v43  ;;  %v11669_v56 = vld [vmem:[%s15202_s1 + $0x1fa8] ss:$16 sps:$4 sm:$0xff]   ;;  %v11674_v43 = vld [vmem:[%s15202_s1 + $0x1d8c] ss:$16 sps:$4 sm:$0xff]  }
 0x3cb   : > { %7801 = vmatprep.subr.bf16.mxu1 %v11611_v21  ;;  %v11677_v21 = vld [vmem:[%s15202_s1 + $0x1f8c] ss:$16 sps:$4 sm:$0xff]  }
 0x3cc   : > { %v5909_v29 = vpop.f32.mrf.mxu0  ;;  %7711 = vmatmul.mubr.bf16.vlgmr.msra.gmra.mxu0 %v6218_v0 }
 0x3cd   : > { %v5950_v30 = vpop.f32.mrf.mxu1  ;;  %7752 = vmatmul.mubr.bf16.vlgmr.msra.gmra.mxu1 %v6220_v1  ;;  %v5910_v28 = vadd.f32 %v5909_v29, %v14749_v62  ;;  %7761 = vmatpush1.bf16.msra.mxu0 %v11606_v24  ;;  %v11672_v24 = vld [vmem:[%s15202_s1 + $0x1d88] ss:$16 sps:$4 sm:$0xff]  }
 0x3ce   : > { %7802 = vmatpush1.bf16.msra.mxu1 %v11609_v25  ;;  %v5911_v60 = vpop.f32.mrf.mxu0  ;;  %7762 = vmatprep.subr.bf16.mxu0 %v11614_v46  ;;  %v11675_v25 = vld [vmem:[%s15202_s1 + $0x1f88] ss:$16 sps:$4 sm:$0xff]   ;;  %v11680_v46 = vld [vmem:[%s15202_s1 + $0x1d6c] ss:$16 sps:$4 sm:$0xff]  }
 0x3cf   : > { %v5952_v14 = vpop.f32.mrf.mxu1  ;;  %7803 = vmatprep.subr.bf16.mxu1 %v11617_v52  ;;  %v5951_v0 = vadd.f32 %v5950_v30, %v5910_v28  ;;  %v5912_v1 = vadd.f32 %v5911_v60, %v14763_v13  ;;  %7792 = vmatprep.mubr.bf16.mxu0 %v6223_v23  ;;  %v11683_v52 = vld [vmem:[%s15202_s1 + $0x1f6c] ss:$16 sps:$4 sm:$0xff]   ;;  %v11678_v29 = vld [vmem:[%s15202_s1 + $0x1d68] ss:$16 sps:$4 sm:$0xff]  }
 0x3d0   : > { %7833 = vmatprep.mubr.bf16.mxu1 %v6225_v19  ;;  %v5913_v62 = vpop.f32.mrf.mxu0  ;;  %v11681_v30 = vld [vmem:[%s15202_s1 + $0x1f68] ss:$16 sps:$4 sm:$0xff]   ;;  %v11686_v28 = vld [vmem:[%s15202_s1 + $0x1d4c] ss:$16 sps:$4 sm:$0xff]  }
 0x3d1   : > { %v5954_v38 = vpop.f32.mrf.mxu1  ;;  %v14972_v31 = vadd.f32 %v5951_v0, %v14140_v51  ;;  %v5953_v39 = vadd.f32 %v5952_v14, %v5912_v1  ;;  %7763 = vmatpush1.bf16.msra.mxu0 %v11612_v50  ;;  %v11629_v51 = vld [vmem:[%s15202_s1 + $0x1e8c] ss:$16 sps:$4 sm:$0xff]   ;;  %v11687_v60 = vld [vmem:[%s15202_s1 + $0x1f48] ss:$16 sps:$4 sm:$0xff]  }
 0x3d2   : > { %7804 = vmatpush1.bf16.msra.mxu1 %v11615_v3  ;;  %v5914_v23 = vpop.f32.mrf.mxu0  ;;  %7764 = vmatprep.subr.bf16.mxu0 %v11620_v10  ;;  %v11689_v50 = vld [vmem:[%s15202_s1 + $0x1f4c] ss:$16 sps:$4 sm:$0xff]   ;;  %v11684_v3 = vld [vmem:[%s15202_s1 + $0x1d48] ss:$16 sps:$4 sm:$0xff]  }
 0x3d3   : > { %v5955_v13 = vpop.f32.mrf.mxu1  ;;  %7805 = vmatprep.subr.bf16.mxu1 %v11623_v34  ;;  %v14987_v19 = vadd.f32 %v5953_v39, %v14145_v48  ;;  %v11635_v48 = vld [vmem:[%s15202_s1 + $0x1e6c] ss:$16 sps:$4 sm:$0xff]   ;;  %v11690_v34 = vld [vmem:[%s15202_s1 + $0x1d28] ss:$16 sps:$4 sm:$0xff]  }
 0x3d4   : > { %v11692_v14 = vld [vmem:[%s15202_s1 + $0x1d2c] ss:$16 sps:$4 sm:$0xff]   ;;  %v11693_v0 = vld [vmem:[%s15202_s1 + $0x1f28] ss:$16 sps:$4 sm:$0xff]   ;;  %v11722_v13 = vmov 0.0  }
 0x3d5   : > { %7765 = vmatpush1.bf16.msra.mxu0 %v11618_v22  ;;  %v11695_v10 = vld [vmem:[%s15202_s1 + $0x1f2c] ss:$16 sps:$4 sm:$0xff]   ;;  %v11696_v38 = vld [vmem:[%s15202_s1 + $0x1d08] ss:$16 sps:$4 sm:$0xff]  }
 0x3d6   : > { %7806 = vmatpush1.bf16.msra.mxu1 %v11621_v12  ;;  %7766 = vmatprep.subr.bf16.mxu0 %v11626_v4  ;;  %v11698_v1 = vld [vmem:[%s15202_s1 + $0x1d0c] ss:$16 sps:$4 sm:$0xff]   ;;  %v11699_v39 = vld [vmem:[%s15202_s1 + $0x1f08] ss:$16 sps:$4 sm:$0xff]  }
 0x3d7   : > { %7807 = vmatprep.subr.bf16.mxu1 %v11629_v51  ;;  %v11701_v62 = vld [vmem:[%s15202_s1 + $0x1f0c] ss:$16 sps:$4 sm:$0xff]  }
 0x3d9   : > { %7767 = vmatpush1.bf16.msra.mxu0 %v11624_v44 }
 0x3da   : > { %7808 = vmatpush1.bf16.msra.mxu1 %v11627_v45  ;;  %7768 = vmatprep.subr.bf16.mxu0 %v11632_v32 }
 0x3db   : > { %7809 = vmatprep.subr.bf16.mxu1 %v11635_v48 }
 0x3dd   : > { %7769 = vmatpush1.bf16.msra.mxu0 %v11630_v47 }
 0x3de   : > { %7810 = vmatpush1.bf16.msra.mxu1 %v11633_v37  ;;  %7770 = vmatprep.subr.bf16.mxu0 %v11638_v54 }
 0x3df   : > { %7811 = vmatprep.subr.bf16.mxu1 %v11641_v57 }
 0x3e1   : > { %7771 = vmatpush1.bf16.msra.mxu0 %v11636_v61 }
 0x3e2   : > { %7812 = vmatpush1.bf16.msra.mxu1 %v11639_v5  ;;  %7772 = vmatprep.subr.bf16.mxu0 %v11644_v6 }
 0x3e3   : > { %7813 = vmatprep.subr.bf16.mxu1 %v11647_v40 }
 0x3e5   : > { %7773 = vmatpush1.bf16.msra.mxu0 %v11642_v63 }
 0x3e6   : > { %7814 = vmatpush1.bf16.msra.mxu1 %v11645_v11  ;;  %7774 = vmatprep.subr.bf16.mxu0 %v11650_v7 }
 0x3e7   : > { %7815 = vmatprep.subr.bf16.mxu1 %v11653_v35  ;;  %v7846_v35 = vld [vmem:[%s15203_s2] sm:$0x1] }
 0x3e9   : > { %7775 = vmatpush1.bf16.msra.mxu0 %v11648_v26 }
 0x3ea   : > { %7816 = vmatpush1.bf16.msra.mxu1 %v11651_v36  ;;  %7776 = vmatprep.subr.bf16.mxu0 %v11656_v59 }
 0x3eb   : > { %7817 = vmatprep.subr.bf16.mxu1 %v11659_v16 }
 0x3ed   : > { %7777 = vmatpush2.bf16.msra.mxu0 %v11654_v17 }
 0x3ee   : > { %7818 = vmatpush2.bf16.msra.mxu1 %v11657_v18  ;;  %7778 = vmatprep.subr.bf16.mxu0 %v11662_v20 }
 0x3ef   : > { %7819 = vmatprep.subr.bf16.mxu1 %v11665_v8 }
 0x3f1   : > { %7779 = vmatpush2.bf16.msra.mxu0 %v11660_v33 }
 0x3f2   : > { %7820 = vmatpush2.bf16.msra.mxu1 %v11663_v2  ;;  %7780 = vmatprep.subr.bf16.mxu0 %v11668_v42 }
 0x3f3   : > { %7821 = vmatprep.subr.bf16.mxu1 %v11671_v55 }
 0x3f5   : > { %7781 = vmatpush2.bf16.msra.mxu0 %v11666_v9 }
 0x3f6   : > { %7822 = vmatpush2.bf16.msra.mxu1 %v11669_v56  ;;  %7782 = vmatprep.subr.bf16.mxu0 %v11674_v43 }
 0x3f7   : > { %7823 = vmatprep.subr.bf16.mxu1 %v11677_v21 }
 0x3f9   : > { %7783 = vmatpush2.bf16.msra.mxu0 %v11672_v24 }
 0x3fa   : > { %7824 = vmatpush2.bf16.msra.mxu1 %v11675_v25  ;;  %7784 = vmatprep.subr.bf16.mxu0 %v11680_v46 }
 0x3fb   : > { %7825 = vmatprep.subr.bf16.mxu1 %v11683_v52 }
 0x3fd   : > { %7785 = vmatpush2.bf16.msra.mxu0 %v11678_v29 }
 0x3fe   : > { %7826 = vmatpush2.bf16.msra.mxu1 %v11681_v30  ;;  %7786 = vmatprep.subr.bf16.mxu0 %v11686_v28 }
 0x3ff   : > { %7827 = vmatprep.subr.bf16.mxu1 %v11689_v50 }
 0x401   : > { %7787 = vmatpush2.bf16.msra.mxu0 %v11684_v3 }
 0x402   : > { %7828 = vmatpush2.bf16.msra.mxu1 %v11687_v60  ;;  %7788 = vmatprep.subr.bf16.mxu0 %v11692_v14 }
 0x403   : > { %7829 = vmatprep.subr.bf16.mxu1 %v11695_v10 }
 0x405   : > { %7789 = vmatpush2.bf16.msra.mxu0 %v11690_v34 }
 0x406   : > { %7830 = vmatpush2.bf16.msra.mxu1 %v11693_v0  ;;  %7790 = vmatprep.subr.bf16.mxu0 %v11698_v1 }
 0x407   : > { %7831 = vmatprep.subr.bf16.mxu1 %v11701_v62 }
 0x409   : > { %7791 = vmatpush2.bf16.msra.mxu0 %v11696_v38 }
 0x40a   : > { %7832 = vmatpush2.bf16.msra.mxu1 %v11699_v39 }
 0x40c   : > { %v7548_v22 = vpop.f32.mrf.mxu0  ;;  %7793 = vmatmul.mubr.bf16.vlgmr.msra.gmra.mxu0 %v6222_v53 }
 0x40d   : > { %v7589_v12 = vpop.f32.mrf.mxu1  ;;  %7834 = vmatmul.mubr.bf16.vlgmr.msra.gmra.mxu1 %v6224_v58  ;;  %7928 = vmatprep.mubr.f32.mxu0 %v11722_v13 }
 0x40e   : > { %v7590_v23 = vadd.f32 %v7589_v12, %v7548_v22  ;;  %7999 = vmatprep.mubr.f32.mxu1 %v11722_v13  ;;  %v7550_v4 = vpop.f32.mrf.mxu0 }
 0x40f   : > { %v7591_v51 = vpop.f32.mrf.mxu1 }
 0x410   : > { %v7552_v44 = vpop.f32.mrf.mxu0  ;;  %v7592_v54 = vadd.f32 %v7591_v51, %v7550_v4  ;;  %v8184_v4 = vlaneseq }
 0x411   : > { %v7593_v45 = vpop.f32.mrf.mxu1 }
 0x412   : > { %v7553_v32 = vpop.f32.mrf.mxu0  ;;  %v8185_v45 = vshrl.u32 %v8184_v4, 7 }
 0x413   : > { %v7594_v48 = vpop.f32.mrf.mxu1 }
 0x414   : > { %v8186_v32 = vsub.s32 0, %v8185_v45 }
 0x44c   : > { %v7630_v47 = vpop.f32.mrf.mxu0 }
 0x44d   : > { %v7671_v37 = vpop.f32.mrf.mxu1  ;;  %v7631_v27 = vadd.f32 %v7630_v47, %v7590_v23 }
 0x44e   : > { %v7632_v53 = vpop.f32.mrf.mxu0 }
 0x44f   : > { %v7673_v57 = vpop.f32.mrf.mxu1  ;;  %v7672_v15 = vadd.f32 %v7671_v37, %v7631_v27  ;;  %v7633_v58 = vadd.f32 %v7632_v53, %v7592_v54 }
 0x450   : > { %v7634_v61 = vpop.f32.mrf.mxu0 }
 0x451   : > { %v7675_v5 = vpop.f32.mrf.mxu1  ;;  %v15146_v6 = vadd.f32 %v7672_v15, %v14558_v49  ;;  %v7674_v40 = vadd.f32 %v7673_v57, %v7633_v58 }
 0x452   : > { %v7635_v63 = vpop.f32.mrf.mxu0 }
 0x453   : > { %v7676_v11 = vpop.f32.mrf.mxu1  ;;  %v15149_v7 = vadd.f32 %v7674_v40, %v14573_v41  ;;  %v8006_v49 = vmul.f32 %v15146_v6, %v15146_v6 }
 0x455   : > { %v8007_v26 = vmul.f32 %v15149_v7, %v15149_v7  ;;  %10129 = vmatprep.subr.msk.mxu0 %vm7851_vm0, %v15149_v7 }
 0x456   : > { %10130 = vmatpush1.msk.msra.mxu0 %vm7851_vm0, %v15146_v6 }
 0x457   : > { %10131 = vmatmul.mubr.msk.f32.vlgmr.msra.gmra.mxu0 %vm7847_vm1, %v7846_v35  ;;  %10135 = vmatprep.subr.msk.mxu0 %vm7851_vm0, %v8007_v26 }
 0x458   : > { %10136 = vmatpush1.msk.msra.mxu0 %vm7851_vm0, %v8006_v49  ;;  %8086 = vmatprep.mubr.f32.mxu0 %v11722_v13 }
 0x45b   : > { %10137 = vmatmul.mubr.msk.f32.vlgmr.msra.gmra.mxu0 %vm7847_vm1, %v7846_v35 }
 0x48c   : > { %v7712_v41 = vpop.f32.mrf.mxu0 }
 0x48d   : > { %v7753_v36 = vpop.f32.mrf.mxu1 }
 0x48e   : > { %v7754_v59 = vadd.f32 %v7753_v36, %v7712_v41  ;;  %v7714_v16 = vpop.f32.mrf.mxu0 }
 0x48f   : > { %v7755_v17 = vpop.f32.mrf.mxu1 }
 0x490   : > { %v7716_v18 = vpop.f32.mrf.mxu0  ;;  %v7756_v55 = vadd.f32 %v7755_v17, %v7714_v16 }
 0x491   : > { %v7757_v20 = vpop.f32.mrf.mxu1 }
 0x492   : > { %v7717_v8 = vpop.f32.mrf.mxu0 }
 0x493   : > { %v7758_v33 = vpop.f32.mrf.mxu1 }
 0x4cc   : > { %v7794_v2 = vpop.f32.mrf.mxu0 }
 0x4cd   : > { %v7835_v42 = vpop.f32.mrf.mxu1  ;;  %v7795_v9 = vadd.f32 %v7794_v2, %v7754_v59 }
 0x4ce   : > { %v7796_v56 = vpop.f32.mrf.mxu0 }
 0x4cf   : > { %v7837_v43 = vpop.f32.mrf.mxu1  ;;  %v7836_v21 = vadd.f32 %v7835_v42, %v7795_v9  ;;  %v7797_v24 = vadd.f32 %v7796_v56, %v7756_v55 }
 0x4d0   : > { %v7798_v25 = vpop.f32.mrf.mxu0 }
 0x4d1   : > { %v7839_v46 = vpop.f32.mrf.mxu1  ;;  %v15168_v52 = vadd.f32 %v7836_v21, %v14972_v31  ;;  %v7838_v29 = vadd.f32 %v7837_v43, %v7797_v24 }
 0x4d2   : > { %v7799_v30 = vpop.f32.mrf.mxu0 }
 0x4d3   : > { %v7840_v28 = vpop.f32.mrf.mxu1  ;;  %v15171_v50 = vadd.f32 %v7838_v29, %v14987_v19  ;;  %v8008_v60 = vmul.f32 %v15168_v52, %v15168_v52 }
 0x4d5   : > { %v8009_v3 = vmul.f32 %v15171_v50, %v15171_v50  ;;  %10132 = vmatprep.subr.msk.mxu1 %vm7851_vm0, %v15171_v50 }
 0x4d6   : > { %10133 = vmatpush1.msk.msra.mxu1 %vm7851_vm0, %v15168_v52 }
 0x4d7   : > { %10134 = vmatmul.mubr.msk.f32.vlgmr.msra.gmra.mxu1 %vm7847_vm1, %v7846_v35  ;;  %10138 = vmatprep.subr.msk.mxu1 %vm7851_vm0, %v8009_v3 }
 0x4d8   : > { %10139 = vmatpush1.msk.msra.mxu1 %vm7851_vm0, %v8008_v60  ;;  %8157 = vmatprep.mubr.f32.mxu1 %v11722_v13 }
 0x4db   : > { %10140 = vmatmul.mubr.msk.f32.vlgmr.msra.gmra.mxu1 %vm7847_vm1, %v7846_v35 }
 0x517   : > { %v7930_v31 = vpop.f32.mrf.mxu0 }
 0x518   : > { %v8164_v19 = vmul.f32 0.25, %v7930_v31 }
 0x519   : > { %v7932_v14 = vpop.f32.mrf.mxu0 }
 0x51a   : > { %v8172_v10 = vmul.f32 %v8164_v19, %v8164_v19  ;;  %v8165_v34 = vmul.f32 0.25, %v7932_v14  ;;  %v8187_v48 = vrot.slane %v8164_v19, %v8186_v32 }
 0x51b   : > { %v8088_v0 = vpop.f32.mrf.mxu0 }
 0x51c   : > { %v8173_v1 = vmul.f32 %v8165_v34, %v8165_v34  ;;  %v8168_v62 = vmul.f32 0.25, %v8088_v0  ;;  %v8191_v47 = vrot.slane %v8165_v34, %v8186_v32  ;;  %v8200_v54 = vsub.f32 %v15146_v6, %v8187_v48 }
 0x51d   : > { %v8090_v38 = vpop.f32.mrf.mxu0 }
 0x51e   : > { %v8176_v39 = vsub.f32 %v8168_v62, %v8172_v10  ;;  %v8169_v22 = vmul.f32 0.25, %v8090_v38  ;;  %v8201_v57 = vsub.f32 %v15149_v7, %v8191_v47 }
 0x520   : > { %v8180_v12 = vmax.f32 %v8176_v39, 0.0  ;;  %v8177_v23 = vsub.f32 %v8169_v22, %v8173_v1 }
 0x522   : > { %v8204_v51 = vadd.f32 1e-05, %v8180_v12  ;;  %v8181_v44 = vmax.f32 %v8177_v23, 0.0 }
 0x524   : > { %11702 = vrsqrt.f32 %v8204_v51  ;;  %v8205_v13 = vadd.f32 1e-05, %v8181_v44 }
 0x526   : > { %11704 = vrsqrt.f32 %v8205_v13 }
 0x531   : > { %v11703_v37 = vpop.eup %11702 }
 0x532   : > { %v8215_v27 = vrot.slane %v11703_v37, %v8186_v32 }
 0x533   : > { %v11705_v53 = vpop.eup %11704 }
 0x534   : > { %v8228_v15 = vmul.f32 %v8215_v27, %v8200_v54  ;;  %v8219_v58 = vrot.slane %v11705_v53, %v8186_v32 }
 0x536   : > { %v8232_v61 = vmul.f32 0.01, %v8228_v15  ;;  %v8229_v5 = vmul.f32 %v8219_v58, %v8201_v57 }
 0x538   : > { %v8233_v40 = vmul.f32 0.01, %v8229_v5  ;;  %v8236_v63 = vmax.f32 %v8228_v15, %v8232_v61 }
 0x53a   : > { %v8237_v11 = vmax.f32 %v8229_v5, %v8233_v40 }
 0x53c   : > { %v10146_v35 = vpack.c.bf16 %v8237_v11, %v8236_v63 }
 0x53e   : > { %8256 = vst [vmem:[%s15192_s14] sm:$0x77] %v10146_v35 }
 0x597   : > { %v8001_v6 = vpop.f32.mrf.mxu1 }
 0x598   : > { %v8166_v26 = vmul.f32 0.25, %v8001_v6 }
 0x599   : > { %v8003_v49 = vpop.f32.mrf.mxu1 }
 0x59a   : > { %v8167_v7 = vmul.f32 0.25, %v8003_v49  ;;  %v8174_v36 = vmul.f32 %v8166_v26, %v8166_v26  ;;  %v8195_v9 = vrot.slane %v8166_v26, %v8186_v32 }
 0x59b   : > { %v8159_v41 = vpop.f32.mrf.mxu1 }
 0x59c   : > { %v8170_v59 = vmul.f32 0.25, %v8159_v41  ;;  %v8175_v17 = vmul.f32 %v8167_v7, %v8167_v7  ;;  %v8199_v56 = vrot.slane %v8167_v7, %v8186_v32  ;;  %v8202_v21 = vsub.f32 %v15168_v52, %v8195_v9 }
 0x59d   : > { %v8161_v16 = vpop.f32.mrf.mxu1 }
 0x59e   : > { %v8178_v18 = vsub.f32 %v8170_v59, %v8174_v36  ;;  %v8171_v20 = vmul.f32 0.25, %v8161_v16  ;;  %v8203_v46 = vsub.f32 %v15171_v50, %v8199_v56 }
 0x5a0   : > { %v8182_v8 = vmax.f32 %v8178_v18, 0.0  ;;  %v8179_v33 = vsub.f32 %v8171_v20, %v8175_v17 }
 0x5a2   : > { %v8206_v2 = vadd.f32 1e-05, %v8182_v8  ;;  %v8183_v42 = vmax.f32 %v8179_v33, 0.0 }
 0x5a4   : > { %11706 = vrsqrt.f32 %v8206_v2  ;;  %v8207_v55 = vadd.f32 1e-05, %v8183_v42 }
 0x5a6   : > { %11708 = vrsqrt.f32 %v8207_v55 }
 0x5b1   : > { %v11707_v43 = vpop.eup %11706 }
 0x5b2   : > { %v8223_v24 = vrot.slane %v11707_v43, %v8186_v32 }
 0x5b3   : > { %v11709_v25 = vpop.eup %11708 }
 0x5b4   : > { %v8230_v29 = vmul.f32 %v8223_v24, %v8202_v21  ;;  %v8227_v30 = vrot.slane %v11709_v25, %v8186_v32 }
 0x5b6   : > { %v8234_v28 = vmul.f32 0.01, %v8230_v29  ;;  %v8231_v3 = vmul.f32 %v8227_v30, %v8203_v46 }
 0x5b8   : > { %v8235_v60 = vmul.f32 0.01, %v8231_v3  ;;  %v8238_v31 = vmax.f32 %v8230_v29, %v8234_v28 }
 0x5ba   : > { %v8239_v19 = vmax.f32 %v8231_v3, %v8235_v60 }
 0x5bc   : > { %v10147_v14 = vpack.c.bf16 %v8239_v19, %v8238_v31 }
 0x5be   : > { %8257 = vst [vmem:[%s15192_s14 + $0x8] sm:$0x77] %v10147_v14 }
 0x5bf PF: > { %s13_s12 = sadd.s32 1, %s11720_s12  }
 0x5c0   : > { %p10_p4 = scmp.ge.s32.totalorder %s13_s12, 4  }
 0x5c2   :  { %12 = sbr.rel (!%p10_p4) target bundleno = 1 (0x1), region = 65 }

</bundles_post_ra>
